<compile_context>
chip_gen: v5e
topology: v5e:2x2
jax: 0.10.0
libtpu: 0.0.40
codegen_flags: <defaults>
</compile_context>

<pallas_src>
from functools import partial

import jax
import jax.numpy as jnp
from jax.experimental import pallas as pl
from jax.experimental.pallas import tpu as pltpu

EPS = 1e-5


def _round_up(v, m):
    return -(-v // m) * m


# --------------------------- fused residual-block kernel -----------------------------
def _residual_kernel(p1_ref, w_ref, o_ref, ybig_ref, *,
                     Cin, H, W, pad, K1p, use_proj):
    # p1_ref:   (M, K1p)         conv1 im2col patches (K1p = round_up(9*Cin, 8))
    # w_ref:    (R, Cp2)         packed parameters:
    #                              rows [0, K1p)          conv1 weight (im2col layout)
    #                              rows [K1p, K1p+9*Cp2)  conv2 weight, tap-major blocks
    #                              rows [sbase, sbase+5)  g1, bt1, g2, bt2, bsk
    #                              rows [sbase+8, +Cin)   1x1 projection weight
    # o_ref:    (M, Cp2)         output (real channels in lanes [0, Cout))
    # ybig_ref: (M + 2*pad, Cp2) scratch: zero-padded flat BN1+ReLU activation
    M, Cp2 = o_ref.shape
    K2 = 9 * Cp2
    sbase = K1p + K2
    inv_m = 1.0 / M

    def batchnorm(z, g, bt):
        # One pass: sum and sum-of-squares together.  Padded lanes stay exactly 0
        # because g / bt are zero-padded there.
        mean = jnp.sum(z, axis=0, keepdims=True) * inv_m
        ex2 = jnp.sum(z * z, axis=0, keepdims=True) * inv_m
        var = ex2 - mean * mean
        return (z - mean) * jax.lax.rsqrt(var + EPS) * g + bt

    g1 = w_ref[sbase + 0:sbase + 1, :]
    bt1 = w_ref[sbase + 1:sbase + 2, :]
    g2 = w_ref[sbase + 2:sbase + 3, :]
    bt2 = w_ref[sbase + 3:sbase + 4, :]
    bsk = w_ref[sbase + 4:sbase + 5, :]

    # ---- conv1: one im2col matmul (K = 9*Cin zero-padded to K1p) ----
    p1 = p1_ref[...]
    y = jnp.dot(p1, w_ref[0:K1p, :], preferred_element_type=jnp.float32)   # (M, Cp2)
    # conv bias omitted: exactly cancelled by the batch-stat BN that follows.
    y = jnp.maximum(batchnorm(y, g1, bt1), 0.0)                            # BN1 + ReLU

    # ---- conv2: zero-padded flat scratch + 9 masked shifted taps -> accumulating dots
    zeros_pad = jnp.zeros((pad, Cp2), jnp.float32)
    ybig_ref[0:pad, :] = zeros_pad                     # aligned stores (pad % 8 == 0)
    ybig_ref[pad + M:pad + M + pad, :] = zeros_pad
    ybig_ref[pad:pad + M, :] = y

    # Border masks from iota (no mask input DMA).
    idx = jax.lax.broadcasted_iota(jnp.int32, (M, 1), 0)
    if (W & (W - 1)) == 0 and (H & (H - 1)) == 0:
        ww = idx & (W - 1)
        hh = (idx >> (W.bit_length() - 1)) & (H - 1)
    else:
        # TODO(synk): non-power-of-2 H/W relies on int32 vector // and % lowering.
        ww = idx % W
        hh = (idx // W) % H
    not_top = hh > 0
    not_bot = hh < H - 1
    not_left = ww > 0
    not_right = ww < W - 1

    y2 = None
    for kh in range(3):
        for kw in range(3):
            dh, dw = kh - 1, kw - 1
            off = dh * W + dw
            tap = ybig_ref[pad + off:pad + off + M, :]          # (M, Cp2)
            ok = None
            if dh == -1:
                ok = not_top
            elif dh == 1:
                ok = not_bot
            if dw == -1:
                ok = not_left if ok is None else (ok & not_left)
            elif dw == 1:
                ok = not_right if ok is None else (ok & not_right)
            if ok is not None:
                tap = jnp.where(ok, tap, 0.0)                   # zero out-of-image rows
            t = kh * 3 + kw
            w2t = w_ref[K1p + t * Cp2:K1p + (t + 1) * Cp2, :]   # (Cp2, Cp2), 8-aligned
            d = jnp.dot(tap, w2t, preferred_element_type=jnp.float32)
            y2 = d if y2 is None else y2 + d                    # (M, Cp2)

    # ---- skip path ----
    if use_proj:
        xc = p1[:, 4 * Cin:5 * Cin]                             # center tap == input x
        wsk = w_ref[sbase + 8:sbase + 8 + Cin, :]               # (Cin, Cp2)
        skip = jnp.dot(xc, wsk, preferred_element_type=jnp.float32) + bsk
    else:
        # Identity skip without an MXU eye-matmul: take a Cp2-wide window that starts at
        # the center tap and lane-mask everything past the real Cin channels.
        xw = p1[:, 4 * Cin:4 * Cin + Cp2]                       # (M, Cp2)
        lane = jax.lax.broadcasted_iota(jnp.int32, (M, Cp2), 1)
        skip = jnp.where(lane < Cin, xw, 0.0)

    # ---- BN2 + add + ReLU ----
    o_ref[...] = jnp.maximum(batchnorm(y2, g2, bt2) + skip, 0.0).astype(o_ref.dtype)


# ----------------------------------- Residual forward ---------------------------------
@partial(jax.jit, static_argnames=("use_1x1conv",))
def residual_forward(x_nchw, params, use_1x1conv=False):
    x = jnp.transpose(x_nchw, (0, 2, 3, 1)).astype(jnp.float32)   # NCHW -> NHWC (tiny)
    N, H, W, Cin = x.shape
    Cout = params["w1"].shape[-1]
    Cp2 = _round_up(Cout, 8)              # pack channels to 8-aligned REAL width, not 128
    M = N * H * W
    PAD = _round_up(W + 1, 8)             # flat-scratch halo, 8-aligned
    K1 = 9 * Cin
    K1p = _round_up(K1, 8)
    K2 = 9 * Cp2

    # --- XLA-side prep on tiny tensors (constant-folded / fused by XLA) ---
    # TODO(synk): at larger H*W build conv1 patches in-kernel from raw x (same
    #             shifted-slice trick as conv2) instead of this 9x host-side im2col.
    xp = jnp.pad(x, ((0, 0), (1, 1), (1, 1), (0, 0)))
    cols = [xp[:, kh:kh + H, kw:kw + W, :] for kh in range(3) for kw in range(3)]
    patches1 = jnp.concatenate(cols, axis=-1).reshape(M, K1)
    patches1 = jnp.pad(patches1, ((0, 0), (0, K1p - K1)))

    def pad_last(a, target):
        pw = [(0, 0)] * (a.ndim - 1) + [(0, target - a.shape[-1])]
        return jnp.pad(a, pw)

    w1m = pad_last(params["w1"], Cp2).reshape(K1, Cp2)
    w1m = jnp.pad(w1m, ((0, K1p - K1), (0, 0)))                   # (K1p, Cp2)
    w2p = pad_last(params["w2"], Cp2)                             # (3,3,Cout,Cp2)
    w2p = jnp.pad(w2p, ((0, 0), (0, 0), (0, Cp2 - Cout), (0, 0))) # pad in-channels
    w2m = w2p.reshape(K2, Cp2)

    if use_1x1conv:
        wsk = pad_last(params["w3"], Cp2)                         # (Cin, Cp2)
        bsk = pad_last(params["b3"], Cp2)
    else:
        assert Cin == Cout, "identity skip requires in_channels == out_channels"
        assert 4 * Cin + Cp2 <= K1p                               # identity window fits
        wsk = jnp.zeros((Cin, Cp2), jnp.float32)                  # unused rows
        bsk = jnp.zeros((Cp2,), jnp.float32)

    scal = jnp.stack([pad_last(params["g1"], Cp2),
                      pad_last(params["bt1"], Cp2),
                      pad_last(params["g2"], Cp2),
                      pad_last(params["bt2"], Cp2),
                      bsk], axis=0)                               # (5, Cp2)
    scal = jnp.pad(scal, ((0, 3), (0, 0)))                        # (8, Cp2), 8-aligned
    w_all = jnp.concatenate([w1m, w2m, scal, wsk], axis=0)        # ONE packed param DMA

    out2d = pl.pallas_call(
        partial(_residual_kernel, Cin=Cin, H=H, W=W, pad=PAD, K1p=K1p,
                use_proj=use_1x1conv),
        out_shape=jax.ShapeDtypeStruct((M, Cp2), jnp.float32),
        scratch_shapes=[pltpu.VMEM((M + 2 * PAD, Cp2), jnp.float32)],
    )(patches1, w_all)

    out = out2d[:, :Cout].reshape(N, H, W, Cout)
    return jnp.transpose(out, (0, 3, 1, 2))                       # NHWC -> NCHW


# -------------------------------- params / reference ----------------------------------
def init_params(key, in_c, out_c, use_1x1conv):
    ks = jax.random.split(key, 8)
    s1 = 1.0 / jnp.sqrt(in_c * 9.0)
    s2 = 1.0 / jnp.sqrt(out_c * 9.0)
    p = {
        "w1": jax.random.normal(ks[0], (3, 3, in_c, out_c), jnp.float32) * s1,
        "b1": jax.random.normal(ks[1], (out_c,), jnp.float32) * s1,   # cancelled by BN
        "w2": jax.random.normal(ks[2], (3, 3, out_c, out_c), jnp.float32) * s2,
        "b2": jax.random.normal(ks[3], (out_c,), jnp.float32) * s2,   # cancelled by BN
        "g1": 1.0 + 0.1 * jax.random.normal(ks[4], (out_c,), jnp.float32),
        "bt1": 0.1 * jax.random.normal(ks[5], (out_c,), jnp.float32),
        "g2": jnp.ones((out_c,), jnp.float32),
        "bt2": jnp.zeros((out_c,), jnp.float32),
    }
    if use_1x1conv:
        s3 = 1.0 / jnp.sqrt(float(in_c))
        p["w3"] = jax.random.normal(ks[6], (in_c, out_c), jnp.float32) * s3
        p["b3"] = jax.random.normal(ks[7], (out_c,), jnp.float32) * s3
    return p


def residual_reference(x_nchw, params, use_1x1conv=False):
    x = jnp.transpose(x_nchw, (0, 2, 3, 1)).astype(jnp.float32)
    dn = ("NHWC", "HWIO", "NHWC")

    def conv(z, w, b):
        return jax.lax.conv_general_dilated(z, w, (1, 1), "SAME",
                                            dimension_numbers=dn) + b

    def bn(z, g, bt):
        m = jnp.mean(z, axis=(0, 1, 2), keepdims=True)
        v = jnp.mean((z - m) ** 2, axis=(0, 1, 2), keepdims=True)
        return (z - m) * jax.lax.rsqrt(v + EPS) * g + bt

    y = jax.nn.relu(bn(conv(x, params["w1"], params["b1"]), params["g1"], params["bt1"]))
    y = bn(conv(y, params["w2"], params["b2"]), params["g2"], params["bt2"])
    skip = x
    if use_1x1conv:
        w3 = params["w3"].reshape(1, 1, *params["w3"].shape)
        skip = jax.lax.conv_general_dilated(x, w3, (1, 1), "VALID",
                                            dimension_numbers=dn) + params["b3"]
    return jnp.transpose(jax.nn.relu(y + skip), (0, 3, 1, 2))


if __name__ == "__main__":
    x = jax.random.normal(jax.random.PRNGKey(0), (2, 4, 16, 16), jnp.float32)  # NCHW

    # Case 1: Residual(4, 4) — identity skip (module defaults).
    p1 = init_params(jax.random.PRNGKey(42), 4, 4, use_1x1conv=False)
    y1 = jax.block_until_ready(residual_forward(x, p1, use_1x1conv=False))
    r1 = residual_reference(x, p1, use_1x1conv=False)
    assert y1.shape == (2, 4, 16, 16)
    assert jnp.allclose(y1, r1, atol=1e-3, rtol=1e-3), float(jnp.max(jnp.abs(y1 - r1)))

    # Case 2: Residual(4, 8, use_1x1conv=True) — projection skip.
    p2 = init_params(jax.random.PRNGKey(7), 4, 8, use_1x1conv=True)
    y2 = jax.block_until_ready(residual_forward(x, p2, use_1x1conv=True))
    r2 = residual_reference(x, p2, use_1x1conv=True)
    assert y2.shape == (2, 8, 16, 16)
    assert jnp.allclose(y2, r2, atol=1e-3, rtol=1e-3), float(jnp.max(jnp.abs(y2 - r2)))

    print("KERNEL_OK")
</pallas_src>

<mosaic_0001>
module attributes {stable_mosaic.version = 11 : i64} {
  func.func @_residual_kernel(%arg0: memref<512x40xf32, #tpu.memory_space<vmem>>, %arg1: memref<124x8xf32, #tpu.memory_space<vmem>>, %arg2: memref<512x8xf32, #tpu.memory_space<vmem>>, %arg3: memref<560x8xf32, #tpu.memory_space<vmem>>) attributes {dimension_semantics = [], scalar_prefetch = 0 : i64, scratch_operands = 1 : i64, tpu.core_type = #tpu.core_type<tc>} {
    %c112 = arith.constant 112 : index
    %c0 = arith.constant 0 : index
    %0 = vector.load %arg1[%c112, %c0] : memref<124x8xf32, #tpu.memory_space<vmem>>, vector<1x8xf32>
    %c113 = arith.constant 113 : index
    %c0_0 = arith.constant 0 : index
    %1 = vector.load %arg1[%c113, %c0_0] : memref<124x8xf32, #tpu.memory_space<vmem>>, vector<1x8xf32>
    %c114 = arith.constant 114 : index
    %c0_1 = arith.constant 0 : index
    %2 = vector.load %arg1[%c114, %c0_1] : memref<124x8xf32, #tpu.memory_space<vmem>>, vector<1x8xf32>
    %c115 = arith.constant 115 : index
    %c0_2 = arith.constant 0 : index
    %3 = vector.load %arg1[%c115, %c0_2] : memref<124x8xf32, #tpu.memory_space<vmem>>, vector<1x8xf32>
    %c0_3 = arith.constant 0 : index
    %c0_4 = arith.constant 0 : index
    %4 = vector.load %arg0[%c0_3, %c0_4] : memref<512x40xf32, #tpu.memory_space<vmem>>, vector<512x40xf32>
    %c0_5 = arith.constant 0 : index
    %c0_6 = arith.constant 0 : index
    %5 = vector.load %arg1[%c0_5, %c0_6] : memref<124x8xf32, #tpu.memory_space<vmem>>, vector<40x8xf32>
    %cst = arith.constant dense<0.000000e+00> : vector<512x8xf32>
    %6 = tpu.matmul %4, %5, %cst {dimension_numbers = #tpu.dot_dimension_numbers<[1], [0], [0], [1], [0, 0, 1, 1], [], []>} : vector<512x40xf32>, vector<40x8xf32>, vector<512x8xf32> -> vector<512x8xf32>
    %cst_7 = arith.constant dense<0.000000e+00> : vector<8xf32>
    %7 = vector.multi_reduction <add>, %6, %cst_7 [0] : vector<512x8xf32> to vector<8xf32>
    %8 = vector.shape_cast %7 : vector<8xf32> to vector<1x8xf32>
    %cst_8 = arith.constant 0.001953125 : f32
    %9 = vector.broadcast %cst_8 : f32 to vector<1x8xf32>
    %10 = arith.mulf %8, %9 : vector<1x8xf32>
    %11 = arith.mulf %6, %6 : vector<512x8xf32>
    %cst_9 = arith.constant dense<0.000000e+00> : vector<8xf32>
    %12 = vector.multi_reduction <add>, %11, %cst_9 [0] : vector<512x8xf32> to vector<8xf32>
    %13 = vector.shape_cast %12 : vector<8xf32> to vector<1x8xf32>
    %cst_10 = arith.constant 0.001953125 : f32
    %14 = vector.broadcast %cst_10 : f32 to vector<1x8xf32>
    %15 = arith.mulf %13, %14 : vector<1x8xf32>
    %16 = arith.mulf %10, %10 : vector<1x8xf32>
    %17 = arith.subf %15, %16 : vector<1x8xf32>
    %18 = vector.broadcast %10 : vector<1x8xf32> to vector<512x8xf32>
    %19 = arith.subf %6, %18 : vector<512x8xf32>
    %cst_11 = arith.constant 9.99999974E-6 : f32
    %20 = vector.broadcast %cst_11 : f32 to vector<1x8xf32>
    %21 = arith.addf %17, %20 : vector<1x8xf32>
    %22 = math.rsqrt %21 : vector<1x8xf32>
    %23 = vector.broadcast %22 : vector<1x8xf32> to vector<512x8xf32>
    %24 = arith.mulf %19, %23 : vector<512x8xf32>
    %25 = vector.broadcast %0 : vector<1x8xf32> to vector<512x8xf32>
    %26 = arith.mulf %24, %25 : vector<512x8xf32>
    %27 = vector.broadcast %1 : vector<1x8xf32> to vector<512x8xf32>
    %28 = arith.addf %26, %27 : vector<512x8xf32>
    %cst_12 = arith.constant 0.000000e+00 : f32
    %29 = vector.broadcast %cst_12 : f32 to vector<512x8xf32>
    %30 = arith.maximumf %28, %29 : vector<512x8xf32>
    %cst_13 = arith.constant 0.000000e+00 : f32
    %31 = vector.broadcast %cst_13 : f32 to vector<24x8xf32>
    %c0_14 = arith.constant 0 : index
    %c0_15 = arith.constant 0 : index
    %32 = vector.load %arg3[%c0_14, %c0_15] : memref<560x8xf32, #tpu.memory_space<vmem>>, vector<24x8xf32>
    tpu.vector_store %arg3[%c0_14, %c0_15], %31 {strides = array<i32>} : memref<560x8xf32, #tpu.memory_space<vmem>>, vector<24x8xf32>,
    %c536 = arith.constant 536 : index
    %c0_16 = arith.constant 0 : index
    %33 = vector.load %arg3[%c536, %c0_16] : memref<560x8xf32, #tpu.memory_space<vmem>>, vector<24x8xf32>
    tpu.vector_store %arg3[%c536, %c0_16], %31 {strides = array<i32>} : memref<560x8xf32, #tpu.memory_space<vmem>>, vector<24x8xf32>,
    %c24 = arith.constant 24 : index
    %c0_17 = arith.constant 0 : index
    %34 = vector.load %arg3[%c24, %c0_17] : memref<560x8xf32, #tpu.memory_space<vmem>>, vector<512x8xf32>
    tpu.vector_store %arg3[%c24, %c0_17], %30 {strides = array<i32>} : memref<560x8xf32, #tpu.memory_space<vmem>>, vector<512x8xf32>,
    %35 = tpu.iota {dimensions = array<i32: 0>} : vector<512x1xi32>
    %c15_i32 = arith.constant 15 : i32
    %36 = vector.broadcast %c15_i32 : i32 to vector<512x1xi32>
    %37 = arith.andi %35, %36 : vector<512x1xi32>
    %c4_i32 = arith.constant 4 : i32
    %38 = vector.broadcast %c4_i32 : i32 to vector<512x1xi32>
    %39 = arith.shrsi %35, %38 : vector<512x1xi32>
    %c15_i32_18 = arith.constant 15 : i32
    %40 = vector.broadcast %c15_i32_18 : i32 to vector<512x1xi32>
    %41 = arith.andi %39, %40 : vector<512x1xi32>
    %c0_i32 = arith.constant 0 : i32
    %42 = vector.broadcast %c0_i32 : i32 to vector<512x1xi32>
    %43 = arith.cmpi sgt, %41, %42 : vector<512x1xi32>
    %c15_i32_19 = arith.constant 15 : i32
    %44 = vector.broadcast %c15_i32_19 : i32 to vector<512x1xi32>
    %45 = arith.cmpi slt, %41, %44 : vector<512x1xi32>
    %c0_i32_20 = arith.constant 0 : i32
    %46 = vector.broadcast %c0_i32_20 : i32 to vector<512x1xi32>
    %47 = arith.cmpi sgt, %37, %46 : vector<512x1xi32>
    %c15_i32_21 = arith.constant 15 : i32
    %48 = vector.broadcast %c15_i32_21 : i32 to vector<512x1xi32>
    %49 = arith.cmpi slt, %37, %48 : vector<512x1xi32>
    %c7 = arith.constant 7 : index
    %c0_22 = arith.constant 0 : index
    %50 = vector.load %arg3[%c7, %c0_22] : memref<560x8xf32, #tpu.memory_space<vmem>>, vector<512x8xf32>
    %51 = arith.andi %43, %47 : vector<512x1xi1>
    %cst_23 = arith.constant 0.000000e+00 : f32
    %52 = vector.shape_cast %51 : vector<512x1xi1> to vector<512x1xi1>
    %53 = vector.broadcast %52 : vector<512x1xi1> to vector<512x8xi1>
    %54 = vector.broadcast %cst_23 : f32 to vector<512x8xf32>
    %55 = arith.select %53, %50, %54 : vector<512x8xi1>, vector<512x8xf32>
    %c40 = arith.constant 40 : index
    %c0_24 = arith.constant 0 : index
    %56 = vector.load %arg1[%c40, %c0_24] : memref<124x8xf32, #tpu.memory_space<vmem>>, vector<8x8xf32>
    %cst_25 = arith.constant dense<0.000000e+00> : vector<512x8xf32>
    %57 = tpu.matmul %55, %56, %cst_25 {dimension_numbers = #tpu.dot_dimension_numbers<[1], [0], [0], [1], [0, 0, 1, 1], [], []>} : vector<512x8xf32>, vector<8x8xf32>, vector<512x8xf32> -> vector<512x8xf32>
    %c8 = arith.constant 8 : index
    %c0_26 = arith.constant 0 : index
    %58 = vector.load %arg3[%c8, %c0_26] : memref<560x8xf32, #tpu.memory_space<vmem>>, vector<512x8xf32>
    %cst_27 = arith.constant 0.000000e+00 : f32
    %59 = vector.shape_cast %43 : vector<512x1xi1> to vector<512x1xi1>
    %60 = vector.broadcast %59 : vector<512x1xi1> to vector<512x8xi1>
    %61 = vector.broadcast %cst_27 : f32 to vector<512x8xf32>
    %62 = arith.select %60, %58, %61 : vector<512x8xi1>, vector<512x8xf32>
    %c48 = arith.constant 48 : index
    %c0_28 = arith.constant 0 : index
    %63 = vector.load %arg1[%c48, %c0_28] : memref<124x8xf32, #tpu.memory_space<vmem>>, vector<8x8xf32>
    %cst_29 = arith.constant dense<0.000000e+00> : vector<512x8xf32>
    %64 = tpu.matmul %62, %63, %cst_29 {dimension_numbers = #tpu.dot_dimension_numbers<[1], [0], [0], [1], [0, 0, 1, 1], [], []>} : vector<512x8xf32>, vector<8x8xf32>, vector<512x8xf32> -> vector<512x8xf32>
    %65 = arith.addf %57, %64 : vector<512x8xf32>
    %c9 = arith.constant 9 : index
    %c0_30 = arith.constant 0 : index
    %66 = vector.load %arg3[%c9, %c0_30] : memref<560x8xf32, #tpu.memory_space<vmem>>, vector<512x8xf32>
    %67 = arith.andi %43, %49 : vector<512x1xi1>
    %cst_31 = arith.constant 0.000000e+00 : f32
    %68 = vector.shape_cast %67 : vector<512x1xi1> to vector<512x1xi1>
    %69 = vector.broadcast %68 : vector<512x1xi1> to vector<512x8xi1>
    %70 = vector.broadcast %cst_31 : f32 to vector<512x8xf32>
    %71 = arith.select %69, %66, %70 : vector<512x8xi1>, vector<512x8xf32>
    %c56 = arith.constant 56 : index
    %c0_32 = arith.constant 0 : index
    %72 = vector.load %arg1[%c56, %c0_32] : memref<124x8xf32, #tpu.memory_space<vmem>>, vector<8x8xf32>
    %cst_33 = arith.constant dense<0.000000e+00> : vector<512x8xf32>
    %73 = tpu.matmul %71, %72, %cst_33 {dimension_numbers = #tpu.dot_dimension_numbers<[1], [0], [0], [1], [0, 0, 1, 1], [], []>} : vector<512x8xf32>, vector<8x8xf32>, vector<512x8xf32> -> vector<512x8xf32>
    %74 = arith.addf %65, %73 : vector<512x8xf32>
    %c23 = arith.constant 23 : index
    %c0_34 = arith.constant 0 : index
    %75 = vector.load %arg3[%c23, %c0_34] : memref<560x8xf32, #tpu.memory_space<vmem>>, vector<512x8xf32>
    %cst_35 = arith.constant 0.000000e+00 : f32
    %76 = vector.shape_cast %47 : vector<512x1xi1> to vector<512x1xi1>
    %77 = vector.broadcast %76 : vector<512x1xi1> to vector<512x8xi1>
    %78 = vector.broadcast %cst_35 : f32 to vector<512x8xf32>
    %79 = arith.select %77, %75, %78 : vector<512x8xi1>, vector<512x8xf32>
    %c64 = arith.constant 64 : index
    %c0_36 = arith.constant 0 : index
    %80 = vector.load %arg1[%c64, %c0_36] : memref<124x8xf32, #tpu.memory_space<vmem>>, vector<8x8xf32>
    %cst_37 = arith.constant dense<0.000000e+00> : vector<512x8xf32>
    %81 = tpu.matmul %79, %80, %cst_37 {dimension_numbers = #tpu.dot_dimension_numbers<[1], [0], [0], [1], [0, 0, 1, 1], [], []>} : vector<512x8xf32>, vector<8x8xf32>, vector<512x8xf32> -> vector<512x8xf32>
    %82 = arith.addf %74, %81 : vector<512x8xf32>
    %c24_38 = arith.constant 24 : index
    %c0_39 = arith.constant 0 : index
    %83 = vector.load %arg3[%c24_38, %c0_39] : memref<560x8xf32, #tpu.memory_space<vmem>>, vector<512x8xf32>
    %c72 = arith.constant 72 : index
    %c0_40 = arith.constant 0 : index
    %84 = vector.load %arg1[%c72, %c0_40] : memref<124x8xf32, #tpu.memory_space<vmem>>, vector<8x8xf32>
    %cst_41 = arith.constant dense<0.000000e+00> : vector<512x8xf32>
    %85 = tpu.matmul %83, %84, %cst_41 {dimension_numbers = #tpu.dot_dimension_numbers<[1], [0], [0], [1], [0, 0, 1, 1], [], []>} : vector<512x8xf32>, vector<8x8xf32>, vector<512x8xf32> -> vector<512x8xf32>
    %86 = arith.addf %82, %85 : vector<512x8xf32>
    %c25 = arith.constant 25 : index
    %c0_42 = arith.constant 0 : index
    %87 = vector.load %arg3[%c25, %c0_42] : memref<560x8xf32, #tpu.memory_space<vmem>>, vector<512x8xf32>
    %cst_43 = arith.constant 0.000000e+00 : f32
    %88 = vector.shape_cast %49 : vector<512x1xi1> to vector<512x1xi1>
    %89 = vector.broadcast %88 : vector<512x1xi1> to vector<512x8xi1>
    %90 = vector.broadcast %cst_43 : f32 to vector<512x8xf32>
    %91 = arith.select %89, %87, %90 : vector<512x8xi1>, vector<512x8xf32>
    %c80 = arith.constant 80 : index
    %c0_44 = arith.constant 0 : index
    %92 = vector.load %arg1[%c80, %c0_44] : memref<124x8xf32, #tpu.memory_space<vmem>>, vector<8x8xf32>
    %cst_45 = arith.constant dense<0.000000e+00> : vector<512x8xf32>
    %93 = tpu.matmul %91, %92, %cst_45 {dimension_numbers = #tpu.dot_dimension_numbers<[1], [0], [0], [1], [0, 0, 1, 1], [], []>} : vector<512x8xf32>, vector<8x8xf32>, vector<512x8xf32> -> vector<512x8xf32>
    %94 = arith.addf %86, %93 : vector<512x8xf32>
    %c39 = arith.constant 39 : index
    %c0_46 = arith.constant 0 : index
    %95 = vector.load %arg3[%c39, %c0_46] : memref<560x8xf32, #tpu.memory_space<vmem>>, vector<512x8xf32>
    %96 = arith.andi %45, %47 : vector<512x1xi1>
    %cst_47 = arith.constant 0.000000e+00 : f32
    %97 = vector.shape_cast %96 : vector<512x1xi1> to vector<512x1xi1>
    %98 = vector.broadcast %97 : vector<512x1xi1> to vector<512x8xi1>
    %99 = vector.broadcast %cst_47 : f32 to vector<512x8xf32>
    %100 = arith.select %98, %95, %99 : vector<512x8xi1>, vector<512x8xf32>
    %c88 = arith.constant 88 : index
    %c0_48 = arith.constant 0 : index
    %101 = vector.load %arg1[%c88, %c0_48] : memref<124x8xf32, #tpu.memory_space<vmem>>, vector<8x8xf32>
    %cst_49 = arith.constant dense<0.000000e+00> : vector<512x8xf32>
    %102 = tpu.matmul %100, %101, %cst_49 {dimension_numbers = #tpu.dot_dimension_numbers<[1], [0], [0], [1], [0, 0, 1, 1], [], []>} : vector<512x8xf32>, vector<8x8xf32>, vector<512x8xf32> -> vector<512x8xf32>
    %103 = arith.addf %94, %102 : vector<512x8xf32>
    %c40_50 = arith.constant 40 : index
    %c0_51 = arith.constant 0 : index
    %104 = vector.load %arg3[%c40_50, %c0_51] : memref<560x8xf32, #tpu.memory_space<vmem>>, vector<512x8xf32>
    %cst_52 = arith.constant 0.000000e+00 : f32
    %105 = vector.shape_cast %45 : vector<512x1xi1> to vector<512x1xi1>
    %106 = vector.broadcast %105 : vector<512x1xi1> to vector<512x8xi1>
    %107 = vector.broadcast %cst_52 : f32 to vector<512x8xf32>
    %108 = arith.select %106, %104, %107 : vector<512x8xi1>, vector<512x8xf32>
    %c96 = arith.constant 96 : index
    %c0_53 = arith.constant 0 : index
    %109 = vector.load %arg1[%c96, %c0_53] : memref<124x8xf32, #tpu.memory_space<vmem>>, vector<8x8xf32>
    %cst_54 = arith.constant dense<0.000000e+00> : vector<512x8xf32>
    %110 = tpu.matmul %108, %109, %cst_54 {dimension_numbers = #tpu.dot_dimension_numbers<[1], [0], [0], [1], [0, 0, 1, 1], [], []>} : vector<512x8xf32>, vector<8x8xf32>, vector<512x8xf32> -> vector<512x8xf32>
    %111 = arith.addf %103, %110 : vector<512x8xf32>
    %c41 = arith.constant 41 : index
    %c0_55 = arith.constant 0 : index
    %112 = vector.load %arg3[%c41, %c0_55] : memref<560x8xf32, #tpu.memory_space<vmem>>, vector<512x8xf32>
    %113 = arith.andi %45, %49 : vector<512x1xi1>
    %cst_56 = arith.constant 0.000000e+00 : f32
    %114 = vector.shape_cast %113 : vector<512x1xi1> to vector<512x1xi1>
    %115 = vector.broadcast %114 : vector<512x1xi1> to vector<512x8xi1>
    %116 = vector.broadcast %cst_56 : f32 to vector<512x8xf32>
    %117 = arith.select %115, %112, %116 : vector<512x8xi1>, vector<512x8xf32>
    %c104 = arith.constant 104 : index
    %c0_57 = arith.constant 0 : index
    %118 = vector.load %arg1[%c104, %c0_57] : memref<124x8xf32, #tpu.memory_space<vmem>>, vector<8x8xf32>
    %cst_58 = arith.constant dense<0.000000e+00> : vector<512x8xf32>
    %119 = tpu.matmul %117, %118, %cst_58 {dimension_numbers = #tpu.dot_dimension_numbers<[1], [0], [0], [1], [0, 0, 1, 1], [], []>} : vector<512x8xf32>, vector<8x8xf32>, vector<512x8xf32> -> vector<512x8xf32>
    %120 = arith.addf %111, %119 : vector<512x8xf32>
    %121 = vector.extract_strided_slice %4 {offsets = [0, 16], sizes = [512, 8], strides = [1, 1]} : vector<512x40xf32> to vector<512x8xf32>
    %122 = tpu.iota {dimensions = array<i32: 1>} : vector<512x8xi32>
    %c4_i32_59 = arith.constant 4 : i32
    %123 = vector.broadcast %c4_i32_59 : i32 to vector<512x8xi32>
    %124 = arith.cmpi slt, %122, %123 : vector<512x8xi32>
    %cst_60 = arith.constant 0.000000e+00 : f32
    %125 = vector.broadcast %cst_60 : f32 to vector<512x8xf32>
    %126 = arith.select %124, %121, %125 : vector<512x8xi1>, vector<512x8xf32>
    %cst_61 = arith.constant dense<0.000000e+00> : vector<8xf32>
    %127 = vector.multi_reduction <add>, %120, %cst_61 [0] : vector<512x8xf32> to vector<8xf32>
    %128 = vector.shape_cast %127 : vector<8xf32> to vector<1x8xf32>
    %cst_62 = arith.constant 0.001953125 : f32
    %129 = vector.broadcast %cst_62 : f32 to vector<1x8xf32>
    %130 = arith.mulf %128, %129 : vector<1x8xf32>
    %131 = arith.mulf %120, %120 : vector<512x8xf32>
    %cst_63 = arith.constant dense<0.000000e+00> : vector<8xf32>
    %132 = vector.multi_reduction <add>, %131, %cst_63 [0] : vector<512x8xf32> to vector<8xf32>
    %133 = vector.shape_cast %132 : vector<8xf32> to vector<1x8xf32>
    %cst_64 = arith.constant 0.001953125 : f32
    %134 = vector.broadcast %cst_64 : f32 to vector<1x8xf32>
    %135 = arith.mulf %133, %134 : vector<1x8xf32>
    %136 = arith.mulf %130, %130 : vector<1x8xf32>
    %137 = arith.subf %135, %136 : vector<1x8xf32>
    %138 = vector.broadcast %130 : vector<1x8xf32> to vector<512x8xf32>
    %139 = arith.subf %120, %138 : vector<512x8xf32>
    %cst_65 = arith.constant 9.99999974E-6 : f32
    %140 = vector.broadcast %cst_65 : f32 to vector<1x8xf32>
    %141 = arith.addf %137, %140 : vector<1x8xf32>
    %142 = math.rsqrt %141 : vector<1x8xf32>
    %143 = vector.broadcast %142 : vector<1x8xf32> to vector<512x8xf32>
    %144 = arith.mulf %139, %143 : vector<512x8xf32>
    %145 = vector.broadcast %2 : vector<1x8xf32> to vector<512x8xf32>
    %146 = arith.mulf %144, %145 : vector<512x8xf32>
    %147 = vector.broadcast %3 : vector<1x8xf32> to vector<512x8xf32>
    %148 = arith.addf %146, %147 : vector<512x8xf32>
    %149 = arith.addf %148, %126 : vector<512x8xf32>
    %cst_66 = arith.constant 0.000000e+00 : f32
    %150 = vector.broadcast %cst_66 : f32 to vector<512x8xf32>
    %151 = arith.maximumf %149, %150 : vector<512x8xf32>
    %c0_67 = arith.constant 0 : index
    %c0_68 = arith.constant 0 : index
    %152 = vector.load %arg2[%c0_67, %c0_68] : memref<512x8xf32, #tpu.memory_space<vmem>>, vector<512x8xf32>
    tpu.vector_store %arg2[%c0_67, %c0_68], %151 {strides = array<i32>} : memref<512x8xf32, #tpu.memory_space<vmem>>, vector<512x8xf32>,
    return
  }
}

</mosaic_0001>

<bundles_post_ra>
// kernel: residual_forward.1
= control target key start
LH: loop header
LB: loop body
LE: loop exit
PB: predicated region body
PF: predicated region fallthrough
CT: control target
= control target key end

     0   :  { %vm84_vm0 = vcmask 326656   ;;  %vm17311_vm1 = vcmask 64512   ;;  %s9946_s3 = smov 112   ;;  %s17230_s1 = inlined_call_operand.vmem [shape: f32[124,8], index: 1, kind: input, shape index: {}]   ;;  %s17231_s0 = inlined_call_operand.vmem [shape: f32[512,40], index: 0, kind: input, shape index: {}]   ;;  %s17232_s2 = inlined_call_operand.vmem [shape: f32[512,8], index: 2, kind: output, shape index: {}]  }
   0x1   :  { %v83_v0 = vld [vmem:[%s17230_s1 + $0x20] sm:$0xff]  ;;  %v82_v1 = vld [vmem:[%s17230_s1 + $0x18] sm:$0xff]  ;;  %v81_v2 = vld [vmem:[%s17230_s1 + $0x10] sm:$0xff] }
   0x2   :  { %288 = vmatpush.msra.mxu0 %v83_v0  ;;  %v80_v3 = vld [vmem:[%s17230_s1 + $0x8] sm:$0xff]  ;;  %v79_v4 = vld [vmem:[%s17230_s1] sm:$0xff]  ;;  %v17_v7 = vld [vmem:[%s17231_s0 + $0x10] sm:$0xff] }
   0x3   :  { %v15_v5 = vld [vmem:[%s17231_s0] sm:$0xff]  ;;  %v16_v6 = vld [vmem:[%s17231_s0 + $0x8] sm:$0xff]  ;;  %v18_v8 = vld [vmem:[%s17231_s0 + $0x18] sm:$0xff] }
   0x4   :  { %289 = vmatpush.msra.mxu0 %v82_v1  ;;  %v19_v9 = vld [vmem:[%s17231_s0 + $0x20] sm:$0xff]  ;;  %v20_v10 = vld [vmem:[%s17231_s0 + $0x28] sm:$0xff]  ;;  %v21_v11 = vld [vmem:[%s17231_s0 + $0x30] sm:$0xff] }
   0x5   :  { %v22_v12 = vld [vmem:[%s17231_s0 + $0x38] sm:$0xff]  ;;  %v23_v13 = vld [vmem:[%s17231_s0 + $0x40] sm:$0xff]  ;;  %v24_v14 = vld [vmem:[%s17231_s0 + $0x48] sm:$0xff] }
   0x6   :  { %290 = vmatpush.msra.mxu0 %v81_v2  ;;  %v25_v15 = vld [vmem:[%s17231_s0 + $0x50] sm:$0xff]  ;;  %v26_v16 = vld [vmem:[%s17231_s0 + $0x58] sm:$0xff]  ;;  %v27_v17 = vld [vmem:[%s17231_s0 + $0x60] sm:$0xff] }
   0x7   :  { %v28_v18 = vld [vmem:[%s17231_s0 + $0x68] sm:$0xff]  ;;  %v29_v19 = vld [vmem:[%s17231_s0 + $0x70] sm:$0xff]  ;;  %v30_v20 = vld [vmem:[%s17231_s0 + $0x78] sm:$0xff] }
   0x8   :  { %291 = vmatpush.msra.mxu0 %v80_v3  ;;  %v31_v22 = vld [vmem:[%s17231_s0 + $0x80] sm:$0xff]  ;;  %v32_v24 = vld [vmem:[%s17231_s0 + $0x88] sm:$0xff]  ;;  %v33_v26 = vld [vmem:[%s17231_s0 + $0x90] sm:$0xff] }
   0x9   :  { %v34_v28 = vld [vmem:[%s17231_s0 + $0x98] sm:$0xff]  ;;  %v35_v30 = vld [vmem:[%s17231_s0 + $0xa0] sm:$0xff]  ;;  %v36_v32 = vld [vmem:[%s17231_s0 + $0xa8] sm:$0xff] }
   0xa   :  { %292 = vmatpush.msra.mxu0 %v79_v4  ;;  %v37_v34 = vld [vmem:[%s17231_s0 + $0xb0] sm:$0xff]  ;;  %v38_v36 = vld [vmem:[%s17231_s0 + $0xb8] sm:$0xff]  ;;  %v39_v38 = vld [vmem:[%s17231_s0 + $0xc0] sm:$0xff] }
   0xb   :  { %9229 = vmatmul.msk.f32.vlgmr.msra.gmra.mxu0 %vm84_vm0, %v15_v5  ;;  %v40_v40 = vld [vmem:[%s17231_s0 + $0xc8] sm:$0xff]  ;;  %v41_v42 = vld [vmem:[%s17231_s0 + $0xd0] sm:$0xff]  ;;  %v42_v44 = vld [vmem:[%s17231_s0 + $0xd8] sm:$0xff] }
   0xc   :  { %v43_v46 = vld [vmem:[%s17231_s0 + $0xe0] sm:$0xff]  ;;  %v44_v48 = vld [vmem:[%s17231_s0 + $0xe8] sm:$0xff]  ;;  %v45_v50 = vld [vmem:[%s17231_s0 + $0xf0] sm:$0xff] }
   0xd   :  { %v46_v52 = vld [vmem:[%s17231_s0 + $0xf8] sm:$0xff]  ;;  %v47_v54 = vld [vmem:[%s17231_s0 + $0x100] sm:$0xff]  ;;  %v48_v56 = vld [vmem:[%s17231_s0 + $0x108] sm:$0xff] }
   0xe   :  { %v49_v58 = vld [vmem:[%s17231_s0 + $0x110] sm:$0xff]  ;;  %v50_v60 = vld [vmem:[%s17231_s0 + $0x118] sm:$0xff]  ;;  %v51_v62 = vld [vmem:[%s17231_s0 + $0x120] sm:$0xff] }
   0xf   :  { %v52_v0 = vld [vmem:[%s17231_s0 + $0x128] sm:$0xff]  ;;  %v53_v2 = vld [vmem:[%s17231_s0 + $0x130] sm:$0xff]  ;;  %v54_v4 = vld [vmem:[%s17231_s0 + $0x138] sm:$0xff] }
  0x13   :  { %9230 = vmatmul.msk.f32.gmra.mxu0 %vm84_vm0, %v16_v6  ;;  %v55_v6 = vld [vmem:[%s17231_s0 + $0x140] sm:$0xff] }
  0x1b   :  { %9231 = vmatmul.msk.f32.gmra.mxu0 %vm84_vm0, %v17_v7 }
  0x23   :  { %9232 = vmatmul.msk.f32.gmra.mxu0 %vm84_vm0, %v18_v8  ;;  %v56_v8 = vld [vmem:[%s17231_s0 + $0x148] sm:$0xff] }
  0x2b   :  { %9233 = vmatmul.msk.f32.gmra.mxu0 %vm84_vm0, %v19_v9 }
  0x33   :  { %9234 = vmatmul.msk.f32.gmra.mxu0 %vm84_vm0, %v20_v10  ;;  %v57_v10 = vld [vmem:[%s17231_s0 + $0x150] sm:$0xff] }
  0x3b   :  { %9235 = vmatmul.msk.f32.gmra.mxu0 %vm84_vm0, %v21_v11 }
  0x43   :  { %9236 = vmatmul.msk.f32.gmra.mxu0 %vm84_vm0, %v22_v12  ;;  %v58_v12 = vld [vmem:[%s17231_s0 + $0x158] sm:$0xff] }
  0x4b   :  { %9237 = vmatmul.msk.f32.gmra.mxu0 %vm84_vm0, %v23_v13 }
  0x53   :  { %9238 = vmatmul.msk.f32.gmra.mxu0 %vm84_vm0, %v24_v14  ;;  %v59_v14 = vld [vmem:[%s17231_s0 + $0x160] sm:$0xff] }
  0x5b   :  { %9239 = vmatmul.msk.f32.gmra.mxu0 %vm84_vm0, %v25_v15 }
  0x63   :  { %9240 = vmatmul.msk.f32.gmra.mxu0 %vm84_vm0, %v26_v16  ;;  %v60_v16 = vld [vmem:[%s17231_s0 + $0x168] sm:$0xff] }
  0x6b   :  { %9241 = vmatmul.msk.f32.gmra.mxu0 %vm84_vm0, %v27_v17 }
  0x73   :  { %9242 = vmatmul.msk.f32.gmra.mxu0 %vm84_vm0, %v28_v18  ;;  %v61_v18 = vld [vmem:[%s17231_s0 + $0x170] sm:$0xff] }
  0x7b   :  { %9243 = vmatmul.msk.f32.gmra.mxu0 %vm84_vm0, %v29_v19 }
  0x83   :  { %9244 = vmatmul.msk.f32.gmra.mxu0 %vm84_vm0, %v30_v20  ;;  %v62_v20 = vld [vmem:[%s17231_s0 + $0x178] sm:$0xff] }
  0x88   :  { %v10041_v21 = vpop.f32.mrf.mxu0 }
  0x8b   :  { %9245 = vmatmul.msk.f32.gmra.mxu0 %vm84_vm0, %v31_v22 }
  0x90   :  { %v10047_v23 = vpop.f32.mrf.mxu0 }
  0x93   :  { %9246 = vmatmul.msk.f32.gmra.mxu0 %vm84_vm0, %v32_v24  ;;  %v63_v24 = vld [vmem:[%s17231_s0 + $0x180] sm:$0xff] }
  0x98   :  { %v10053_v25 = vpop.f32.mrf.mxu0 }
  0x99   :  { %17864 = vst [vmem:[#allocation3_spill] sm:$0xff] %v10053_v25 }
  0x9b   :  { %9247 = vmatmul.msk.f32.gmra.mxu0 %vm84_vm0, %v33_v26 }
  0xa0   :  { %v10059_v27 = vpop.f32.mrf.mxu0 }
  0xa1   :  { %17865 = vst [vmem:[#allocation4_spill] sm:$0xff] %v10059_v27 }
  0xa3   :  { %9248 = vmatmul.msk.f32.gmra.mxu0 %vm84_vm0, %v34_v28  ;;  %v64_v28 = vld [vmem:[%s17231_s0 + $0x188] sm:$0xff] }
  0xa8   :  { %v10065_v29 = vpop.f32.mrf.mxu0 }
  0xa9   :  { %17866 = vst [vmem:[#allocation5_spill] sm:$0xff] %v10065_v29 }
  0xab   :  { %9249 = vmatmul.msk.f32.gmra.mxu0 %vm84_vm0, %v35_v30 }
  0xb0   :  { %v10071_v31 = vpop.f32.mrf.mxu0 }
  0xb3   :  { %9250 = vmatmul.msk.f32.gmra.mxu0 %vm84_vm0, %v36_v32  ;;  %v65_v32 = vld [vmem:[%s17231_s0 + $0x190] sm:$0xff] }
  0xb8   :  { %v10077_v33 = vpop.f32.mrf.mxu0 }
  0xbb   :  { %9251 = vmatmul.msk.f32.gmra.mxu0 %vm84_vm0, %v37_v34 }
  0xc0   :  { %v10083_v35 = vpop.f32.mrf.mxu0 }
  0xc3   :  { %9252 = vmatmul.msk.f32.gmra.mxu0 %vm84_vm0, %v38_v36  ;;  %v66_v36 = vld [vmem:[%s17231_s0 + $0x198] sm:$0xff] }
  0xc8   :  { %v10089_v37 = vpop.f32.mrf.mxu0 }
  0xc9   :  { %17867 = vst [vmem:[#allocation6_spill] sm:$0xff] %v10089_v37 }
  0xcb   :  { %9253 = vmatmul.msk.f32.gmra.mxu0 %vm84_vm0, %v39_v38 }
  0xd0   :  { %v10095_v39 = vpop.f32.mrf.mxu0 }
  0xd3   :  { %9254 = vmatmul.msk.f32.gmra.mxu0 %vm84_vm0, %v40_v40  ;;  %v67_v40 = vld [vmem:[%s17231_s0 + $0x1a0] sm:$0xff] }
  0xd8   :  { %v10101_v41 = vpop.f32.mrf.mxu0 }
  0xdb   :  { %9255 = vmatmul.msk.f32.gmra.mxu0 %vm84_vm0, %v41_v42 }
  0xe0   :  { %v10107_v43 = vpop.f32.mrf.mxu0 }
  0xe1   :  { %17868 = vst [vmem:[#allocation7_spill] sm:$0xff] %v10107_v43 }
  0xe3   :  { %9256 = vmatmul.msk.f32.gmra.mxu0 %vm84_vm0, %v42_v44  ;;  %v68_v44 = vld [vmem:[%s17231_s0 + $0x1a8] sm:$0xff] }
  0xe8   :  { %v10113_v45 = vpop.f32.mrf.mxu0 }
  0xe9   :  { %17869 = vst [vmem:[#allocation8_spill] sm:$0xff] %v10113_v45 }
  0xeb   :  { %9257 = vmatmul.msk.f32.gmra.mxu0 %vm84_vm0, %v43_v46 }
  0xf0   :  { %v10119_v47 = vpop.f32.mrf.mxu0 }
  0xf1   :  { %17870 = vst [vmem:[#allocation9_spill] sm:$0xff] %v10119_v47 }
  0xf3   :  { %9258 = vmatmul.msk.f32.gmra.mxu0 %vm84_vm0, %v44_v48  ;;  %v69_v48 = vld [vmem:[%s17231_s0 + $0x1b0] sm:$0xff] }
  0xf8   :  { %v10125_v49 = vpop.f32.mrf.mxu0 }
  0xf9   :  { %17871 = vst [vmem:[#allocation10_spill] sm:$0xff] %v10125_v49 }
  0xfb   :  { %9259 = vmatmul.msk.f32.gmra.mxu0 %vm84_vm0, %v45_v50 }
 0x100   :  { %v10131_v51 = vpop.f32.mrf.mxu0 }
 0x101   :  { %17872 = vst [vmem:[#allocation11_spill] sm:$0xff] %v10131_v51 }
 0x103   :  { %9260 = vmatmul.msk.f32.gmra.mxu0 %vm84_vm0, %v46_v52  ;;  %v70_v52 = vld [vmem:[%s17231_s0 + $0x1b8] sm:$0xff] }
 0x108   :  { %v10137_v53 = vpop.f32.mrf.mxu0 }
 0x109   :  { %17873 = vst [vmem:[#allocation12_spill] sm:$0xff] %v10137_v53 }
 0x10b   :  { %9261 = vmatmul.msk.f32.gmra.mxu0 %vm84_vm0, %v47_v54 }
 0x110   :  { %v10143_v55 = vpop.f32.mrf.mxu0 }
 0x111   :  { %17874 = vst [vmem:[#allocation13_spill] sm:$0xff] %v10143_v55 }
 0x113   :  { %9262 = vmatmul.msk.f32.gmra.mxu0 %vm84_vm0, %v48_v56  ;;  %v71_v56 = vld [vmem:[%s17231_s0 + $0x1c0] sm:$0xff] }
 0x118   :  { %v10149_v57 = vpop.f32.mrf.mxu0 }
 0x119   :  { %17875 = vst [vmem:[#allocation14_spill] sm:$0xff] %v10149_v57 }
 0x11b   :  { %9263 = vmatmul.msk.f32.gmra.mxu0 %vm84_vm0, %v49_v58 }
 0x120   :  { %v10155_v59 = vpop.f32.mrf.mxu0 }
 0x121   :  { %17876 = vst [vmem:[#allocation15_spill] sm:$0xff] %v10155_v59 }
 0x123   :  { %9264 = vmatmul.msk.f32.gmra.mxu0 %vm84_vm0, %v50_v60  ;;  %v72_v60 = vld [vmem:[%s17231_s0 + $0x1c8] sm:$0xff] }
 0x128   :  { %v10161_v61 = vpop.f32.mrf.mxu0 }
 0x129   :  { %17877 = vst [vmem:[#allocation16_spill] sm:$0xff] %v10161_v61 }
 0x12b   :  { %9265 = vmatmul.msk.f32.gmra.mxu0 %vm84_vm0, %v51_v62 }
 0x130   :  { %v10167_v63 = vpop.f32.mrf.mxu0 }
 0x131   :  { %17878 = vst [vmem:[#allocation17_spill] sm:$0xff] %v10167_v63 }
 0x133   :  { %9266 = vmatmul.msk.f32.gmra.mxu0 %vm84_vm0, %v52_v0  ;;  %v73_v0 = vld [vmem:[%s17231_s0 + $0x1d0] sm:$0xff] }
 0x138   :  { %v10173_v1 = vpop.f32.mrf.mxu0 }
 0x13b   :  { %9267 = vmatmul.msk.f32.gmra.mxu0 %vm84_vm0, %v53_v2 }
 0x140   :  { %v10179_v3 = vpop.f32.mrf.mxu0 }
 0x143   :  { %9268 = vmatmul.msk.f32.gmra.mxu0 %vm84_vm0, %v54_v4  ;;  %v74_v4 = vld [vmem:[%s17231_s0 + $0x1d8] sm:$0xff] }
 0x148   :  { %v10185_v5 = vpop.f32.mrf.mxu0 }
 0x14b   :  { %9269 = vmatmul.msk.f32.gmra.mxu0 %vm84_vm0, %v55_v6 }
 0x150   :  { %v10191_v7 = vpop.f32.mrf.mxu0 }
 0x153   :  { %9270 = vmatmul.msk.f32.gmra.mxu0 %vm84_vm0, %v56_v8  ;;  %v75_v8 = vld [vmem:[%s17231_s0 + $0x1e0] sm:$0xff] }
 0x158   :  { %v10197_v9 = vpop.f32.mrf.mxu0 }
 0x15b   :  { %9271 = vmatmul.msk.f32.gmra.mxu0 %vm84_vm0, %v57_v10 }
 0x160   :  { %v10203_v11 = vpop.f32.mrf.mxu0 }
 0x163   :  { %9272 = vmatmul.msk.f32.gmra.mxu0 %vm84_vm0, %v58_v12  ;;  %v76_v12 = vld [vmem:[%s17231_s0 + $0x1e8] sm:$0xff] }
 0x168   :  { %v10209_v13 = vpop.f32.mrf.mxu0 }
 0x16b   :  { %9273 = vmatmul.msk.f32.gmra.mxu0 %vm84_vm0, %v59_v14 }
 0x170   :  { %v10215_v15 = vpop.f32.mrf.mxu0 }
 0x173   :  { %9274 = vmatmul.msk.f32.gmra.mxu0 %vm84_vm0, %v60_v16  ;;  %v77_v16 = vld [vmem:[%s17231_s0 + $0x1f0] sm:$0xff] }
 0x178   :  { %v10221_v17 = vpop.f32.mrf.mxu0 }
 0x17b   :  { %9275 = vmatmul.msk.f32.gmra.mxu0 %vm84_vm0, %v61_v18 }
 0x180   :  { %v10227_v19 = vpop.f32.mrf.mxu0 }
 0x183   :  { %9276 = vmatmul.msk.f32.gmra.mxu0 %vm84_vm0, %v62_v20  ;;  %v78_v20 = vld [vmem:[%s17231_s0 + $0x1f8] sm:$0xff] }
 0x188   :  { %v10233_v22 = vpop.f32.mrf.mxu0 }
 0x18b   :  { %9277 = vmatmul.msk.f32.gmra.mxu0 %vm84_vm0, %v63_v24  ;;  %v622_v24 = vmul.f32 %v10047_v23, %v10047_v23 }
 0x190   :  { %v10239_v26 = vpop.f32.mrf.mxu0 }
 0x193   :  { %9278 = vmatmul.msk.f32.gmra.mxu0 %vm84_vm0, %v64_v28  ;;  %v621_v28 = vmul.f32 %v10041_v21, %v10041_v21 }
 0x198   :  { %v10245_v30 = vpop.f32.mrf.mxu0 }
 0x19b   :  { %9279 = vmatmul.msk.f32.gmra.mxu0 %vm84_vm0, %v65_v32  ;;  %v488_v32 = vsel %vm17311_vm1, %v10047_v23, 0.0 }
 0x1a0   :  { %v10251_v34 = vpop.f32.mrf.mxu0 }
 0x1a3   :  { %9280 = vmatmul.msk.f32.gmra.mxu0 %vm84_vm0, %v66_v36  ;;  %v623_v36 = vmul.f32 %v10053_v25, %v10053_v25 }
 0x1a8   :  { %v10257_v38 = vpop.f32.mrf.mxu0 }
 0x1ab   :  { %9281 = vmatmul.msk.f32.gmra.mxu0 %vm84_vm0, %v67_v40  ;;  %v487_v40 = vsel %vm17311_vm1, %v10041_v21, 0.0 }
 0x1b0   :  { %v10263_v42 = vpop.f32.mrf.mxu0 }
 0x1b3   :  { %9282 = vmatmul.msk.f32.gmra.mxu0 %vm84_vm0, %v68_v44  ;;  %v686_v44 = vsel %vm17311_vm1, %v622_v24, 0.0 }
 0x1b8   :  { %v10269_v46 = vpop.f32.mrf.mxu0 }
 0x1bb   :  { %9283 = vmatmul.msk.f32.gmra.mxu0 %vm84_vm0, %v69_v48  ;;  %v490_v48 = vsel %vm17311_vm1, %v10053_v25, 0.0  ;;  %v494_v25 = vsel %vm17311_vm1, %v10065_v29, 0.0 }
 0x1c0   :  { %v10275_v50 = vpop.f32.mrf.mxu0 }
 0x1c3   :  { %9284 = vmatmul.msk.f32.gmra.mxu0 %vm84_vm0, %v70_v52  ;;  %v624_v52 = vmul.f32 %v10059_v27, %v10059_v27 }
 0x1c5   :  { %v690_v24 = vsel %vm17311_vm1, %v624_v52, 0.0 }
 0x1c8   :  { %v10281_v54 = vpop.f32.mrf.mxu0 }
 0x1cb   :  { %9285 = vmatmul.msk.f32.gmra.mxu0 %vm84_vm0, %v71_v56  ;;  %v489_v56 = vadd.f32 %v488_v32, %v487_v40 }
 0x1d0   :  { %v10287_v58 = vpop.f32.mrf.mxu0 }
 0x1d3   :  { %9286 = vmatmul.msk.f32.gmra.mxu0 %vm84_vm0, %v72_v60  ;;  %v685_v60 = vsel %vm17311_vm1, %v621_v28, 0.0  ;;  %v626_v28 = vmul.f32 %v10071_v31, %v10071_v31 }
 0x1d5   :  { %v694_v52 = vsel %vm17311_vm1, %v626_v28, 0.0 }
 0x1d8   :  { %v10293_v62 = vpop.f32.mrf.mxu0 }
 0x1db   :  { %9287 = vmatmul.msk.f32.gmra.mxu0 %vm84_vm0, %v73_v0  ;;  %v688_v0 = vsel %vm17311_vm1, %v623_v36, 0.0 }
 0x1e0   :  { %v10299_v2 = vpop.f32.mrf.mxu0 }
 0x1e3   :  { %9288 = vmatmul.msk.f32.gmra.mxu0 %vm84_vm0, %v74_v4  ;;  %v492_v4 = vsel %vm17311_vm1, %v10059_v27, 0.0  ;;  %v496_v27 = vsel %vm17311_vm1, %v10071_v31, 0.0 }
 0x1e8   :  { %v10305_v6 = vpop.f32.mrf.mxu0 }
 0x1eb   :  { %9289 = vmatmul.msk.f32.gmra.mxu0 %vm84_vm0, %v75_v8  ;;  %v625_v8 = vmul.f32 %v10065_v29, %v10065_v29  ;;  %v628_v29 = vmul.f32 %v10083_v35, %v10083_v35 }
 0x1ed   :  { %v692_v40 = vsel %vm17311_vm1, %v625_v8, 0.0  ;;  %v698_v28 = vsel %vm17311_vm1, %v628_v29, 0.0 }
 0x1f0   :  { %v10311_v10 = vpop.f32.mrf.mxu0 }
 0x1f3   :  { %9290 = vmatmul.msk.f32.gmra.mxu0 %vm84_vm0, %v76_v12  ;;  %v687_v12 = vadd.f32 %v686_v44, %v685_v60  ;;  %v627_v44 = vmul.f32 %v10077_v33, %v10077_v33  ;;  %v498_v60 = vsel %vm17311_vm1, %v10077_v33, 0.0 }
 0x1f5   :  { %v689_v32 = vadd.f32 %v688_v0, %v687_v12  ;;  %v696_v8 = vsel %vm17311_vm1, %v627_v44, 0.0  ;;  %v500_v12 = vsel %vm17311_vm1, %v10083_v35, 0.0 }
 0x1f8   :  { %v10317_v14 = vpop.f32.mrf.mxu0 }
 0x1fb   :  { %9291 = vmatmul.msk.f32.gmra.mxu0 %vm84_vm0, %v77_v16  ;;  %v491_v16 = vadd.f32 %v490_v48, %v489_v56  ;;  %v691_v48 = vadd.f32 %v690_v24, %v689_v32 }
 0x1fd   :  { %v493_v36 = vadd.f32 %v492_v4, %v491_v16  ;;  %v693_v0 = vadd.f32 %v692_v40, %v691_v48  ;;  %v629_v16 = vmul.f32 %v10089_v37, %v10089_v37 }
 0x1ff   :  { %v495_v56 = vadd.f32 %v494_v25, %v493_v36  ;;  %v695_v24 = vadd.f32 %v694_v52, %v693_v0  ;;  %v502_v36 = vsel %vm17311_vm1, %v10089_v37, 0.0  ;;  %v700_v48 = vsel %vm17311_vm1, %v629_v16, 0.0 }
 0x200   :  { %v10323_v18 = vpop.f32.mrf.mxu0  ;;  %v631_v52 = vmul.f32 %v10101_v41, %v10101_v41  ;;  %v632_v37 = vmul.f32 %v10107_v43, %v10107_v43 }
 0x201   :  { %v497_v4 = vadd.f32 %v496_v27, %v495_v56  ;;  %v630_v27 = vmul.f32 %v10095_v39, %v10095_v39  ;;  %v697_v40 = vadd.f32 %v696_v8, %v695_v24  ;;  %v504_v56 = vsel %vm17311_vm1, %v10095_v39, 0.0 }
 0x202   :  { %v704_v16 = vsel %vm17311_vm1, %v631_v52, 0.0  ;;  %v508_v24 = vsel %vm17311_vm1, %v10107_v43, 0.0 }
 0x203   :  { %9292 = vmatmul.msk.f32.gmra.mxu0 %vm84_vm0, %v78_v20  ;;  %v499_v25 = vadd.f32 %v498_v60, %v497_v4  ;;  %v699_v60 = vadd.f32 %v698_v28, %v697_v40  ;;  %v702_v29 = vsel %vm17311_vm1, %v630_v27, 0.0  ;;  %v506_v4 = vsel %vm17311_vm1, %v10101_v41, 0.0 }
 0x204   :  { %v706_v27 = vsel %vm17311_vm1, %v632_v37, 0.0 }
 0x205   :  { %v501_v44 = vadd.f32 %v500_v12, %v499_v25  ;;  %v701_v8 = vadd.f32 %v700_v48, %v699_v60  ;;  %v633_v25 = vmul.f32 %v10113_v45, %v10113_v45  ;;  %v634_v48 = vmul.f32 %v10119_v47, %v10119_v47 }
 0x207   :  { %v503_v0 = vadd.f32 %v502_v36, %v501_v44  ;;  %v703_v28 = vadd.f32 %v702_v29, %v701_v8  ;;  %v510_v44 = vsel %vm17311_vm1, %v10113_v45, 0.0  ;;  %v708_v60 = vsel %vm17311_vm1, %v633_v25, 0.0 }
 0x208   :  { %v10350_v20 = vpop.f32.mrf.mxu0  ;;  %v635_v29 = vmul.f32 %v10125_v49, %v10125_v49  ;;  %v710_v37 = vsel %vm17311_vm1, %v634_v48, 0.0  ;;  %v636_v45 = vmul.f32 %v10131_v51, %v10131_v51 }
 0x209   :  { %17879 = vst [vmem:[#allocation18_spill] sm:$0xff] %v10350_v20  ;;  %v505_v12 = vadd.f32 %v504_v56, %v503_v0  ;;  %v705_v56 = vadd.f32 %v704_v16, %v703_v28  ;;  %v512_v0 = vsel %vm17311_vm1, %v10119_v47, 0.0  ;;  %v516_v28 = vsel %vm17311_vm1, %v10131_v51, 0.0 }
 0x20a   :  { %v712_v25 = vsel %vm17311_vm1, %v635_v29, 0.0  ;;  %v714_v48 = vsel %vm17311_vm1, %v636_v45, 0.0  ;;  %v660_v51 = vmul.f32 %v10275_v50, %v10275_v50 }
 0x20b   :  { %v507_v36 = vadd.f32 %v506_v4, %v505_v12  ;;  %v707_v4 = vadd.f32 %v706_v27, %v705_v56  ;;  %v514_v12 = vsel %vm17311_vm1, %v10125_v49, 0.0  ;;  %v664_v49 = vmul.f32 %v10299_v2, %v10299_v2 }
 0x20d   :  { %v509_v52 = vadd.f32 %v508_v24, %v507_v36  ;;  %v709_v16 = vadd.f32 %v708_v60, %v707_v4  ;;  %v637_v36 = vmul.f32 %v10137_v53, %v10137_v53  ;;  %v638_v60 = vmul.f32 %v10143_v55, %v10143_v55 }
 0x20f   :  { %v511_v8 = vadd.f32 %v510_v44, %v509_v52  ;;  %v711_v27 = vadd.f32 %v710_v37, %v709_v16  ;;  %v518_v52 = vsel %vm17311_vm1, %v10137_v53, 0.0  ;;  %v716_v4 = vsel %vm17311_vm1, %v637_v36, 0.0 }
 0x210   :  { %v10372_v32 = vpop.f32.mrf.mxu0  ;;  %v639_v37 = vmul.f32 %v10149_v57, %v10149_v57  ;;  %v718_v45 = vsel %vm17311_vm1, %v638_v60, 0.0  ;;  %v640_v53 = vmul.f32 %v10155_v59, %v10155_v59 }
 0x211   :  { %v513_v24 = vadd.f32 %v512_v0, %v511_v8  ;;  %v713_v0 = vadd.f32 %v712_v25, %v711_v27  ;;  %v520_v8 = vsel %vm17311_vm1, %v10143_v55, 0.0  ;;  %v524_v27 = vsel %vm17311_vm1, %v10155_v59, 0.0 }
 0x212   :  { %v720_v36 = vsel %vm17311_vm1, %v639_v37, 0.0  ;;  %v722_v60 = vsel %vm17311_vm1, %v640_v53, 0.0  ;;  %v648_v59 = vmul.f32 %v10203_v11, %v10203_v11  ;;  %v656_v55 = vmul.f32 %v10251_v34, %v10251_v34 }
 0x213   :  { %v515_v44 = vadd.f32 %v514_v12, %v513_v24  ;;  %v715_v12 = vadd.f32 %v714_v48, %v713_v0  ;;  %v522_v24 = vsel %vm17311_vm1, %v10149_v57, 0.0  ;;  %v652_v57 = vmul.f32 %v10227_v19, %v10227_v19 }
 0x215   :  { %v517_v29 = vadd.f32 %v516_v28, %v515_v44  ;;  %v717_v25 = vadd.f32 %v716_v4, %v715_v12  ;;  %v641_v44 = vmul.f32 %v10161_v61, %v10161_v61  ;;  %v642_v4 = vmul.f32 %v10167_v63, %v10167_v63 }
 0x217   :  { %v519_v16 = vadd.f32 %v518_v52, %v517_v29  ;;  %v719_v48 = vadd.f32 %v718_v45, %v717_v25  ;;  %v526_v29 = vsel %vm17311_vm1, %v10161_v61, 0.0  ;;  %v724_v12 = vsel %vm17311_vm1, %v641_v44, 0.0 }
 0x218   :  { %v10394_v40 = vpop.f32.mrf.mxu0  ;;  %v643_v45 = vmul.f32 %v10173_v1, %v10173_v1  ;;  %v726_v53 = vsel %vm17311_vm1, %v642_v4, 0.0  ;;  %v644_v61 = vmul.f32 %v10179_v3, %v10179_v3 }
 0x219   :  { %v521_v28 = vadd.f32 %v520_v8, %v519_v16  ;;  %v721_v8 = vadd.f32 %v720_v36, %v719_v48  ;;  %v528_v16 = vsel %vm17311_vm1, %v10167_v63, 0.0  ;;  %v532_v48 = vsel %vm17311_vm1, %v10179_v3, 0.0 }
 0x21a   :  { %v728_v44 = vsel %vm17311_vm1, %v643_v45, 0.0  ;;  %v730_v4 = vsel %vm17311_vm1, %v644_v61, 0.0  ;;  %v668_v63 = vmul.f32 %v10323_v18, %v10323_v18 }
 0x21b   :  { %v523_v52 = vadd.f32 %v522_v24, %v521_v28  ;;  %v723_v24 = vadd.f32 %v722_v60, %v721_v8  ;;  %v530_v28 = vsel %vm17311_vm1, %v10173_v1, 0.0 }
 0x21d   :  { %v525_v37 = vadd.f32 %v524_v27, %v523_v52  ;;  %v725_v36 = vadd.f32 %v724_v12, %v723_v24  ;;  %v645_v52 = vmul.f32 %v10185_v5, %v10185_v5  ;;  %v646_v12 = vmul.f32 %v10191_v7, %v10191_v7 }
 0x21f   :  { %v527_v25 = vadd.f32 %v526_v29, %v525_v37  ;;  %v727_v60 = vadd.f32 %v726_v53, %v725_v36  ;;  %v534_v37 = vsel %vm17311_vm1, %v10185_v5, 0.0  ;;  %v732_v24 = vsel %vm17311_vm1, %v645_v52, 0.0 }
 0x220   :  { %v10416_v56 = vpop.f32.mrf.mxu0  ;;  %v647_v53 = vmul.f32 %v10197_v9, %v10197_v9  ;;  %v734_v61 = vsel %vm17311_vm1, %v646_v12, 0.0  ;;  %v738_v12 = vsel %vm17311_vm1, %v648_v59, 0.0 }
 0x221   :  { %v529_v27 = vadd.f32 %v528_v16, %v527_v25  ;;  %v729_v16 = vadd.f32 %v728_v44, %v727_v60  ;;  %v536_v25 = vsel %vm17311_vm1, %v10191_v7, 0.0  ;;  %v540_v60 = vsel %vm17311_vm1, %v10203_v11, 0.0 }
 0x222   :  { %v736_v52 = vsel %vm17311_vm1, %v647_v53, 0.0 }
 0x223   :  { %v531_v29 = vadd.f32 %v530_v28, %v529_v27  ;;  %v731_v28 = vadd.f32 %v730_v4, %v729_v16  ;;  %v538_v27 = vsel %vm17311_vm1, %v10197_v9, 0.0 }
 0x225   :  { %v533_v45 = vadd.f32 %v532_v48, %v531_v29  ;;  %v733_v44 = vadd.f32 %v732_v24, %v731_v28  ;;  %v649_v29 = vmul.f32 %v10209_v13, %v10209_v13  ;;  %v650_v24 = vmul.f32 %v10215_v15, %v10215_v15 }
 0x227   :  { %v535_v36 = vadd.f32 %v534_v37, %v533_v45  ;;  %v735_v4 = vadd.f32 %v734_v61, %v733_v44  ;;  %v542_v45 = vsel %vm17311_vm1, %v10209_v13, 0.0  ;;  %v740_v28 = vsel %vm17311_vm1, %v649_v29, 0.0 }
 0x228   :  { %v10438_v0 = vpop.f32.mrf.mxu0  ;;  %v651_v61 = vmul.f32 %v10221_v17, %v10221_v17  ;;  %v742_v59 = vsel %vm17311_vm1, %v650_v24, 0.0  ;;  %v746_v24 = vsel %vm17311_vm1, %v652_v57, 0.0 }
 0x229   :  { %17880 = vst [vmem:[#allocation19_spill] sm:$0xff] %v10438_v0  ;;  %v537_v48 = vadd.f32 %v536_v25, %v535_v36  ;;  %v737_v25 = vadd.f32 %v736_v52, %v735_v4  ;;  %v544_v36 = vsel %vm17311_vm1, %v10215_v15, 0.0  ;;  %v548_v4 = vsel %vm17311_vm1, %v10227_v19, 0.0 }
 0x22a   :  { %v744_v29 = vsel %vm17311_vm1, %v651_v61, 0.0 }
 0x22b   :  { %v539_v37 = vadd.f32 %v538_v27, %v537_v48  ;;  %v739_v27 = vadd.f32 %v738_v12, %v737_v25  ;;  %v546_v48 = vsel %vm17311_vm1, %v10221_v17, 0.0 }
 0x22d   :  { %v541_v53 = vadd.f32 %v540_v60, %v539_v37  ;;  %v741_v52 = vadd.f32 %v740_v28, %v739_v27  ;;  %v653_v37 = vmul.f32 %v10233_v22, %v10233_v22  ;;  %v654_v28 = vmul.f32 %v10239_v26, %v10239_v26 }
 0x22f   :  { %v543_v44 = vadd.f32 %v542_v45, %v541_v53  ;;  %v743_v12 = vadd.f32 %v742_v59, %v741_v52  ;;  %v550_v53 = vsel %vm17311_vm1, %v10233_v22, 0.0  ;;  %v748_v27 = vsel %vm17311_vm1, %v653_v37, 0.0 }
 0x230   :  { %v10460_v8 = vpop.f32.mrf.mxu0  ;;  %v655_v59 = vmul.f32 %v10245_v30, %v10245_v30  ;;  %v750_v57 = vsel %vm17311_vm1, %v654_v28, 0.0  ;;  %v754_v28 = vsel %vm17311_vm1, %v656_v55, 0.0 }
 0x231   :  { %v545_v60 = vadd.f32 %v544_v36, %v543_v44  ;;  %v745_v36 = vadd.f32 %v744_v29, %v743_v12  ;;  %v552_v44 = vsel %vm17311_vm1, %v10239_v26, 0.0  ;;  %v556_v12 = vsel %vm17311_vm1, %v10251_v34, 0.0 }
 0x232   :  { %v752_v37 = vsel %vm17311_vm1, %v655_v59, 0.0 }
 0x233   :  { %v547_v45 = vadd.f32 %v546_v48, %v545_v60  ;;  %v747_v48 = vadd.f32 %v746_v24, %v745_v36  ;;  %v554_v60 = vsel %vm17311_vm1, %v10245_v30, 0.0 }
 0x235   :  { %v549_v61 = vadd.f32 %v548_v4, %v547_v45  ;;  %v749_v29 = vadd.f32 %v748_v27, %v747_v48  ;;  %v657_v45 = vmul.f32 %v10257_v38, %v10257_v38  ;;  %v658_v27 = vmul.f32 %v10263_v42, %v10263_v42 }
 0x237   :  { %v551_v52 = vadd.f32 %v550_v53, %v549_v61  ;;  %v751_v24 = vadd.f32 %v750_v57, %v749_v29  ;;  %v558_v61 = vsel %vm17311_vm1, %v10257_v38, 0.0  ;;  %v756_v48 = vsel %vm17311_vm1, %v657_v45, 0.0 }
 0x238   :  { %v10482_v16 = vpop.f32.mrf.mxu0  ;;  %v659_v57 = vmul.f32 %v10269_v46, %v10269_v46  ;;  %v758_v55 = vsel %vm17311_vm1, %v658_v27, 0.0  ;;  %v762_v27 = vsel %vm17311_vm1, %v660_v51, 0.0 }
 0x239   :  { %v553_v4 = vadd.f32 %v552_v44, %v551_v52  ;;  %v753_v44 = vadd.f32 %v752_v37, %v751_v24  ;;  %v560_v52 = vsel %vm17311_vm1, %v10263_v42, 0.0  ;;  %v564_v24 = vsel %vm17311_vm1, %v10275_v50, 0.0 }
 0x23a   :  { %v760_v45 = vsel %vm17311_vm1, %v659_v57, 0.0 }
 0x23b   :  { %v555_v53 = vadd.f32 %v554_v60, %v553_v4  ;;  %v755_v60 = vadd.f32 %v754_v28, %v753_v44  ;;  %v562_v4 = vsel %vm17311_vm1, %v10269_v46, 0.0 }
 0x23d   :  { %v557_v59 = vadd.f32 %v556_v12, %v555_v53  ;;  %v757_v37 = vadd.f32 %v756_v48, %v755_v60  ;;  %v661_v53 = vmul.f32 %v10281_v54, %v10281_v54  ;;  %v662_v48 = vmul.f32 %v10287_v58, %v10287_v58 }
 0x23f   :  { %v559_v29 = vadd.f32 %v558_v61, %v557_v59  ;;  %v759_v28 = vadd.f32 %v758_v55, %v757_v37  ;;  %v566_v59 = vsel %vm17311_vm1, %v10281_v54, 0.0  ;;  %v764_v60 = vsel %vm17311_vm1, %v661_v53, 0.0 }
 0x240   :  { %v10504_v25 = vpop.f32.mrf.mxu0  ;;  %v663_v55 = vmul.f32 %v10293_v62, %v10293_v62  ;;  %v766_v51 = vsel %vm17311_vm1, %v662_v48, 0.0  ;;  %v770_v48 = vsel %vm17311_vm1, %v664_v49, 0.0 }
 0x241   :  { %17881 = vst [vmem:[#allocation20_spill] sm:$0xff] %v10504_v25  ;;  %v561_v12 = vadd.f32 %v560_v52, %v559_v29  ;;  %v761_v52 = vadd.f32 %v760_v45, %v759_v28  ;;  %v568_v29 = vsel %vm17311_vm1, %v10287_v58, 0.0  ;;  %v572_v28 = vsel %vm17311_vm1, %v10299_v2, 0.0 }
 0x242   :  { %v768_v53 = vsel %vm17311_vm1, %v663_v55, 0.0 }
 0x243   :  { %v563_v61 = vadd.f32 %v562_v4, %v561_v12  ;;  %v763_v4 = vadd.f32 %v762_v27, %v761_v52  ;;  %v570_v12 = vsel %vm17311_vm1, %v10293_v62, 0.0 }
 0x245   :  { %v565_v57 = vadd.f32 %v564_v24, %v563_v61  ;;  %v765_v45 = vadd.f32 %v764_v60, %v763_v4  ;;  %v665_v61 = vmul.f32 %v10305_v6, %v10305_v6  ;;  %v666_v60 = vmul.f32 %v10311_v10, %v10311_v10 }
 0x247   :  { %v567_v37 = vadd.f32 %v566_v59, %v565_v57  ;;  %v767_v27 = vadd.f32 %v766_v51, %v765_v45  ;;  %v574_v57 = vsel %vm17311_vm1, %v10305_v6, 0.0  ;;  %v772_v4 = vsel %vm17311_vm1, %v665_v61, 0.0 }
 0x248   :  { %v10526_v36 = vpop.f32.mrf.mxu0  ;;  %v667_v51 = vmul.f32 %v10317_v14, %v10317_v14  ;;  %v774_v49 = vsel %vm17311_vm1, %v666_v60, 0.0  ;;  %v778_v60 = vsel %vm17311_vm1, %v668_v63, 0.0 }
 0x249   :  { %17882 = vst [vmem:[#allocation21_spill] sm:$0xff] %v10526_v36  ;;  %v569_v24 = vadd.f32 %v568_v29, %v567_v37  ;;  %v769_v29 = vadd.f32 %v768_v53, %v767_v27  ;;  %v576_v37 = vsel %vm17311_vm1, %v10311_v10, 0.0  ;;  %v580_v27 = vsel %vm17311_vm1, %v10323_v18, 0.0 }
 0x24a   :  { %v776_v61 = vsel %vm17311_vm1, %v667_v51, 0.0 }
 0x24b   :  { %v571_v59 = vadd.f32 %v570_v12, %v569_v24  ;;  %v771_v12 = vadd.f32 %v770_v48, %v769_v29  ;;  %v578_v24 = vsel %vm17311_vm1, %v10317_v14, 0.0 }
 0x24d   :  { %v573_v55 = vadd.f32 %v572_v28, %v571_v59  ;;  %v773_v53 = vadd.f32 %v772_v4, %v771_v12  ;;  %v669_v59 = vmul.f32 %v10350_v20, %v10350_v20  ;;  %v670_v4 = vmul.f32 %v10372_v32, %v10372_v32 }
 0x24f   :  { %v575_v45 = vadd.f32 %v574_v57, %v573_v55  ;;  %v775_v48 = vadd.f32 %v774_v49, %v773_v53  ;;  %v582_v55 = vsel %vm17311_vm1, %v10350_v20, 0.0  ;;  %v780_v12 = vsel %vm17311_vm1, %v669_v59, 0.0 }
 0x250   :  { %v10548_v44 = vpop.f32.mrf.mxu0  ;;  %v671_v49 = vmul.f32 %v10394_v40, %v10394_v40  ;;  %v782_v63 = vsel %vm17311_vm1, %v670_v4, 0.0  ;;  %v672_v20 = vmul.f32 %v10416_v56, %v10416_v56 }
 0x251   :  { %17883 = vst [vmem:[#allocation22_spill] sm:$0xff] %v10548_v44  ;;  %v577_v28 = vadd.f32 %v576_v37, %v575_v45  ;;  %v777_v37 = vadd.f32 %v776_v61, %v775_v48  ;;  %v584_v45 = vsel %vm17311_vm1, %v10372_v32, 0.0  ;;  %v588_v48 = vsel %vm17311_vm1, %v10416_v56, 0.0 }
 0x252   :  { %v784_v59 = vsel %vm17311_vm1, %v671_v49, 0.0  ;;  %v786_v4 = vsel %vm17311_vm1, %v672_v20, 0.0 }
 0x253   :  { %v579_v57 = vadd.f32 %v578_v24, %v577_v28  ;;  %v779_v24 = vadd.f32 %v778_v60, %v777_v37  ;;  %v586_v28 = vsel %vm17311_vm1, %v10394_v40, 0.0 }
 0x255   :  { %v581_v51 = vadd.f32 %v580_v27, %v579_v57  ;;  %v781_v61 = vadd.f32 %v780_v12, %v779_v24  ;;  %v673_v57 = vmul.f32 %v10438_v0, %v10438_v0  ;;  %v674_v12 = vmul.f32 %v10460_v8, %v10460_v8 }
 0x257   :  { %v583_v53 = vadd.f32 %v582_v55, %v581_v51  ;;  %v783_v60 = vadd.f32 %v782_v63, %v781_v61  ;;  %v590_v51 = vsel %vm17311_vm1, %v10438_v0, 0.0  ;;  %v788_v24 = vsel %vm17311_vm1, %v673_v57, 0.0 }
 0x258   :  { %v10570_v52 = vpop.f32.mrf.mxu0  ;;  %v675_v63 = vmul.f32 %v10482_v16, %v10482_v16  ;;  %v790_v20 = vsel %vm17311_vm1, %v674_v12, 0.0  ;;  %v676_v0 = vmul.f32 %v10504_v25, %v10504_v25 }
 0x259   :  { %17884 = vst [vmem:[#allocation23_spill] sm:$0xff] %v10570_v52  ;;  %v585_v27 = vadd.f32 %v584_v45, %v583_v53  ;;  %v785_v45 = vadd.f32 %v784_v59, %v783_v60  ;;  %v592_v53 = vsel %vm17311_vm1, %v10460_v8, 0.0  ;;  %v596_v60 = vsel %vm17311_vm1, %v10504_v25, 0.0 }
 0x25a   :  { %v792_v57 = vsel %vm17311_vm1, %v675_v63, 0.0  ;;  %v794_v12 = vsel %vm17311_vm1, %v676_v0, 0.0 }
 0x25b   :  { %v587_v55 = vadd.f32 %v586_v28, %v585_v27  ;;  %v787_v28 = vadd.f32 %v786_v4, %v785_v45  ;;  %v594_v27 = vsel %vm17311_vm1, %v10482_v16, 0.0 }
 0x25d   :  { %v589_v49 = vadd.f32 %v588_v48, %v587_v55  ;;  %v789_v59 = vadd.f32 %v788_v24, %v787_v28  ;;  %v677_v55 = vmul.f32 %v10526_v36, %v10526_v36  ;;  %v678_v24 = vmul.f32 %v10548_v44, %v10548_v44 }
 0x25f   :  { %v591_v61 = vadd.f32 %v590_v51, %v589_v49  ;;  %v791_v4 = vadd.f32 %v790_v20, %v789_v59  ;;  %v598_v49 = vsel %vm17311_vm1, %v10526_v36, 0.0  ;;  %v796_v28 = vsel %vm17311_vm1, %v677_v55, 0.0 }
 0x260   :  { %v10592_v29 = vpop.f32.mrf.mxu0  ;;  %v679_v20 = vmul.f32 %v10570_v52, %v10570_v52  ;;  %v798_v0 = vsel %vm17311_vm1, %v678_v24, 0.0 }
 0x261   :  { %17885 = vst [vmem:[#allocation24_spill] sm:$0xff] %v10592_v29  ;;  %v593_v48 = vadd.f32 %v592_v53, %v591_v61  ;;  %v793_v53 = vadd.f32 %v792_v57, %v791_v4  ;;  %v600_v61 = vsel %vm17311_vm1, %v10548_v44, 0.0  ;;  %v680_v36 = vmul.f32 %v10592_v29, %v10592_v29 }
 0x262   :  { %v800_v55 = vsel %vm17311_vm1, %v679_v20, 0.0  ;;  %v604_v4 = vsel %vm17311_vm1, %v10592_v29, 0.0 }
 0x263   :  { %v595_v51 = vadd.f32 %v594_v27, %v593_v48  ;;  %v795_v27 = vadd.f32 %v794_v12, %v793_v53  ;;  %v602_v48 = vsel %vm17311_vm1, %v10570_v52, 0.0  ;;  %v802_v24 = vsel %vm17311_vm1, %v680_v36, 0.0 }
 0x265   :  { %v597_v63 = vadd.f32 %v596_v60, %v595_v51  ;;  %v797_v57 = vadd.f32 %v796_v28, %v795_v27 }
 0x267   :  { %v599_v59 = vadd.f32 %v598_v49, %v597_v63  ;;  %v799_v12 = vadd.f32 %v798_v0, %v797_v57 }
 0x268   :  { %v10614_v37 = vpop.f32.mrf.mxu0 }
 0x269   :  { %17886 = vst [vmem:[#allocation25_spill] sm:$0xff] %v10614_v37  ;;  %v601_v60 = vadd.f32 %v600_v61, %v599_v59  ;;  %v681_v51 = vmul.f32 %v10614_v37, %v10614_v37  ;;  %v606_v63 = vsel %vm17311_vm1, %v10614_v37, 0.0  ;;  %v801_v61 = vadd.f32 %v800_v55, %v799_v12 }
 0x26b   :  { %v603_v49 = vadd.f32 %v602_v48, %v601_v60  ;;  %v804_v27 = vsel %vm17311_vm1, %v681_v51, 0.0  ;;  %v803_v48 = vadd.f32 %v802_v24, %v801_v61 }
 0x26d   :  { %v605_v20 = vadd.f32 %v604_v4, %v603_v49  ;;  %v805_v37 = vadd.f32 %v804_v27, %v803_v48 }
 0x26f   :  { %v607_v57 = vadd.f32 %v606_v63, %v605_v20 }
 0x270   :  { %v10636_v45 = vpop.f32.mrf.mxu0  ;;  %v17902_v47 = vld [vmem:[#allocation25_spill] sm:$0xff] }
 0x271   :  { %17887 = vst [vmem:[#allocation26_spill] sm:$0xff] %v10636_v45  ;;  %v682_v28 = vmul.f32 %v10636_v45, %v10636_v45  ;;  %v608_v59 = vsel %vm17311_vm1, %v10636_v45, 0.0 }
 0x272   :  { %v609_v29 = vadd.f32 %v608_v59, %v607_v57 }
 0x273   :  { %v806_v36 = vsel %vm17311_vm1, %v682_v28, 0.0 }
 0x274   :  { %v807_v4 = vadd.f32 %v806_v36, %v805_v37 }
 0x278   :  { %v10658_v53 = vpop.f32.mrf.mxu0 }
 0x279   :  { %17888 = vst [vmem:[#allocation27_spill] sm:$0xff] %v10658_v53  ;;  %v683_v0 = vmul.f32 %v10658_v53, %v10658_v53  ;;  %v610_v60 = vsel %vm17311_vm1, %v10658_v53, 0.0 }
 0x27a   :  { %v611_v12 = vadd.f32 %v610_v60, %v609_v29 }
 0x27b   :  { %v808_v55 = vsel %vm17311_vm1, %v683_v0, 0.0 }
 0x27c   :  { %v809_v63 = vadd.f32 %v808_v55, %v807_v4 }
 0x280   :  { %v10674_v51 = vpop.f32.mrf.mxu0 }
 0x281   :  { %v612_v49 = vsel %vm17311_vm1, %v10674_v51, 0.0  ;;  %v684_v24 = vmul.f32 %v10674_v51, %v10674_v51 }
 0x282   :  { %v613_v61 = vadd.f32 %v612_v49, %v611_v12 }
 0x283   :  { %v810_v28 = vsel %vm17311_vm1, %v684_v24, 0.0 }
 0x284   :  { %v614_v20 = vrot.slane %v613_v61, 4  ;;  %v811_v53 = vadd.f32 %v810_v28, %v809_v63  ;;  %v17890_v28 = vld [vmem:[#allocation4_spill] sm:$0xff] }
 0x285   :  { %v17901_v63 = vld [vmem:[#allocation24_spill] sm:$0xff] }
 0x286   :  { %v615_v27 = vadd.f32 %v614_v20, %v613_v61  ;;  %v812_v59 = vrot.slane %v811_v53, 4  ;;  %v17898_v20 = vld [vmem:[#allocation21_spill] sm:$0xff]  ;;  %v17900_v61 = vld [vmem:[#allocation23_spill] sm:$0xff] }
 0x288   :  { %v616_v48 = vrot.slane %v615_v27, 2  ;;  %v813_v0 = vadd.f32 %v812_v59, %v811_v53  ;;  %v17897_v59 = vld [vmem:[#allocation20_spill] sm:$0xff] }
 0x28a   :  { %v617_v37 = vadd.f32 %v616_v48, %v615_v27  ;;  %v814_v29 = vrot.slane %v813_v0, 2  ;;  %v17891_v27 = vld [vmem:[#allocation5_spill] sm:$0xff] }
 0x28c   :  { %v618_v57 = vrot.slane %v617_v37, 1  ;;  %v815_v36 = vadd.f32 %v814_v29, %v813_v0 }
 0x28e   :  { %v619_v60 = vadd.f32 %v618_v57, %v617_v37  ;;  %v816_v45 = vrot.slane %v815_v36, 1  ;;  %v17892_v37 = vld [vmem:[#allocation6_spill] sm:$0xff] }
 0x290   :  { %v10681_v52 = vmul.f32 0.001953125, %v619_v60  ;;  %v817_v44 = vadd.f32 %v816_v45, %v815_v36  ;;  %v17889_v45 = vld [vmem:[#allocation3_spill] sm:$0xff] }
 0x292   :  { %v818_v25 = vmul.f32 0.001953125, %v817_v44  ;;  %v819_v55 = vmul.f32 %v10681_v52, %v10681_v52  ;;  %v884_v53 = vsub.f32 %v10674_v51, %v10681_v52  ;;  %v843_v29 = vsub.f32 %v10173_v1, %v10681_v52  ;;  %v17896_v51 = vld [vmem:[#allocation19_spill] sm:$0xff]  ;;  %v17899_v44 = vld [vmem:[#allocation22_spill] sm:$0xff] }
 0x293   :  { %v844_v57 = vsub.f32 %v10179_v3, %v10681_v52  ;;  %v845_v36 = vsub.f32 %v10185_v5, %v10681_v52  ;;  %v848_v48 = vsub.f32 %v10203_v11, %v10681_v52  ;;  %v849_v1 = vsub.f32 %v10209_v13, %v10681_v52  ;;  %v10742_v11 = vld [vmem:[%s17230_s1 + $0x70] ss:$0 sm:$0xff] }
 0x294   :  { %v820_v4 = vsub.f32 %v818_v25, %v819_v55  ;;  %v846_v55 = vsub.f32 %v10191_v7, %v10681_v52  ;;  %v850_v3 = vsub.f32 %v10215_v15, %v10681_v52  ;;  %v851_v5 = vsub.f32 %v10221_v17, %v10681_v52 }
 0x295   :  { %v852_v0 = vsub.f32 %v10227_v19, %v10681_v52  ;;  %v853_v7 = vsub.f32 %v10233_v22, %v10681_v52  ;;  %v855_v13 = vsub.f32 %v10245_v30, %v10681_v52  ;;  %v856_v15 = vsub.f32 %v10251_v34, %v10681_v52  ;;  %v10764_v34 = vld [vmem:[%s17230_s1 + $0x71] ss:$0 sm:$0xff] }
 0x296   :  { %v885_v12 = vadd.f32 1e-05, %v820_v4  ;;  %v857_v17 = vsub.f32 %v10257_v38, %v10681_v52  ;;  %v858_v19 = vsub.f32 %v10263_v42, %v10681_v52  ;;  %v861_v30 = vsub.f32 %v10281_v54, %v10681_v52  ;;  %17894 = vst [vmem:[#allocation3_spill] sm:$0xff] %v10764_v34 }
 0x297   :  { %v862_v42 = vsub.f32 %v10287_v58, %v10681_v52  ;;  %v866_v54 = vsub.f32 %v10311_v10, %v10681_v52  ;;  %v872_v10 = vsub.f32 %v10416_v56, %v10681_v52  ;;  %v878_v56 = vsub.f32 %v17899_v44, %v10681_v52 }
 0x298   :  { %9877 = vrsqrt.f32 %v885_v12  ;;  %vm892_vm2 = vweird.f32 %v885_v12 }
 0x29e   :  { %v9878_v49 = vpop.eup %9877 }
 0x29f   :  { %v887_v24 = vmul.f32 %v9878_v49, %v885_v12  ;;  %vm893_vm3 = vweird.f32 %v9878_v49  ;;  %v860_v12 = vsub.f32 %v10275_v50, %v10681_v52  ;;  %v865_v50 = vsub.f32 %v10305_v6, %v10681_v52 }
 0x2a0   :  { %vm894_vm4 = vmor %vm892_vm2, %vm893_vm3  ;;  %v871_v6 = vsub.f32 %v10394_v40, %v10681_v52  ;;  %v877_v40 = vsub.f32 %v17898_v20, %v10681_v52 }
 0x2a1   :  { %v888_v25 = vmul.f32 %v9878_v49, %v887_v24  ;;  %v847_v24 = vsub.f32 %v10197_v9, %v10681_v52  ;;  %v854_v9 = vsub.f32 %v10239_v26, %v10681_v52  ;;  %v859_v26 = vsub.f32 %v10269_v46, %v10681_v52 }
 0x2a2   :  { %v864_v46 = vsub.f32 %v10299_v2, %v10681_v52  ;;  %v870_v2 = vsub.f32 %v10372_v32, %v10681_v52  ;;  %v876_v32 = vsub.f32 %v17897_v59, %v10681_v52  ;;  %v17904_v59 = vld [vmem:[#allocation27_spill] sm:$0xff] }
 0x2a3   :  { %v889_v60 = vmul.f32 0.5, %v888_v25  ;;  %v883_v43 = vsub.f32 %v17904_v59, %v10681_v52 }
 0x2a5   :  { %v890_v25 = vsub.f32 1.5, %v889_v60 }
 0x2a7   :  { %v891_v60 = vmul.f32 %v9878_v49, %v890_v25  ;;  %v867_v25 = vsub.f32 %v10317_v14, %v10681_v52  ;;  %v873_v14 = vsub.f32 %v17896_v51, %v10681_v52  ;;  %v879_v51 = vsub.f32 %v17900_v61, %v10681_v52 }
 0x2a9   :  { %v10753_v22 = vsel %vm894_vm4, %v9878_v49, %v891_v60  ;;  %v863_v49 = vsub.f32 %v10293_v62, %v10681_v52  ;;  %v17895_v60 = vld [vmem:[#allocation18_spill] sm:$0xff] }
 0x2aa   :  { %v959_v38 = vmul.f32 %v10753_v22, %v884_v53  ;;  %v868_v53 = vsub.f32 %v10323_v18, %v10681_v52  ;;  %v869_v62 = vsub.f32 %v17895_v60, %v10681_v52  ;;  %v874_v18 = vsub.f32 %v10460_v8, %v10681_v52 }
 0x2ab   :  { %v880_v8 = vsub.f32 %v17901_v63, %v10681_v52  ;;  %v10814_v20 = vmul.f32 %v10753_v22, %v843_v29  ;;  %v10817_v44 = vmul.f32 %v10753_v22, %v844_v57  ;;  %v10820_v61 = vmul.f32 %v10753_v22, %v845_v36 }
 0x2ac   :  { %v1024_v58 = vmul.f32 %v10742_v11, %v959_v38  ;;  %v875_v38 = vsub.f32 %v10482_v16, %v10681_v52  ;;  %v881_v16 = vsub.f32 %v17902_v47, %v10681_v52  ;;  %v10823_v63 = vmul.f32 %v10753_v22, %v846_v55 }
 0x2ad   :  { %v10826_v47 = vmul.f32 %v10753_v22, %v847_v24  ;;  %v10833_v29 = vmul.f32 %v10753_v22, %v849_v1  ;;  %v10836_v57 = vmul.f32 %v10753_v22, %v850_v3  ;;  %v10839_v36 = vmul.f32 %v10753_v22, %v851_v5 }
 0x2ae   :  { %v1089_v60 = vadd.f32 %v10764_v34, %v1024_v58  ;;  %v17903_v58 = vld [vmem:[#allocation26_spill] sm:$0xff]  ;;  %v10842_v55 = vmul.f32 %v10753_v22, %v852_v0  ;;  %v10845_v24 = vmul.f32 %v10753_v22, %v853_v7  ;;  %v10854_v1 = vmul.f32 %v10753_v22, %v856_v15 }
 0x2af   :  { %v882_v34 = vsub.f32 %v17903_v58, %v10681_v52  ;;  %v10857_v3 = vmul.f32 %v10753_v22, %v857_v17  ;;  %v10860_v5 = vmul.f32 %v10753_v22, %v858_v19  ;;  %v10863_v0 = vmul.f32 %v10753_v22, %v859_v26 }
 0x2b0   :  { %v1153_v4 = vmax.f32 %v1089_v60, 0.0  ;;  %v10829_v60 = vmul.f32 %v10753_v22, %v848_v48  ;;  %v10848_v48 = vmul.f32 %v10753_v22, %v854_v9  ;;  %v10866_v7 = vmul.f32 %v10753_v22, %v860_v12 }
 0x2b1   :  { %v10869_v9 = vmul.f32 %v10753_v22, %v861_v30  ;;  %v10875_v15 = vmul.f32 %v10753_v22, %v863_v49  ;;  %v10878_v17 = vmul.f32 %v10753_v22, %v864_v46  ;;  %v10881_v19 = vmul.f32 %v10753_v22, %v865_v50 }
 0x2b2   :  { %1223 = vst.msk [vmem:[#allocation2 + $0x210] sm:$0xff] %vm17311_vm1, %v1153_v4  ;;  %v10851_v4 = vmul.f32 %v10753_v22, %v855_v13  ;;  %v10872_v13 = vmul.f32 %v10753_v22, %v862_v42  ;;  %v10884_v26 = vmul.f32 %v10753_v22, %v866_v54  ;;  %v10887_v12 = vmul.f32 %v10753_v22, %v867_v25 }
 0x2b3   :  { %v10890_v30 = vmul.f32 %v10753_v22, %v868_v53  ;;  %v10893_v42 = vmul.f32 %v10753_v22, %v869_v62  ;;  %v10896_v49 = vmul.f32 %v10753_v22, %v870_v2  ;;  %v10899_v46 = vmul.f32 %v10753_v22, %v871_v6 }
 0x2b4   :  { %v10902_v50 = vmul.f32 %v10753_v22, %v872_v10  ;;  %v10905_v54 = vmul.f32 %v10753_v22, %v873_v14  ;;  %v10908_v25 = vmul.f32 %v10753_v22, %v874_v18  ;;  %v10911_v53 = vmul.f32 %v10753_v22, %v875_v38  ;;  %v17907_v18 = vld [vmem:[#allocation17_spill] sm:$0xff] }
 0x2b5   :  { %v10914_v62 = vmul.f32 %v10753_v22, %v876_v32  ;;  %v10917_v2 = vmul.f32 %v10753_v22, %v877_v40  ;;  %v10920_v6 = vmul.f32 %v10753_v22, %v878_v56  ;;  %v10923_v10 = vmul.f32 %v10753_v22, %v879_v51 }
 0x2b6   :  { %v10926_v14 = vmul.f32 %v10753_v22, %v880_v8  ;;  %v842_v58 = vsub.f32 %v17907_v18, %v10681_v52  ;;  %v956_v38 = vmul.f32 %v10753_v22, %v881_v16  ;;  %v10932_v32 = vmul.f32 %v10753_v22, %v882_v34 }
 0x2b7   :  { %17905 = vst [vmem:[#allocation4_spill] sm:$0xff] %v10923_v10  ;;  %v10935_v40 = vmul.f32 %v10753_v22, %v883_v43  ;;  %v17912_v8 = vsub.f32 %v10041_v21, %v10681_v52  ;;  %v17913_v16 = vsub.f32 %v10047_v23, %v10681_v52 }
 0x2b8   :  { %17906 = vst [vmem:[#allocation5_spill] sm:$0xff] %v10926_v14  ;;  %v917_v10 = vmul.f32 %v10753_v22, %v842_v58  ;;  %v17921_v58 = vsub.f32 %v10071_v31, %v10681_v52  ;;  %v17925_v31 = vsub.f32 %v10095_v39, %v10681_v52  ;;  %v11005_v39 = vmul.f32 %v10742_v11, %v10817_v44 }
 0x2b9   :  { %17908 = vst [vmem:[#allocation6_spill] sm:$0xff] %v10932_v32  ;;  %v896_v14 = vmul.f32 %v10753_v22, %v17912_v8  ;;  %v897_v34 = vmul.f32 %v10753_v22, %v17913_v16  ;;  %v17918_v8 = vsub.f32 %v17889_v45, %v10681_v52  ;;  %v17919_v16 = vsub.f32 %v17890_v28, %v10681_v52 }
 0x2ba   :  { %17909 = vst [vmem:[#allocation18_spill] sm:$0xff] %v10935_v40  ;;  %v17920_v32 = vsub.f32 %v17891_v27, %v10681_v52  ;;  %v901_v51 = vmul.f32 %v10753_v22, %v17921_v58  ;;  %v17922_v45 = vsub.f32 %v10077_v33, %v10681_v52  ;;  %v17923_v28 = vsub.f32 %v10083_v35, %v10681_v52 }
 0x2bb   :  { %v898_v23 = vmul.f32 %v10753_v22, %v17918_v8  ;;  %v899_v43 = vmul.f32 %v10753_v22, %v17919_v16  ;;  %v17924_v27 = vsub.f32 %v17892_v37, %v10681_v52  ;;  %v905_v58 = vmul.f32 %v10753_v22, %v17925_v31 }
 0x2bc   :  { %v900_v56 = vmul.f32 %v10753_v22, %v17920_v32  ;;  %v902_v8 = vmul.f32 %v10753_v22, %v17922_v45  ;;  %v903_v16 = vmul.f32 %v10753_v22, %v17923_v28  ;;  %v17926_v33 = vsub.f32 %v10101_v41, %v10681_v52 }
 0x2bd   :  { %v904_v32 = vmul.f32 %v10753_v22, %v17924_v27  ;;  %v961_v21 = vmul.f32 %v10742_v11, %v896_v14  ;;  %v962_v35 = vmul.f32 %v10742_v11, %v897_v34  ;;  %v10997_v28 = vmul.f32 %v10742_v11, %v917_v10 }
 0x2be   :  { %v906_v45 = vmul.f32 %v10753_v22, %v17926_v33  ;;  %v11001_v37 = vmul.f32 %v10742_v11, %v10814_v20  ;;  %v11009_v41 = vmul.f32 %v10742_v11, %v10820_v61  ;;  %v11013_v14 = vmul.f32 %v10742_v11, %v10823_v63  ;;  %v17928_v34 = vld [vmem:[#allocation4_spill] sm:$0xff] }
 0x2bf   :  { %v11017_v10 = vmul.f32 %v10742_v11, %v10826_v47  ;;  %v11021_v20 = vmul.f32 %v10742_v11, %v10829_v60  ;;  %v11025_v44 = vmul.f32 %v10742_v11, %v10833_v29  ;;  %v11029_v61 = vmul.f32 %v10742_v11, %v10836_v57  ;;  %v17930_v27 = vld [vmem:[#allocation5_spill] sm:$0xff] }
 0x2c0   :  { %v11033_v63 = vmul.f32 %v10742_v11, %v10839_v36  ;;  %v11037_v47 = vmul.f32 %v10742_v11, %v10842_v55  ;;  %v11041_v60 = vmul.f32 %v10742_v11, %v10845_v24  ;;  %v11045_v29 = vmul.f32 %v10742_v11, %v10848_v48  ;;  %v17933_v33 = vld [vmem:[#allocation6_spill] sm:$0xff] }
 0x2c1   :  { %v11049_v57 = vmul.f32 %v10742_v11, %v10851_v4  ;;  %v11053_v36 = vmul.f32 %v10742_v11, %v10854_v1  ;;  %v11057_v55 = vmul.f32 %v10742_v11, %v10857_v3  ;;  %v11061_v24 = vmul.f32 %v10742_v11, %v10860_v5 }
 0x2c2   :  { %v11065_v48 = vmul.f32 %v10742_v11, %v10863_v0  ;;  %v11069_v4 = vmul.f32 %v10742_v11, %v10866_v7  ;;  %v11073_v1 = vmul.f32 %v10742_v11, %v10869_v9  ;;  %v11077_v3 = vmul.f32 %v10742_v11, %v10872_v13 }
 0x2c3   :  { %v11081_v5 = vmul.f32 %v10742_v11, %v10875_v15  ;;  %v11085_v0 = vmul.f32 %v10742_v11, %v10878_v17  ;;  %v11089_v7 = vmul.f32 %v10742_v11, %v10881_v19  ;;  %v11093_v9 = vmul.f32 %v10742_v11, %v10884_v26 }
 0x2c4   :  { %v11097_v13 = vmul.f32 %v10742_v11, %v10887_v12  ;;  %v11101_v15 = vmul.f32 %v10742_v11, %v10890_v30  ;;  %v11105_v17 = vmul.f32 %v10742_v11, %v10893_v42  ;;  %v11109_v19 = vmul.f32 %v10742_v11, %v10896_v49 }
 0x2c5   :  { %v11113_v26 = vmul.f32 %v10742_v11, %v10899_v46  ;;  %v11117_v12 = vmul.f32 %v10742_v11, %v10902_v50  ;;  %v11121_v30 = vmul.f32 %v10742_v11, %v10905_v54  ;;  %v11125_v42 = vmul.f32 %v10742_v11, %v10908_v25 }
 0x2c6   :  { %v11129_v49 = vmul.f32 %v10742_v11, %v10911_v53  ;;  %v11133_v46 = vmul.f32 %v10742_v11, %v10914_v62  ;;  %v11137_v50 = vmul.f32 %v10742_v11, %v10917_v2  ;;  %v11141_v54 = vmul.f32 %v10742_v11, %v10920_v6  ;;  %v17934_v6 = vld [vmem:[#allocation18_spill] sm:$0xff] }
 0x2c7   :  { %v11145_v25 = vmul.f32 %v10742_v11, %v17928_v34  ;;  %v11149_v53 = vmul.f32 %v10742_v11, %v17930_v27  ;;  %v11152_v31 = vmul.f32 %v10742_v11, %v956_v38  ;;  %v963_v62 = vmul.f32 %v10742_v11, %v898_v23 }
 0x2c8   :  { %17927 = vst [vmem:[#allocation19_spill] sm:$0xff] %v11141_v54  ;;  %v964_v2 = vmul.f32 %v10742_v11, %v899_v43  ;;  %v1022_v59 = vmul.f32 %v10742_v11, %v17933_v33  ;;  %v1023_v40 = vmul.f32 %v10742_v11, %v17934_v6  ;;  %v966_v27 = vmul.f32 %v10742_v11, %v901_v51  ;;  %v17941_v6 = vld [vmem:[#allocation9_spill] sm:$0xff]  ;;  %v17943_v51 = vld [vmem:[#allocation10_spill] sm:$0xff] }
 0x2c9   :  { %17929 = vst [vmem:[#allocation20_spill] sm:$0xff] %v11145_v25  ;;  %v965_v25 = vmul.f32 %v10742_v11, %v900_v56  ;;  %v967_v38 = vmul.f32 %v10742_v11, %v902_v8  ;;  %v17942_v18 = vsub.f32 %v17941_v6, %v10681_v52  ;;  %v17944_v8 = vsub.f32 %v17943_v51, %v10681_v52  ;;  %v17945_v6 = vld [vmem:[#allocation3_spill] sm:$0xff] }
 0x2ca   :  { %17931 = vst [vmem:[#allocation21_spill] sm:$0xff] %v11149_v53  ;;  %v17938_v53 = vld [vmem:[#allocation8_spill] sm:$0xff]  ;;  %v11200_v51 = vadd.f32 %v17945_v6, %v963_v62  ;;  %v11232_v62 = vadd.f32 %v17945_v6, %v11013_v14  ;;  %v11252_v14 = vadd.f32 %v17945_v6, %v11033_v63  ;;  %v11272_v63 = vadd.f32 %v17945_v6, %v11053_v36 }
 0x2cb   :  { %17932 = vst [vmem:[#allocation22_spill] sm:$0xff] %v11152_v31  ;;  %v17936_v31 = vld [vmem:[#allocation7_spill] sm:$0xff]  ;;  %v17939_v33 = vsub.f32 %v17938_v53, %v10681_v52  ;;  %v11179_v56 = vmul.f32 %v10753_v22, %v17942_v18  ;;  %v11185_v34 = vmul.f32 %v10753_v22, %v17944_v8  ;;  %v11190_v53 = vmul.f32 %v10742_v11, %v905_v58 }
 0x2cc   :  { %v17937_v23 = vsub.f32 %v17936_v31, %v10681_v52  ;;  %v968_v31 = vmul.f32 %v10742_v11, %v903_v16  ;;  %v11197_v18 = vadd.f32 %v17945_v6, %v962_v35  ;;  %v11203_v8 = vadd.f32 %v17945_v6, %v964_v2 }
 0x2cd   :  { %v11173_v54 = vmul.f32 %v10753_v22, %v17939_v33  ;;  %v11193_v33 = vmul.f32 %v10742_v11, %v906_v45  ;;  %v11206_v16 = vadd.f32 %v17945_v6, %v965_v25  ;;  %v11212_v58 = vadd.f32 %v17945_v6, %v967_v38 }
 0x2ce   :  { %v907_v43 = vmul.f32 %v10753_v22, %v17937_v23  ;;  %v969_v23 = vmul.f32 %v10742_v11, %v904_v32  ;;  %v11209_v32 = vadd.f32 %v17945_v6, %v966_v27  ;;  %v11220_v45 = vadd.f32 %v17945_v6, %v11001_v37 }
 0x2cf   :  { %17940 = vst [vmem:[#allocation23_spill] sm:$0xff] %v11173_v54  ;;  %v1026_v54 = vadd.f32 %v17945_v6, %v961_v21  ;;  %v11216_v21 = vadd.f32 %v17945_v6, %v10997_v28  ;;  %v11224_v35 = vadd.f32 %v17945_v6, %v11005_v39  ;;  %v11228_v25 = vadd.f32 %v17945_v6, %v11009_v41  ;;  %v17950_v2 = vld [vmem:[#allocation19_spill] sm:$0xff] }
 0x2d0   :  { %v11236_v28 = vadd.f32 %v17945_v6, %v11017_v10  ;;  %v11240_v37 = vadd.f32 %v17945_v6, %v11021_v20  ;;  %v11244_v39 = vadd.f32 %v17945_v6, %v11025_v44  ;;  %v11248_v41 = vadd.f32 %v17945_v6, %v11029_v61  ;;  %v17952_v27 = vld [vmem:[#allocation20_spill] sm:$0xff] }
 0x2d1   :  { %v11256_v10 = vadd.f32 %v17945_v6, %v11037_v47  ;;  %v11260_v20 = vadd.f32 %v17945_v6, %v11041_v60  ;;  %v11264_v44 = vadd.f32 %v17945_v6, %v11045_v29  ;;  %v11268_v61 = vadd.f32 %v17945_v6, %v11049_v57  ;;  %v17954_v38 = vld [vmem:[#allocation21_spill] sm:$0xff] }
 0x2d2   :  { %v11276_v47 = vadd.f32 %v17945_v6, %v11057_v55  ;;  %v11280_v60 = vadd.f32 %v17945_v6, %v11061_v24  ;;  %v11284_v29 = vadd.f32 %v17945_v6, %v11065_v48  ;;  %v11288_v57 = vadd.f32 %v17945_v6, %v11069_v4 }
 0x2d3   :  { %v11292_v36 = vadd.f32 %v17945_v6, %v11073_v1  ;;  %v11296_v55 = vadd.f32 %v17945_v6, %v11077_v3  ;;  %v11300_v24 = vadd.f32 %v17945_v6, %v11081_v5  ;;  %v11304_v48 = vadd.f32 %v17945_v6, %v11085_v0 }
 0x2d4   :  { %v11308_v4 = vadd.f32 %v17945_v6, %v11089_v7  ;;  %v11312_v1 = vadd.f32 %v17945_v6, %v11093_v9  ;;  %v11316_v3 = vadd.f32 %v17945_v6, %v11097_v13  ;;  %v11320_v5 = vadd.f32 %v17945_v6, %v11101_v15 }
 0x2d5   :  { %v11324_v0 = vadd.f32 %v17945_v6, %v11105_v17  ;;  %v11328_v7 = vadd.f32 %v17945_v6, %v11109_v19  ;;  %v11332_v9 = vadd.f32 %v17945_v6, %v11113_v26  ;;  %v11336_v13 = vadd.f32 %v17945_v6, %v11117_v12 }
 0x2d6   :  { %v11340_v15 = vadd.f32 %v17945_v6, %v11121_v30  ;;  %v11344_v17 = vadd.f32 %v17945_v6, %v11125_v42  ;;  %v11348_v19 = vadd.f32 %v17945_v6, %v11129_v49  ;;  %v11352_v26 = vadd.f32 %v17945_v6, %v11133_v46 }
 0x2d7   :  { %v11356_v12 = vadd.f32 %v17945_v6, %v11137_v50  ;;  %v11360_v30 = vadd.f32 %v17945_v6, %v17950_v2  ;;  %v11364_v42 = vadd.f32 %v17945_v6, %v17952_v27  ;;  %v11368_v49 = vadd.f32 %v17945_v6, %v17954_v38 }
 0x2d8   :  { %17946 = vst [vmem:[#allocation24_spill] sm:$0xff] %v11344_v17  ;;  %v11378_v50 = vadd.f32 %v17945_v6, %v1023_v40  ;;  %v1090_v2 = vmax.f32 %v1026_v54, 0.0  ;;  %v1092_v27 = vmax.f32 %v11200_v51, 0.0  ;;  %v1034_v51 = vadd.f32 %v17945_v6, %v969_v23  ;;  %v17967_v23 = vld [vmem:[#allocation14_spill] sm:$0xff] }
 0x2d9   :  { %17947 = vst [vmem:[#allocation25_spill] sm:$0xff] %v11348_v19  ;;  %v17956_v19 = vld [vmem:[#allocation22_spill] sm:$0xff] }
 0x2da   :  { %17948 = vst [vmem:[#allocation26_spill] sm:$0xff] %v11352_v26  ;;  %v11372_v46 = vadd.f32 %v17945_v6, %v17956_v19  ;;  %v11375_v26 = vadd.f32 %v17945_v6, %v1022_v59  ;;  %v1033_v19 = vadd.f32 %v17945_v6, %v968_v31  ;;  %v1093_v59 = vmax.f32 %v11203_v8, 0.0 }
 0x2db   :  { %17949 = vst [vmem:[#allocation27_spill] sm:$0xff] %v11356_v12  ;;  %v974_v8 = vmul.f32 %v10742_v11, %v11179_v56  ;;  %v1096_v56 = vmax.f32 %v11212_v58, 0.0  ;;  %v1098_v17 = vmax.f32 %v1034_v51, 0.0 }
 0x2dc   :  { %17951 = vst [vmem:[#allocation17_spill] sm:$0xff] %v11360_v30  ;;  %v1091_v30 = vmax.f32 %v11197_v18, 0.0 }
 0x2dd   :  { %17953 = vst [vmem:[#allocation4_spill] sm:$0xff] %v11364_v42  ;;  %v17960_v42 = vld [vmem:[#allocation11_spill] sm:$0xff] }
 0x2de   :  { %17955 = vst [vmem:[#allocation5_spill] sm:$0xff] %v11368_v49  ;;  %v17961_v12 = vsub.f32 %v17960_v42, %v10681_v52  ;;  %v972_v49 = vmul.f32 %v10742_v11, %v907_v43  ;;  %v1094_v42 = vmax.f32 %v11206_v16, 0.0  ;;  %v17968_v16 = vsub.f32 %v17967_v23, %v10681_v52 }
 0x2df   :  { %17957 = vst [vmem:[#allocation6_spill] sm:$0xff] %v11372_v46 }
 0x2e0   :  { %17958 = vst [vmem:[#allocation18_spill] sm:$0xff] %v11375_v26  ;;  %v911_v38 = vmul.f32 %v10753_v22, %v17961_v12  ;;  %v17962_v26 = vld [vmem:[#allocation12_spill] sm:$0xff]  ;;  %v17965_v12 = vld [vmem:[#allocation13_spill] sm:$0xff]  ;;  %v1037_v23 = vadd.f32 %v17945_v6, %v972_v49 }
 0x2e1   :  { %17959 = vst [vmem:[#allocation7_spill] sm:$0xff] %v11378_v50  ;;  %v17963_v40 = vsub.f32 %v17962_v26, %v10681_v52  ;;  %v17964_v50 = vld [vmem:[#allocation23_spill] sm:$0xff]  ;;  %v17966_v43 = vsub.f32 %v17965_v12, %v10681_v52  ;;  %v1035_v26 = vadd.f32 %v17945_v6, %v11190_v53  ;;  %v1036_v12 = vadd.f32 %v17945_v6, %v11193_v33 }
 0x2e2   :  { %v973_v18 = vmul.f32 %v10742_v11, %v17964_v50  ;;  %1160 = vst.msk [vmem:[#allocation2 + $0x18] sm:$0xff] %vm17311_vm1, %v1090_v2  ;;  %v914_v50 = vmul.f32 %v10753_v22, %v17968_v16  ;;  %v975_v2 = vmul.f32 %v10742_v11, %v11185_v34  ;;  %v17969_v53 = vld [vmem:[#allocation15_spill] sm:$0xff]  ;;  %v1097_v16 = vmax.f32 %v1033_v19, 0.0  ;;  %v17971_v34 = vld [vmem:[#allocation16_spill] sm:$0xff] }
 0x2e3   :  { %v912_v54 = vmul.f32 %v10753_v22, %v17963_v40  ;;  %v913_v31 = vmul.f32 %v10753_v22, %v17966_v43  ;;  %v1095_v40 = vmax.f32 %v11209_v32, 0.0  ;;  %1161 = vst.msk [vmem:[#allocation2 + $0x20] sm:$0xff] %vm17311_vm1, %v1091_v30  ;;  %v17970_v32 = vsub.f32 %v17969_v53, %v10681_v52 }
 0x2e4   :  { %1162 = vst.msk [vmem:[#allocation2 + $0x28] sm:$0xff] %vm17311_vm1, %v1092_v27  ;;  %v976_v43 = vmul.f32 %v10742_v11, %v911_v38  ;;  %v17972_v46 = vsub.f32 %v17971_v34, %v10681_v52  ;;  %v1038_v27 = vadd.f32 %v17945_v6, %v973_v18  ;;  %v1039_v38 = vadd.f32 %v17945_v6, %v974_v8 }
 0x2e5   :  { %v915_v30 = vmul.f32 %v10753_v22, %v17970_v32  ;;  %1163 = vst.msk [vmem:[#allocation2 + $0x30] sm:$0xff] %vm17311_vm1, %v1093_v59  ;;  %v977_v58 = vmul.f32 %v10742_v11, %v912_v54  ;;  %v978_v53 = vmul.f32 %v10742_v11, %v913_v31  ;;  %v1099_v49 = vmax.f32 %v1035_v26, 0.0 }
 0x2e6   :  { %v916_v33 = vmul.f32 %v10753_v22, %v17972_v46  ;;  %1164 = vst.msk [vmem:[#allocation2 + $0x38] sm:$0xff] %vm17311_vm1, %v1094_v42  ;;  %v979_v19 = vmul.f32 %v10742_v11, %v914_v50  ;;  %v1040_v52 = vadd.f32 %v17945_v6, %v975_v2  ;;  %v1100_v59 = vmax.f32 %v1036_v12, 0.0 }
 0x2e7   :  { %1165 = vst.msk [vmem:[#allocation2 + $0x40] sm:$0xff] %vm17311_vm1, %v1095_v40  ;;  %v980_v22 = vmul.f32 %v10742_v11, %v915_v30  ;;  %v1041_v46 = vadd.f32 %v17945_v6, %v976_v43  ;;  %v1101_v54 = vmax.f32 %v1037_v23, 0.0  ;;  %v1042_v51 = vadd.f32 %v17945_v6, %v977_v58 }
 0x2e8   :  { %1166 = vst.msk [vmem:[#allocation2 + $0x48] sm:$0xff] %vm17311_vm1, %v1096_v56  ;;  %v981_v18 = vmul.f32 %v10742_v11, %v916_v33  ;;  %v1102_v42 = vmax.f32 %v1038_v27, 0.0  ;;  %v1043_v31 = vadd.f32 %v17945_v6, %v978_v53  ;;  %v1103_v8 = vmax.f32 %v1039_v38, 0.0 }
 0x2e9   :  { %1167 = vst.msk [vmem:[#allocation2 + $0x50] sm:$0xff] %vm17311_vm1, %v1097_v16  ;;  %v1044_v26 = vadd.f32 %v17945_v6, %v979_v19  ;;  %v1104_v40 = vmax.f32 %v1040_v52, 0.0  ;;  %v1045_v50 = vadd.f32 %v17945_v6, %v980_v22  ;;  %v1105_v2 = vmax.f32 %v1041_v46, 0.0  ;;  %v17974_v19 = vld [vmem:[#allocation25_spill] sm:$0xff]  ;;  %v17975_v22 = vld [vmem:[#allocation26_spill] sm:$0xff] }
 0x2ea   :  { %1168 = vst.msk [vmem:[#allocation2 + $0x58] sm:$0xff] %vm17311_vm1, %v1098_v17  ;;  %v1046_v11 = vadd.f32 %v17945_v6, %v981_v18  ;;  %v1106_v12 = vmax.f32 %v1042_v51, 0.0  ;;  %v1107_v17 = vmax.f32 %v1043_v31, 0.0  ;;  %v1111_v43 = vmax.f32 %v11216_v21, 0.0  ;;  %v2314_v21 = vld [vmem:[%s17230_s1 + $0x30] sm:$0xff] }
 0x2eb   :  { %1169 = vst.msk [vmem:[#allocation2 + $0x60] sm:$0xff] %vm17311_vm1, %v1099_v49  ;;  %v1108_v56 = vmax.f32 %v1044_v26, 0.0  ;;  %v1109_v32 = vmax.f32 %v1045_v50, 0.0  ;;  %v1112_v6 = vmax.f32 %v11220_v45, 0.0  ;;  %v1113_v23 = vmax.f32 %v11224_v35, 0.0  ;;  %v2057_v45 = vld [vmem:[%s17230_s1 + $0x28] sm:$0xff]  ;;  %2522 = vmatpush.msra.mxu1 %v2314_v21  ;;  %9869 = vmatpush.msra.mxu3 %v2314_v21 }
 0x2ec   :  { %1170 = vst.msk [vmem:[#allocation2 + $0x68] sm:$0xff] %vm17311_vm1, %v1100_v59  ;;  %v1110_v30 = vmax.f32 %v1046_v11, 0.0  ;;  %v1114_v16 = vmax.f32 %v11228_v25, 0.0  ;;  %v1115_v34 = vmax.f32 %v11232_v62, 0.0  ;;  %v1116_v35 = vmax.f32 %v11236_v28, 0.0  ;;  %2923 = vmatpush.msrb.mxu0 %v2057_v45  ;;  %9870 = vmatpush.msra.mxu2 %v2057_v45  ;;  %v17976_v18 = vld [vmem:[#allocation27_spill] sm:$0xff] }
 0x2ed   :  { %1171 = vst.msk [vmem:[#allocation2 + $0x70] sm:$0xff] %vm17311_vm1, %v1101_v54  ;;  %v1117_v25 = vmax.f32 %v11240_v37, 0.0  ;;  %v1118_v62 = vmax.f32 %v11244_v39, 0.0  ;;  %v1119_v33 = vmax.f32 %v11248_v41, 0.0  ;;  %v1120_v28 = vmax.f32 %v11252_v14, 0.0  ;;  %v4689_v45 = vld [vmem:[%s17230_s1 + $0x48] sm:$0xff] }
 0x2ee   :  { %1172 = vst.msk [vmem:[#allocation2 + $0x78] sm:$0xff] %vm17311_vm1, %v1102_v42  ;;  %v1121_v58 = vmax.f32 %v11256_v10, 0.0  ;;  %v1122_v37 = vmax.f32 %v11260_v20, 0.0  ;;  %v1123_v39 = vmax.f32 %v11264_v44, 0.0  ;;  %v1124_v41 = vmax.f32 %v11268_v61, 0.0  ;;  %4897 = vmatpush.msrb.mxu2 %v4689_v45 }
 0x2ef   :  { %1173 = vst.msk [vmem:[#allocation2 + $0x80] sm:$0xff] %vm17311_vm1, %v1103_v8  ;;  %v1125_v14 = vmax.f32 %v11272_v63, 0.0  ;;  %v1126_v10 = vmax.f32 %v11276_v47, 0.0  ;;  %v1127_v20 = vmax.f32 %v11280_v60, 0.0  ;;  %v1128_v44 = vmax.f32 %v11284_v29, 0.0  ;;  %v17979_v8 = vld [vmem:[#allocation17_spill] sm:$0xff] }
 0x2f0   :  { %1174 = vst.msk [vmem:[#allocation2 + $0x88] sm:$0xff] %vm17311_vm1, %v1104_v40  ;;  %v1129_v61 = vmax.f32 %v11288_v57, 0.0  ;;  %v1130_v63 = vmax.f32 %v11292_v36, 0.0  ;;  %v1131_v47 = vmax.f32 %v11296_v55, 0.0  ;;  %v1132_v60 = vmax.f32 %v11300_v24, 0.0  ;;  %v17980_v40 = vld [vmem:[#allocation4_spill] sm:$0xff] }
 0x2f1   :  { %1175 = vst.msk [vmem:[#allocation2 + $0x90] sm:$0xff] %vm17311_vm1, %v1105_v2  ;;  %v1133_v29 = vmax.f32 %v11304_v48, 0.0  ;;  %v1134_v57 = vmax.f32 %v11308_v4, 0.0  ;;  %v1135_v36 = vmax.f32 %v11312_v1, 0.0  ;;  %v1136_v55 = vmax.f32 %v11316_v3, 0.0 }
 0x2f2   :  { %1176 = vst.msk [vmem:[#allocation2 + $0x98] sm:$0xff] %vm17311_vm1, %v1106_v12  ;;  %v17297_v27 = vlaneseq  ;;  %v1137_v24 = vmax.f32 %v11320_v5, 0.0  ;;  %v1138_v48 = vmax.f32 %v11324_v0, 0.0  ;;  %v1139_v4 = vmax.f32 %v11328_v7, 0.0 }
 0x2f3   :  { %1177 = vst.msk [vmem:[#allocation2 + $0xa0] sm:$0xff] %vm17311_vm1, %v1107_v17  ;;  %v1140_v1 = vmax.f32 %v11332_v9, 0.0  ;;  %v1141_v53 = vmax.f32 %v11336_v13, 0.0  ;;  %v1142_v5 = vmax.f32 %v11340_v15, 0.0  ;;  %v17973_v9 = vld [vmem:[#allocation24_spill] sm:$0xff]  ;;  %v1144_v52 = vmax.f32 %v17974_v19, 0.0 }
 0x2f4   :  { %1178 = vst.msk [vmem:[#allocation2 + $0xa8] sm:$0xff] %vm17311_vm1, %v1108_v56  ;;  %v11523_v3 = vshrl.u32 %v17297_v27, 7  ;;  %v1143_v38 = vmax.f32 %v17973_v9, 0.0  ;;  %v1145_v46 = vmax.f32 %v17975_v22, 0.0  ;;  %v1146_v51 = vmax.f32 %v17976_v18, 0.0  ;;  %v17982_v17 = vld [vmem:[#allocation5_spill] sm:$0xff] }
 0x2f5   :  { %1179 = vst.msk [vmem:[#allocation2 + $0xb0] sm:$0xff] %vm17311_vm1, %v1109_v32  ;;  %v1147_v26 = vmax.f32 %v17979_v8, 0.0  ;;  %v1148_v50 = vmax.f32 %v17980_v40, 0.0  ;;  %v1149_v56 = vmax.f32 %v17982_v17, 0.0  ;;  %v17996_v18 = vmov 0 }
 0x2f6   :  { %1180 = vst.msk [vmem:[#allocation2 + $0xb8] sm:$0xff] %vm17311_vm1, %v1110_v30  ;;  %v11530_v0 = vadd.s32 264, %v11523_v3  ;;  %v11533_v7 = vadd.s32 248, %v11523_v3  ;;  %v11538_v49 = vadd.s32 272, %v11523_v3  ;;  %v1257_v13 = vadd.s32 256, %v11523_v3 }
 0x2f7   :  { %1181 = vst.msk [vmem:[#allocation2 + $0xc0] sm:$0xff] %vm17311_vm1, %v1111_v43  ;;  %v17983_v43 = vld [vmem:[#allocation6_spill] sm:$0xff]  ;;  %v18000_v17 = vmov 0 }
 0x2f8   :  { %1182 = vst.msk [vmem:[#allocation2 + $0xc8] sm:$0xff] %vm17311_vm1, %v1112_v6  ;;  %v1386_v15 = vshra.s32 %v11530_v0, 4  ;;  %v1384_v59 = vshra.s32 %v11533_v7, 4  ;;  %v1385_v54 = vshra.s32 %v1257_v13, 4  ;;  %v1387_v2 = vshra.s32 %v11538_v49, 4 }
 0x2f9   :  { %1183 = vst.msk [vmem:[#allocation2 + $0xd0] sm:$0xff] %vm17311_vm1, %v1113_v23  ;;  %v1321_v11 = vand.u32 15, %v1257_v13  ;;  %v1150_v6 = vmax.f32 %v17983_v43, 0.0  ;;  %v1323_v13 = vand.u32 15, %v11538_v49 }
 0x2fa   :  { %1184 = vst.msk [vmem:[#allocation2 + $0xd8] sm:$0xff] %vm17311_vm1, %v1114_v16  ;;  %v11549_v42 = vand.u32 15, %v1386_v15  ;;  %v11551_v31 = vand.u32 15, %v1384_v59  ;;  %v11560_v12 = vand.u32 15, %v1385_v54 }
 0x2fb   :  { %1185 = vst.msk [vmem:[#allocation2 + $0xe0] sm:$0xff] %vm17311_vm1, %v1115_v34  ;;  %v17984_v34 = vld [vmem:[#allocation18_spill] sm:$0xff]  ;;  %vm11589_vm8 = vcmp.gt.s32.totalorder %v1321_v11, 0  ;;  %vm11659_vm0 = vcmp.gt.s32.totalorder %v1323_v13, 0  ;;  %v11739_v13 = vadd.s32 40, %v11523_v3 }
 0x2fc   :  { %1186 = vst.msk [vmem:[#allocation2 + $0xe8] sm:$0xff] %vm17311_vm1, %v1116_v35  ;;  %vm17273_vm5 = vcmp.gt.s32.totalorder %v11549_v42, 0  ;;  %vm17282_vm6 = vcmp.gt.s32.totalorder %v11551_v31, 0  ;;  %v1151_v21 = vmax.f32 %v17984_v34, 0.0  ;;  %v4159_v35 = vld [vmem:[%s17230_s1 + $0x40] sm:$0xff]  ;;  %vm17276_vm7 = vcmp.gt.s32.totalorder %v11560_v12, 0 }
 0x2fd   :  { %1187 = vst.msk [vmem:[#allocation2 + $0xf0] sm:$0xff] %vm17311_vm1, %v1117_v25  ;;  %v11580_v25 = vand.u32 15, %v1387_v2  ;;  %4367 = vmatpush.msrb.mxu1 %v4159_v35  ;;  %vm1833_vm10 = vmand %vm17276_vm7, %vm11589_vm8  ;;  %v17997_v18 = vsel %vm11659_vm0, 4294967295, %v17996_v18 }
 0x2fe   :  { %1188 = vst.msk [vmem:[#allocation2 + $0xf8] sm:$0xff] %vm17311_vm1, %v1118_v62  ;;  %v11583_v62 = vadd.s32 280, %v11523_v3 }
 0x2ff   :  { %1189 = vst.msk [vmem:[#allocation2 + $0x100] sm:$0xff] %vm17311_vm1, %v1119_v33  ;;  %v17986_v33 = vld [vmem:[#allocation7_spill] sm:$0xff]  ;;  %vm17272_vm9 = vcmp.gt.s32.totalorder %v11580_v25, 0 }
 0x300   :  { %1190 = vst.msk [vmem:[#allocation2 + $0x108] sm:$0xff] %vm17311_vm1, %v1120_v28  ;;  %v1152_v28 = vmax.f32 %v17986_v33, 0.0  ;;  %vm1835_vm3 = vmand %vm17272_vm9, %vm11659_vm0 }
 0x301   :  { %1191 = vst.msk [vmem:[#allocation2 + $0x110] sm:$0xff] %vm17311_vm1, %v1121_v58  ;;  %v1353_v58 = vshra.s32 %v11523_v3, 4 }
 0x302   :  { %1192 = vst.msk [vmem:[#allocation2 + $0x118] sm:$0xff] %vm17311_vm1, %v1122_v37  ;;  %v17987_v37 = vmov 0 }
 0x303   :  { %1193 = vst.msk [vmem:[#allocation2 + $0x120] sm:$0xff] %vm17311_vm1, %v1123_v39  ;;  %v17988_v37 = vsel %vm11589_vm8, 4294967295, %v17987_v37 }
 0x304   :  { %1194 = vst.msk [vmem:[#allocation2 + $0x128] sm:$0xff] %vm17311_vm1, %v1124_v41 }
 0x305   :  { %1195 = vst.msk [vmem:[#allocation2 + $0x130] sm:$0xff] %vm17311_vm1, %v1125_v14  ;;  %v1388_v14 = vshra.s32 %v11583_v62, 4 }
 0x306   :  { %1196 = vst.msk [vmem:[#allocation2 + $0x138] sm:$0xff] %vm17311_vm1, %v1126_v10  ;;  %v1768_v30 = vld [vmem:[#allocation2 + $0xff] sm:$0xff]  ;;  %v1289_v10 = vand.u32 15, %v11523_v3 }
 0x307   :  { %1197 = vst.msk [vmem:[#allocation2 + $0x140] sm:$0xff] %vm17311_vm1, %v1127_v20  ;;  %v2024_v16 = vsel %vm17282_vm6, %v1768_v30, 0.0  ;;  %v1769_v41 = vld [vmem:[#allocation2 + $0x107] sm:$0xff]  ;;  %v11604_v20 = vand.u32 15, %v1353_v58 }
 0x308   :  { %1198 = vst.msk [vmem:[#allocation2 + $0x148] sm:$0xff] %vm17311_vm1, %v1128_v44  ;;  %v2091_v32 = vld [vmem:[#allocation2 + $0x110] sm:$0xff]  ;;  %9388 = vmatmul.msk.f32.vlgmr.msra.gmra.mxu2 %vm17311_vm1, %v2024_v16  ;;  %v11607_v44 = vadd.s32 8, %v11523_v3  ;;  %vm11625_vm12 = vcmp.gt.s32.totalorder %v1289_v10, 0 }
 0x309   :  { %1199 = vst.msk [vmem:[#allocation2 + $0x150] sm:$0xff] %vm17311_vm1, %v1129_v61  ;;  %v2283_v23 = vsel %vm17273_vm5, %v2091_v32, 0.0  ;;  %v2092_v39 = vld [vmem:[#allocation2 + $0x118] sm:$0xff]  ;;  %v9945_v61 = vmov 0.0   ;;  %vm17288_vm11 = vcmp.gt.s32.totalorder %v11604_v20, 0 }
 0x30a   :  { %1200 = vst.msk [vmem:[#allocation2 + $0x158] sm:$0xff] %vm17311_vm1, %v1130_v63  ;;  %9326 = vmatmul.msk.f32.vlgmr.msra.gmra.mxu3 %vm17311_vm1, %v2283_v23  ;;  %v2284_v63 = vsel %vm17272_vm9, %v2092_v39, 0.0  ;;  %vm1801_vm13 = vmand %vm17288_vm11, %vm11625_vm12  ;;  %v1771_v11 = vld [vmem:[#allocation2 + $0x117] sm:$0xff]  ;;  %v1772_v58 = vld [vmem:[#allocation2 + $0x11f] sm:$0xff] }
 0x30b   :  { %1201 = vst.msk [vmem:[#allocation2 + $0x160] sm:$0xff] %vm17311_vm1, %v1131_v47  ;;  %v2025_v47 = vsel %vm1833_vm10, %v1769_v41, 0.0  ;;  %v2094_v40 = vld [vmem:[#allocation2 + $0x128] sm:$0xff]  ;;  %v2027_v30 = vsel %vm1835_vm3, %v1771_v11, 0.0  ;;  %v2060_v23 = vld [vmem:[#allocation2 + $0x18] sm:$0xff] }
 0x30c   :  { %1202 = vst.msk [vmem:[#allocation2 + $0x168] sm:$0xff] %vm17311_vm1, %v1132_v60  ;;  %v3437_v60 = vld [vmem:[%s17230_s1 + $0x38] sm:$0xff]  ;;  %v2095_v45 = vld [vmem:[#allocation2 + $0x130] sm:$0xff] }
 0x30d   :  { %1203 = vst.msk [vmem:[#allocation2 + $0x170] sm:$0xff] %vm17311_vm1, %v1133_v29  ;;  %v11619_v29 = vand.u32 15, %v1388_v14  ;;  %3645 = vmatpush.msrb.mxu3 %v3437_v60  ;;  %v18007_v60 = vmov 0  ;;  %v1774_v11 = vld [vmem:[#allocation2 + $0x12f] sm:$0xff] }
 0x30e   :  { %1204 = vst.msk [vmem:[#allocation2 + $0x178] sm:$0xff] %vm17311_vm1, %v1134_v57  ;;  %v11622_v57 = vadd.s32 288, %v11523_v3 }
 0x30f   :  { %1205 = vst.msk [vmem:[#allocation2 + $0x180] sm:$0xff] %vm17311_vm1, %v1135_v36  ;;  %vm17274_vm14 = vcmp.gt.s32.totalorder %v11619_v29, 0 }
 0x310   :  { %1206 = vst.msk [vmem:[#allocation2 + $0x188] sm:$0xff] %vm17311_vm1, %v1136_v55  ;;  %9389 = vmatmul.msk.f32.gmra.mxu2 %vm17311_vm1, %v2025_v47  ;;  %v1354_v55 = vshra.s32 %v11607_v44, 4  ;;  %v1325_v39 = vand.u32 15, %v11622_v57  ;;  %v2028_v10 = vsel %vm17274_vm14, %v1772_v58, 0.0  ;;  %v1742_v58 = vld [vmem:[#allocation2 + $0x2f] sm:$0xff] }
 0x311   :  { %1207 = vst.msk [vmem:[#allocation2 + $0x190] sm:$0xff] %vm17311_vm1, %v1137_v24  ;;  %v1227_v24 = vadd.s32 16, %v11523_v3 }
 0x312   :  { %1208 = vst.msk [vmem:[#allocation2 + $0x198] sm:$0xff] %vm17311_vm1, %v1138_v48  ;;  %9327 = vmatmul.msk.f32.gmra.mxu3 %vm17311_vm1, %v2284_v63  ;;  %v2093_v48 = vld [vmem:[#allocation2 + $0x120] sm:$0xff]  ;;  %v11717_v63 = vadd.s32 312, %v11523_v3 }
 0x313   :  { %1209 = vst.msk [vmem:[#allocation2 + $0x1a0] sm:$0xff] %vm17311_vm1, %v1139_v4  ;;  %v1389_v4 = vshra.s32 %v11622_v57, 4  ;;  %v2285_v15 = vsel %vm17274_vm14, %v2093_v48, 0.0  ;;  %v1291_v8 = vand.u32 15, %v1227_v24  ;;  %v2061_v57 = vld [vmem:[#allocation2 + $0x20] sm:$0xff] }
 0x314   :  { %1210 = vst.msk [vmem:[#allocation2 + $0x1a8] sm:$0xff] %vm17311_vm1, %v1140_v1  ;;  %v1392_v48 = vshra.s32 %v11717_v63, 4 }
 0x315   :  { %1211 = vst.msk [vmem:[#allocation2 + $0x1b0] sm:$0xff] %vm17311_vm1, %v1141_v53  ;;  %v11640_v53 = vand.u32 15, %v1354_v55  ;;  %v11652_v22 = vand.u32 15, %v1389_v4  ;;  %vm11677_vm10 = vcmp.gt.s32.totalorder %v1291_v8, 0  ;;  %v1740_v55 = vld [vmem:[#allocation2 + $0x1f] sm:$0xff]  ;;  %v1358_v8 = vshra.s32 %v11739_v13, 4 }
 0x316   :  { %1212 = vst.msk [vmem:[#allocation2 + $0x1b8] sm:$0xff] %vm17311_vm1, %v1142_v5  ;;  %v1770_v5 = vld [vmem:[#allocation2 + $0x10f] sm:$0xff]  ;;  %v18001_v17 = vsel %vm11677_vm10, 4294967295, %v18000_v17 }
 0x317   :  { %17977 = vst [vmem:[#allocation8_spill] sm:$0xff] %v11549_v42  ;;  %v2026_v59 = vsel %vm17273_vm5, %v1770_v5, 0.0  ;;  %vm17285_vm15 = vcmp.gt.s32.totalorder %v11640_v53, 0  ;;  %vm17275_vm2 = vcmp.gt.s32.totalorder %v11652_v22, 0  ;;  %v1773_v5 = vld [vmem:[#allocation2 + $0x127] sm:$0xff] }
 0x318   :  { %17978 = vst [vmem:[#allocation9_spill] sm:$0xff] %v11551_v31  ;;  %9390 = vmatmul.msk.f32.gmra.mxu2 %vm17311_vm1, %v2026_v59  ;;  %v2286_v32 = vsel %vm17275_vm2, %v2094_v40, 0.0  ;;  %v11748_v59 = vadd.s32 320, %v11523_v3  ;;  %v2097_v40 = vld [vmem:[#allocation2 + $0x140] sm:$0xff] }
 0x319   :  { %1213 = vst.msk [vmem:[#allocation2 + $0x1c0] sm:$0xff] %vm17311_vm1, %v1143_v38 }
 0x31a   :  { %1214 = vst.msk [vmem:[#allocation2 + $0x1c8] sm:$0xff] %vm17311_vm1, %v1144_v52  ;;  %v1355_v52 = vshra.s32 %v1227_v24, 4  ;;  %9328 = vmatmul.msk.f32.gmra.mxu3 %vm17311_vm1, %v2285_v15  ;;  %v2096_v24 = vld [vmem:[#allocation2 + $0x138] sm:$0xff]  ;;  %v11745_v15 = vand.u32 15, %v1392_v48  ;;  %v11801_v48 = vadd.s32 56, %v11523_v3 }
 0x31b   :  { %17981 = vst [vmem:[#allocation10_spill] sm:$0xff] %v11560_v12 }
 0x31c   :  { %1215 = vst.msk [vmem:[#allocation2 + $0x1d0] sm:$0xff] %vm17311_vm1, %v1145_v46  ;;  %v11655_v46 = vadd.s32 296, %v11523_v3 }
 0x31d   :  { %1216 = vst.msk [vmem:[#allocation2 + $0x1d8] sm:$0xff] %vm17311_vm1, %v1146_v51  ;;  %v11663_v51 = vand.u32 15, %v1355_v52 }
 0x31e   :  { %1217 = vst.msk [vmem:[#allocation2 + $0x1e0] sm:$0xff] %vm17311_vm1, %v1147_v26 }
 0x31f   :  { %17985 = vst [vmem:[#allocation3_spill] sm:$0xff] %v11580_v25  ;;  %vm17279_vm4 = vcmp.gt.s32.totalorder %v11663_v51, 0 }
 0x320   :  { %1218 = vst.msk [vmem:[#allocation2 + $0x1e8] sm:$0xff] %vm17311_vm1, %v1148_v50  ;;  %v1390_v50 = vshra.s32 %v11655_v46, 4  ;;  %9391 = vmatmul.msk.f32.gmra.mxu2 %vm17311_vm1, %v2027_v30 }
 0x321   :  { %17989 = vst [vmem:[#allocation19_spill] sm:$0xff] %v17988_v37 }
 0x322   :  { %1219 = vst.msk [vmem:[#allocation2 + $0x1f0] sm:$0xff] %vm17311_vm1, %v1149_v56  ;;  %v11682_v56 = vadd.s32 24, %v11523_v3  ;;  %9329 = vmatmul.msk.f32.gmra.mxu3 %vm17311_vm1, %v2286_v32  ;;  %v11688_v43 = vand.u32 15, %v1390_v50  ;;  %v1393_v50 = vshra.s32 %v11748_v59, 4 }
 0x323   :  { %1220 = vst.msk [vmem:[#allocation2 + $0x1f8] sm:$0xff] %vm17311_vm1, %v1150_v6  ;;  %v11691_v6 = vadd.s32 304, %v11523_v3 }
 0x324   :  { %1221 = vst.msk [vmem:[#allocation2 + $0x200] sm:$0xff] %vm17311_vm1, %v1151_v21  ;;  %v1356_v34 = vshra.s32 %v11682_v56, 4  ;;  %v2252_v21 = vsel %vm17279_vm4, %v2060_v23, 0.0  ;;  %vm17280_vm3 = vcmp.gt.s32.totalorder %v11688_v43, 0 }
 0x325   :  { %1222 = vst.msk [vmem:[#allocation2 + $0x208] sm:$0xff] %vm17311_vm1, %v1152_v28  ;;  %v1391_v35 = vshra.s32 %v11691_v6, 4  ;;  %v1229_v28 = vadd.s32 32, %v11523_v3  ;;  %v2287_v14 = vsel %vm17280_vm3, %v2095_v45, 0.0  ;;  %v1327_v30 = vand.u32 15, %v11691_v6 }
 0x326   :  { %17990 = vst [vmem:[#allocation20_spill] sm:$0xff] %v11604_v20  ;;  %v11706_v41 = vand.u32 15, %v1356_v34  ;;  %v11776_v45 = vand.u32 15, %v1393_v50  ;;  %v1233_v50 = vadd.s32 64, %v11523_v3 }
 0x327   :  { %1155 = vst.msk [vmem:[#allocation2 + $0x8] sm:$0xff] %vm17311_vm1, %v9945_v61  ;;  %v1357_v47 = vshra.s32 %v1229_v28, 4 }
 0x328   :  { %1154 = vst.msk [vmem:[#allocation2] sm:$0xff] %vm17311_vm1, %v9945_v61  ;;  %9392 = vmatmul.msk.f32.gmra.mxu2 %vm17311_vm1, %v2028_v10  ;;  %vm17277_vm9 = vcmp.gt.s32.totalorder %v11706_v41, 0 }
 0x329   :  { %1156 = vst.msk [vmem:[#allocation2 + $0x10] sm:$0xff] %vm17311_vm1, %v9945_v61  ;;  %v11727_v4 = vand.u32 15, %v1357_v47 }
 0x32a   :  { %17991 = vst [vmem:[#allocation21_spill] sm:$0xff] %v11619_v29  ;;  %9330 = vmatmul.msk.f32.gmra.mxu3 %vm17311_vm1, %v2287_v14 }
 0x32b   :  { %1157 = vst.msk [vmem:[#allocation2 + $0x218] sm:$0xff] %vm17311_vm1, %v9945_v61 }
 0x32c   :  { %1158 = vst.msk [vmem:[#allocation2 + $0x220] sm:$0xff] %vm17311_vm1, %v9945_v61 }
 0x32d   :  { %1159 = vst.msk [vmem:[#allocation2 + $0x228] sm:$0xff] %vm17311_vm1, %v9945_v61  ;;  %v11714_v61 = vand.u32 15, %v1391_v35  ;;  %v11779_v35 = vadd.s32 328, %v11523_v3 }
 0x32e   :  { %v2058_v1 = vld [vmem:[#allocation2 + $0x8] sm:$0xff]  ;;  %17994 = vst [vmem:[#allocation22_spill] sm:$0xff] %v11640_v53 }
 0x32f   :  { %v2250_v9 = vsel %vm17288_vm11, %v2058_v1, 0.0  ;;  %v1737_v38 = vld [vmem:[#allocation2 + $0x7] sm:$0xff]  ;;  %17995 = vst [vmem:[#allocation11_spill] sm:$0xff] %v11652_v22  ;;  %vm17281_vm5 = vcmp.gt.s32.totalorder %v11714_v61, 0  ;;  %v1293_v1 = vand.u32 15, %v1229_v28  ;;  %v2063_v28 = vld [vmem:[#allocation2 + $0x30] sm:$0xff] }
 0x330   :  { %9293 = vmatmul.msk.f32.vlgmr.msra.gmra.mxu1 %vm17311_vm1, %v2250_v9  ;;  %v1993_v19 = vsel %vm1801_vm13, %v1737_v38, 0.0  ;;  %v2059_v49 = vld [vmem:[#allocation2 + $0x10] sm:$0xff]  ;;  %17998 = vst [vmem:[#allocation12_spill] sm:$0xff] %v17997_v18  ;;  %vm1803_vm13 = vmand %vm17279_vm4, %vm11677_vm10  ;;  %v2253_v9 = vsel %vm17277_vm9, %v2061_v57, 0.0  ;;  %v1996_v38 = vsel %vm17277_vm9, %v1740_v55, 0.0  ;;  %vm17286_vm9 = vcmp.gt.s32.totalorder %v11745_v15, 0 }
 0x331   :  { %9357 = vmatmul.msk.f32.vlgmr.msrb.gmra.mxu0 %vm17311_vm1, %v1993_v19  ;;  %v1738_v54 = vld [vmem:[#allocation2 + $0xf] sm:$0xff]  ;;  %17999 = vst [vmem:[#allocation23_spill] sm:$0xff] %v11663_v51  ;;  %v2251_v26 = vsel %vm17285_vm15, %v2059_v49, 0.0  ;;  %v1739_v16 = vld [vmem:[#allocation2 + $0x17] sm:$0xff]  ;;  %v2288_v19 = vsel %vm17281_vm5, %v2096_v24, 0.0  ;;  %vm11751_vm7 = vcmp.gt.s32.totalorder %v1293_v1, 0 }
 0x332   :  { %v1994_v2 = vsel %vm17285_vm15, %v1738_v54, 0.0  ;;  %18002 = vst [vmem:[#allocation13_spill] sm:$0xff] %v18001_v17  ;;  %v1995_v33 = vsel %vm1803_vm13, %v1739_v16, 0.0  ;;  %vm11720_vm13 = vcmp.gt.s32.totalorder %v1325_v39, 0  ;;  %9331 = vmatmul.msk.f32.gmra.mxu3 %vm17311_vm1, %v2288_v19  ;;  %v18013_v49 = vmov 0  ;;  %v2062_v54 = vld [vmem:[#allocation2 + $0x28] sm:$0xff] }
 0x333   :  { %18003 = vst [vmem:[#allocation14_spill] sm:$0xff] %v11682_v56  ;;  %v18008_v60 = vsel %vm11720_vm13, 4294967295, %v18007_v60  ;;  %vm1837_vm14 = vmand %vm17275_vm2, %vm11720_vm13  ;;  %vm17278_vm2 = vcmp.gt.s32.totalorder %v11727_v4, 0  ;;  %v18014_v49 = vsel %vm11751_vm7, 4294967295, %v18013_v49  ;;  %v11768_v16 = vand.u32 15, %v1358_v8  ;;  %v2098_v39 = vld [vmem:[#allocation2 + $0x148] sm:$0xff] }
 0x334   :  { %18004 = vst [vmem:[#allocation15_spill] sm:$0xff] %v11688_v43  ;;  %v2029_v52 = vsel %vm1837_vm14, %v1773_v5, 0.0  ;;  %vm1805_vm14 = vmand %vm17278_vm2, %vm11751_vm7  ;;  %v2254_v32 = vsel %vm17278_vm2, %v2062_v54, 0.0  ;;  %v2289_v34 = vsel %vm17286_vm9, %v2097_v40, 0.0  ;;  %vm17287_vm4 = vcmp.gt.s32.totalorder %v11776_v45, 0  ;;  %v1775_v57 = vld [vmem:[#allocation2 + $0x137] sm:$0xff] }
 0x335   :  { %18005 = vst [vmem:[#allocation16_spill] sm:$0xff] %v11706_v41  ;;  %9393 = vmatmul.msk.f32.gmra.mxu2 %vm17311_vm1, %v2029_v52  ;;  %vm17283_vm2 = vcmp.gt.s32.totalorder %v11768_v16, 0  ;;  %v1394_v14 = vshra.s32 %v11779_v35, 4  ;;  %v2290_v1 = vsel %vm17287_vm4, %v2098_v39, 0.0  ;;  %v18024_v19 = vmov 0  ;;  %v2064_v52 = vld [vmem:[#allocation2 + $0x38] sm:$0xff] }
 0x336   :  { %18006 = vst [vmem:[#allocation24_spill] sm:$0xff] %v11714_v61  ;;  %v2255_v55 = vsel %vm17283_vm2, %v2063_v28, 0.0  ;;  %v1998_v24 = vsel %vm17283_vm2, %v1742_v58, 0.0  ;;  %v1360_v54 = vshra.s32 %v11801_v48, 4  ;;  %v1743_v8 = vld [vmem:[#allocation2 + $0x37] sm:$0xff]  ;;  %v11841_v28 = vadd.s32 344, %v11523_v3 }
 0x337   :  { %18009 = vst [vmem:[#allocation25_spill] sm:$0xff] %v18008_v60  ;;  %v18029_v58 = vmov 0  ;;  %v2065_v39 = vld [vmem:[#allocation2 + $0x40] sm:$0xff]  ;;  %v11987_v61 = vadd.s32 104, %v11523_v3 }
 0x338   :  { %9294 = vmatmul.msk.f32.gmra.mxu1 %vm17311_vm1, %v2251_v26  ;;  %18010 = vst [vmem:[#allocation26_spill] sm:$0xff] %v11727_v4  ;;  %v1741_v26 = vld [vmem:[#allocation2 + $0x27] sm:$0xff]  ;;  %v1787_v4 = vld [vmem:[#allocation2 + $0x197] sm:$0xff] }
 0x339   :  { %9358 = vmatmul.msk.f32.gmra.mxu0 %vm17311_vm1, %v1994_v2  ;;  %18011 = vst [vmem:[#allocation27_spill] sm:$0xff] %v11739_v13  ;;  %v1231_v2 = vadd.s32 48, %v11523_v3  ;;  %v1997_v23 = vsel %vm1805_vm14, %v1741_v26, 0.0  ;;  %vm11782_vm14 = vcmp.gt.s32.totalorder %v1327_v30, 0  ;;  %v2099_v26 = vld [vmem:[#allocation2 + $0x150] sm:$0xff] }
 0x33a   :  { %18012 = vst [vmem:[#allocation17_spill] sm:$0xff] %v11745_v15  ;;  %9332 = vmatmul.msk.f32.gmra.mxu3 %vm17311_vm1, %v2289_v34 }
 0x33b   :  { %18015 = vst [vmem:[#allocation4_spill] sm:$0xff] %v18014_v49  ;;  %v1359_v6 = vshra.s32 %v1231_v2, 4  ;;  %v1295_v47 = vand.u32 15, %v1231_v2  ;;  %v1776_v2 = vld [vmem:[#allocation2 + $0x13f] sm:$0xff] }
 0x33c   :  { %18016 = vst [vmem:[#allocation5_spill] sm:$0xff] %v11768_v16 }
 0x33d   :  { %18017 = vst [vmem:[#allocation6_spill] sm:$0xff] %v11776_v45  ;;  %v11789_v10 = vand.u32 15, %v1359_v6  ;;  %vm11813_vm6 = vcmp.gt.s32.totalorder %v1295_v47, 0  ;;  %v2100_v47 = vld [vmem:[#allocation2 + $0x158] sm:$0xff] }
 0x33e   :  { %18022 = vst [vmem:[#allocation28_spill] sm:$0xff] %v11801_v48  ;;  %v18025_v19 = vsel %vm11813_vm6, 4294967295, %v18024_v19 }
 0x33f   :  { %18021 = vst [vmem:[#allocation7_spill] sm:$0xff] %v11789_v10 }
 0x340   :  { %9295 = vmatmul.msk.f32.gmra.mxu1 %vm17311_vm1, %v2252_v21  ;;  %v2030_v21 = vsel %vm17280_vm3, %v1774_v11, 0.0  ;;  %vm1839_vm3 = vmand %vm17281_vm5, %vm11782_vm14  ;;  %vm17284_vm5 = vcmp.gt.s32.totalorder %v11789_v10, 0  ;;  %18026 = vst [vmem:[#allocation30_spill] sm:$0xff] %v18025_v19 }
 0x341   :  { %9359 = vmatmul.msk.f32.gmra.mxu0 %vm17311_vm1, %v1995_v33  ;;  %9394 = vmatmul.msk.f32.gmra.mxu2 %vm17311_vm1, %v2030_v21  ;;  %v18018_v33 = vmov 0  ;;  %v2031_v5 = vsel %vm1839_vm3, %v1775_v57, 0.0  ;;  %vm1807_vm3 = vmand %vm17284_vm5, %vm11813_vm6  ;;  %v2256_v11 = vsel %vm17284_vm5, %v2064_v52, 0.0  ;;  %v2032_v21 = vsel %vm17286_vm9, %v1776_v2, 0.0  ;;  %18058 = vst [vmem:[#allocation49_spill] sm:$0xff] %v11987_v61 }
 0x342   :  { %v18019_v33 = vsel %vm11782_vm14, 4294967295, %v18018_v33  ;;  %9333 = vmatmul.msk.f32.gmra.mxu3 %vm17311_vm1, %v2290_v1  ;;  %v1999_v30 = vsel %vm1807_vm3, %v1743_v8, 0.0  ;;  %v1396_v57 = vshra.s32 %v11841_v28, 4  ;;  %v1777_v1 = vld [vmem:[#allocation2 + $0x147] sm:$0xff]  ;;  %v18035_v2 = vmov 0 }
 0x343   :  { %18020 = vst [vmem:[#allocation18_spill] sm:$0xff] %v18019_v33 }
 0x348   :  { %9296 = vmatmul.msk.f32.gmra.mxu1 %vm17311_vm1, %v2253_v9  ;;  %v11807_v9 = vand.u32 15, %v1394_v14  ;;  %v1744_v14 = vld [vmem:[#allocation2 + $0x3f] sm:$0xff] }
 0x349   :  { %9360 = vmatmul.msk.f32.gmra.mxu0 %vm17311_vm1, %v1996_v38  ;;  %v11810_v38 = vadd.s32 336, %v11523_v3  ;;  %9395 = vmatmul.msk.f32.gmra.mxu2 %vm17311_vm1, %v2031_v5 }
 0x34a   :  { %18023 = vst [vmem:[#allocation29_spill] sm:$0xff] %v11807_v9  ;;  %vm17292_vm2 = vcmp.gt.s32.totalorder %v11807_v9, 0 }
 0x34b   :  { %v1395_v40 = vshra.s32 %v11810_v38, 4  ;;  %v2291_v34 = vsel %vm17292_vm2, %v2099_v26, 0.0 }
 0x34c   :  { %9334 = vmatmul.msk.f32.gmra.mxu3 %vm17311_vm1, %v2291_v34  ;;  %v2101_v34 = vld [vmem:[#allocation2 + $0x160] sm:$0xff] }
 0x34d   :  { %v11838_v6 = vand.u32 15, %v1395_v40  ;;  %v11869_v40 = vand.u32 15, %v1396_v57 }
 0x34f   :  { %18028 = vst [vmem:[#allocation32_spill] sm:$0xff] %v11838_v6  ;;  %vm17293_vm15 = vcmp.gt.s32.totalorder %v11838_v6, 0 }
 0x350   :  { %9297 = vmatmul.msk.f32.gmra.mxu1 %vm17311_vm1, %v2254_v32  ;;  %v1329_v32 = vand.u32 15, %v11748_v59  ;;  %v1361_v59 = vshra.s32 %v1233_v50, 4  ;;  %v2292_v8 = vsel %vm17293_vm15, %v2100_v47, 0.0  ;;  %18034 = vst [vmem:[#allocation36_spill] sm:$0xff] %v11869_v40  ;;  %v1331_v47 = vand.u32 15, %v11810_v38 }
 0x351   :  { %9361 = vmatmul.msk.f32.gmra.mxu0 %vm17311_vm1, %v1997_v23  ;;  %v11830_v23 = vand.u32 15, %v1360_v54  ;;  %9396 = vmatmul.msk.f32.gmra.mxu2 %vm17311_vm1, %v2032_v21  ;;  %v11863_v54 = vadd.s32 72, %v11523_v3 }
 0x352   :  { %vm11844_vm3 = vcmp.gt.s32.totalorder %v1329_v32, 0 }
 0x353   :  { %18027 = vst [vmem:[#allocation31_spill] sm:$0xff] %v11830_v23  ;;  %v18030_v58 = vsel %vm11844_vm3, 4294967295, %v18029_v58  ;;  %vm17289_vm5 = vcmp.gt.s32.totalorder %v11830_v23, 0  ;;  %vm1841_vm9 = vmand %vm17287_vm4, %vm11844_vm3  ;;  %v1362_v32 = vshra.s32 %v11863_v54, 4  ;;  %vm18057_vm3 = vcmask 64512  }
 0x354   :  { %18031 = vst [vmem:[#allocation33_spill] sm:$0xff] %v18030_v58  ;;  %v2257_v5 = vsel %vm17289_vm5, %v2065_v39, 0.0  ;;  %v2000_v52 = vsel %vm17289_vm5, %v1744_v14, 0.0  ;;  %9335 = vmatmul.msk.f32.gmra.mxu3 %vm17311_vm1, %v2292_v8  ;;  %v2033_v26 = vsel %vm1841_vm9, %v1777_v1, 0.0  ;;  %vm17291_vm5 = vcmp.gt.s32.totalorder %v11869_v40, 0  ;;  %v1778_v39 = vld [vmem:[#allocation2 + $0x14f] sm:$0xff]  ;;  %vm18059_vm14 = vmmov %vm18057_vm3 }
 0x355   :  { %18033 = vst [vmem:[#allocation35_spill] sm:$0xff] %v11863_v54  ;;  %v2293_v1 = vsel %vm17291_vm5, %v2101_v34, 0.0  ;;  %v11903_v8 = vadd.s32 360, %v11523_v3  ;;  %vm18060_vm13 = vmmov %vm18057_vm3 }
 0x357   :  { %v1398_v34 = vshra.s32 %v11903_v8, 4 }
 0x358   :  { %9298 = vmatmul.msk.f32.gmra.mxu1 %vm17311_vm1, %v2255_v55  ;;  %v11851_v55 = vand.u32 15, %v1361_v59  ;;  %v1235_v59 = vadd.s32 80, %v11523_v3 }
 0x359   :  { %9362 = vmatmul.msk.f32.gmra.mxu0 %vm17311_vm1, %v1998_v24  ;;  %v1297_v24 = vand.u32 15, %v1233_v50  ;;  %v11872_v50 = vadd.s32 352, %v11523_v3  ;;  %9397 = vmatmul.msk.f32.gmra.mxu2 %vm17311_vm1, %v2033_v26  ;;  %v18040_v26 = vmov 0 }
 0x35a   :  { %18032 = vst [vmem:[#allocation34_spill] sm:$0xff] %v11851_v55  ;;  %vm17290_vm4 = vcmp.gt.s32.totalorder %v11851_v55, 0  ;;  %v1363_v38 = vshra.s32 %v1235_v59, 4 }
 0x35b   :  { %vm11875_vm11 = vcmp.gt.s32.totalorder %v1297_v24, 0  ;;  %v1397_v21 = vshra.s32 %v11872_v50, 4  ;;  %v11892_v24 = vand.u32 15, %v1362_v32  ;;  %v1746_v32 = vld [vmem:[#allocation2 + $0x4f] sm:$0xff]  ;;  %v1333_v27 = vand.u32 15, %v11872_v50 }
 0x35c   :  { %v18036_v2 = vsel %vm11875_vm11, 4294967295, %v18035_v2  ;;  %vm1809_vm9 = vmand %vm17290_vm4, %vm11875_vm11  ;;  %9336 = vmatmul.msk.f32.gmra.mxu3 %vm17311_vm1, %v2293_v1  ;;  %v11925_v1 = vadd.s32 88, %v11523_v3 }
 0x35d   :  { %18037 = vst [vmem:[#allocation37_spill] sm:$0xff] %v18036_v2 }
 0x35e   :  { %18038 = vst [vmem:[#allocation38_spill] sm:$0xff] %v11892_v24 }
 0x35f   :  { %18044 = vst [vmem:[#allocation42_spill] sm:$0xff] %v11925_v1 }
 0x360   :  { %9299 = vmatmul.msk.f32.gmra.mxu1 %vm17311_vm1, %v2256_v11  ;;  %v2066_v11 = vld [vmem:[#allocation2 + $0x48] sm:$0xff] }
 0x361   :  { %9363 = vmatmul.msk.f32.gmra.mxu0 %vm17311_vm1, %v1999_v30  ;;  %v1745_v30 = vld [vmem:[#allocation2 + $0x47] sm:$0xff]  ;;  %v2258_v14 = vsel %vm17290_vm4, %v2066_v11, 0.0  ;;  %vm17296_vm4 = vcmp.gt.s32.totalorder %v11892_v24, 0  ;;  %v2067_v11 = vld [vmem:[#allocation2 + $0x50] sm:$0xff]  ;;  %v1784_v24 = vld [vmem:[#allocation2 + $0x17f] sm:$0xff] }
 0x362   :  { %v2001_v57 = vsel %vm1809_vm9, %v1745_v30, 0.0  ;;  %vm11906_vm9 = vcmp.gt.s32.totalorder %v1331_v47, 0  ;;  %v2102_v30 = vld [vmem:[#allocation2 + $0x168] sm:$0xff]  ;;  %v2259_v47 = vsel %vm17296_vm4, %v2067_v11, 0.0  ;;  %v11934_v11 = vadd.s32 368, %v11523_v3 }
 0x363   :  { %v18041_v26 = vsel %vm11906_vm9, 4294967295, %v18040_v26 }
 0x364   :  { %18042 = vst [vmem:[#allocation40_spill] sm:$0xff] %v18041_v26 }
 0x368   :  { %9300 = vmatmul.msk.f32.gmra.mxu1 %vm17311_vm1, %v2257_v5  ;;  %v2034_v5 = vsel %vm17292_vm2, %v1778_v39, 0.0  ;;  %v1299_v39 = vand.u32 15, %v1235_v59  ;;  %vm1843_vm2 = vmand %vm17293_vm15, %vm11906_vm9 }
 0x369   :  { %9364 = vmatmul.msk.f32.gmra.mxu0 %vm17311_vm1, %v2000_v52  ;;  %v11900_v52 = vand.u32 15, %v1397_v21  ;;  %9398 = vmatmul.msk.f32.gmra.mxu2 %vm17311_vm1, %v2034_v5  ;;  %v11913_v21 = vand.u32 15, %v1363_v38  ;;  %v11931_v38 = vand.u32 15, %v1398_v34  ;;  %v2103_v34 = vld [vmem:[#allocation2 + $0x170] sm:$0xff] }
 0x36a   :  { %vm11937_vm9 = vcmp.gt.s32.totalorder %v1299_v39, 0  ;;  %v1237_v39 = vadd.s32 96, %v11523_v3 }
 0x36b   :  { %18039 = vst [vmem:[#allocation39_spill] sm:$0xff] %v11900_v52  ;;  %vm17304_vm5 = vcmp.gt.s32.totalorder %v11900_v52, 0  ;;  %vm17309_vm15 = vcmp.gt.s32.totalorder %v11913_v21, 0 }
 0x36c   :  { %18043 = vst [vmem:[#allocation41_spill] sm:$0xff] %v11913_v21  ;;  %v2294_v59 = vsel %vm17304_vm5, %v2102_v30, 0.0  ;;  %v1364_v30 = vshra.s32 %v11925_v1, 4  ;;  %vm18050_vm5 = vcmp.gt.s32.totalorder %v11869_v40, 0  ;;  %v1365_v50 = vshra.s32 %v1237_v39, 4  ;;  %v1751_v21 = vld [vmem:[#allocation2 + $0x77] sm:$0xff] }
 0x36d   :  { %9337 = vmatmul.msk.f32.gmra.mxu3 %vm17311_vm1, %v2294_v59  ;;  %18045 = vst [vmem:[#allocation43_spill] sm:$0xff] %v11931_v38  ;;  %v1780_v59 = vld [vmem:[#allocation2 + $0x15f] sm:$0xff]  ;;  %v2107_v1 = vld [vmem:[#allocation2 + $0x190] sm:$0xff] }
 0x36e   :  { %v11954_v6 = vand.u32 15, %v1364_v30  ;;  %v2036_v45 = vsel %vm18050_vm5, %v1780_v59, 0.0  ;;  %v18052_v30 = vmov 0  ;;  %v1301_v59 = vand.u32 15, %v1237_v39 }
 0x36f   :  { %vm18056_vm5 = vcmp.gt.s32.totalorder %v11900_v52, 0  ;;  %v1335_v52 = vand.u32 15, %v11934_v11 }
 0x370   :  { %9301 = vmatmul.msk.f32.gmra.mxu1 %vm17311_vm1, %v2258_v14  ;;  %v1779_v14 = vld [vmem:[#allocation2 + $0x157] sm:$0xff]  ;;  %18049 = vst [vmem:[#allocation45_spill] sm:$0xff] %v11954_v6 }
 0x371   :  { %9365 = vmatmul.msk.f32.gmra.mxu0 %vm17311_vm1, %v2001_v57  ;;  %v2002_v57 = vsel %vm17296_vm4, %v1746_v32, 0.0  ;;  %v2035_v5 = vsel %vm1843_vm2, %v1779_v14, 0.0  ;;  %v18046_v32 = vmov 0  ;;  %vm1811_vm2 = vmand %vm17309_vm15, %vm11937_vm9  ;;  %vm17310_vm4 = vcmp.gt.s32.totalorder %v11931_v38, 0 }
 0x372   :  { %v18047_v32 = vsel %vm11937_vm9, 4294967295, %v18046_v32  ;;  %9399 = vmatmul.msk.f32.gmra.mxu2 %vm17311_vm1, %v2035_v5  ;;  %v1399_v14 = vshra.s32 %v11934_v11, 4  ;;  %v2295_v58 = vsel %vm17310_vm4, %v2103_v34, 0.0  ;;  %v12027_v11 = vadd.s32 392, %v11523_v3 }
 0x373   :  { %18048 = vst [vmem:[#allocation44_spill] sm:$0xff] %v18047_v32  ;;  %v2072_v32 = vld [vmem:[#allocation2 + $0x78] sm:$0xff] }
 0x374   :  { %v11962_v33 = vand.u32 15, %v1399_v14  ;;  %v11975_v14 = vand.u32 15, %v1365_v50 }
 0x375   :  { %9338 = vmatmul.msk.f32.gmra.mxu3 %vm17311_vm1, %v2295_v58  ;;  %v2104_v58 = vld [vmem:[#allocation2 + $0x178] sm:$0xff] }
 0x376   :  { %18051 = vst [vmem:[#allocation46_spill] sm:$0xff] %v11962_v33  ;;  %vm17333_vm4 = vcmp.gt.s32.totalorder %v11962_v33, 0 }
 0x377   :  { %18055 = vst [vmem:[#allocation48_spill] sm:$0xff] %v11975_v14  ;;  %v2296_v39 = vsel %vm17333_vm4, %v2104_v58, 0.0  ;;  %v1366_v58 = vshra.s32 %v11987_v61, 4  ;;  %vm18068_vm4 = vmmov %vm18059_vm14 }
 0x378   :  { %9302 = vmatmul.msk.f32.gmra.mxu1 %vm17311_vm1, %v2259_v47  ;;  %v2068_v47 = vld [vmem:[#allocation2 + $0x58] sm:$0xff] }
 0x379   :  { %9366 = vmatmul.msk.f32.gmra.mxu0 %vm17311_vm1, %v2002_v57  ;;  %v1747_v57 = vld [vmem:[#allocation2 + $0x57] sm:$0xff]  ;;  %v2260_v5 = vsel %vm17309_vm15, %v2068_v47, 0.0  ;;  %v11965_v47 = vadd.s32 376, %v11523_v3  ;;  %vm17322_vm15 = vcmp.gt.s32.totalorder %v11954_v6, 0  ;;  %v12016_v22 = vand.u32 15, %v1366_v58 }
 0x37a   :  { %v2003_v26 = vsel %vm1811_vm2, %v1747_v57, 0.0  ;;  %9400 = vmatmul.msk.f32.gmra.mxu2 %vm17311_vm1, %v2036_v45  ;;  %vm11968_vm2 = vcmp.gt.s32.totalorder %v1333_v27, 0  ;;  %v1748_v57 = vld [vmem:[#allocation2 + $0x5f] sm:$0xff]  ;;  %v2071_v58 = vld [vmem:[#allocation2 + $0x70] sm:$0xff]  ;;  %v12079_v6 = vadd.s32 216, %v11523_v3 }
 0x37b   :  { %v18053_v30 = vsel %vm11968_vm2, 4294967295, %v18052_v30  ;;  %v1400_v34 = vshra.s32 %v11965_v47, 4  ;;  %v2004_v45 = vsel %vm17322_vm15, %v1748_v57, 0.0  ;;  %v18062_v57 = vmov 0  ;;  %18067 = vst [vmem:[#allocation52_spill] sm:$0xff] %v12016_v22 }
 0x37c   :  { %18054 = vst [vmem:[#allocation47_spill] sm:$0xff] %v18053_v30  ;;  %v1380_v19 = vshra.s32 %v12079_v6, 4  ;;  %v1316_v49 = vand.u32 15, %v12079_v6  ;;  %v18129_v6 = vmov 0 }
 0x37d   :  { %9339 = vmatmul.msk.f32.gmra.mxu3 %vm18060_vm13, %v2296_v39  ;;  %v11993_v30 = vand.u32 15, %v1400_v34  ;;  %v1749_v39 = vld [vmem:[#allocation2 + $0x67] sm:$0xff] }
 0x37e   :  { %v2105_v34 = vld [vmem:[#allocation2 + $0x180] sm:$0xff] }
 0x37f   :  { %18061 = vst [vmem:[#allocation50_spill] sm:$0xff] %v11993_v30 }
 0x380   :  { %9303 = vmatmul.msk.f32.gmra.mxu1 %vm17311_vm1, %v2260_v5  ;;  %v1781_v5 = vld [vmem:[#allocation2 + $0x167] sm:$0xff] }
 0x381   :  { %9367 = vmatmul.msk.f32.gmra.mxu0 %vm17311_vm1, %v2003_v26  ;;  %v2069_v26 = vld [vmem:[#allocation2 + $0x60] sm:$0xff]  ;;  %vm1845_vm1 = vmand %vm18056_vm5, %vm11968_vm2  ;;  %vm11999_vm5 = vcmp.gt.s32.totalorder %v1301_v59, 0  ;;  %vm18069_vm2 = vcmp.gt.s32.totalorder %v11931_v38, 0 }
 0x382   :  { %v2261_v27 = vsel %vm17322_vm15, %v2069_v26, 0.0  ;;  %v2037_v50 = vsel %vm1845_vm1, %v1781_v5, 0.0  ;;  %v11996_v26 = vadd.s32 384, %v11523_v3  ;;  %v18063_v57 = vsel %vm11999_vm5, 4294967295, %v18062_v57  ;;  %vm18065_vm15 = vmmov %vm18060_vm13  ;;  %v1782_v5 = vld [vmem:[#allocation2 + $0x16f] sm:$0xff] }
 0x383   :  { %18064 = vst [vmem:[#allocation51_spill] sm:$0xff] %v18063_v57  ;;  %9401 = vmatmul.msk.f32.gmra.mxu2 %vm18065_vm15, %v2037_v50  ;;  %vm17344_vm13 = vcmp.gt.s32.totalorder %v11993_v30, 0  ;;  %vm18066_vm15 = vmmov %vm18059_vm14  ;;  %v2038_v37 = vsel %vm18069_vm2, %v1782_v5, 0.0  ;;  %v1248_v5 = vadd.s32 184, %v11523_v3  ;;  %vm18077_vm2 = vcmp.gt.s32.totalorder %v11962_v33, 0 }
 0x384   :  { %v1401_v59 = vshra.s32 %v11996_v26, 4  ;;  %v2297_v25 = vsel %vm17344_vm13, %v2105_v34, 0.0  ;;  %v2106_v34 = vld [vmem:[#allocation2 + $0x188] sm:$0xff]  ;;  %v12064_v33 = vadd.s32 200, %v11523_v3  ;;  %v1337_v55 = vand.u32 15, %v11996_v26 }
 0x385   :  { %9340 = vmatmul.msk.f32.gmra.mxu3 %vm18068_vm4, %v2297_v25  ;;  %v1750_v25 = vld [vmem:[#allocation2 + $0x6f] sm:$0xff] }
 0x386   :  { %v12024_v57 = vand.u32 15, %v1401_v59  ;;  %v1402_v59 = vshra.s32 %v12027_v11, 4 }
 0x388   :  { %9304 = vmatmul.msk.f32.gmra.mxu1 %vm18057_vm3, %v2261_v27  ;;  %vm17340_vm3 = vcmp.gt.s32.totalorder %v11975_v14, 0  ;;  %v2070_v27 = vld [vmem:[#allocation2 + $0x68] sm:$0xff]  ;;  %18070 = vst [vmem:[#allocation53_spill] sm:$0xff] %v12024_v57  ;;  %v1251_v14 = vadd.s32 208, %v11523_v3 }
 0x389   :  { %9368 = vmatmul.msk.f32.gmra.mxu0 %vm18059_vm14, %v2004_v45  ;;  %v1239_v45 = vadd.s32 112, %v11523_v3  ;;  %vm1813_vm1 = vmand %vm17340_vm3, %vm11999_vm5  ;;  %v2262_v50 = vsel %vm17340_vm3, %v2070_v27, 0.0  ;;  %v18072_v27 = vmov 0  ;;  %vm17381_vm3 = vcmp.gt.s32.totalorder %v12016_v22, 0 }
 0x38a   :  { %v2005_v60 = vsel %vm1813_vm1, %v1749_v39, 0.0  ;;  %vm12030_vm1 = vcmp.gt.s32.totalorder %v1335_v52, 0  ;;  %v1783_v52 = vld [vmem:[#allocation2 + $0x177] sm:$0xff]  ;;  %v2006_v61 = vsel %vm17381_vm3, %v1750_v25, 0.0  ;;  %v12074_v25 = vand.u32 15, %v1402_v59 }
 0x38b   :  { %v1367_v18 = vshra.s32 %v1239_v45, 4  ;;  %v18073_v27 = vsel %vm12030_vm1, 4294967295, %v18072_v27  ;;  %v1303_v39 = vand.u32 15, %v1239_v45  ;;  %v2263_v45 = vsel %vm17381_vm3, %v2071_v58, 0.0 }
 0x38c   :  { %18074 = vst [vmem:[#allocation54_spill] sm:$0xff] %v18073_v27  ;;  %v18081_v58 = vmov 0  ;;  %v1376_v22 = vshra.s32 %v1248_v5, 4  ;;  %v1315_v54 = vand.u32 15, %v1251_v14  ;;  %vm18128_vm5 = vcmask 64512  }
 0x38d   :  { %18085 = vst [vmem:[#allocation58_spill] sm:$0xff] %v12074_v25  ;;  %vm18132_vm9 = vmmov %vm18128_vm5 }
 0x38e   :  { %vm18133_vm11 = vmmov %vm18128_vm5 }
 0x390   :  { %9305 = vmatmul.msk.f32.gmra.mxu1 %vm18066_vm15, %v2262_v50  ;;  %vm18071_vm15 = vmmov %vm18068_vm4  ;;  %vm17383_vm4 = vcmp.gt.s32.totalorder %v12024_v57, 0  ;;  %v12054_v50 = vadd.s32 400, %v11523_v3 }
 0x391   :  { %9369 = vmatmul.msk.f32.gmra.mxu0 %vm18059_vm14, %v2005_v60  ;;  %9402 = vmatmul.msk.f32.gmra.mxu2 %vm18071_vm15, %v2038_v37  ;;  %v12035_v60 = vand.u32 15, %v1367_v18  ;;  %v12041_v37 = vadd.s32 120, %v11523_v3  ;;  %vm12047_vm14 = vmand %vm18077_vm2, %vm12030_vm1  ;;  %v2298_v27 = vsel %vm17383_vm4, %v2106_v34, 0.0  ;;  %vm12067_vm1 = vcmp.gt.s32.totalorder %v1303_v39, 0 }
 0x392   :  { %vm18080_vm2 = vmmov %vm18071_vm15  ;;  %v18082_v58 = vsel %vm12067_vm1, 4294967295, %v18081_v58  ;;  %v1403_v39 = vshra.s32 %v12054_v50, 4  ;;  %v12095_v18 = vadd.s32 232, %v11523_v3  ;;  %vm12130_vm4 = vcmp.gt.s32.totalorder %v1337_v55, 0  ;;  %v1752_v55 = vld [vmem:[#allocation2 + $0x7f] sm:$0xff] }
 0x393   :  { %18075 = vst [vmem:[#allocation55_spill] sm:$0xff] %v12035_v60  ;;  %vm17380_vm13 = vcmp.gt.s32.totalorder %v12035_v60, 0  ;;  %vm18084_vm0 = vmmov %vm18080_vm2  ;;  %v1368_v34 = vshra.s32 %v12041_v37, 4 }
 0x394   :  { %18076 = vst [vmem:[#allocation56_spill] sm:$0xff] %v12041_v37  ;;  %9341 = vmatmul.msk.f32.gmra.mxu3 %vm18084_vm0, %v2298_v27  ;;  %v1379_v27 = vshra.s32 %v1251_v14, 4  ;;  %v2264_v37 = vsel %vm17380_vm13, %v2072_v32, 0.0  ;;  %v12110_v60 = vand.u32 15, %v1403_v39  ;;  %v1382_v14 = vshra.s32 %v12095_v18, 4 }
 0x395   :  { %18083 = vst [vmem:[#allocation57_spill] sm:$0xff] %v18082_v58  ;;  %v12101_v58 = vand.u32 15, %v1376_v22  ;;  %v12103_v2 = vand.u32 15, %v1368_v34  ;;  %v12125_v39 = vadd.s32 408, %v11523_v3 }
 0x396   :  { %18090 = vst [vmem:[#allocation60_spill] sm:$0xff] %v12110_v60  ;;  %v12112_v32 = vand.u32 15, %v1379_v27  ;;  %v12138_v27 = vand.u32 15, %v1380_v19  ;;  %v12151_v19 = vand.u32 15, %v1382_v14 }
 0x397   :  { %18089 = vst [vmem:[#allocation59_spill] sm:$0xff] %v12103_v2  ;;  %v1404_v14 = vshra.s32 %v12125_v39, 4 }
 0x398   :  { %9306 = vmatmul.msk.f32.gmra.mxu1 %vm18071_vm15, %v2263_v45  ;;  %v2039_v45 = vsel %vm12047_vm14, %v1783_v52, 0.0  ;;  %vm18086_vm15 = vmmov %vm18084_vm0  ;;  %v1378_v52 = vshra.s32 %v12064_v33, 4  ;;  %vm17382_vm14 = vcmp.gt.s32.totalorder %v12074_v25, 0  ;;  %18091 = vst [vmem:[#allocation61_spill] sm:$0xff] %v12112_v32 }
 0x399   :  { %9370 = vmatmul.msk.f32.gmra.mxu0 %vm18080_vm2, %v2006_v61  ;;  %9403 = vmatmul.msk.f32.gmra.mxu2 %vm18086_vm15, %v2039_v45  ;;  %v12082_v61 = vadd.s32 128, %v11523_v3  ;;  %vm12089_vm0 = vmand %vm17380_vm13, %vm12067_vm1  ;;  %v1255_v45 = vadd.s32 240, %v11523_v3  ;;  %v2299_v22 = vsel %vm17382_vm14, %v2107_v1, 0.0  ;;  %v18096_v1 = vmov 0 }
 0x39a   :  { %v2007_v23 = vsel %vm12089_vm0, %v1751_v21, 0.0  ;;  %v12117_v34 = vand.u32 15, %v1378_v52  ;;  %vm18092_vm15 = vmmov %vm18080_vm2  ;;  %vm18094_vm0 = vcmp.gt.s32.totalorder %v11993_v30, 0  ;;  %v18097_v1 = vsel %vm12130_vm4, 4294967295, %v18096_v1  ;;  %v12146_v52 = vpop.f32.mrf.mxu3 }
 0x39b   :  { %v1369_v10 = vshra.s32 %v12082_v61, 4  ;;  %v1383_v26 = vshra.s32 %v1255_v45, 4  ;;  %vm18093_vm13 = vmmov %vm18080_vm2  ;;  %v2040_v21 = vsel %vm18094_vm0, %v1784_v24, 0.0  ;;  %18098 = vst [vmem:[#allocation62_spill] sm:$0xff] %v18097_v1  ;;  %v2073_v24 = vld [vmem:[#allocation2 + $0x80] sm:$0xff]  ;;  %v1319_v59 = vand.u32 15, %v1255_v45 }
 0x39c   :  { %9342 = vmatmul.msk.f32.gmra.mxu3 %vm18093_vm13, %v2299_v22  ;;  %vm18095_vm14 = vmmov %vm18093_vm13  ;;  %v12148_v22 = vpop.f32.mrf.mxu2  ;;  %v18105_v45 = vmov 0  ;;  %v1305_v48 = vand.u32 15, %v12082_v61  ;;  %v18116_v61 = vmov 0  ;;  %vm18121_vm1 = vcmp.gt.s32.totalorder %v12110_v60, 0 }
 0x39d   :  { %18104 = vst [vmem:[#allocation64_spill] sm:$0xff] %v12148_v22  ;;  %v12166_v22 = vadd.s32 136, %v11523_v3  ;;  %vm18124_vm8 = vcmp.gt.s32.totalorder %v12117_v34, 0 }
 0x39f   :  { %18108 = vst [vmem:[#allocation66_spill] sm:$0xff] %v12166_v22 }
 0x3a0   :  { %9307 = vmatmul.msk.f32.gmra.mxu1 %vm18080_vm2, %v2264_v37  ;;  %vm17388_vm2 = vcmp.gt.s32.totalorder %v12101_v58, 0  ;;  %v1312_v37 = vand.u32 15, %v1248_v5  ;;  %v18101_v5 = vmov 0 }
 0x3a1   :  { %9371 = vmatmul.msk.f32.gmra.mxu0 %vm18092_vm15, %v2007_v23  ;;  %9404 = vmatmul.msk.f32.gmra.mxu2 %vm18095_vm14, %v2040_v21  ;;  %vm12134_vm15 = vcmp.gt.s32.totalorder %v1315_v54, 0  ;;  %vm17395_vm14 = vcmp.lt.s32.totalorder %v12112_v32, 15  ;;  %v2108_v54 = vld [vmem:[#allocation2 + $0x198] sm:$0xff]  ;;  %v12153_v21 = vand.u32 15, %v1383_v26  ;;  %v18109_v26 = vmov 0 }
 0x3a2   :  { %vm12141_vm0 = vcmp.lt.s32.totalorder %v1312_v37, 15  ;;  %v1314_v37 = vand.u32 15, %v12064_v33  ;;  %vm12173_vm3 = vmand %vm17395_vm14, %vm12134_vm15  ;;  %vm18119_vm14 = vcmp.gt.s32.totalorder %v12103_v2, 0  ;;  %v12263_v33 = vpop.f32.mrf.mxu3 }
 0x3a3   :  { %v18102_v5 = vsel %vm12141_vm0, 4294967295, %v18101_v5  ;;  %vm12159_vm13 = vmand %vm17388_vm2, %vm12141_vm0  ;;  %v18110_v26 = vsel %vm12173_vm3, 4294967295, %v18109_v26  ;;  %vm18113_vm2 = vcmp.gt.s32.totalorder %v12024_v57, 0  ;;  %v2300_v57 = vsel %vm18121_vm1, %v2108_v54, 0.0 }
 0x3a4   :  { %18103 = vst [vmem:[#allocation63_spill] sm:$0xff] %v18102_v5  ;;  %v18106_v45 = vsel %vm12159_vm13, 4294967295, %v18105_v45  ;;  %v12177_v5 = vand.u32 15, %v1369_v10  ;;  %vm12183_vm0 = vmand %vm18113_vm2, %vm12130_vm4  ;;  %vm12188_vm13 = vcmp.lt.s32.totalorder %v1314_v37, 15  ;;  %v2265_v10 = vsel %vm18119_vm14, %v2073_v24, 0.0  ;;  %9343 = vmatmul.msk.f32.gmra.mxu3 %vm18133_vm11, %v2300_v57 }
 0x3a5   :  { %18107 = vst [vmem:[#allocation65_spill] sm:$0xff] %v18106_v45  ;;  %v1785_v45 = vld [vmem:[#allocation2 + $0x187] sm:$0xff]  ;;  %v18117_v61 = vsel %vm12188_vm13, 4294967295, %v18116_v61  ;;  %vm18120_vm3 = vmmov %vm18119_vm14  ;;  %vm12199_vm2 = vcmp.gt.s32.totalorder %v1319_v59, 0  ;;  %v18125_v37 = vmov 0  ;;  %vm17413_vm1 = vcmp.lt.s32.totalorder %v12153_v21, 15 }
 0x3a6   :  { %18111 = vst [vmem:[#allocation67_spill] sm:$0xff] %v18110_v26  ;;  %v2008_v1 = vsel %vm18120_vm3, %v1752_v55, 0.0  ;;  %vm12207_vm4 = vmand %vm18124_vm8, %vm12188_vm13  ;;  %vm12213_vm3 = vcmp.lt.s32.totalorder %v1316_v49, 15  ;;  %v1318_v24 = vand.u32 15, %v12095_v18  ;;  %v2041_v59 = vsel %vm12183_vm0, %v1785_v45, 0.0  ;;  %v2074_v45 = vld [vmem:[#allocation2 + $0x88] sm:$0xff] }
 0x3a7   :  { %18112 = vst [vmem:[#allocation68_spill] sm:$0xff] %v12177_v5  ;;  %v18126_v37 = vsel %vm12207_vm4, 4294967295, %v18125_v37  ;;  %v18130_v6 = vsel %vm12213_vm3, 4294967295, %v18129_v6  ;;  %v12223_v55 = vand.u32 15, %v1404_v14  ;;  %v12226_v54 = vadd.s32 416, %v11523_v3  ;;  %vm18142_vm11 = vmmov %vm18132_vm9  ;;  %v4657_v26 = vld [vmem:[#allocation2 + $0x118] sm:$0xff] }
 0x3a8   :  { %18118 = vst [vmem:[#allocation69_spill] sm:$0xff] %v18117_v61  ;;  %9308 = vmatmul.msk.f32.gmra.mxu1 %vm18128_vm5, %v2265_v10  ;;  %vm18135_vm8 = vcmp.gt.s32.totalorder %v12138_v27, 0  ;;  %v18136_v49 = vmov 0  ;;  %vm12237_vm14 = vcmp.gt.s32.totalorder %v1305_v48, 0  ;;  %v18139_v57 = vmov 0  ;;  %vm12246_vm0 = vmand %vm17413_vm1, %vm12199_vm2  ;;  %v12265_v10 = vpop.f32.mrf.mxu2 }
 0x3a9   :  { %18127 = vst [vmem:[#allocation70_spill] sm:$0xff] %v18126_v37  ;;  %9372 = vmatmul.msk.f32.gmra.mxu0 %vm18132_vm9, %v2008_v1  ;;  %vm12232_vm5 = vmand %vm18135_vm8, %vm12213_vm3  ;;  %v18140_v57 = vsel %vm12237_vm14, 4294967295, %v18139_v57  ;;  %9405 = vmatmul.msk.f32.gmra.mxu2 %vm18142_vm11, %v2041_v59  ;;  %v18143_v18 = vmov 0  ;;  %vm12250_vm8 = vcmp.lt.s32.totalorder %v1318_v24, 15  ;;  %v18146_v1 = vmov 0  ;;  %v1753_v24 = vld [vmem:[#allocation2 + $0x87] sm:$0xff] }
 0x3aa   :  { %18131 = vst [vmem:[#allocation71_spill] sm:$0xff] %v18130_v6  ;;  %v18137_v49 = vsel %vm12232_vm5, 4294967295, %v18136_v49  ;;  %v18144_v18 = vsel %vm12246_vm0, 4294967295, %v18143_v18  ;;  %v18147_v1 = vsel %vm12250_vm8, 4294967295, %v18146_v1  ;;  %vm18149_vm9 = vcmp.gt.s32.totalorder %v12151_v19, 0  ;;  %v2109_v6 = vld [vmem:[#allocation2 + $0x1a0] sm:$0xff] }
 0x3ab   :  { %18134 = vst [vmem:[#allocation72_spill] sm:$0xff] %v12223_v55  ;;  %vm12258_vm3 = vmand %vm18149_vm9, %vm12250_vm8  ;;  %v18150_v48 = vmov 0  ;;  %v1370_v14 = vshra.s32 %v12166_v22, 4  ;;  %vm18155_vm11 = vcmp.gt.s32.totalorder %v12177_v5, 0  ;;  %vm17435_vm9 = vcmp.gt.s32.totalorder %v12223_v55, 0 }
 0x3ac   :  { %18138 = vst [vmem:[#allocation73_spill] sm:$0xff] %v18137_v49  ;;  %v18151_v48 = vsel %vm12258_vm3, 4294967295, %v18150_v48  ;;  %vm1817_vm1 = vmand %vm18155_vm11, %vm12237_vm14  ;;  %v1405_v61 = vshra.s32 %v12226_v54, 4  ;;  %v1786_v49 = vld [vmem:[#allocation2 + $0x18f] sm:$0xff]  ;;  %v1339_v37 = vand.u32 15, %v12054_v50  ;;  %vm18158_vm0 = vcmask 64512  }
 0x3ad   :  { %18141 = vst [vmem:[#allocation74_spill] sm:$0xff] %v18140_v57  ;;  %v12267_v59 = vpop.f32.mrf.mxu1  ;;  %vm18157_vm13 = vmmov %vm18155_vm11  ;;  %v12282_v57 = vand.u32 15, %v1370_v14  ;;  %v2301_v22 = vsel %vm17435_vm9, %v2109_v6, 0.0  ;;  %vm18162_vm5 = vcmp.gt.s32.totalorder %v12074_v25, 0  ;;  %v18165_v14 = vmov 0  ;;  %v2075_v6 = vld [vmem:[#allocation2 + $0x90] sm:$0xff] }
 0x3ae   :  { %18145 = vst [vmem:[#allocation75_spill] sm:$0xff] %v18144_v18  ;;  %v12275_v18 = vpop.f32.mrf.mxu0  ;;  %vm18160_vm11 = vmmov %vm18158_vm0  ;;  %v12290_v2 = vand.u32 15, %v1405_v61 }
 0x3af   :  { %18148 = vst [vmem:[#allocation76_spill] sm:$0xff] %v18147_v1  ;;  %vm18161_vm3 = vmmov %vm18158_vm0  ;;  %v1794_v1 = vld [vmem:[#allocation2 + $0x1cf] sm:$0xff] }
 0x3b0   :  { %18152 = vst [vmem:[#allocation77_spill] sm:$0xff] %v18151_v48  ;;  %v1243_v48 = vadd.s32 144, %v11523_v3  ;;  %9344 = vmatmul.msk.f32.gmra.mxu3 %vm18161_vm3, %v2301_v22  ;;  %v3024_v61 = vpop.f32.mrf.mxu2  ;;  %vm17449_vm3 = vcmp.gt.s32.totalorder %v12290_v2, 0 }
 0x3b1   :  { %18153 = vst [vmem:[#allocation78_spill] sm:$0xff] %v12265_v10  ;;  %v2266_v10 = vsel %vm18157_vm13, %v2074_v45, 0.0  ;;  %v12293_v45 = vadd.s32 424, %v11523_v3  ;;  %vm18164_vm13 = vmmov %vm18158_vm0  ;;  %v12312_v16 = vadd.f32 %v3024_v61, %v12146_v52 }
 0x3b2   :  { %18154 = vst [vmem:[#allocation79_spill] sm:$0xff] %v12267_v59  ;;  %9309 = vmatmul.msk.f32.gmra.mxu1 %vm18158_vm0, %v2266_v10  ;;  %v2009_v59 = vsel %vm1817_vm1, %v1753_v24, 0.0  ;;  %v1371_v50 = vshra.s32 %v1243_v48, 4  ;;  %vm12296_vm1 = vcmp.gt.s32.totalorder %v1339_v37, 0  ;;  %vm17436_vm0 = vcmp.gt.s32.totalorder %v12282_v57, 0  ;;  %v12301_v10 = vpop.f32.mrf.mxu3  ;;  %vm18174_vm9 = vmmov %vm18164_vm13 }
 0x3b3   :  { %18156 = vst [vmem:[#allocation80_spill] sm:$0xff] %v12275_v18  ;;  %9373 = vmatmul.msk.f32.gmra.mxu0 %vm18160_vm11, %v2009_v59  ;;  %v2042_v18 = vsel %vm18162_vm5, %v1786_v49, 0.0  ;;  %v18166_v14 = vsel %vm12296_vm1, 4294967295, %v18165_v14  ;;  %v1754_v49 = vld [vmem:[#allocation2 + $0x8f] sm:$0xff]  ;;  %v1406_v24 = vshra.s32 %v12293_v45, 4  ;;  %vm18172_vm5 = vcmp.gt.s32.totalorder %v12110_v60, 0  ;;  %vm18175_vm4 = vmmov %vm18174_vm9 }
 0x3b4   :  { %18159 = vst [vmem:[#allocation81_spill] sm:$0xff] %v12282_v57  ;;  %9406 = vmatmul.msk.f32.gmra.mxu2 %vm18164_vm13, %v2042_v18  ;;  %v2110_v59 = vld [vmem:[#allocation2 + $0x1a8] sm:$0xff]  ;;  %v12309_v37 = vand.u32 15, %v1371_v50  ;;  %v1307_v18 = vand.u32 15, %v1243_v48  ;;  %vm1851_vm11 = vmand %vm18172_vm5, %vm12296_vm1  ;;  %v12324_v50 = vadd.s32 152, %v11523_v3  ;;  %v1341_v57 = vand.u32 15, %v12226_v54 }
 0x3b5   :  { %18163 = vst [vmem:[#allocation82_spill] sm:$0xff] %v12290_v2  ;;  %v12303_v22 = vpop.f32.mrf.mxu1  ;;  %v2302_v52 = vsel %vm17449_vm3, %v2110_v59, 0.0  ;;  %v2043_v48 = vsel %vm1851_vm11, %v1787_v4, 0.0  ;;  %v12330_v61 = vand.u32 15, %v1406_v24  ;;  %v1755_v4 = vld [vmem:[#allocation2 + $0x97] sm:$0xff]  ;;  %vm18189_vm1 = vcmp.gt.s32.totalorder %v12223_v55, 0 }
 0x3b6   :  { %18167 = vst [vmem:[#allocation83_spill] sm:$0xff] %v18166_v14  ;;  %v12307_v5 = vpop.f32.mrf.mxu0  ;;  %vm17452_vm5 = vcmp.gt.s32.totalorder %v12309_v37, 0  ;;  %v1372_v59 = vshra.s32 %v12324_v50, 4  ;;  %v12379_v54 = vadd.s32 440, %v11523_v3  ;;  %v2112_v24 = vld [vmem:[#allocation2 + $0x1b8] sm:$0xff] }
 0x3b7   :  { %18168 = vst [vmem:[#allocation84_spill] sm:$0xff] %v12303_v22  ;;  %v2267_v22 = vsel %vm17436_vm0, %v2075_v6, 0.0  ;;  %v12333_v6 = vadd.s32 432, %v11523_v3 }
 0x3b8   :  { %18169 = vst [vmem:[#allocation85_spill] sm:$0xff] %v12307_v5  ;;  %v2010_v5 = vsel %vm17436_vm0, %v1754_v49, 0.0  ;;  %9345 = vmatmul.msk.f32.gmra.mxu3 %vm18175_vm4, %v2302_v52  ;;  %vm18180_vm0 = vmmov %vm18175_vm4  ;;  %v2076_v49 = vld [vmem:[#allocation2 + $0x98] sm:$0xff]  ;;  %v12368_v17 = vand.u32 15, %v1372_v59  ;;  %v18191_v59 = vmov 0 }
 0x3b9   :  { %18170 = vst [vmem:[#allocation86_spill] sm:$0xff] %v12309_v37  ;;  %v1407_v14 = vshra.s32 %v12333_v6, 4  ;;  %vm18187_vm11 = vmmov %vm18180_vm0  ;;  %v1789_v37 = vld [vmem:[#allocation2 + $0x1a7] sm:$0xff] }
 0x3ba   :  { %18171 = vst [vmem:[#allocation87_spill] sm:$0xff] %v12312_v16  ;;  %9310 = vmatmul.msk.f32.gmra.mxu1 %vm18164_vm13, %v2267_v22  ;;  %vm12336_vm13 = vcmp.gt.s32.totalorder %v1307_v18, 0  ;;  %v18177_v22 = vmov 0  ;;  %v3027_v18 = vpop.f32.mrf.mxu2  ;;  %v1245_v16 = vadd.s32 160, %v11523_v3  ;;  %vm18188_vm3 = vmmov %vm18180_vm0 }
 0x3bb   :  { %18173 = vst [vmem:[#allocation88_spill] sm:$0xff] %v12324_v50  ;;  %9374 = vmatmul.msk.f32.gmra.mxu0 %vm18174_vm9, %v2010_v5  ;;  %v18178_v22 = vsel %vm12336_vm13, 4294967295, %v18177_v22  ;;  %v12342_v5 = vpop.f32.mrf.mxu3  ;;  %vm12350_vm4 = vmand %vm17452_vm5, %vm12336_vm13  ;;  %vm17455_vm9 = vcmp.gt.s32.totalorder %v12330_v61, 0  ;;  %v2268_v50 = vsel %vm17452_vm5, %v2076_v49, 0.0  ;;  %v12376_v49 = vand.u32 15, %v1407_v14 }
 0x3bc   :  { %18176 = vst [vmem:[#allocation89_spill] sm:$0xff] %v12330_v61  ;;  %9407 = vmatmul.msk.f32.gmra.mxu2 %vm18180_vm0, %v2043_v48  ;;  %v2111_v48 = vld [vmem:[#allocation2 + $0x1b0] sm:$0xff]  ;;  %v2011_v13 = vsel %vm12350_vm4, %v1755_v4, 0.0  ;;  %vm12382_vm4 = vcmp.gt.s32.totalorder %v1341_v57, 0  ;;  %vm17458_vm5 = vcmp.gt.s32.totalorder %v12368_v17, 0  ;;  %vm18201_vm13 = vmmov %vm18180_vm0 }
 0x3bd   :  { %18179 = vst [vmem:[#allocation90_spill] sm:$0xff] %v18178_v22  ;;  %v12344_v52 = vpop.f32.mrf.mxu1  ;;  %v1788_v22 = vld [vmem:[#allocation2 + $0x19f] sm:$0xff]  ;;  %v18192_v59 = vsel %vm12382_vm4, 4294967295, %v18191_v59 }
 0x3be   :  { %18181 = vst [vmem:[#allocation91_spill] sm:$0xff] %v12344_v52  ;;  %v12356_v60 = vpop.f32.mrf.mxu0  ;;  %v12360_v52 = vadd.f32 %v3027_v18, %v12263_v33  ;;  %v2044_v33 = vsel %vm18189_vm1, %v1788_v22, 0.0  ;;  %v1756_v22 = vld [vmem:[#allocation2 + $0x9f] sm:$0xff]  ;;  %vm17472_vm1 = vcmp.gt.s32.totalorder %v12376_v49, 0  ;;  %v1408_v18 = vshra.s32 %v12379_v54, 4 }
 0x3bf   :  { %18184 = vst [vmem:[#allocation92_spill] sm:$0xff] %v12356_v60  ;;  %v2303_v60 = vsel %vm17455_vm9, %v2111_v48, 0.0  ;;  %vm18200_vm9 = vmmov %vm18180_vm0 }
 0x3c0   :  { %18185 = vst [vmem:[#allocation93_spill] sm:$0xff] %v12360_v52  ;;  %9346 = vmatmul.msk.f32.gmra.mxu3 %vm18188_vm3, %v2303_v60  ;;  %vm18198_vm3 = vcmp.gt.s32.totalorder %v12290_v2, 0 }
 0x3c1   :  { %18186 = vst [vmem:[#allocation94_spill] sm:$0xff] %v12368_v17  ;;  %v1343_v17 = vand.u32 15, %v12333_v6  ;;  %v12465_v6 = vadd.s32 456, %v11523_v3 }
 0x3c2   :  { %9311 = vmatmul.msk.f32.gmra.mxu1 %vm18180_vm0, %v2268_v50  ;;  %18190 = vst [vmem:[#allocation95_spill] sm:$0xff] %v12376_v49  ;;  %v1373_v50 = vshra.s32 %v1245_v16, 4  ;;  %v3030_v14 = vpop.f32.mrf.mxu2 }
 0x3c3   :  { %9375 = vmatmul.msk.f32.gmra.mxu0 %vm18187_vm11, %v2011_v13  ;;  %18193 = vst [vmem:[#allocation96_spill] sm:$0xff] %v18192_v59  ;;  %v2077_v13 = vld [vmem:[#allocation2 + $0xa0] sm:$0xff]  ;;  %v12387_v4 = vpop.f32.mrf.mxu3  ;;  %v12398_v52 = vadd.f32 %v3030_v14, %v12301_v10  ;;  %vm1853_vm11 = vmand %vm18198_vm3, %vm12382_vm4  ;;  %v12416_v14 = vand.u32 15, %v1408_v18  ;;  %vm18215_vm4 = vcmp.gt.s32.totalorder %v12330_v61, 0  ;;  %v2114_v18 = vld [vmem:[#allocation2 + $0x1c8] sm:$0xff] }
 0x3c4   :  { %9408 = vmatmul.msk.f32.gmra.mxu2 %vm18180_vm0, %v2044_v33  ;;  %v12395_v57 = vand.u32 15, %v1373_v50  ;;  %v1309_v33 = vand.u32 15, %v1245_v16  ;;  %v12410_v50 = vadd.s32 168, %v11523_v3  ;;  %v2304_v16 = vsel %vm17472_vm1, %v2112_v24, 0.0 }
 0x3c5   :  { %v12389_v60 = vpop.f32.mrf.mxu1  ;;  %18197 = vst [vmem:[#allocation100_spill] sm:$0xff] %v12398_v52  ;;  %v2045_v10 = vsel %vm1853_vm11, %v1789_v37, 0.0  ;;  %v1757_v37 = vld [vmem:[#allocation2 + $0xa7] sm:$0xff]  ;;  %v1247_v52 = vadd.s32 176, %v11523_v3 }
 0x3c6   :  { %18194 = vst [vmem:[#allocation97_spill] sm:$0xff] %v12389_v60  ;;  %v12393_v48 = vpop.f32.mrf.mxu0  ;;  %v2269_v60 = vsel %vm17458_vm5, %v2077_v13, 0.0  ;;  %v12419_v13 = vadd.s32 448, %v11523_v3  ;;  %vm17475_vm3 = vcmp.gt.s32.totalorder %v12395_v57, 0  ;;  %v1374_v24 = vshra.s32 %v12410_v50, 4 }
 0x3c7   :  { %18195 = vst [vmem:[#allocation98_spill] sm:$0xff] %v12393_v48  ;;  %v2012_v48 = vsel %vm17458_vm5, %v1756_v22, 0.0  ;;  %vm18206_vm5 = vmmov %vm18200_vm9  ;;  %v2078_v22 = vld [vmem:[#allocation2 + $0xa8] sm:$0xff] }
 0x3c8   :  { %18196 = vst [vmem:[#allocation99_spill] sm:$0xff] %v12395_v57  ;;  %9347 = vmatmul.msk.f32.gmra.mxu3 %vm18201_vm13, %v2304_v16  ;;  %v1409_v59 = vshra.s32 %v12419_v13, 4  ;;  %v12454_v41 = vand.u32 15, %v1374_v24  ;;  %vm18213_vm11 = vmmov %vm18206_vm5  ;;  %v18218_v24 = vmov 0  ;;  %v1791_v57 = vld [vmem:[#allocation2 + $0x1b7] sm:$0xff] }
 0x3c9   :  { %18199 = vst [vmem:[#allocation101_spill] sm:$0xff] %v12410_v50  ;;  %v2270_v50 = vsel %vm17475_vm3, %v2078_v22, 0.0  ;;  %vm18214_vm1 = vmmov %vm18206_vm5 }
 0x3ca   :  { %9312 = vmatmul.msk.f32.gmra.mxu1 %vm18180_vm0, %v2269_v60  ;;  %18202 = vst [vmem:[#allocation102_spill] sm:$0xff] %v12416_v14  ;;  %vm12422_vm0 = vcmp.gt.s32.totalorder %v1309_v33, 0  ;;  %v18203_v60 = vmov 0  ;;  %v3033_v33 = vpop.f32.mrf.mxu2  ;;  %v12462_v22 = vand.u32 15, %v1409_v59 }
 0x3cb   :  { %9376 = vmatmul.msk.f32.gmra.mxu0 %vm18200_vm9, %v2012_v48  ;;  %v18204_v60 = vsel %vm12422_vm0, 4294967295, %v18203_v60  ;;  %v12428_v48 = vpop.f32.mrf.mxu3  ;;  %vm12436_vm13 = vmand %vm17475_vm3, %vm12422_vm0  ;;  %vm17478_vm9 = vcmp.gt.s32.totalorder %v12416_v14, 0  ;;  %18212 = vst [vmem:[#allocation107_spill] sm:$0xff] %v12454_v41  ;;  %vm17494_vm3 = vcmp.gt.s32.totalorder %v12454_v41, 0 }
 0x3cc   :  { %18205 = vst [vmem:[#allocation103_spill] sm:$0xff] %v18204_v60  ;;  %9409 = vmatmul.msk.f32.gmra.mxu2 %vm18206_vm5, %v2045_v10  ;;  %v2113_v10 = vld [vmem:[#allocation2 + $0x1c0] sm:$0xff]  ;;  %v1790_v60 = vld [vmem:[#allocation2 + $0x1af] sm:$0xff]  ;;  %v2013_v12 = vsel %vm12436_vm13, %v1757_v37, 0.0  ;;  %vm12468_vm13 = vcmp.gt.s32.totalorder %v1343_v17, 0 }
 0x3cd   :  { %v12430_v16 = vpop.f32.mrf.mxu1  ;;  %18216 = vst [vmem:[#allocation108_spill] sm:$0xff] %v12462_v22  ;;  %v18219_v24 = vsel %vm12468_vm13, 4294967295, %v18218_v24 }
 0x3ce   :  { %18207 = vst [vmem:[#allocation104_spill] sm:$0xff] %v12430_v16  ;;  %v12442_v2 = vpop.f32.mrf.mxu0  ;;  %v12446_v16 = vadd.f32 %v3033_v33, %v12342_v5  ;;  %v2046_v5 = vsel %vm18215_vm4, %v1790_v60, 0.0  ;;  %v1758_v60 = vld [vmem:[#allocation2 + $0xaf] sm:$0xff]  ;;  %vm17495_vm4 = vcmp.gt.s32.totalorder %v12462_v22, 0  ;;  %v1410_v33 = vshra.s32 %v12465_v6, 4 }
 0x3cf   :  { %18210 = vst [vmem:[#allocation105_spill] sm:$0xff] %v12442_v2  ;;  %v2305_v2 = vsel %vm17478_vm9, %v2113_v10, 0.0 }
 0x3d0   :  { %18211 = vst [vmem:[#allocation106_spill] sm:$0xff] %v12446_v16  ;;  %9348 = vmatmul.msk.f32.gmra.mxu3 %vm18214_vm1, %v2305_v2 }
 0x3d1   :  { %18220 = vst [vmem:[#allocation109_spill] sm:$0xff] %v18219_v24 }
 0x3d2   :  { %9313 = vmatmul.msk.f32.gmra.mxu1 %vm18206_vm5, %v2270_v50  ;;  %v1375_v50 = vshra.s32 %v1247_v52, 4  ;;  %vm18217_vm5 = vmmov %vm18214_vm1  ;;  %v3036_v59 = vpop.f32.mrf.mxu2  ;;  %vm18225_vm1 = vcmp.gt.s32.totalorder %v12376_v49, 0  ;;  %v1792_v49 = vld [vmem:[#allocation2 + $0x1bf] sm:$0xff] }
 0x3d3   :  { %9377 = vmatmul.msk.f32.gmra.mxu0 %vm18213_vm11, %v2013_v12  ;;  %v2079_v12 = vld [vmem:[#allocation2 + $0xb0] sm:$0xff]  ;;  %v12473_v37 = vpop.f32.mrf.mxu3  ;;  %v12484_v16 = vadd.f32 %v3036_v59, %v12387_v4  ;;  %vm1855_vm11 = vmand %vm18225_vm1, %vm12468_vm13  ;;  %v12498_v4 = vadd.s32 464, %v11523_v3  ;;  %v12502_v59 = vand.u32 15, %v1410_v33 }
 0x3d4   :  { %9410 = vmatmul.msk.f32.gmra.mxu2 %vm18217_vm5, %v2046_v5  ;;  %v12481_v17 = vand.u32 15, %v1375_v50  ;;  %v1311_v5 = vand.u32 15, %v1247_v52  ;;  %v2306_v52 = vsel %vm17495_vm4, %v2114_v18, 0.0  ;;  %vm18226_vm9 = vmmov %vm18217_vm5  ;;  %v2047_v50 = vsel %vm1855_vm11, %v1791_v57, 0.0  ;;  %v1759_v57 = vld [vmem:[#allocation2 + $0xb7] sm:$0xff] }
 0x3d5   :  { %v12475_v2 = vpop.f32.mrf.mxu1  ;;  %18224 = vst [vmem:[#allocation113_spill] sm:$0xff] %v12484_v16  ;;  %vm18227_vm0 = vmmov %vm18217_vm5  ;;  %v1345_v16 = vand.u32 15, %v12419_v13  ;;  %vm18239_vm4 = vcmp.gt.s32.totalorder %v12416_v14, 0  ;;  %v12539_v13 = vadd.s32 472, %v11523_v3 }
 0x3d6   :  { %18221 = vst [vmem:[#allocation110_spill] sm:$0xff] %v12475_v2  ;;  %v12479_v10 = vpop.f32.mrf.mxu0  ;;  %v2271_v2 = vsel %vm17494_vm3, %v2079_v12, 0.0  ;;  %vm17496_vm1 = vcmp.gt.s32.totalorder %v12481_v17, 0  ;;  %vm12505_vm13 = vcmp.gt.s32.totalorder %v1311_v5, 0  ;;  %v18229_v12 = vmov 0  ;;  %v2115_v5 = vld [vmem:[#allocation2 + $0x1d0] sm:$0xff] }
 0x3d7   :  { %18222 = vst [vmem:[#allocation111_spill] sm:$0xff] %v12479_v10  ;;  %v2014_v10 = vsel %vm17494_vm3, %v1758_v60, 0.0  ;;  %v18230_v12 = vsel %vm12505_vm13, 4294967295, %v18229_v12  ;;  %v2080_v60 = vld [vmem:[#allocation2 + $0xb8] sm:$0xff] }
 0x3d8   :  { %18223 = vst [vmem:[#allocation112_spill] sm:$0xff] %v12481_v17  ;;  %9349 = vmatmul.msk.f32.gmra.mxu3 %vm18227_vm0, %v2306_v52 }
 0x3d9   :  { %18228 = vst [vmem:[#allocation114_spill] sm:$0xff] %v12502_v59 }
 0x3da   :  { %9314 = vmatmul.msk.f32.gmra.mxu1 %vm18217_vm5, %v2271_v2  ;;  %18231 = vst [vmem:[#allocation115_spill] sm:$0xff] %v18230_v12  ;;  %vm18232_vm5 = vmmov %vm18227_vm0  ;;  %v1249_v2 = vadd.s32 192, %v11523_v3  ;;  %v3039_v33 = vpop.f32.mrf.mxu2 }
 0x3db   :  { %9378 = vmatmul.msk.f32.gmra.mxu0 %vm18226_vm9, %v2014_v10  ;;  %v12511_v18 = vpop.f32.mrf.mxu3  ;;  %v1411_v10 = vshra.s32 %v12498_v4, 4  ;;  %vm1823_vm0 = vmand %vm17496_vm1, %vm12505_vm13  ;;  %vm17497_vm9 = vcmp.gt.s32.totalorder %v12502_v59, 0  ;;  %vm18260_vm13 = vcmask 64512  }
 0x3dc   :  { %9411 = vmatmul.msk.f32.gmra.mxu2 %vm18232_vm5, %v2047_v50  ;;  %v12524_v50 = vadd.f32 %v3039_v33, %v12428_v48  ;;  %v1377_v41 = vshra.s32 %v1249_v2, 4  ;;  %vm18236_vm11 = vmmov %vm18232_vm5  ;;  %v2015_v12 = vsel %vm1823_vm0, %v1759_v57, 0.0  ;;  %v2307_v51 = vsel %vm17497_vm9, %v2115_v5, 0.0  ;;  %v1760_v57 = vld [vmem:[#allocation2 + $0xbf] sm:$0xff] }
 0x3dd   :  { %v12514_v24 = vpop.f32.mrf.mxu1  ;;  %v12532_v56 = vand.u32 15, %v1411_v10  ;;  %vm18238_vm3 = vmmov %vm18232_vm5  ;;  %v2048_v48 = vsel %vm18239_vm4, %v1792_v49, 0.0  ;;  %v1320_v10 = vand.u32 15, %v11533_v7  ;;  %v2116_v49 = vld [vmem:[#allocation2 + $0x1d8] sm:$0xff]  ;;  %v1322_v5 = vand.u32 15, %v11530_v0  ;;  %v1793_v7 = vld [vmem:[#allocation2 + $0x1c7] sm:$0xff] }
 0x3de   :  { %18233 = vst [vmem:[#allocation116_spill] sm:$0xff] %v12514_v24  ;;  %v12521_v52 = vpop.f32.mrf.mxu0  ;;  %v2272_v24 = vsel %vm17496_vm1, %v2080_v60, 0.0  ;;  %v2081_v60 = vld [vmem:[#allocation2 + $0xc0] sm:$0xff]  ;;  %vm18240_vm1 = vmmov %vm18238_vm3  ;;  %v12547_v33 = vand.u32 15, %v1377_v41  ;;  %vm18246_vm0 = vcmp.gt.s32.totalorder %v12462_v22, 0  ;;  %v18253_v22 = vmov 0 }
 0x3df   :  { %18234 = vst [vmem:[#allocation117_spill] sm:$0xff] %v12521_v52  ;;  %v1324_v52 = vand.u32 15, %v11583_v62  ;;  %vm12576_vm4 = vcmp.lt.s32.totalorder %v1320_v10, 15  ;;  %v12600_v10 = vadd.s32 480, %v11523_v3  ;;  %vm18263_vm14 = vmmov %vm18260_vm13  ;;  %v2082_v41 = vld [vmem:[#allocation2 + $0xc8] sm:$0xff] }
 0x3e0   :  { %18235 = vst [vmem:[#allocation118_spill] sm:$0xff] %v12524_v50  ;;  %9350 = vmatmul.msk.f32.gmra.mxu3 %vm18238_vm3, %v2307_v51 }
 0x3e1   :  { %18237 = vst [vmem:[#allocation119_spill] sm:$0xff] %v12532_v56 }
 0x3e2   :  { %9315 = vmatmul.msk.f32.gmra.mxu1 %vm18236_vm11, %v2272_v24  ;;  %vm12542_vm11 = vcmp.gt.s32.totalorder %v1345_v16, 0  ;;  %v18241_v24 = vmov 0  ;;  %v3042_v50 = vpop.f32.mrf.mxu2 }
 0x3e3   :  { %9379 = vmatmul.msk.f32.gmra.mxu0 %vm18232_vm5, %v2015_v12  ;;  %v18242_v24 = vsel %vm12542_vm11, 4294967295, %v18241_v24  ;;  %v1313_v12 = vand.u32 15, %v1249_v2  ;;  %v12549_v51 = vpop.f32.mrf.mxu3  ;;  %vm12562_vm5 = vmand %vm18246_vm0, %vm12542_vm11  ;;  %v1412_v2 = vshra.s32 %v12539_v13, 4  ;;  %vm18255_vm11 = vcmp.gt.s32.totalorder %v12532_v56, 0 }
 0x3e4   :  { %9412 = vmatmul.msk.f32.gmra.mxu2 %vm18240_vm1, %v2048_v48  ;;  %18243 = vst [vmem:[#allocation120_spill] sm:$0xff] %v18242_v24  ;;  %vm18245_vm1 = vcmp.gt.s32.totalorder %v12101_v58, 0  ;;  %v18251_v24 = vmov 0  ;;  %v2308_v62 = vsel %vm18255_vm11, %v2116_v49, 0.0  ;;  %vm12603_vm0 = vcmp.lt.s32.totalorder %v1322_v5, 15 }
 0x3e5   :  { %v12554_v48 = vpop.f32.mrf.mxu1  ;;  %v2273_v16 = vsel %vm18245_vm1, %v2081_v60, 0.0  ;;  %vm18249_vm9 = vmmov %vm18245_vm1  ;;  %v12573_v60 = vadd.f32 %v3042_v50, %v12473_v37  ;;  %v18252_v24 = vsel %vm12576_vm4, 4294967295, %v18251_v24  ;;  %vm12581_vm3 = vcmp.gt.s32.totalorder %v1313_v12, 0 }
 0x3e6   :  { %18244 = vst [vmem:[#allocation121_spill] sm:$0xff] %v12554_v48  ;;  %v12568_v0 = vpop.f32.mrf.mxu0  ;;  %v2016_v48 = vsel %vm18249_vm9, %v1760_v57, 0.0  ;;  %v18254_v22 = vsel %vm12581_vm3, 4294967295, %v18253_v22  ;;  %v1326_v57 = vand.u32 15, %v11655_v46  ;;  %vm18256_vm9 = vcmp.lt.s32.totalorder %v12151_v19, 15 }
 0x3e7   :  { %18250 = vst [vmem:[#allocation122_spill] sm:$0xff] %v12573_v60  ;;  %vm12592_vm1 = vmand %vm18256_vm9, %vm12250_vm8  ;;  %v18257_v37 = vmov 0  ;;  %v2049_v50 = vsel %vm12562_vm5, %v1793_v7, 0.0  ;;  %v18261_v46 = vmov 0  ;;  %v12609_v12 = vand.u32 15, %v1412_v2  ;;  %v1761_v2 = vld [vmem:[#allocation2 + $0xc7] sm:$0xff] }
 0x3e8   :  { %v18258_v37 = vsel %vm12592_vm1, 4294967295, %v18257_v37  ;;  %v18262_v46 = vsel %vm12603_vm0, 4294967295, %v18261_v46  ;;  %vm18264_vm9 = vmmov %vm18260_vm13  ;;  %vm12612_vm1 = vcmp.lt.s32.totalorder %v1324_v52, 15  ;;  %v18266_v49 = vmov 0 }
 0x3e9   :  { %18259 = vst [vmem:[#allocation123_spill] sm:$0xff] %v18258_v37  ;;  %9351 = vmatmul.msk.f32.gmra.mxu3 %vm18264_vm9, %v2308_v62  ;;  %v18267_v49 = vsel %vm12612_vm1, 4294967295, %v18266_v49  ;;  %vm18269_vm5 = vcmp.lt.s32.totalorder %v11551_v31, 15  ;;  %v18270_v5 = vmov 0  ;;  %vm12636_vm6 = vcmp.lt.s32.totalorder %v1326_v57, 15 }
 0x3ea   :  { %9316 = vmatmul.msk.f32.gmra.mxu1 %vm18260_vm13, %v2273_v16  ;;  %18265 = vst [vmem:[#allocation124_spill] sm:$0xff] %v12609_v12  ;;  %v1328_v16 = vand.u32 15, %v11717_v63  ;;  %vm12621_vm11 = vmand %vm18269_vm5, %vm12576_vm4  ;;  %v1330_v63 = vand.u32 15, %v11779_v35  ;;  %v18276_v52 = vmov 0  ;;  %vm18279_vm5 = vcmp.lt.s32.totalorder %v11549_v42, 15  ;;  %v3045_v37 = vpop.f32.mrf.mxu2 }
 0x3eb   :  { %9380 = vmatmul.msk.f32.gmra.mxu0 %vm18263_vm14, %v2016_v48  ;;  %18268 = vst [vmem:[#allocation125_spill] sm:$0xff] %v18267_v49  ;;  %v18271_v5 = vsel %vm12621_vm11, 4294967295, %v18270_v5  ;;  %vm18273_vm14 = vcmp.gt.s32.totalorder %v12547_v33, 0  ;;  %v18277_v52 = vsel %vm12636_vm6, 4294967295, %v18276_v52  ;;  %vm12644_vm11 = vmand %vm18279_vm5, %vm12603_vm0  ;;  %v18280_v7 = vmov 0  ;;  %v12648_v62 = vpop.f32.mrf.mxu3 }
 0x3ec   :  { %18272 = vst [vmem:[#allocation126_spill] sm:$0xff] %v18271_v5  ;;  %vm12629_vm9 = vmand %vm18273_vm14, %vm12581_vm3  ;;  %9413 = vmatmul.msk.f32.gmra.mxu2 %vm18260_vm13, %v2049_v50  ;;  %v18281_v7 = vsel %vm12644_vm11, 4294967295, %v18280_v7  ;;  %v1347_v35 = vand.u32 15, %v12498_v4  ;;  %v1332_v50 = vand.u32 15, %v11841_v28  ;;  %vm18283_vm13 = vcmp.lt.s32.totalorder %v11619_v29, 15 }
 0x3ed   :  { %18278 = vst [vmem:[#allocation127_spill] sm:$0xff] %v18277_v52  ;;  %vm12656_vm14 = vmand %vm18283_vm13, %vm12612_vm1  ;;  %v18284_v57 = vmov 0  ;;  %v12660_v5 = vpop.f32.mrf.mxu1  ;;  %v1413_v60 = vshra.s32 %v12600_v10, 4  ;;  %vm12665_vm11 = vcmp.lt.s32.totalorder %v1328_v16, 15  ;;  %v18287_v28 = vmov 0 }
 0x3ee   :  { %18282 = vst [vmem:[#allocation128_spill] sm:$0xff] %v18281_v7  ;;  %v18285_v57 = vsel %vm12656_vm14, 4294967295, %v18284_v57  ;;  %v2117_v7 = vld [vmem:[#allocation2 + $0x1e0] sm:$0xff]  ;;  %v18288_v28 = vsel %vm12665_vm11, 4294967295, %v18287_v28  ;;  %v12669_v4 = vpop.f32.mrf.mxu0  ;;  %v12672_v29 = vadd.f32 %v3045_v37, %v12511_v18  ;;  %vm12675_vm14 = vcmp.lt.s32.totalorder %v1330_v63, 15 }
 0x3ef   :  { %18286 = vst [vmem:[#allocation129_spill] sm:$0xff] %v18285_v57  ;;  %v18291_v57 = vmov 0  ;;  %v1334_v49 = vand.u32 15, %v11903_v8  ;;  %vm18294_vm8 = vcmp.lt.s32.totalorder %v11688_v43, 15  ;;  %v18295_v16 = vmov 0 }
 0x3f0   :  { %18289 = vst [vmem:[#allocation130_spill] sm:$0xff] %v18288_v28  ;;  %v18292_v57 = vsel %vm12675_vm14, 4294967295, %v18291_v57  ;;  %vm12684_vm5 = vmand %vm18294_vm8, %vm12636_vm6  ;;  %vm18298_vm1 = vcmp.gt.s32.totalorder %v12547_v33, 0  ;;  %v2017_v37 = vsel %vm12629_vm9, %v1761_v2, 0.0  ;;  %v1336_v63 = vand.u32 15, %v11965_v47 }
 0x3f1   :  { %18290 = vst [vmem:[#allocation131_spill] sm:$0xff] %v12672_v29  ;;  %v18296_v16 = vsel %vm12684_vm5, 4294967295, %v18295_v16  ;;  %v2274_v18 = vsel %vm18298_vm1, %v2082_v41, 0.0  ;;  %vm18299_vm13 = vcmask 64512   ;;  %vm18300_vm0 = vcmp.gt.s32.totalorder %v12609_v12, 0 }
 0x3f2   :  { %18293 = vst [vmem:[#allocation132_spill] sm:$0xff] %v18292_v57  ;;  %9317 = vmatmul.msk.f32.gmra.mxu1 %vm18299_vm13, %v2274_v18  ;;  %v2309_v8 = vsel %vm18300_vm0, %v2117_v7, 0.0  ;;  %vm18301_vm4 = vcmp.gt.s32.totalorder %v12502_v59, 0  ;;  %vm12699_vm6 = vcmp.lt.s32.totalorder %v1332_v50, 15  ;;  %vm18305_vm1 = vcmp.lt.s32.totalorder %v11745_v15, 15  ;;  %vm18309_vm0 = vmmov %vm18299_vm13 }
 0x3f3   :  { %18297 = vst [vmem:[#allocation133_spill] sm:$0xff] %v18296_v16  ;;  %v2050_v29 = vsel %vm18301_vm4, %v1794_v1, 0.0  ;;  %v18302_v16 = vmov 0  ;;  %vm12707_vm9 = vmand %vm18305_vm1, %vm12665_vm11  ;;  %v18306_v47 = vmov 0  ;;  %9381 = vmatmul.msk.f32.gmra.mxu0 %vm18299_vm13, %v2017_v37  ;;  %9352 = vmatmul.msk.f32.gmra.mxu3 %vm18309_vm0, %v2309_v8  ;;  %v12713_v48 = vand.u32 15, %v1413_v60  ;;  %v12751_v18 = vpop.f32.mrf.mxu3  ;;  %v3048_v8 = vpop.f32.mrf.mxu2 }
 0x3f4   :  { %v18303_v16 = vsel %vm12699_vm6, 4294967295, %v18302_v16  ;;  %v18307_v47 = vsel %vm12707_vm9, 4294967295, %v18306_v47  ;;  %vm12715_vm4 = vcmp.gt.s32.totalorder %v1347_v35, 0  ;;  %v18311_v1 = vmov 0  ;;  %vm18318_vm13 = vmmov %vm18309_vm0  ;;  %v2083_v35 = vld [vmem:[#allocation2 + $0xd0] sm:$0xff] }
 0x3f5   :  { %18304 = vst [vmem:[#allocation134_spill] sm:$0xff] %v18303_v16  ;;  %v18312_v1 = vsel %vm12715_vm4, 4294967295, %v18311_v1  ;;  %v12720_v7 = vadd.s32 488, %v11523_v3  ;;  %v1338_v41 = vand.u32 15, %v12027_v11  ;;  %vm18314_vm1 = vcmp.lt.s32.totalorder %v11807_v9, 15  ;;  %9414 = vmatmul.msk.f32.gmra.mxu2 %vm18318_vm13, %v2050_v29 }
 0x3f6   :  { %18308 = vst [vmem:[#allocation135_spill] sm:$0xff] %v18307_v47  ;;  %vm12727_vm8 = vmand %vm18314_vm1, %vm12675_vm14  ;;  %v18315_v2 = vmov 0  ;;  %vm12733_vm9 = vcmp.lt.s32.totalorder %v1334_v49, 15  ;;  %v18319_v60 = vmov 0  ;;  %vm12738_vm11 = vcmp.lt.s32.totalorder %v1336_v63, 15  ;;  %v1762_v49 = vld [vmem:[#allocation2 + $0xcf] sm:$0xff]  ;;  %v12762_v63 = vpop.f32.mrf.mxu1 }
 0x3f7   :  { %18310 = vst [vmem:[#allocation136_spill] sm:$0xff] %v12713_v48  ;;  %v18316_v2 = vsel %vm12727_vm8, 4294967295, %v18315_v2  ;;  %v18320_v60 = vsel %vm12733_vm9, 4294967295, %v18319_v60  ;;  %v18322_v11 = vmov 0  ;;  %v1340_v50 = vand.u32 15, %v12125_v39 }
 0x3f8   :  { %18313 = vst [vmem:[#allocation137_spill] sm:$0xff] %v18312_v1  ;;  %v18323_v11 = vsel %vm12738_vm11, 4294967295, %v18322_v11  ;;  %vm18325_vm1 = vcmp.lt.s32.totalorder %v11869_v40, 15  ;;  %v18326_v29 = vmov 0  ;;  %vm18329_vm5 = vcmp.gt.s32.totalorder %v12532_v56, 0  ;;  %v12779_v1 = vpop.f32.mrf.mxu0 }
 0x3f9   :  { %18317 = vst [vmem:[#allocation138_spill] sm:$0xff] %v18316_v2  ;;  %vm12747_vm13 = vmand %vm18325_vm1, %vm12699_vm6  ;;  %v1342_v39 = vand.u32 15, %v12293_v45  ;;  %v2118_v2 = vld [vmem:[#allocation2 + $0x1e8] sm:$0xff]  ;;  %vm12767_vm8 = vcmp.lt.s32.totalorder %v1338_v41, 15  ;;  %v18332_v47 = vmov 0  ;;  %v18336_v45 = vmov 0 }
 0x3fa   :  { %18321 = vst [vmem:[#allocation139_spill] sm:$0xff] %v18320_v60  ;;  %v18327_v29 = vsel %vm12747_vm13, 4294967295, %v18326_v29  ;;  %vm12757_vm0 = vmand %vm18329_vm5, %vm12715_vm4  ;;  %v18333_v47 = vsel %vm12767_vm8, 4294967295, %v18332_v47  ;;  %vm18335_vm5 = vcmp.lt.s32.totalorder %v11931_v38, 15  ;;  %vm18339_vm1 = vcmp.gt.s32.totalorder %v12117_v34, 0  ;;  %v1795_v41 = vld [vmem:[#allocation2 + $0x1d7] sm:$0xff] }
 0x3fb   :  { %18324 = vst [vmem:[#allocation140_spill] sm:$0xff] %v18323_v11  ;;  %vm12775_vm4 = vmand %vm18335_vm5, %vm12733_vm9  ;;  %v2275_v56 = vsel %vm18339_vm1, %v2083_v35, 0.0  ;;  %v12784_v40 = vadd.f32 %v3048_v8, %v12549_v51  ;;  %v1344_v16 = vand.u32 15, %v12379_v54  ;;  %vm18341_vm13 = vcmp.lt.s32.totalorder %v11993_v30, 15  ;;  %v12861_v37 = vpop.f32.mrf.mxu3  ;;  %v18477_v60 = vld [vmem:[#allocation26_spill] sm:$0xff] }
 0x3fc   :  { %18328 = vst [vmem:[#allocation141_spill] sm:$0xff] %v18327_v29  ;;  %v1414_v29 = vshra.s32 %v12720_v7, 4  ;;  %v18337_v45 = vsel %vm12775_vm4, 4294967295, %v18336_v45  ;;  %vm12791_vm6 = vmand %vm18341_vm13, %vm12738_vm11  ;;  %v18342_v38 = vmov 0  ;;  %vm12799_vm9 = vcmp.lt.s32.totalorder %v1340_v50, 15 }
 0x3fd   :  { %18334 = vst [vmem:[#allocation142_spill] sm:$0xff] %v18333_v47  ;;  %v18343_v38 = vsel %vm12791_vm6, 4294967295, %v18342_v38  ;;  %vm18345_vm5 = vmmov %vm18339_vm1  ;;  %v18346_v51 = vmov 0  ;;  %vm18349_vm14 = vcmask 64512   ;;  %vm18350_vm3 = vcmp.gt.s32.totalorder %v12713_v48, 0  ;;  %v18475_v47 = vld [vmem:[#allocation27_spill] sm:$0xff] }
 0x3fe   :  { %18338 = vst [vmem:[#allocation143_spill] sm:$0xff] %v18337_v45  ;;  %v2018_v45 = vsel %vm18345_vm5, %v1762_v49, 0.0  ;;  %v18347_v51 = vsel %vm12799_vm9, 4294967295, %v18346_v51  ;;  %9318 = vmatmul.msk.f32.gmra.mxu1 %vm18349_vm14, %v2275_v56  ;;  %v2310_v54 = vsel %vm18350_vm3, %v2118_v2, 0.0  ;;  %vm12807_vm11 = vcmp.lt.s32.totalorder %v1342_v39, 15  ;;  %vm18358_vm1 = vmmov %vm18349_vm14 }
 0x3ff   :  { %18340 = vst [vmem:[#allocation144_spill] sm:$0xff] %v12784_v40  ;;  %v18351_v35 = vmov 0  ;;  %v1346_v49 = vand.u32 15, %v12465_v6  ;;  %vm18354_vm5 = vcmp.lt.s32.totalorder %v12074_v25, 15  ;;  %v18355_v50 = vmov 0  ;;  %9382 = vmatmul.msk.f32.gmra.mxu0 %vm18349_vm14, %v2018_v45  ;;  %9353 = vmatmul.msk.f32.gmra.mxu3 %vm18358_vm1, %v2310_v54  ;;  %vm18360_vm3 = vmmov %vm18358_vm1  ;;  %v12868_v54 = vpop.f32.mrf.mxu1 }
 0x400   :  { %18344 = vst [vmem:[#allocation145_spill] sm:$0xff] %v18343_v38  ;;  %v18352_v35 = vsel %vm12807_vm11, 4294967295, %v18351_v35  ;;  %vm12816_vm4 = vmand %vm18354_vm5, %vm12767_vm8  ;;  %v2051_v56 = vsel %vm12757_vm0, %v1795_v41, 0.0  ;;  %v12824_v2 = vand.u32 15, %v1414_v29  ;;  %v12827_v39 = vadd.s32 496, %v11523_v3  ;;  %v12885_v40 = vpop.f32.mrf.mxu0 }
 0x401   :  { %18348 = vst [vmem:[#allocation146_spill] sm:$0xff] %v18347_v51  ;;  %v18356_v50 = vsel %vm12816_vm4, 4294967295, %v18355_v50  ;;  %v1348_v6 = vand.u32 15, %v12539_v13  ;;  %9415 = vmatmul.msk.f32.gmra.mxu2 %vm18360_vm3, %v2051_v56  ;;  %vm12832_vm13 = vcmp.lt.s32.totalorder %v1344_v16, 15  ;;  %v18361_v8 = vmov 0  ;;  %v2084_v16 = vld [vmem:[#allocation2 + $0xd8] sm:$0xff] }
 0x402   :  { %18353 = vst [vmem:[#allocation147_spill] sm:$0xff] %v18352_v35  ;;  %v18362_v8 = vsel %vm12832_vm13, 4294967295, %v18361_v8  ;;  %v1350_v45 = vand.u32 15, %v12720_v7  ;;  %vm18364_vm0 = vcmp.lt.s32.totalorder %v12223_v55, 15  ;;  %v18365_v29 = vmov 0  ;;  %v1763_v56 = vld [vmem:[#allocation2 + $0xd7] sm:$0xff] }
 0x403   :  { %18357 = vst [vmem:[#allocation148_spill] sm:$0xff] %v18356_v50  ;;  %vm12841_vm1 = vmand %vm18364_vm0, %vm12799_vm9  ;;  %vm18368_vm14 = vcmp.lt.s32.totalorder %v12330_v61, 15  ;;  %v18369_v13 = vmov 0  ;;  %vm18372_vm5 = vcmp.gt.s32.totalorder %v12112_v32, 0  ;;  %v18375_v41 = vmov 0  ;;  %v1796_v55 = vld [vmem:[#allocation2 + $0x1df] sm:$0xff] }
 0x404   :  { %18359 = vst [vmem:[#allocation149_spill] sm:$0xff] %v12824_v2  ;;  %v18366_v29 = vsel %vm12841_vm1, 4294967295, %v18365_v29  ;;  %vm12849_vm3 = vmand %vm18368_vm14, %vm12807_vm11  ;;  %vm12864_vm1 = vcmp.lt.s32.totalorder %v1346_v49, 15  ;;  %v1415_v50 = vshra.s32 %v12827_v39, 4  ;;  %v18378_v38 = vmov 0 }
 0x405   :  { %18363 = vst [vmem:[#allocation150_spill] sm:$0xff] %v18362_v8  ;;  %v18370_v13 = vsel %vm12849_vm3, 4294967295, %v18369_v13  ;;  %vm12857_vm4 = vmand %vm18372_vm5, %vm12134_vm15  ;;  %v18376_v41 = vsel %vm12864_vm1, 4294967295, %v18375_v41  ;;  %vm12873_vm3 = vcmp.lt.s32.totalorder %v1348_v6, 15  ;;  %vm18381_vm0 = vcmp.lt.s32.totalorder %v12416_v14, 15 }
 0x406   :  { %18367 = vst [vmem:[#allocation151_spill] sm:$0xff] %v18366_v29  ;;  %v2119_v29 = vld [vmem:[#allocation2 + $0x1f0] sm:$0xff]  ;;  %v18379_v38 = vsel %vm12873_vm3, 4294967295, %v18378_v38  ;;  %vm12881_vm6 = vmand %vm18381_vm0, %vm12832_vm13  ;;  %v18382_v49 = vmov 0  ;;  %v1253_v61 = vadd.s32 224, %v11523_v3  ;;  %vm12892_vm14 = vcmp.lt.s32.totalorder %v1350_v45, 15 }
 0x407   :  { %18371 = vst [vmem:[#allocation152_spill] sm:$0xff] %v18370_v13  ;;  %v3051_v13 = vpop.f32.mrf.mxu2  ;;  %v18383_v49 = vsel %vm12881_vm6, 4294967295, %v18382_v49  ;;  %v18386_v6 = vmov 0  ;;  %vm18389_vm11 = vmmov %vm18372_vm5  ;;  %v1349_v8 = vand.u32 15, %v12600_v10  ;;  %vm18390_vm0 = vcmp.lt.s32.totalorder %v12502_v59, 15 }
 0x408   :  { %18377 = vst [vmem:[#allocation153_spill] sm:$0xff] %v18376_v41  ;;  %v12889_v35 = vadd.f32 %v3051_v13, %v12648_v62  ;;  %v18387_v6 = vsel %vm12892_vm14, 4294967295, %v18386_v6  ;;  %v2276_v14 = vsel %vm18389_vm11, %v2084_v16, 0.0  ;;  %vm12903_vm6 = vmand %vm18390_vm0, %vm12864_vm1  ;;  %vm18394_vm13 = vcmask 64512   ;;  %v18462_v41 = vld [vmem:[#allocation16_spill] sm:$0xff] }
 0x409   :  { %18380 = vst [vmem:[#allocation154_spill] sm:$0xff] %v18379_v38  ;;  %9319 = vmatmul.msk.f32.gmra.mxu1 %vm18394_vm13, %v2276_v14  ;;  %v2019_v62 = vsel %vm12857_vm4, %v1763_v56, 0.0  ;;  %vm18395_vm5 = vcmp.gt.s32.totalorder %v12824_v2, 0  ;;  %vm18396_vm11 = vcmp.lt.s32.totalorder %v12609_v12, 15  ;;  %v18397_v10 = vmov 0  ;;  %vm18400_vm0 = vmmov %vm18394_vm13 }
 0x40a   :  { %18384 = vst [vmem:[#allocation155_spill] sm:$0xff] %v18383_v49  ;;  %v18391_v49 = vmov 0  ;;  %v2311_v45 = vsel %vm18395_vm5, %v2119_v29, 0.0  ;;  %vm12916_vm9 = vmand %vm18396_vm11, %vm12873_vm3  ;;  %9383 = vmatmul.msk.f32.gmra.mxu0 %vm18400_vm0, %v2019_v62  ;;  %vm18402_vm13 = vcmp.gt.s32.totalorder %v12609_v12, 0  ;;  %v12924_v13 = vand.u32 15, %v1415_v50  ;;  %v2659_v50 = vpop.f32.mrf.mxu3  ;;  %v12942_v62 = vpop.f32.mrf.mxu1  ;;  %v1797_v12 = vld [vmem:[#allocation2 + $0x1e7] sm:$0xff] }
 0x40b   :  { %18385 = vst [vmem:[#allocation156_spill] sm:$0xff] %v12889_v35  ;;  %v18392_v49 = vsel %vm12903_vm6, 4294967295, %v18391_v49  ;;  %v18398_v10 = vsel %vm12916_vm9, 4294967295, %v18397_v10  ;;  %vm18401_vm1 = vmmov %vm18400_vm0  ;;  %v2052_v14 = vsel %vm18402_vm13, %v1796_v55, 0.0  ;;  %v12927_v16 = vadd.s32 504, %v11523_v3  ;;  %v2085_v55 = vld [vmem:[#allocation2 + $0xe0] sm:$0xff] }
 0x40c   :  { %18388 = vst [vmem:[#allocation157_spill] sm:$0xff] %v18387_v6  ;;  %9354 = vmatmul.msk.f32.gmra.mxu3 %vm18401_vm1, %v2311_v45  ;;  %vm18405_vm4 = vcmp.lt.s32.totalorder %v12824_v2, 15  ;;  %v18406_v29 = vmov 0  ;;  %v1381_v7 = vshra.s32 %v1253_v61, 4  ;;  %vm18409_vm11 = vmmov %vm18400_vm0  ;;  %vm12938_vm1 = vcmp.gt.s32.totalorder %v1349_v8, 0  ;;  %v1764_v3 = vld [vmem:[#allocation2 + $0xdf] sm:$0xff]  ;;  %v12946_v6 = vpop.f32.mrf.mxu0 }
 0x40d   :  { %18393 = vst [vmem:[#allocation158_spill] sm:$0xff] %v18392_v49  ;;  %vm12933_vm5 = vmand %vm18405_vm4, %vm12892_vm14  ;;  %9416 = vmatmul.msk.f32.gmra.mxu2 %vm18409_vm11, %v2052_v14  ;;  %v18410_v56 = vmov 0  ;;  %v1416_v49 = vshra.s32 %v12927_v16, 4  ;;  %v1317_v14 = vand.u32 15, %v1253_v61  ;;  %vm18414_vm13 = vcmp.gt.s32.totalorder %v12713_v48, 0  ;;  %v18455_v35 = vld [vmem:[#allocation23_spill] sm:$0xff] }
 0x40e   :  { %18399 = vst [vmem:[#allocation159_spill] sm:$0xff] %v18398_v10  ;;  %v18407_v29 = vsel %vm12933_vm5, 4294967295, %v18406_v29  ;;  %v18411_v56 = vsel %vm12938_vm1, 4294967295, %v18410_v56  ;;  %v2120_v10 = vld [vmem:[#allocation2 + $0x1f8] sm:$0xff]  ;;  %vm1861_vm4 = vmand %vm18414_vm13, %vm12938_vm1  ;;  %vm18415_vm11 = vcmp.gt.s32.totalorder %v12138_v27, 0  ;;  %vm18417_vm9 = vcmp.gt.s32.totalorder %v12924_v13, 0 }
 0x40f   :  { %18403 = vst [vmem:[#allocation160_spill] sm:$0xff] %v12924_v13  ;;  %v3054_v45 = vpop.f32.mrf.mxu2  ;;  %v2277_v38 = vsel %vm18415_vm11, %v2085_v55, 0.0  ;;  %vm18416_vm5 = vmmov %vm18415_vm11  ;;  %vm12972_vm11 = vcmp.gt.s32.totalorder %v1317_v14, 0  ;;  %v1294_v30 = vand.u32 15, %v18475_v47  ;;  %v4655_v55 = vld [vmem:[#allocation2 + $0x108] sm:$0xff] }
 0x410   :  { %18404 = vst [vmem:[#allocation161_spill] sm:$0xff] %v12927_v16  ;;  %v12951_v8 = vadd.f32 %v3054_v45, %v12751_v18  ;;  %v6197_v16 = vld [vmem:[%s17230_s1 + $0x58] sm:$0xff]  ;;  %v2020_v61 = vsel %vm18416_vm5, %v1764_v3, 0.0  ;;  %v2312_v18 = vsel %vm18417_vm9, %v2120_v10, 0.0  ;;  %vm18418_vm6 = vmmov %vm18400_vm0  ;;  %v12969_v45 = vand.u32 15, %v1416_v49  ;;  %v1765_v10 = vld [vmem:[#allocation2 + $0xe7] sm:$0xff] }
 0x411   :  { %18408 = vst [vmem:[#allocation162_spill] sm:$0xff] %v18407_v29  ;;  %v12948_v29 = vand.u32 15, %v1381_v7  ;;  %9320 = vmatmul.msk.f32.gmra.mxu1 %vm18400_vm0, %v2277_v38  ;;  %6405 = vmatpush.msra.mxu0 %v6197_v16  ;;  %vm18419_vm14 = vmmov %vm18400_vm0  ;;  %v2053_v7 = vsel %vm1861_vm4, %v1797_v12, 0.0  ;;  %v2086_v38 = vld [vmem:[#allocation2 + $0xe8] sm:$0xff]  ;;  %v2121_v49 = vld [vmem:[#allocation2 + $0x200] sm:$0xff] }
 0x412   :  { %18412 = vst [vmem:[#allocation163_spill] sm:$0xff] %v18411_v56  ;;  %9384 = vmatmul.msk.f32.gmra.mxu0 %vm18418_vm6, %v2020_v61  ;;  %v2662_v16 = vpop.f32.mrf.mxu3  ;;  %v12977_v3 = vpop.f32.mrf.mxu1  ;;  %vm17603_vm9 = vcmp.gt.s32.totalorder %v12969_v45, 0  ;;  %v1351_v56 = vand.u32 15, %v12827_v39  ;;  %vm18425_vm5 = vmmov %vm18400_vm0  ;;  %v2087_v39 = vld [vmem:[#allocation2 + $0xf0] sm:$0xff] }
 0x413   :  { %18413 = vst [vmem:[#allocation164_spill] sm:$0xff] %v12951_v8  ;;  %vm17602_vm13 = vcmp.gt.s32.totalorder %v12948_v29, 0  ;;  %v2313_v8 = vsel %vm17603_vm9, %v2121_v49, 0.0  ;;  %vm18426_vm4 = vmmov %vm18400_vm0  ;;  %vm17629_vm9 = vcmp.gt.s32.totalorder %v12153_v21, 0 }
 0x414   :  { %9355 = vmatmul.msk.f32.gmra.mxu3 %vm18419_vm14, %v2312_v18  ;;  %18420 = vst [vmem:[#allocation165_spill] sm:$0xff] %v12969_v45  ;;  %vm1829_vm6 = vmand %vm17602_vm13, %vm12972_vm11  ;;  %v12984_v14 = vpop.f32.mrf.mxu0  ;;  %v1798_v18 = vld [vmem:[#allocation2 + $0x1ef] sm:$0xff]  ;;  %vm13000_vm3 = vcmp.gt.s32.totalorder %v1351_v56, 0  ;;  %v1290_v56 = vand.u32 15, %v11607_v44  ;;  %v18441_v44 = vmov 0 }
 0x415   :  { %9417 = vmatmul.msk.f32.gmra.mxu2 %vm18400_vm0, %v2053_v7  ;;  %v2278_v7 = vsel %vm17602_vm13, %v2086_v38, 0.0  ;;  %vm18424_vm14 = vmmov %vm18400_vm0  ;;  %v2021_v48 = vsel %vm1829_vm6, %v1765_v10, 0.0  ;;  %vm18427_vm0 = vcmp.gt.s32.totalorder %v12824_v2, 0  ;;  %v1766_v10 = vld [vmem:[#allocation2 + $0xef] sm:$0xff]  ;;  %vm18433_vm6 = vcmp.gt.s32.totalorder %v12924_v13, 0 }
 0x416   :  { %vm18428_vm1 = vmmov %vm18426_vm4  ;;  %vm13026_vm8 = vcmp.lt.s32.totalorder %v1290_v56, 15 }
 0x417   :  { %v3057_v12 = vpop.f32.mrf.mxu2  ;;  %v18442_v44 = vsel %vm13026_vm8, 4294967295, %v18441_v44 }
 0x418   :  { %v12987_v61 = vadd.f32 %v3057_v12, %v12861_v37  ;;  %v2054_v37 = vsel %vm18427_vm0, %v1798_v18, 0.0  ;;  %v18429_v12 = vmov 0  ;;  %vm18437_vm0 = vcmp.gt.s32.totalorder %v11604_v20, 0  ;;  %18443 = vst [vmem:[#allocation169_spill] sm:$0xff] %v18442_v44 }
 0x419   :  { %9321 = vmatmul.msk.f32.gmra.mxu1 %vm18424_vm14, %v2278_v7  ;;  %v18430_v12 = vsel %vm13000_vm3, 4294967295, %v18429_v12  ;;  %vm18434_vm14 = vcmp.gt.s32.totalorder %v12151_v19, 0 }
 0x41a   :  { %18423 = vst [vmem:[#allocation166_spill] sm:$0xff] %v12987_v61  ;;  %9385 = vmatmul.msk.f32.gmra.mxu0 %vm18425_vm5, %v2021_v48  ;;  %v2665_v38 = vpop.f32.mrf.mxu3  ;;  %v13004_v7 = vpop.f32.mrf.mxu1  ;;  %v2279_v18 = vsel %vm18434_vm14, %v2087_v39, 0.0  ;;  %vm18435_vm5 = vmmov %vm18426_vm4  ;;  %v2088_v39 = vld [vmem:[#allocation2 + $0xf8] sm:$0xff] }
 0x41b   :  { %18431 = vst [vmem:[#allocation167_spill] sm:$0xff] %v18430_v12  ;;  %vm18438_vm13 = vmmov %vm18435_vm5  ;;  %v2280_v12 = vsel %vm17629_vm9, %v2088_v39, 0.0  ;;  %v2089_v39 = vld [vmem:[#allocation2 + $0x100] sm:$0xff] }
 0x41c   :  { %9356 = vmatmul.msk.f32.gmra.mxu3 %vm18426_vm4, %v2313_v8  ;;  %v13006_v49 = vpop.f32.mrf.mxu0  ;;  %v1799_v8 = vld [vmem:[#allocation2 + $0x1f7] sm:$0xff]  ;;  %vm18436_vm4 = vmmov %vm18434_vm14 }
 0x41d   :  { %9418 = vmatmul.msk.f32.gmra.mxu2 %vm18428_vm1, %v2054_v37  ;;  %vm1863_vm1 = vmand %vm18433_vm6, %vm13000_vm3  ;;  %v3117_v37 = vld [vmem:[#allocation2 + $0x9] sm:$0xff]  ;;  %v2022_v2 = vsel %vm18436_vm4, %v1766_v10, 0.0  ;;  %vm18448_vm4 = vcmp.gt.s32.totalorder %v12969_v45, 0 }
 0x41e   :  { %vm18439_vm6 = vmmov %vm18435_vm5  ;;  %v18452_v45 = vld [vmem:[#allocation14_spill] sm:$0xff] }
 0x41f   :  { %v3060_v61 = vpop.f32.mrf.mxu2  ;;  %vm18440_vm3 = vmmov %vm18435_vm5 }
 0x420   :  { %v13008_v48 = vadd.f32 %v3060_v61, %v2659_v50  ;;  %v3373_v50 = vsel %vm18437_vm0, %v3117_v37, 0.0  ;;  %v2055_v61 = vsel %vm1863_vm1, %v1799_v8, 0.0  ;;  %vm1831_vm14 = vmand %vm17629_vm9, %vm12199_vm2  ;;  %v3118_v8 = vld [vmem:[#allocation2 + $0x11] sm:$0xff] }
 0x421   :  { %9322 = vmatmul.msk.f32.gmra.mxu1 %vm18435_vm5, %v2279_v18  ;;  %vm18446_vm1 = vmmov %vm18435_vm5 }
 0x422   :  { %18432 = vst [vmem:[#allocation168_spill] sm:$0xff] %v13008_v48  ;;  %9386 = vmatmul.msk.f32.gmra.mxu0 %vm18438_vm13, %v2022_v2  ;;  %v2668_v10 = vpop.f32.mrf.mxu3  ;;  %v13034_v18 = vpop.f32.mrf.mxu1  ;;  %v1767_v2 = vld [vmem:[#allocation2 + $0xf7] sm:$0xff]  ;;  %vm18447_vm5 = vmmov %vm18446_vm1 }
 0x423   :  { %v2023_v13 = vsel %vm1831_vm14, %v1767_v2, 0.0  ;;  %vm18449_vm0 = vmmov %vm18446_vm1 }
 0x424   :  { %9421 = vmatmul.msk.f32.vlgmr.msrb.gmra.mxu3 %vm18439_vm6, %v3373_v50  ;;  %v13040_v56 = vpop.f32.mrf.mxu0  ;;  %vm17626_vm6 = vcmp.lt.s32.totalorder %v11604_v20, 15  ;;  %v4625_v20 = vld [vmem:[#allocation2 + $0x18] sm:$0xff]  ;;  %vm18470_vm9 = vmmov %vm18449_vm0 }
 0x425   :  { %9419 = vmatmul.msk.f32.gmra.mxu2 %vm18440_vm3, %v2055_v61  ;;  %vm18444_vm3 = vcmp.gt.s32.totalorder %v11640_v53, 0  ;;  %v1800_v61 = vld [vmem:[#allocation2 + $0x1ff] sm:$0xff]  ;;  %vm5941_vm14 = vmand %vm17626_vm6, %vm11625_vm12 }
 0x426   :  { %vm3182_vm13 = vmand %vm18444_vm3, %vm13026_vm8  ;;  %v2056_v44 = vsel %vm18448_vm4, %v1800_v61, 0.0 }
 0x427   :  { %v3063_v37 = vpop.f32.mrf.mxu2  ;;  %v3374_v48 = vsel %vm3182_vm13, %v3118_v8, 0.0  ;;  %vm18450_vm3 = vmmov %vm18449_vm0  ;;  %vm18453_vm13 = vcmp.gt.s32.totalorder %v11551_v31, 0 }
 0x428   :  { %v13042_v50 = vadd.f32 %v3063_v37, %v2662_v16  ;;  %v5411_v16 = vld [vmem:[%s17230_s1 + $0x50] sm:$0xff]  ;;  %v13058_v37 = vld [vmem:[#allocation2 + $0x27] sm:$0xff]  ;;  %vm18457_vm4 = vmmov %vm18449_vm0 }
 0x429   :  { %9323 = vmatmul.msk.f32.gmra.mxu1 %vm18446_vm1, %v2280_v12  ;;  %5619 = vmatpush.msra.mxu3 %v5411_v16  ;;  %v2281_v16 = vsel %vm18453_vm13, %v2089_v39, 0.0  ;;  %vm18454_vm1 = vmmov %vm18449_vm0  ;;  %v18459_v39 = vmov 0  ;;  %vm17662_vm13 = vcmp.lt.s32.totalorder %v11640_v53, 15 }
 0x42a   :  { %18445 = vst [vmem:[#allocation170_spill] sm:$0xff] %v13042_v50  ;;  %9387 = vmatmul.msk.f32.gmra.mxu0 %vm18447_vm5, %v2023_v13  ;;  %v2671_v12 = vpop.f32.mrf.mxu3  ;;  %v13056_v2 = vpop.f32.mrf.mxu1  ;;  %v6133_v50 = vsel %vm5941_vm14, %v13058_v37, 0.0  ;;  %vm18456_vm5 = vcmp.gt.s32.totalorder %v18455_v35, 0  ;;  %vm18469_vm6 = vmmov %vm18449_vm0 }
 0x42c   :  { %9422 = vmatmul.msk.f32.gmra.mxu3 %vm18449_vm0, %v3374_v48  ;;  %v3119_v48 = vld [vmem:[#allocation2 + $0x19] sm:$0xff]  ;;  %v13064_v8 = vpop.f32.mrf.mxu0 }
 0x42d   :  { %9420 = vmatmul.msk.f32.gmra.mxu2 %vm18450_vm3, %v2056_v44  ;;  %v1292_v44 = vand.u32 15, %v18452_v45  ;;  %v3375_v59 = vsel %vm18456_vm5, %v3119_v48, 0.0  ;;  %v6919_v45 = vld [vmem:[%s17230_s1 + $0x60] sm:$0xff]  ;;  %vm18458_vm3 = vmmov %vm18449_vm0  ;;  %v13091_v48 = vld [vmem:[#allocation2 + $0x2f] sm:$0xff] }
 0x42e   :  { %7127 = vmatpush.msra.mxu1 %v6919_v45  ;;  %v6134_v51 = vsel %vm17662_vm13, %v13091_v48, 0.0 }
 0x42f   :  { %v3066_v13 = vpop.f32.mrf.mxu2  ;;  %vm13084_vm14 = vcmp.lt.s32.totalorder %v1292_v44, 15 }
 0x430   :  { %v13066_v61 = vadd.f32 %v3066_v13, %v2665_v38  ;;  %v7705_v38 = vld [vmem:[%s17230_s1 + $0x68] sm:$0xff]  ;;  %v18460_v39 = vsel %vm13084_vm14, 4294967295, %v18459_v39 }
 0x431   :  { %9324 = vmatmul.msk.f32.gmra.mxu1 %vm18454_vm1, %v2281_v16  ;;  %18461 = vst [vmem:[#allocation14_spill] sm:$0xff] %v18460_v39  ;;  %7913 = vmatpush.msra.mxu2 %v7705_v38  ;;  %vm18463_vm1 = vcmp.gt.s32.totalorder %v18462_v41, 0  ;;  %v18466_v38 = vld [vmem:[#allocation10_spill] sm:$0xff]  ;;  %v4626_v39 = vld [vmem:[#allocation2 + $0x20] sm:$0xff] }
 0x432   :  { %18451 = vst [vmem:[#allocation171_spill] sm:$0xff] %v13066_v61  ;;  %9677 = vmatmul.msk.f32.vlgmr.msra.gmra.mxu0 %vm18457_vm4, %v6133_v50  ;;  %v2090_v50 = vld [vmem:[#allocation2 + $0x108] sm:$0xff]  ;;  %v2674_v13 = vpop.f32.mrf.mxu3  ;;  %vm3184_vm5 = vmand %vm18463_vm1, %vm13084_vm14  ;;  %vm18467_vm4 = vcmp.gt.s32.totalorder %v18466_v38, 0  ;;  %vm17643_vm1 = vcmp.lt.s32.totalorder %v18455_v35, 15 }
 0x433   :  { %v3120_v61 = vld [vmem:[#allocation2 + $0x21] sm:$0xff]  ;;  %v2282_v45 = vsel %vm18467_vm4, %v2090_v50, 0.0  ;;  %v13113_v50 = vld [vmem:[#allocation2 + $0x37] sm:$0xff]  ;;  %vm18479_vm4 = vmmov %vm18449_vm0 }
 0x434   :  { %9423 = vmatmul.msk.f32.gmra.mxu3 %vm18449_vm0, %v3375_v59  ;;  %v13088_v59 = vpop.f32.mrf.mxu1  ;;  %v3376_v25 = vsel %vm3184_vm5, %v3120_v61, 0.0  ;;  %vm5943_vm5 = vmand %vm17643_vm1, %vm11677_vm10  ;;  %v4627_v35 = vld [vmem:[#allocation2 + $0x28] sm:$0xff]  ;;  %vm13133_vm1 = vcmp.lt.s32.totalorder %v1294_v30, 15 }
 0x435   :  { %9549 = vmatmul.msk.f32.vlgmr.msrb.gmra.mxu2 %vm18458_vm3, %v4625_v20  ;;  %v13097_v20 = vpop.f32.mrf.mxu0  ;;  %vm18468_vm3 = vmmov %vm18449_vm0  ;;  %v6135_v11 = vsel %vm5943_vm5, %v13113_v50, 0.0 }
 0x436   :  { %18464 = vst [vmem:[#allocation172_spill] sm:$0xff] %v13097_v20 }
 0x437   :  { %v3069_v16 = vpop.f32.mrf.mxu2 }
 0x438   :  { %v13099_v44 = vadd.f32 %v3069_v16, %v2668_v10  ;;  %v3903_v10 = vld [vmem:[#allocation2 + $0x17] sm:$0xff] }
 0x439   :  { %9325 = vmatmul.msk.f32.gmra.mxu1 %vm18449_vm0, %v2282_v45 }
 0x43a   :  { %18465 = vst [vmem:[#allocation173_spill] sm:$0xff] %v13099_v44  ;;  %9678 = vmatmul.msk.f32.gmra.mxu0 %vm18468_vm3, %v6134_v51  ;;  %v2677_v16 = vpop.f32.mrf.mxu3  ;;  %v3121_v51 = vld [vmem:[#allocation2 + $0x29] sm:$0xff]  ;;  %vm18480_vm3 = vmmov %vm18449_vm0 }
 0x43c   :  { %9424 = vmatmul.msk.f32.gmra.mxu3 %vm18469_vm6, %v3376_v25  ;;  %v13111_v44 = vpop.f32.mrf.mxu1  ;;  %vm18478_vm6 = vcmp.gt.s32.totalorder %v18477_v60, 0 }
 0x43d   :  { %9550 = vmatmul.msk.f32.gmra.mxu2 %vm18470_vm9, %v4626_v39  ;;  %18471 = vst [vmem:[#allocation10_spill] sm:$0xff] %v13111_v44  ;;  %v13119_v53 = vpop.f32.mrf.mxu0  ;;  %v4095_v39 = vsel %vm11625_vm12, %v3903_v10, 0.0  ;;  %vm18476_vm9 = vmmov %vm18449_vm0  ;;  %v3377_v9 = vsel %vm18478_vm6, %v3121_v51, 0.0  ;;  %vm17655_vm12 = vcmp.lt.s32.totalorder %v18462_v41, 15  ;;  %v13140_v10 = vld [vmem:[#allocation2 + $0x3f] sm:$0xff]  ;;  %v3122_v51 = vld [vmem:[#allocation2 + $0x31] sm:$0xff] }
 0x43e   :  { %18473 = vst [vmem:[#allocation13_spill] sm:$0xff] %v13119_v53  ;;  %vm18489_vm6 = vmmov %vm18449_vm0  ;;  %v3123_v41 = vld [vmem:[#allocation2 + $0x39] sm:$0xff]  ;;  %v18653_v44 = vld [vmem:[#allocation99_spill] sm:$0xff] }
 0x43f   :  { %v3072_v61 = vpop.f32.mrf.mxu2 }
 0x440   :  { %v13121_v25 = vadd.f32 %v3072_v61, %v2671_v12  ;;  %v18481_v12 = vmov 0 }
 0x441   :  { %9485 = vmatmul.msk.f32.vlgmr.msrb.gmra.mxu1 %vm18476_vm9, %v4095_v39  ;;  %v18482_v12 = vsel %vm13133_vm1, 4294967295, %v18481_v12  ;;  %v6136_v39 = vsel %vm17655_vm12, %v13140_v10, 0.0 }
 0x442   :  { %18474 = vst [vmem:[#allocation174_spill] sm:$0xff] %v13121_v25  ;;  %9679 = vmatmul.msk.f32.gmra.mxu0 %vm18479_vm4, %v6135_v11  ;;  %v2680_v36 = vpop.f32.mrf.mxu3  ;;  %v18485_v11 = vld [vmem:[#allocation5_spill] sm:$0xff]  ;;  %vm18490_vm4 = vmmov %vm18449_vm0 }
 0x443   :  { %18483 = vst [vmem:[#allocation27_spill] sm:$0xff] %v18482_v12  ;;  %vm18486_vm5 = vcmp.gt.s32.totalorder %v18485_v11, 0  ;;  %v4628_v12 = vld [vmem:[#allocation2 + $0x30] sm:$0xff] }
 0x444   :  { %9425 = vmatmul.msk.f32.gmra.mxu3 %vm18449_vm0, %v3377_v9  ;;  %v13137_v47 = vpop.f32.mrf.mxu1  ;;  %vm3186_vm9 = vmand %vm18486_vm5, %vm13133_vm1 }
 0x445   :  { %9551 = vmatmul.msk.f32.gmra.mxu2 %vm18480_vm3, %v4627_v35  ;;  %18484 = vst [vmem:[#allocation175_spill] sm:$0xff] %v13137_v47  ;;  %v13146_v9 = vpop.f32.mrf.mxu0  ;;  %v3904_v35 = vld [vmem:[#allocation2 + $0x1f] sm:$0xff]  ;;  %v3378_v25 = vsel %vm3186_vm9, %v3122_v51, 0.0  ;;  %vm17654_vm3 = vcmp.lt.s32.totalorder %v18477_v60, 15  ;;  %vm18491_vm5 = vmmov %vm18449_vm0 }
 0x446   :  { %18487 = vst [vmem:[#allocation176_spill] sm:$0xff] %v13146_v9  ;;  %vm18497_vm9 = vmmov %vm18449_vm0  ;;  %v18649_v47 = vld [vmem:[#allocation101_spill] sm:$0xff] }
 0x447   :  { %v3075_v61 = vpop.f32.mrf.mxu2  ;;  %v1310_v43 = vand.u32 15, %v18649_v47  ;;  %v4643_v47 = vld [vmem:[#allocation2 + $0xa8] sm:$0xff] }
 0x448   :  { %v13148_v30 = vadd.f32 %v3075_v61, %v2674_v13  ;;  %v13160_v61 = vld [vmem:[#allocation2 + $0x47] sm:$0xff] }
 0x449   :  { %9486 = vmatmul.msk.f32.gmra.mxu1 %vm18489_vm6, %v3904_v35  ;;  %vm5945_vm6 = vmand %vm17654_vm3, %vm11751_vm7 }
 0x44a   :  { %18488 = vst [vmem:[#allocation177_spill] sm:$0xff] %v13148_v30  ;;  %9680 = vmatmul.msk.f32.gmra.mxu0 %vm18490_vm4, %v6136_v39  ;;  %v2683_v57 = vpop.f32.mrf.mxu3  ;;  %v18496_v30 = vld [vmem:[#allocation28_spill] sm:$0xff]  ;;  %v6137_v28 = vsel %vm5945_vm6, %v13160_v61, 0.0  ;;  %vm18501_vm3 = vmmov %vm18449_vm0 }
 0x44b   :  { %v1296_v15 = vand.u32 15, %v18496_v30  ;;  %v13188_v30 = vld [vmem:[#allocation2 + $0x4f] sm:$0xff] }
 0x44c   :  { %9426 = vmatmul.msk.f32.gmra.mxu3 %vm18449_vm0, %v3378_v25  ;;  %v13158_v13 = vpop.f32.mrf.mxu1 }
 0x44d   :  { %9552 = vmatmul.msk.f32.gmra.mxu2 %vm18491_vm5, %v4628_v12  ;;  %18492 = vst [vmem:[#allocation178_spill] sm:$0xff] %v13158_v13  ;;  %v13166_v39 = vpop.f32.mrf.mxu0  ;;  %v4097_v12 = vsel %vm11677_vm10, %v13058_v37, 0.0  ;;  %v18498_v13 = vld [vmem:[#allocation7_spill] sm:$0xff]  ;;  %vm18500_vm5 = vmmov %vm18449_vm0  ;;  %vm13181_vm12 = vcmp.lt.s32.totalorder %v1296_v15, 15  ;;  %vm17658_vm10 = vcmp.lt.s32.totalorder %v18485_v11, 15 }
 0x44e   :  { %18494 = vst [vmem:[#allocation4_spill] sm:$0xff] %v13166_v39  ;;  %vm18499_vm4 = vcmp.gt.s32.totalorder %v18498_v13, 0  ;;  %v4629_v39 = vld [vmem:[#allocation2 + $0x38] sm:$0xff]  ;;  %v3125_v11 = vld [vmem:[#allocation2 + $0x49] sm:$0xff] }
 0x44f   :  { %v3078_v51 = vpop.f32.mrf.mxu2  ;;  %v3379_v60 = vsel %vm18499_vm4, %v3123_v41, 0.0  ;;  %v3124_v41 = vld [vmem:[#allocation2 + $0x41] sm:$0xff]  ;;  %vm18511_vm4 = vmmov %vm18449_vm0 }
 0x450   :  { %v13168_v25 = vadd.f32 %v3078_v51, %v2677_v16  ;;  %v18502_v16 = vmov 0 }
 0x451   :  { %9487 = vmatmul.msk.f32.gmra.mxu1 %vm18497_vm9, %v4097_v12  ;;  %v18503_v16 = vsel %vm13181_vm12, 4294967295, %v18502_v16 }
 0x452   :  { %18495 = vst [vmem:[#allocation179_spill] sm:$0xff] %v13168_v25  ;;  %9681 = vmatmul.msk.f32.gmra.mxu0 %vm18449_vm0, %v6137_v28  ;;  %v2686_v45 = vpop.f32.mrf.mxu3  ;;  %v18506_v28 = vld [vmem:[#allocation31_spill] sm:$0xff] }
 0x453   :  { %18504 = vst [vmem:[#allocation28_spill] sm:$0xff] %v18503_v16  ;;  %vm18507_vm6 = vcmp.gt.s32.totalorder %v18506_v28, 0  ;;  %v4630_v16 = vld [vmem:[#allocation2 + $0x40] sm:$0xff] }
 0x454   :  { %9427 = vmatmul.msk.f32.gmra.mxu3 %vm18500_vm5, %v3379_v60  ;;  %v13185_v37 = vpop.f32.mrf.mxu1  ;;  %vm3188_vm9 = vmand %vm18507_vm6, %vm13181_vm12  ;;  %vm17661_vm5 = vcmp.lt.s32.totalorder %v18498_v13, 15 }
 0x455   :  { %9553 = vmatmul.msk.f32.gmra.mxu2 %vm18501_vm3, %v4629_v39  ;;  %18505 = vst [vmem:[#allocation180_spill] sm:$0xff] %v13185_v37  ;;  %v13194_v60 = vpop.f32.mrf.mxu0  ;;  %vm18510_vm3 = vmmov %vm18449_vm0  ;;  %v6138_v39 = vsel %vm17658_vm10, %v13188_v30, 0.0  ;;  %v3380_v12 = vsel %vm3188_vm9, %v3124_v41, 0.0  ;;  %v18520_v37 = vld [vmem:[#allocation34_spill] sm:$0xff] }
 0x456   :  { %18508 = vst [vmem:[#allocation181_spill] sm:$0xff] %v13194_v60  ;;  %vm18512_vm6 = vmmov %vm18449_vm0 }
 0x457   :  { %v3081_v51 = vpop.f32.mrf.mxu2  ;;  %vm18519_vm9 = vmmov %vm18449_vm0 }
 0x458   :  { %v13196_v15 = vadd.f32 %v3081_v51, %v2680_v36  ;;  %v13209_v51 = vld [vmem:[#allocation2 + $0x57] sm:$0xff] }
 0x459   :  { %9488 = vmatmul.msk.f32.gmra.mxu1 %vm18510_vm3, %v13091_v48  ;;  %v18514_v48 = vld [vmem:[#allocation30_spill] sm:$0xff] }
 0x45a   :  { %18509 = vst [vmem:[#allocation182_spill] sm:$0xff] %v13196_v15  ;;  %9682 = vmatmul.msk.f32.gmra.mxu0 %vm18511_vm4, %v6138_v39  ;;  %v2689_v25 = vpop.f32.mrf.mxu3  ;;  %vm18515_vm3 = vnez %v18514_v48  ;;  %v18518_v15 = vld [vmem:[#allocation35_spill] sm:$0xff]  ;;  %vm18521_vm4 = vcmp.gt.s32.totalorder %v18520_v37, 0 }
 0x45b   :  { %vm5947_vm10 = vmand %vm17661_vm5, %vm18515_vm3  ;;  %v1298_v60 = vand.u32 15, %v18518_v15  ;;  %v3381_v13 = vsel %vm18521_vm4, %v3125_v11, 0.0  ;;  %v13237_v15 = vld [vmem:[#allocation2 + $0x5f] sm:$0xff]  ;;  %v3126_v11 = vld [vmem:[#allocation2 + $0x51] sm:$0xff] }
 0x45c   :  { %9428 = vmatmul.msk.f32.gmra.mxu3 %vm18449_vm0, %v3380_v12  ;;  %v13207_v36 = vpop.f32.mrf.mxu1  ;;  %vm18523_vm5 = vmmov %vm18449_vm0 }
 0x45d   :  { %9554 = vmatmul.msk.f32.gmra.mxu2 %vm18512_vm6, %v4630_v16  ;;  %18513 = vst [vmem:[#allocation183_spill] sm:$0xff] %v13207_v36  ;;  %v13215_v39 = vpop.f32.mrf.mxu0  ;;  %v4099_v16 = vsel %vm11751_vm7, %v13113_v50, 0.0  ;;  %v6139_v36 = vsel %vm5947_vm10, %v13209_v51, 0.0  ;;  %vm18522_vm6 = vmmov %vm18449_vm0  ;;  %vm13230_vm13 = vcmp.lt.s32.totalorder %v1298_v60, 15  ;;  %vm17665_vm7 = vcmp.lt.s32.totalorder %v18506_v28, 15  ;;  %v3127_v28 = vld [vmem:[#allocation2 + $0x59] sm:$0xff] }
 0x45e   :  { %18516 = vst [vmem:[#allocation30_spill] sm:$0xff] %v13215_v39  ;;  %v4631_v39 = vld [vmem:[#allocation2 + $0x48] sm:$0xff]  ;;  %vm18533_vm4 = vmmov %vm18449_vm0 }
 0x45f   :  { %v3084_v41 = vpop.f32.mrf.mxu2 }
 0x460   :  { %v13217_v12 = vadd.f32 %v3084_v41, %v2683_v57  ;;  %v18524_v57 = vmov 0 }
 0x461   :  { %9489 = vmatmul.msk.f32.gmra.mxu1 %vm18519_vm9, %v4099_v16  ;;  %v18525_v57 = vsel %vm13230_vm13, 4294967295, %v18524_v57 }
 0x462   :  { %18517 = vst [vmem:[#allocation184_spill] sm:$0xff] %v13217_v12  ;;  %9683 = vmatmul.msk.f32.gmra.mxu0 %vm18449_vm0, %v6139_v36  ;;  %v2692_v35 = vpop.f32.mrf.mxu3  ;;  %v18528_v36 = vld [vmem:[#allocation38_spill] sm:$0xff] }
 0x463   :  { %18526 = vst [vmem:[#allocation35_spill] sm:$0xff] %v18525_v57  ;;  %vm18529_vm10 = vcmp.gt.s32.totalorder %v18528_v36, 0  ;;  %v4632_v57 = vld [vmem:[#allocation2 + $0x50] sm:$0xff] }
 0x464   :  { %9429 = vmatmul.msk.f32.gmra.mxu3 %vm18522_vm6, %v3381_v13  ;;  %v13234_v50 = vpop.f32.mrf.mxu1  ;;  %vm3190_vm9 = vmand %vm18529_vm10, %vm13230_vm13  ;;  %vm17668_vm6 = vcmp.lt.s32.totalorder %v18520_v37, 15 }
 0x465   :  { %9555 = vmatmul.msk.f32.gmra.mxu2 %vm18523_vm5, %v4631_v39  ;;  %18527 = vst [vmem:[#allocation185_spill] sm:$0xff] %v13234_v50  ;;  %v13243_v13 = vpop.f32.mrf.mxu0  ;;  %vm18532_vm5 = vmmov %vm18449_vm0  ;;  %v6140_v39 = vsel %vm17665_vm7, %v13237_v15, 0.0  ;;  %v3382_v16 = vsel %vm3190_vm9, %v3126_v11, 0.0  ;;  %v18542_v50 = vld [vmem:[#allocation41_spill] sm:$0xff] }
 0x466   :  { %18530 = vst [vmem:[#allocation186_spill] sm:$0xff] %v13243_v13  ;;  %vm18534_vm10 = vmmov %vm18449_vm0 }
 0x467   :  { %v3087_v41 = vpop.f32.mrf.mxu2  ;;  %vm18541_vm9 = vmmov %vm18449_vm0 }
 0x468   :  { %v13245_v60 = vadd.f32 %v3087_v41, %v2686_v45  ;;  %v13258_v41 = vld [vmem:[#allocation2 + $0x67] sm:$0xff] }
 0x469   :  { %9490 = vmatmul.msk.f32.gmra.mxu1 %vm18532_vm5, %v13140_v10  ;;  %v18536_v10 = vld [vmem:[#allocation37_spill] sm:$0xff] }
 0x46a   :  { %18531 = vst [vmem:[#allocation187_spill] sm:$0xff] %v13245_v60  ;;  %9684 = vmatmul.msk.f32.gmra.mxu0 %vm18533_vm4, %v6140_v39  ;;  %v2695_v12 = vpop.f32.mrf.mxu3  ;;  %vm18537_vm5 = vnez %v18536_v10  ;;  %v18540_v60 = vld [vmem:[#allocation42_spill] sm:$0xff]  ;;  %vm18543_vm4 = vcmp.gt.s32.totalorder %v18542_v50, 0 }
 0x46b   :  { %vm5949_vm7 = vmand %vm17668_vm6, %vm18537_vm5  ;;  %v1300_v13 = vand.u32 15, %v18540_v60  ;;  %v3383_v37 = vsel %vm18543_vm4, %v3127_v28, 0.0  ;;  %v13286_v60 = vld [vmem:[#allocation2 + $0x6f] sm:$0xff]  ;;  %v3128_v28 = vld [vmem:[#allocation2 + $0x61] sm:$0xff] }
 0x46c   :  { %9430 = vmatmul.msk.f32.gmra.mxu3 %vm18449_vm0, %v3382_v16  ;;  %v13256_v45 = vpop.f32.mrf.mxu1  ;;  %vm18545_vm6 = vmmov %vm18449_vm0 }
 0x46d   :  { %9556 = vmatmul.msk.f32.gmra.mxu2 %vm18534_vm10, %v4632_v57  ;;  %18535 = vst [vmem:[#allocation188_spill] sm:$0xff] %v13256_v45  ;;  %v13264_v39 = vpop.f32.mrf.mxu0  ;;  %v4101_v57 = vsel %vm18515_vm3, %v13160_v61, 0.0  ;;  %v6141_v45 = vsel %vm5949_vm7, %v13258_v41, 0.0  ;;  %vm18544_vm10 = vmmov %vm18449_vm0  ;;  %vm13279_vm13 = vcmp.lt.s32.totalorder %v1300_v13, 15  ;;  %vm17673_vm3 = vcmp.lt.s32.totalorder %v18528_v36, 15  ;;  %v3129_v36 = vld [vmem:[#allocation2 + $0x69] sm:$0xff] }
 0x46e   :  { %18538 = vst [vmem:[#allocation37_spill] sm:$0xff] %v13264_v39  ;;  %v4633_v39 = vld [vmem:[#allocation2 + $0x58] sm:$0xff]  ;;  %vm18555_vm4 = vmmov %vm18449_vm0 }
 0x46f   :  { %v3090_v11 = vpop.f32.mrf.mxu2 }
 0x470   :  { %v13266_v16 = vadd.f32 %v3090_v11, %v2689_v25  ;;  %v18546_v25 = vmov 0 }
 0x471   :  { %9491 = vmatmul.msk.f32.gmra.mxu1 %vm18541_vm9, %v4101_v57  ;;  %v18547_v25 = vsel %vm13279_vm13, 4294967295, %v18546_v25 }
 0x472   :  { %18539 = vst [vmem:[#allocation189_spill] sm:$0xff] %v13266_v16  ;;  %9685 = vmatmul.msk.f32.gmra.mxu0 %vm18449_vm0, %v6141_v45  ;;  %v2698_v48 = vpop.f32.mrf.mxu3  ;;  %v18550_v45 = vld [vmem:[#allocation45_spill] sm:$0xff] }
 0x473   :  { %18548 = vst [vmem:[#allocation42_spill] sm:$0xff] %v18547_v25  ;;  %vm18551_vm7 = vcmp.gt.s32.totalorder %v18550_v45, 0  ;;  %v4634_v25 = vld [vmem:[#allocation2 + $0x60] sm:$0xff] }
 0x474   :  { %9431 = vmatmul.msk.f32.gmra.mxu3 %vm18544_vm10, %v3383_v37  ;;  %v13283_v61 = vpop.f32.mrf.mxu1  ;;  %vm3192_vm9 = vmand %vm18551_vm7, %vm13279_vm13  ;;  %vm17676_vm10 = vcmp.lt.s32.totalorder %v18542_v50, 15 }
 0x475   :  { %9557 = vmatmul.msk.f32.gmra.mxu2 %vm18545_vm6, %v4633_v39  ;;  %18549 = vst [vmem:[#allocation190_spill] sm:$0xff] %v13283_v61  ;;  %v13292_v37 = vpop.f32.mrf.mxu0  ;;  %vm18554_vm6 = vmmov %vm18449_vm0  ;;  %v6142_v39 = vsel %vm17673_vm3, %v13286_v60, 0.0  ;;  %v3384_v57 = vsel %vm3192_vm9, %v3128_v28, 0.0  ;;  %v18564_v61 = vld [vmem:[#allocation48_spill] sm:$0xff] }
 0x476   :  { %18552 = vst [vmem:[#allocation191_spill] sm:$0xff] %v13292_v37  ;;  %vm18556_vm7 = vmmov %vm18449_vm0 }
 0x477   :  { %v3093_v11 = vpop.f32.mrf.mxu2  ;;  %vm18563_vm9 = vmmov %vm18449_vm0 }
 0x478   :  { %v13294_v13 = vadd.f32 %v3093_v11, %v2692_v35  ;;  %v13307_v11 = vld [vmem:[#allocation2 + $0x77] sm:$0xff] }
 0x479   :  { %9492 = vmatmul.msk.f32.gmra.mxu1 %vm18554_vm6, %v13188_v30  ;;  %v18558_v30 = vld [vmem:[#allocation44_spill] sm:$0xff] }
 0x47a   :  { %18553 = vst [vmem:[#allocation192_spill] sm:$0xff] %v13294_v13  ;;  %9686 = vmatmul.msk.f32.gmra.mxu0 %vm18555_vm4, %v6142_v39  ;;  %v2701_v16 = vpop.f32.mrf.mxu3  ;;  %vm18559_vm6 = vnez %v18558_v30  ;;  %v18562_v13 = vld [vmem:[#allocation49_spill] sm:$0xff]  ;;  %vm18565_vm4 = vcmp.gt.s32.totalorder %v18564_v61, 0 }
 0x47b   :  { %vm5951_vm3 = vmand %vm17676_vm10, %vm18559_vm6  ;;  %v1302_v37 = vand.u32 15, %v18562_v13  ;;  %v3385_v50 = vsel %vm18565_vm4, %v3129_v36, 0.0  ;;  %v13335_v13 = vld [vmem:[#allocation2 + $0x7f] sm:$0xff]  ;;  %v3130_v36 = vld [vmem:[#allocation2 + $0x71] sm:$0xff] }
 0x47c   :  { %9432 = vmatmul.msk.f32.gmra.mxu3 %vm18449_vm0, %v3384_v57  ;;  %v13305_v35 = vpop.f32.mrf.mxu1  ;;  %vm18567_vm10 = vmmov %vm18449_vm0 }
 0x47d   :  { %9558 = vmatmul.msk.f32.gmra.mxu2 %vm18556_vm7, %v4634_v25  ;;  %18557 = vst [vmem:[#allocation193_spill] sm:$0xff] %v13305_v35  ;;  %v13313_v39 = vpop.f32.mrf.mxu0  ;;  %v4103_v25 = vsel %vm18537_vm5, %v13209_v51, 0.0  ;;  %v6143_v35 = vsel %vm5951_vm3, %v13307_v11, 0.0  ;;  %vm18566_vm7 = vmmov %vm18449_vm0  ;;  %vm13328_vm13 = vcmp.lt.s32.totalorder %v1302_v37, 15  ;;  %vm17681_vm5 = vcmp.lt.s32.totalorder %v18550_v45, 15  ;;  %v3131_v45 = vld [vmem:[#allocation2 + $0x79] sm:$0xff] }
 0x47e   :  { %18560 = vst [vmem:[#allocation44_spill] sm:$0xff] %v13313_v39  ;;  %v4635_v39 = vld [vmem:[#allocation2 + $0x68] sm:$0xff]  ;;  %vm18577_vm4 = vmmov %vm18449_vm0 }
 0x47f   :  { %v3096_v28 = vpop.f32.mrf.mxu2 }
 0x480   :  { %v13315_v57 = vadd.f32 %v3096_v28, %v2695_v12  ;;  %v18568_v12 = vmov 0 }
 0x481   :  { %9493 = vmatmul.msk.f32.gmra.mxu1 %vm18563_vm9, %v4103_v25  ;;  %v18569_v12 = vsel %vm13328_vm13, 4294967295, %v18568_v12 }
 0x482   :  { %18561 = vst [vmem:[#allocation194_spill] sm:$0xff] %v13315_v57  ;;  %9687 = vmatmul.msk.f32.gmra.mxu0 %vm18449_vm0, %v6143_v35  ;;  %v2704_v10 = vpop.f32.mrf.mxu3  ;;  %v18572_v35 = vld [vmem:[#allocation52_spill] sm:$0xff] }
 0x483   :  { %18570 = vst [vmem:[#allocation49_spill] sm:$0xff] %v18569_v12  ;;  %vm18573_vm3 = vcmp.gt.s32.totalorder %v18572_v35, 0  ;;  %v4636_v12 = vld [vmem:[#allocation2 + $0x70] sm:$0xff] }
 0x484   :  { %9433 = vmatmul.msk.f32.gmra.mxu3 %vm18566_vm7, %v3385_v50  ;;  %vm3194_vm9 = vmand %vm18573_vm3, %vm13328_vm13  ;;  %vm17684_vm7 = vcmp.lt.s32.totalorder %v18564_v61, 15 }
 0x485   :  { %9559 = vmatmul.msk.f32.gmra.mxu2 %vm18567_vm10, %v4635_v39  ;;  %vm18576_vm10 = vmmov %vm18449_vm0  ;;  %v6144_v39 = vsel %vm17681_vm5, %v13335_v13, 0.0  ;;  %v3386_v25 = vsel %vm3194_vm9, %v3130_v36, 0.0 }
 0x486   :  { %v13332_v51 = vpop.f32.mrf.mxu1  ;;  %vm18578_vm3 = vmmov %vm18449_vm0 }
 0x487   :  { %18571 = vst [vmem:[#allocation195_spill] sm:$0xff] %v13332_v51  ;;  %v3099_v28 = vpop.f32.mrf.mxu2  ;;  %v13341_v50 = vpop.f32.mrf.mxu0  ;;  %vm18585_vm9 = vmmov %vm18449_vm0  ;;  %v18586_v51 = vld [vmem:[#allocation55_spill] sm:$0xff] }
 0x488   :  { %18574 = vst [vmem:[#allocation196_spill] sm:$0xff] %v13341_v50  ;;  %v13343_v37 = vadd.f32 %v3099_v28, %v2698_v48  ;;  %v13356_v28 = vld [vmem:[#allocation2 + $0x87] sm:$0xff] }
 0x489   :  { %9494 = vmatmul.msk.f32.gmra.mxu1 %vm18576_vm10, %v13237_v15  ;;  %v18580_v15 = vld [vmem:[#allocation51_spill] sm:$0xff] }
 0x48a   :  { %18575 = vst [vmem:[#allocation197_spill] sm:$0xff] %v13343_v37  ;;  %9688 = vmatmul.msk.f32.gmra.mxu0 %vm18577_vm4, %v6144_v39  ;;  %vm18581_vm10 = vnez %v18580_v15  ;;  %v18584_v37 = vld [vmem:[#allocation56_spill] sm:$0xff]  ;;  %vm18587_vm4 = vcmp.gt.s32.totalorder %v18586_v51, 0 }
 0x48b   :  { %vm5953_vm5 = vmand %vm17684_vm7, %vm18581_vm10  ;;  %v1304_v50 = vand.u32 15, %v18584_v37  ;;  %v3387_v61 = vsel %vm18587_vm4, %v3131_v45, 0.0  ;;  %v13384_v37 = vld [vmem:[#allocation2 + $0x8f] sm:$0xff]  ;;  %v3132_v45 = vld [vmem:[#allocation2 + $0x81] sm:$0xff] }
 0x48c   :  { %9434 = vmatmul.msk.f32.gmra.mxu3 %vm18449_vm0, %v3386_v25  ;;  %vm18589_vm7 = vmmov %vm18449_vm0 }
 0x48d   :  { %9560 = vmatmul.msk.f32.gmra.mxu2 %vm18578_vm3, %v4636_v12  ;;  %v4105_v12 = vsel %vm18559_vm6, %v13258_v41, 0.0  ;;  %vm18588_vm3 = vmmov %vm18449_vm0  ;;  %vm13377_vm13 = vcmp.lt.s32.totalorder %v1304_v50, 15  ;;  %vm17689_vm6 = vcmp.lt.s32.totalorder %v18572_v35, 15  ;;  %v3133_v35 = vld [vmem:[#allocation2 + $0x89] sm:$0xff] }
 0x48e   :  { %v13354_v48 = vpop.f32.mrf.mxu1  ;;  %vm18599_vm4 = vmmov %vm18449_vm0 }
 0x48f   :  { %v2707_v57 = vpop.f32.mrf.mxu3  ;;  %18579 = vst [vmem:[#allocation198_spill] sm:$0xff] %v13354_v48  ;;  %v13362_v39 = vpop.f32.mrf.mxu0  ;;  %v6145_v48 = vsel %vm5953_vm5, %v13356_v28, 0.0 }
 0x490   :  { %v3102_v36 = vpop.f32.mrf.mxu2  ;;  %18582 = vst [vmem:[#allocation51_spill] sm:$0xff] %v13362_v39  ;;  %v4637_v39 = vld [vmem:[#allocation2 + $0x78] sm:$0xff] }
 0x491   :  { %v13364_v25 = vadd.f32 %v3102_v36, %v2701_v16  ;;  %9495 = vmatmul.msk.f32.gmra.mxu1 %vm18585_vm9, %v4105_v12  ;;  %v18590_v16 = vmov 0 }
 0x492   :  { %9689 = vmatmul.msk.f32.gmra.mxu0 %vm18449_vm0, %v6145_v48  ;;  %v18591_v16 = vsel %vm13377_vm13, 4294967295, %v18590_v16  ;;  %v18594_v48 = vld [vmem:[#allocation59_spill] sm:$0xff] }
 0x493   :  { %18583 = vst [vmem:[#allocation199_spill] sm:$0xff] %v13364_v25  ;;  %vm18595_vm5 = vcmp.gt.s32.totalorder %v18594_v48, 0 }
 0x494   :  { %9435 = vmatmul.msk.f32.gmra.mxu3 %vm18588_vm3, %v3387_v61  ;;  %18592 = vst [vmem:[#allocation56_spill] sm:$0xff] %v18591_v16  ;;  %vm3196_vm9 = vmand %vm18595_vm5, %vm13377_vm13  ;;  %v4638_v16 = vld [vmem:[#allocation2 + $0x80] sm:$0xff]  ;;  %vm17692_vm3 = vcmp.lt.s32.totalorder %v18586_v51, 15 }
 0x495   :  { %9561 = vmatmul.msk.f32.gmra.mxu2 %vm18589_vm7, %v4637_v39  ;;  %vm18598_vm7 = vmmov %vm18449_vm0  ;;  %v6146_v39 = vsel %vm17689_vm6, %v13384_v37, 0.0  ;;  %v3388_v12 = vsel %vm3196_vm9, %v3132_v45, 0.0 }
 0x496   :  { %v13381_v41 = vpop.f32.mrf.mxu1  ;;  %vm18600_vm5 = vmmov %vm18449_vm0 }
 0x497   :  { %v2710_v30 = vpop.f32.mrf.mxu3  ;;  %18593 = vst [vmem:[#allocation200_spill] sm:$0xff] %v13381_v41  ;;  %v13390_v61 = vpop.f32.mrf.mxu0  ;;  %vm18607_vm9 = vmmov %vm18449_vm0  ;;  %v18608_v41 = vld [vmem:[#allocation68_spill] sm:$0xff] }
 0x498   :  { %v3105_v36 = vpop.f32.mrf.mxu2  ;;  %18596 = vst [vmem:[#allocation201_spill] sm:$0xff] %v13390_v61 }
 0x499   :  { %v13392_v50 = vadd.f32 %v3105_v36, %v2704_v10  ;;  %9496 = vmatmul.msk.f32.gmra.mxu1 %vm18598_vm7, %v13286_v60  ;;  %v13405_v36 = vld [vmem:[#allocation2 + $0x97] sm:$0xff]  ;;  %v18602_v60 = vld [vmem:[#allocation57_spill] sm:$0xff] }
 0x49a   :  { %9690 = vmatmul.msk.f32.gmra.mxu0 %vm18599_vm4, %v6146_v39  ;;  %vm18603_vm7 = vnez %v18602_v60  ;;  %vm18609_vm4 = vcmp.gt.s32.totalorder %v18608_v41, 0 }
 0x49b   :  { %18597 = vst [vmem:[#allocation202_spill] sm:$0xff] %v13392_v50  ;;  %vm5955_vm6 = vmand %vm17692_vm3, %vm18603_vm7  ;;  %v18606_v50 = vld [vmem:[#allocation66_spill] sm:$0xff]  ;;  %v3389_v51 = vsel %vm18609_vm4, %v3133_v35, 0.0  ;;  %v3134_v35 = vld [vmem:[#allocation2 + $0x91] sm:$0xff] }
 0x49c   :  { %9436 = vmatmul.msk.f32.gmra.mxu3 %vm18449_vm0, %v3388_v12  ;;  %v1306_v61 = vand.u32 15, %v18606_v50  ;;  %vm18611_vm3 = vmmov %vm18449_vm0  ;;  %v13433_v50 = vld [vmem:[#allocation2 + $0x9f] sm:$0xff] }
 0x49d   :  { %9562 = vmatmul.msk.f32.gmra.mxu2 %vm18600_vm5, %v4638_v16  ;;  %v4107_v16 = vsel %vm18581_vm10, %v13307_v11, 0.0  ;;  %vm18610_vm5 = vmmov %vm18449_vm0  ;;  %vm17697_vm10 = vcmp.lt.s32.totalorder %v18594_v48, 15  ;;  %v3135_v48 = vld [vmem:[#allocation2 + $0x99] sm:$0xff] }
 0x49e   :  { %v13403_v10 = vpop.f32.mrf.mxu1  ;;  %vm13426_vm13 = vcmp.lt.s32.totalorder %v1306_v61, 15  ;;  %vm18621_vm4 = vmmov %vm18449_vm0 }
 0x49f   :  { %v2713_v25 = vpop.f32.mrf.mxu3  ;;  %18601 = vst [vmem:[#allocation203_spill] sm:$0xff] %v13403_v10  ;;  %v13411_v39 = vpop.f32.mrf.mxu0  ;;  %v6147_v10 = vsel %vm5955_vm6, %v13405_v36, 0.0 }
 0x4a0   :  { %v3108_v45 = vpop.f32.mrf.mxu2  ;;  %18604 = vst [vmem:[#allocation57_spill] sm:$0xff] %v13411_v39  ;;  %v4639_v39 = vld [vmem:[#allocation2 + $0x88] sm:$0xff] }
 0x4a1   :  { %v13413_v12 = vadd.f32 %v3108_v45, %v2707_v57  ;;  %9497 = vmatmul.msk.f32.gmra.mxu1 %vm18607_vm9, %v4107_v16  ;;  %v18612_v57 = vmov 0 }
 0x4a2   :  { %9691 = vmatmul.msk.f32.gmra.mxu0 %vm18449_vm0, %v6147_v10  ;;  %v18613_v57 = vsel %vm13426_vm13, 4294967295, %v18612_v57  ;;  %v18616_v10 = vld [vmem:[#allocation81_spill] sm:$0xff] }
 0x4a3   :  { %18605 = vst [vmem:[#allocation204_spill] sm:$0xff] %v13413_v12  ;;  %vm18617_vm6 = vcmp.gt.s32.totalorder %v18616_v10, 0 }
 0x4a4   :  { %9437 = vmatmul.msk.f32.gmra.mxu3 %vm18610_vm5, %v3389_v51  ;;  %18614 = vst [vmem:[#allocation66_spill] sm:$0xff] %v18613_v57  ;;  %vm3198_vm9 = vmand %vm18617_vm6, %vm13426_vm13  ;;  %v4640_v57 = vld [vmem:[#allocation2 + $0x90] sm:$0xff]  ;;  %vm17700_vm5 = vcmp.lt.s32.totalorder %v18608_v41, 15 }
 0x4a5   :  { %9563 = vmatmul.msk.f32.gmra.mxu2 %vm18611_vm3, %v4639_v39  ;;  %vm18620_vm3 = vmmov %vm18449_vm0  ;;  %v6148_v39 = vsel %vm17697_vm10, %v13433_v50, 0.0  ;;  %v3390_v16 = vsel %vm3198_vm9, %v3134_v35, 0.0 }
 0x4a6   :  { %v13430_v11 = vpop.f32.mrf.mxu1  ;;  %vm18622_vm6 = vmmov %vm18449_vm0 }
 0x4a7   :  { %v3647_v15 = vpop.f32.mrf.mxu3  ;;  %18615 = vst [vmem:[#allocation205_spill] sm:$0xff] %v13430_v11  ;;  %v13439_v51 = vpop.f32.mrf.mxu0  ;;  %vm18629_vm9 = vmmov %vm18449_vm0  ;;  %v18630_v11 = vld [vmem:[#allocation86_spill] sm:$0xff] }
 0x4a8   :  { %v3111_v45 = vpop.f32.mrf.mxu2  ;;  %18618 = vst [vmem:[#allocation206_spill] sm:$0xff] %v13439_v51 }
 0x4a9   :  { %v13441_v61 = vadd.f32 %v3111_v45, %v2710_v30  ;;  %9498 = vmatmul.msk.f32.gmra.mxu1 %vm18620_vm3, %v13335_v13  ;;  %v13454_v45 = vld [vmem:[#allocation2 + $0xa7] sm:$0xff] }
 0x4aa   :  { %9692 = vmatmul.msk.f32.gmra.mxu0 %vm18621_vm4, %v6148_v39  ;;  %v18624_v13 = vld [vmem:[#allocation74_spill] sm:$0xff]  ;;  %vm18631_vm4 = vcmp.gt.s32.totalorder %v18630_v11, 0 }
 0x4ab   :  { %18619 = vst [vmem:[#allocation207_spill] sm:$0xff] %v13441_v61  ;;  %vm18625_vm3 = vnez %v18624_v13  ;;  %v18628_v61 = vld [vmem:[#allocation88_spill] sm:$0xff]  ;;  %v3391_v41 = vsel %vm18631_vm4, %v3135_v48, 0.0  ;;  %v3136_v48 = vld [vmem:[#allocation2 + $0xa1] sm:$0xff]  ;;  %vm18644_vm4 = vmmov %vm18449_vm0 }
 0x4ac   :  { %9438 = vmatmul.msk.f32.gmra.mxu3 %vm18449_vm0, %v3390_v16  ;;  %vm5957_vm10 = vmand %vm17700_vm5, %vm18625_vm3  ;;  %v1308_v51 = vand.u32 15, %v18628_v61  ;;  %v13482_v61 = vld [vmem:[#allocation2 + $0xaf] sm:$0xff] }
 0x4ad   :  { %9564 = vmatmul.msk.f32.gmra.mxu2 %vm18622_vm6, %v4640_v57  ;;  %v4109_v57 = vsel %vm18603_vm7, %v13356_v28, 0.0  ;;  %vm18632_vm6 = vmmov %vm18449_vm0  ;;  %vm17705_vm7 = vcmp.lt.s32.totalorder %v18616_v10, 15  ;;  %v3137_v10 = vld [vmem:[#allocation2 + $0xa9] sm:$0xff] }
 0x4ae   :  { %v13452_v30 = vpop.f32.mrf.mxu1  ;;  %vm18633_vm5 = vmmov %vm18449_vm0  ;;  %vm13475_vm13 = vcmp.lt.s32.totalorder %v1308_v51, 15  ;;  %v18641_v51 = vld [vmem:[#allocation79_spill] sm:$0xff] }
 0x4af   :  { %v3650_v12 = vpop.f32.mrf.mxu3  ;;  %18623 = vst [vmem:[#allocation208_spill] sm:$0xff] %v13452_v30  ;;  %v13460_v39 = vpop.f32.mrf.mxu0  ;;  %v6149_v30 = vsel %vm5957_vm10, %v13454_v45, 0.0 }
 0x4b0   :  { %v3114_v35 = vpop.f32.mrf.mxu2  ;;  %18626 = vst [vmem:[#allocation74_spill] sm:$0xff] %v13460_v39  ;;  %v4641_v39 = vld [vmem:[#allocation2 + $0x98] sm:$0xff] }
 0x4b1   :  { %v13462_v16 = vadd.f32 %v3114_v35, %v2713_v25  ;;  %9499 = vmatmul.msk.f32.gmra.mxu1 %vm18629_vm9, %v4109_v57  ;;  %v18634_v25 = vmov 0 }
 0x4b2   :  { %9693 = vmatmul.msk.f32.gmra.mxu0 %vm18449_vm0, %v6149_v30  ;;  %v18635_v25 = vsel %vm13475_vm13, 4294967295, %v18634_v25  ;;  %v18638_v30 = vld [vmem:[#allocation94_spill] sm:$0xff] }
 0x4b3   :  { %18627 = vst [vmem:[#allocation209_spill] sm:$0xff] %v13462_v16  ;;  %vm18639_vm10 = vcmp.gt.s32.totalorder %v18638_v30, 0  ;;  %v6150_v16 = vsel %vm17705_vm7, %v13482_v61, 0.0 }
 0x4b4   :  { %9439 = vmatmul.msk.f32.gmra.mxu3 %vm18632_vm6, %v3391_v41  ;;  %18636 = vst [vmem:[#allocation88_spill] sm:$0xff] %v18635_v25  ;;  %vm3200_vm9 = vmand %vm18639_vm10, %vm13475_vm13  ;;  %v4642_v25 = vld [vmem:[#allocation2 + $0xa0] sm:$0xff]  ;;  %vm17712_vm6 = vcmp.lt.s32.totalorder %v18630_v11, 15 }
 0x4b5   :  { %9565 = vmatmul.msk.f32.gmra.mxu2 %vm18633_vm5, %v4641_v39  ;;  %v18642_v39 = vld [vmem:[#allocation80_spill] sm:$0xff]  ;;  %vm18643_vm5 = vmmov %vm18449_vm0 }
 0x4b6   :  { %v13479_v28 = vpop.f32.mrf.mxu1  ;;  %v2926_v57 = vadd.f32 %v18642_v39, %v18641_v51  ;;  %vm18645_vm10 = vmmov %vm18449_vm0  ;;  %v13501_v39 = vld [vmem:[#allocation2 + $0xb7] sm:$0xff] }
 0x4b7   :  { %v3653_v60 = vpop.f32.mrf.mxu3  ;;  %18637 = vst [vmem:[#allocation210_spill] sm:$0xff] %v13479_v28  ;;  %v13488_v41 = vpop.f32.mrf.mxu0  ;;  %v3392_v28 = vsel %vm3200_vm9, %v3136_v48, 0.0  ;;  %vm18652_vm9 = vmmov %vm18449_vm0 }
 0x4b8   :  { %v4899_v35 = vpop.f32.mrf.mxu2  ;;  %18640 = vst [vmem:[#allocation94_spill] sm:$0xff] %v13488_v41  ;;  %v3839_v9 = vadd.f32 %v3647_v15, %v2926_v57  ;;  %v4111_v15 = vsel %vm18625_vm3, %v13405_v36, 0.0  ;;  %v18651_v57 = vld [vmem:[#allocation85_spill] sm:$0xff]  ;;  %vm13524_vm3 = vcmp.lt.s32.totalorder %v1310_v43, 15  ;;  %v18657_v36 = vmov 0  ;;  %v18663_v43 = vld [vmem:[#allocation91_spill] sm:$0xff] }
 0x4b9   :  { %9500 = vmatmul.msk.f32.gmra.mxu1 %vm18643_vm5, %v13384_v37  ;;  %v18646_v37 = vld [vmem:[#allocation90_spill] sm:$0xff]  ;;  %v18658_v36 = vsel %vm13524_vm3, 4294967295, %v18657_v36 }
 0x4ba   :  { %9694 = vmatmul.msk.f32.gmra.mxu0 %vm18644_vm4, %v6150_v16  ;;  %vm18647_vm5 = vnez %v18646_v37  ;;  %vm18654_vm4 = vcmp.gt.s32.totalorder %v18653_v44, 0  ;;  %18659 = vst [vmem:[#allocation80_spill] sm:$0xff] %v18658_v36 }
 0x4bb   :  { %vm5959_vm7 = vmand %vm17712_vm6, %vm18647_vm5  ;;  %v3393_v20 = vsel %vm18654_vm4, %v3137_v10, 0.0  ;;  %v3138_v10 = vld [vmem:[#allocation2 + $0xb1] sm:$0xff] }
 0x4bc   :  { %9440 = vmatmul.msk.f32.gmra.mxu3 %vm18449_vm0, %v3392_v28  ;;  %v6151_v53 = vsel %vm5959_vm7, %v13501_v39, 0.0  ;;  %vm18656_vm6 = vmmov %vm18449_vm0  ;;  %vm17715_vm7 = vcmp.lt.s32.totalorder %v18638_v30, 15 }
 0x4bd   :  { %9566 = vmatmul.msk.f32.gmra.mxu2 %vm18645_vm10, %v4642_v25  ;;  %v18650_v25 = vld [vmem:[#allocation84_spill] sm:$0xff]  ;;  %vm18655_vm10 = vmmov %vm18449_vm0 }
 0x4be   :  { %v4369_v51 = vpop.f32.mrf.mxu1  ;;  %v2929_v52 = vadd.f32 %v18651_v57, %v18650_v25 }
 0x4bf   :  { %v3656_v41 = vpop.f32.mrf.mxu3  ;;  %v13507_v16 = vpop.f32.mrf.mxu0  ;;  %v4561_v28 = vadd.f32 %v4369_v51, %v3839_v9 }
 0x4c0   :  { %v4902_v48 = vpop.f32.mrf.mxu2  ;;  %18648 = vst [vmem:[#allocation79_spill] sm:$0xff] %v13507_v16  ;;  %v3840_v9 = vadd.f32 %v3650_v12, %v2929_v52  ;;  %v18664_v12 = vld [vmem:[#allocation92_spill] sm:$0xff]  ;;  %v4644_v16 = vld [vmem:[#allocation2 + $0xb0] sm:$0xff] }
 0x4c1   :  { %9501 = vmatmul.msk.f32.gmra.mxu1 %vm18652_vm9, %v4111_v15  ;;  %v13517_v11 = vadd.f32 %v4899_v35, %v4561_v28  ;;  %v13529_v35 = vld [vmem:[#allocation2 + $0xbf] sm:$0xff]  ;;  %v2932_v15 = vadd.f32 %v18664_v12, %v18663_v43  ;;  %v18668_v12 = vld [vmem:[#allocation103_spill] sm:$0xff] }
 0x4c2   :  { %9695 = vmatmul.msk.f32.gmra.mxu0 %vm18449_vm0, %v6151_v53  ;;  %v18660_v53 = vld [vmem:[#allocation107_spill] sm:$0xff]  ;;  %v6152_v25 = vsel %vm17715_vm7, %v13529_v35, 0.0 }
 0x4c3   :  { %vm18661_vm9 = vcmp.gt.s32.totalorder %v18660_v53, 0 }
 0x4c4   :  { %9441 = vmatmul.msk.f32.gmra.mxu3 %vm18655_vm10, %v3393_v20  ;;  %vm3202_vm4 = vmand %vm18661_vm9, %vm13524_vm3  ;;  %vm17719_vm9 = vcmp.lt.s32.totalorder %v18653_v44, 15 }
 0x4c5   :  { %9567 = vmatmul.msk.f32.gmra.mxu2 %vm18656_vm6, %v4643_v47  ;;  %vm18665_vm6 = vmmov %vm18449_vm0  ;;  %v3394_v47 = vsel %vm3202_vm4, %v3138_v10, 0.0  ;;  %v3139_v10 = vld [vmem:[#allocation2 + $0xb9] sm:$0xff]  ;;  %vm18674_vm4 = vcmp.gt.s32.totalorder %v12481_v17, 0 }
 0x4c6   :  { %v4372_v51 = vpop.f32.mrf.mxu1  ;;  %vm18666_vm10 = vmmov %vm18449_vm0  ;;  %v3395_v44 = vsel %vm18674_vm4, %v3139_v10, 0.0  ;;  %v18678_v10 = vld [vmem:[#allocation104_spill] sm:$0xff] }
 0x4c7   :  { %v3659_v13 = vpop.f32.mrf.mxu3  ;;  %v13535_v52 = vpop.f32.mrf.mxu0  ;;  %v4562_v20 = vadd.f32 %v4372_v51, %v3840_v9  ;;  %v3841_v9 = vadd.f32 %v3653_v60, %v2932_v15  ;;  %vm18667_vm3 = vmmov %vm18449_vm0  ;;  %v4113_v60 = vsel %vm18647_vm5, %v13454_v45, 0.0  ;;  %v18671_v15 = vld [vmem:[#allocation97_spill] sm:$0xff]  ;;  %vm17720_vm5 = vcmp.lt.s32.totalorder %v18660_v53, 15 }
 0x4c8   :  { %v4905_v28 = vpop.f32.mrf.mxu2  ;;  %18662 = vst [vmem:[#allocation90_spill] sm:$0xff] %v13535_v52  ;;  %vm18684_vm4 = vmmov %vm18449_vm0 }
 0x4c9   :  { %9502 = vmatmul.msk.f32.gmra.mxu1 %vm18665_vm6, %v13433_v50  ;;  %v13544_v57 = vadd.f32 %v4902_v48, %v4562_v20  ;;  %v13550_v50 = vld [vmem:[#allocation2 + $0xc7] sm:$0xff]  ;;  %vm18669_vm6 = vnez %v18668_v12 }
 0x4ca   :  { %9696 = vmatmul.msk.f32.gmra.mxu0 %vm18449_vm0, %v6152_v25  ;;  %vm5961_vm7 = vmand %vm17719_vm9, %vm18669_vm6  ;;  %v4647_v12 = vld [vmem:[#allocation2 + $0xc8] sm:$0xff] }
 0x4cb   :  { %v6153_v52 = vsel %vm5961_vm7, %v13550_v50, 0.0  ;;  %vm18676_vm9 = vmmov %vm18449_vm0 }
 0x4cc   :  { %9442 = vmatmul.msk.f32.gmra.mxu3 %vm18666_vm10, %v3394_v47  ;;  %vm18675_vm10 = vmmov %vm18449_vm0 }
 0x4cd   :  { %9568 = vmatmul.msk.f32.gmra.mxu2 %vm18667_vm3, %v4644_v16  ;;  %v18672_v16 = vld [vmem:[#allocation98_spill] sm:$0xff]  ;;  %vm18673_vm3 = vmmov %vm18449_vm0 }
 0x4ce   :  { %v4375_v43 = vpop.f32.mrf.mxu1  ;;  %v2935_v47 = vadd.f32 %v18672_v16, %v18671_v15  ;;  %vm18680_vm7 = vmmov %vm18449_vm0 }
 0x4cf   :  { %v3662_v51 = vpop.f32.mrf.mxu3  ;;  %v13556_v20 = vpop.f32.mrf.mxu0  ;;  %v4563_v25 = vadd.f32 %v4375_v43, %v3841_v9  ;;  %v4645_v9 = vld [vmem:[#allocation2 + $0xb8] sm:$0xff] }
 0x4d0   :  { %v4908_v48 = vpop.f32.mrf.mxu2  ;;  %18670 = vst [vmem:[#allocation101_spill] sm:$0xff] %v13556_v20  ;;  %v3842_v43 = vadd.f32 %v3656_v41, %v2935_v47  ;;  %v18679_v20 = vld [vmem:[#allocation105_spill] sm:$0xff] }
 0x4d1   :  { %9503 = vmatmul.msk.f32.gmra.mxu1 %vm18673_vm3, %v4113_v60  ;;  %v13565_v36 = vadd.f32 %v4905_v28, %v4563_v25  ;;  %v13573_v60 = vld [vmem:[#allocation2 + $0xcf] sm:$0xff]  ;;  %v3140_v28 = vld [vmem:[#allocation2 + $0xc1] sm:$0xff]  ;;  %vm18683_vm3 = vmmov %vm18449_vm0 }
 0x4d2   :  { %9697 = vmatmul.msk.f32.gmra.mxu0 %vm18449_vm0, %v6153_v52  ;;  %v2938_v52 = vadd.f32 %v18679_v20, %v18678_v10  ;;  %v18681_v47 = vld [vmem:[#allocation65_spill] sm:$0xff]  ;;  %vm17724_vm0 = vcmp.lt.s32.totalorder %v12481_v17, 15  ;;  %v13592_v10 = vld [vmem:[#allocation2 + $0xd7] sm:$0xff] }
 0x4d4   :  { %9443 = vmatmul.msk.f32.gmra.mxu3 %vm18675_vm10, %v3395_v44  ;;  %v6154_v44 = vsel %vm17720_vm5, %v13573_v60, 0.0  ;;  %v3843_v20 = vadd.f32 %v3659_v13, %v2938_v52  ;;  %vm18685_vm10 = vmmov %vm18683_vm3  ;;  %v18689_v13 = vld [vmem:[#allocation111_spill] sm:$0xff] }
 0x4d5   :  { %9569 = vmatmul.msk.f32.gmra.mxu2 %vm18676_vm9, %v4645_v9  ;;  %vm18682_vm9 = vnez %v18681_v47  ;;  %v18688_v47 = vld [vmem:[#allocation110_spill] sm:$0xff] }
 0x4d6   :  { %v4378_v37 = vpop.f32.mrf.mxu1  ;;  %v3396_v9 = vsel %vm18682_vm9, %v3140_v28, 0.0  ;;  %v3141_v28 = vld [vmem:[#allocation2 + $0xc9] sm:$0xff]  ;;  %v2941_v52 = vadd.f32 %v18689_v13, %v18688_v47  ;;  %vm18691_vm9 = vmmov %vm18683_vm3  ;;  %v18695_v13 = vld [vmem:[#allocation116_spill] sm:$0xff] }
 0x4d7   :  { %v3665_v45 = vpop.f32.mrf.mxu3  ;;  %v13575_v25 = vpop.f32.mrf.mxu0  ;;  %v4564_v16 = vadd.f32 %v4378_v37, %v3842_v43  ;;  %v4646_v43 = vld [vmem:[#allocation2 + $0xc0] sm:$0xff] }
 0x4d8   :  { %v4911_v15 = vpop.f32.mrf.mxu2  ;;  %18677 = vst [vmem:[#allocation84_spill] sm:$0xff] %v13575_v25  ;;  %v18686_v25 = vld [vmem:[#allocation115_spill] sm:$0xff] }
 0x4d9   :  { %9504 = vmatmul.msk.f32.gmra.mxu1 %vm18680_vm7, %v13482_v61  ;;  %v13584_v41 = vadd.f32 %v4908_v48, %v4564_v16  ;;  %vm18687_vm7 = vnez %v18686_v25 }
 0x4da   :  { %9698 = vmatmul.msk.f32.gmra.mxu0 %vm18683_vm3, %v6154_v44  ;;  %vm5963_vm5 = vmand %vm17724_vm0, %vm18687_vm7  ;;  %v4115_v44 = vsel %vm18669_vm6, %v13501_v39, 0.0  ;;  %vm18692_vm3 = vcmp.gt.s32.totalorder %v12547_v33, 0  ;;  %v3844_v39 = vadd.f32 %v3662_v51, %v2941_v52  ;;  %vm17726_vm0 = vcmp.lt.s32.totalorder %v12101_v58, 15  ;;  %v18698_v52 = vld [vmem:[#allocation70_spill] sm:$0xff] }
 0x4db   :  { %v3397_v17 = vsel %vm18692_vm3, %v3141_v28, 0.0  ;;  %vm18694_vm6 = vmmov %vm18684_vm4 }
 0x4dc   :  { %9444 = vmatmul.msk.f32.gmra.mxu3 %vm18684_vm4, %v3396_v9  ;;  %vm18700_vm3 = vmmov %vm18684_vm4 }
 0x4dd   :  { %9570 = vmatmul.msk.f32.gmra.mxu2 %vm18685_vm10, %v4646_v43  ;;  %v6155_v43 = vsel %vm5963_vm5, %v13592_v10, 0.0  ;;  %vm18693_vm10 = vmmov %vm18684_vm4 }
 0x4de   :  { %v4381_v37 = vpop.f32.mrf.mxu1  ;;  %vm18697_vm5 = vmmov %vm18684_vm4 }
 0x4df   :  { %v3668_v61 = vpop.f32.mrf.mxu3  ;;  %v4565_v16 = vadd.f32 %v4381_v37, %v3843_v20  ;;  %v13603_v9 = vpop.f32.mrf.mxu0 }
 0x4e0   :  { %v4914_v48 = vpop.f32.mrf.mxu2  ;;  %18690 = vst [vmem:[#allocation85_spill] sm:$0xff] %v13603_v9  ;;  %v18696_v9 = vld [vmem:[#allocation117_spill] sm:$0xff] }
 0x4e1   :  { %9505 = vmatmul.msk.f32.gmra.mxu1 %vm18691_vm9, %v4115_v44  ;;  %v13607_v53 = vadd.f32 %v4911_v15, %v4565_v16  ;;  %v13615_v44 = vld [vmem:[#allocation2 + $0xdf] sm:$0xff]  ;;  %v3142_v15 = vld [vmem:[#allocation2 + $0xd1] sm:$0xff]  ;;  %v2944_v28 = vadd.f32 %v18696_v9, %v18695_v13  ;;  %vm18699_vm9 = vnez %v18698_v52  ;;  %v13634_v13 = vld [vmem:[#allocation2 + $0xe7] sm:$0xff] }
 0x4e2   :  { %9699 = vmatmul.msk.f32.gmra.mxu0 %vm18684_vm4, %v6155_v43  ;;  %v3398_v43 = vsel %vm18699_vm9, %v3142_v15, 0.0  ;;  %vm18701_vm4 = vmmov %vm18700_vm3  ;;  %v3143_v15 = vld [vmem:[#allocation2 + $0xd9] sm:$0xff] }
 0x4e3   :  { %v3845_v9 = vadd.f32 %v3665_v45, %v2944_v28  ;;  %v18704_v52 = vld [vmem:[#allocation121_spill] sm:$0xff] }
 0x4e4   :  { %9445 = vmatmul.msk.f32.gmra.mxu3 %vm18693_vm10, %v3397_v17  ;;  %v6156_v17 = vsel %vm17726_vm0, %v13615_v44, 0.0  ;;  %vm17725_vm10 = vcmp.lt.s32.totalorder %v12547_v33, 15  ;;  %v2947_v45 = vadd.f32 %v12568_v0, %v18704_v52  ;;  %vm18708_vm0 = vmmov %vm18700_vm3 }
 0x4e5   :  { %9571 = vmatmul.msk.f32.gmra.mxu2 %vm18694_vm6, %v4647_v12  ;;  %v4648_v12 = vld [vmem:[#allocation2 + $0xd0] sm:$0xff]  ;;  %vm18702_vm6 = vmmov %vm18700_vm3 }
 0x4e6   :  { %v4384_v37 = vpop.f32.mrf.mxu1 }
 0x4e7   :  { %v3671_v20 = vpop.f32.mrf.mxu3  ;;  %v4566_v16 = vadd.f32 %v4384_v37, %v3844_v39  ;;  %v13630_v39 = vpop.f32.mrf.mxu0 }
 0x4e8   :  { %v4917_v47 = vpop.f32.mrf.mxu2 }
 0x4e9   :  { %9506 = vmatmul.msk.f32.gmra.mxu1 %vm18697_vm5, %v13529_v35  ;;  %v13624_v51 = vadd.f32 %v4914_v48, %v4566_v16  ;;  %vm18703_vm5 = vnez %v18254_v22  ;;  %v4651_v22 = vld [vmem:[#allocation2 + $0xe8] sm:$0xff] }
 0x4ea   :  { %9700 = vmatmul.msk.f32.gmra.mxu0 %vm18700_vm3, %v6156_v17  ;;  %vm5965_vm9 = vmand %vm17725_vm10, %vm18703_vm5  ;;  %v4117_v17 = vsel %vm18687_vm7, %v13550_v50, 0.0  ;;  %vm17732_vm7 = vcmp.lt.s32.totalorder %v12117_v34, 15 }
 0x4eb   :  { %v6157_v28 = vsel %vm5965_vm9, %v13634_v13, 0.0  ;;  %vm18707_vm10 = vmmov %vm18700_vm3 }
 0x4ec   :  { %9446 = vmatmul.msk.f32.gmra.mxu3 %vm18701_vm4, %v3398_v43  ;;  %vm18705_vm4 = vcmp.gt.s32.totalorder %v12112_v32, 0  ;;  %vm18713_vm9 = vmmov %vm18700_vm3  ;;  %v3145_v32 = vld [vmem:[#allocation2 + $0xe9] sm:$0xff] }
 0x4ed   :  { %9572 = vmatmul.msk.f32.gmra.mxu2 %vm18702_vm6, %v4648_v12  ;;  %v3399_v12 = vsel %vm18705_vm4, %v3143_v15, 0.0  ;;  %vm18706_vm6 = vmmov %vm18700_vm3  ;;  %v2950_v15 = vadd.f32 %v12669_v4, %v12660_v5 }
 0x4ee   :  { %v4387_v37 = vpop.f32.mrf.mxu1  ;;  %vm18714_vm4 = vmmov %vm18700_vm3 }
 0x4ef   :  { %v3674_v35 = vpop.f32.mrf.mxu3  ;;  %v4567_v16 = vadd.f32 %v4387_v37, %v3845_v9  ;;  %v4649_v9 = vld [vmem:[#allocation2 + $0xd8] sm:$0xff]  ;;  %v3846_v37 = vadd.f32 %v3668_v61, %v2947_v45  ;;  %v13654_v50 = vpop.f32.mrf.mxu0 }
 0x4f0   :  { %v4920_v48 = vpop.f32.mrf.mxu2  ;;  %18709 = vst [vmem:[#allocation91_spill] sm:$0xff] %v13654_v50 }
 0x4f1   :  { %9507 = vmatmul.msk.f32.gmra.mxu1 %vm18700_vm3, %v4117_v17  ;;  %v13647_v43 = vadd.f32 %v4917_v47, %v4567_v16  ;;  %v13657_v17 = vld [vmem:[#allocation2 + $0xef] sm:$0xff]  ;;  %v3144_v16 = vld [vmem:[#allocation2 + $0xe1] sm:$0xff] }
 0x4f2   :  { %9701 = vmatmul.msk.f32.gmra.mxu0 %vm18706_vm6, %v6157_v28  ;;  %v6158_v61 = vsel %vm17732_vm7, %v13657_v17, 0.0  ;;  %v18711_v28 = vld [vmem:[#allocation73_spill] sm:$0xff]  ;;  %vm18715_vm6 = vmmov %vm18700_vm3 }
 0x4f4   :  { %9447 = vmatmul.msk.f32.gmra.mxu3 %vm18707_vm10, %v3399_v12  ;;  %vm18710_vm10 = vmmov %vm18708_vm0 }
 0x4f5   :  { %9573 = vmatmul.msk.f32.gmra.mxu2 %vm18708_vm0, %v4649_v9  ;;  %vm18712_vm0 = vnez %v18711_v28  ;;  %v4650_v9 = vld [vmem:[#allocation2 + $0xe0] sm:$0xff] }
 0x4f6   :  { %v4390_v25 = vpop.f32.mrf.mxu1  ;;  %v3400_v12 = vsel %vm18712_vm0, %v3144_v16, 0.0  ;;  %v4119_v16 = vsel %vm18703_vm5, %v13592_v10, 0.0  ;;  %vm18718_vm0 = vcmp.gt.s32.totalorder %v12948_v29, 0  ;;  %vm18720_vm5 = vmmov %vm18700_vm3 }
 0x4f7   :  { %v3677_v0 = vpop.f32.mrf.mxu3  ;;  %v4568_v52 = vadd.f32 %v4390_v25, %v3846_v37  ;;  %v3847_v37 = vadd.f32 %v3671_v20, %v2950_v15  ;;  %v13675_v50 = vpop.f32.mrf.mxu0  ;;  %v18716_v20 = vld [vmem:[#allocation67_spill] sm:$0xff]  ;;  %v3401_v28 = vsel %vm18718_vm0, %v3145_v32, 0.0  ;;  %v2956_v32 = vadd.f32 %v12885_v40, %v12868_v54  ;;  %vm18724_vm0 = vmmov %vm18700_vm3 }
 0x4f8   :  { %v4923_v47 = vpop.f32.mrf.mxu2 }
 0x4f9   :  { %9508 = vmatmul.msk.f32.gmra.mxu1 %vm18710_vm10, %v13573_v60  ;;  %v13666_v45 = vadd.f32 %v4920_v48, %v4568_v52  ;;  %v13673_v60 = vld [vmem:[#allocation2 + $0xf7] sm:$0xff]  ;;  %v2953_v52 = vadd.f32 %v12779_v1, %v12762_v63  ;;  %vm18717_vm10 = vnez %v18716_v20  ;;  %v3849_v40 = vadd.f32 %v3677_v0, %v2956_v32 }
 0x4fa   :  { %9702 = vmatmul.msk.f32.gmra.mxu0 %vm18713_vm9, %v6158_v61  ;;  %v6159_v15 = vsel %vm18717_vm10, %v13673_v60, 0.0  ;;  %vm18719_vm9 = vmmov %vm18700_vm3  ;;  %v4652_v20 = vld [vmem:[#allocation2 + $0xf0] sm:$0xff]  ;;  %v2959_v0 = vadd.f32 %v12946_v6, %v12942_v62  ;;  %v4653_v32 = vld [vmem:[#allocation2 + $0xf8] sm:$0xff] }
 0x4fb   :  { %v3848_v10 = vadd.f32 %v3674_v35, %v2953_v52 }
 0x4fc   :  { %9448 = vmatmul.msk.f32.gmra.mxu3 %vm18700_vm3, %v3400_v12  ;;  %v13694_v12 = vld [vmem:[#allocation2 + $0xff] sm:$0xff] }
 0x4fd   :  { %9574 = vmatmul.msk.f32.gmra.mxu2 %vm18714_vm4, %v4650_v9  ;;  %vm17730_vm4 = vcmp.lt.s32.totalorder %v12138_v27, 15 }
 0x4fe   :  { %v4393_v4 = vpop.f32.mrf.mxu1  ;;  %v6160_v35 = vsel %vm17730_vm4, %v13694_v12, 0.0 }
 0x4ff   :  { %v3680_v5 = vpop.f32.mrf.mxu3  ;;  %v4569_v48 = vadd.f32 %v4393_v4, %v3847_v37  ;;  %v13698_v4 = vpop.f32.mrf.mxu0 }
 0x500   :  { %v4926_v25 = vpop.f32.mrf.mxu2  ;;  %v3850_v23 = vadd.f32 %v3680_v5, %v2959_v0 }
 0x501   :  { %9509 = vmatmul.msk.f32.gmra.mxu1 %vm18715_vm6, %v4119_v16  ;;  %v13686_v61 = vadd.f32 %v4923_v47, %v4569_v48  ;;  %v3146_v47 = vld [vmem:[#allocation2 + $0xf1] sm:$0xff]  ;;  %vm18721_vm6 = vmmov %vm18700_vm3  ;;  %v18722_v16 = vld [vmem:[#allocation77_spill] sm:$0xff] }
 0x502   :  { %9703 = vmatmul.msk.f32.gmra.mxu0 %vm18719_vm9, %v6159_v15  ;;  %vm18723_vm10 = vnez %v18722_v16  ;;  %vm18725_vm9 = vmmov %vm18724_vm0  ;;  %v13713_v15 = vld [vmem:[#allocation2 + $0x107] sm:$0xff] }
 0x503   :  { %v3402_v52 = vsel %vm18723_vm10, %v3146_v47, 0.0  ;;  %vm18727_vm10 = vmmov %vm18724_vm0 }
 0x504   :  { %9449 = vmatmul.msk.f32.gmra.mxu3 %vm18700_vm3, %v3401_v28  ;;  %vm17729_vm3 = vcmp.lt.s32.totalorder %v12948_v29, 15  ;;  %v3147_v28 = vld [vmem:[#allocation2 + $0xf9] sm:$0xff] }
 0x505   :  { %9575 = vmatmul.msk.f32.gmra.mxu2 %vm18720_vm5, %v4651_v22  ;;  %vm18726_vm5 = vmmov %vm18724_vm0 }
 0x506   :  { %v4396_v63 = vpop.f32.mrf.mxu1 }
 0x507   :  { %v3683_v1 = vpop.f32.mrf.mxu3  ;;  %v4570_v37 = vadd.f32 %v4396_v63, %v3848_v10  ;;  %v4121_v10 = vsel %vm12134_vm15, %v13634_v13, 0.0  ;;  %vm18730_vm15 = vmmov %vm18726_vm5  ;;  %v13735_v13 = vld [vmem:[#allocation2 + $0x10f] sm:$0xff] }
 0x508   :  { %v4929_v9 = vpop.f32.mrf.mxu2 }
 0x509   :  { %9510 = vmatmul.msk.f32.gmra.mxu1 %vm18721_vm6, %v13615_v44  ;;  %v13705_v48 = vadd.f32 %v4926_v25, %v4570_v37  ;;  %vm5969_vm6 = vmand %vm17729_vm3, %vm12972_vm11 }
 0x50a   :  { %9704 = vmatmul.msk.f32.gmra.mxu0 %vm18724_vm0, %v6160_v35  ;;  %v6161_v63 = vsel %vm5969_vm6, %v13713_v15, 0.0  ;;  %vm18728_vm0 = vcmp.gt.s32.totalorder %v12153_v21, 0  ;;  %v13732_v35 = vpop.f32.mrf.mxu0  ;;  %vm18731_vm6 = vnez %v18252_v24 }
 0x50b   :  { %v3403_v37 = vsel %vm18728_vm0, %v3147_v28, 0.0  ;;  %v4654_v28 = vld [vmem:[#allocation2 + $0x100] sm:$0xff] }
 0x50c   :  { %9450 = vmatmul.msk.f32.gmra.mxu3 %vm18725_vm9, %v3402_v52  ;;  %vm18729_vm9 = vmmov %vm18726_vm5 }
 0x50d   :  { %9576 = vmatmul.msk.f32.gmra.mxu2 %vm18726_vm5, %v4652_v20  ;;  %v2962_v20 = vadd.f32 %v12984_v14, %v12977_v3 }
 0x50e   :  { %v4399_v44 = vpop.f32.mrf.mxu1 }
 0x50f   :  { %v3686_v54 = vpop.f32.mrf.mxu3  ;;  %v4571_v22 = vadd.f32 %v4399_v44, %v3849_v40 }
 0x510   :  { %v4932_v25 = vpop.f32.mrf.mxu2 }
 0x511   :  { %9511 = vmatmul.msk.f32.gmra.mxu1 %vm18727_vm10, %v4121_v10  ;;  %v13726_v47 = vadd.f32 %v4929_v9, %v4571_v22  ;;  %v3148_v9 = vld [vmem:[#allocation2 + $0x101] sm:$0xff]  ;;  %vm18732_vm10 = vcmp.gt.s32.totalorder %v11551_v31, 0  ;;  %v3851_v22 = vadd.f32 %v3683_v1, %v2962_v20  ;;  %v18738_v1 = vld [vmem:[#allocation75_spill] sm:$0xff] }
 0x512   :  { %9705 = vmatmul.msk.f32.gmra.mxu0 %vm18729_vm9, %v6161_v63  ;;  %vm3212_vm0 = vmand %vm18732_vm10, %vm18731_vm6  ;;  %v13753_v10 = vpop.f32.mrf.mxu0  ;;  %v3149_v63 = vld [vmem:[#allocation2 + $0x109] sm:$0xff] }
 0x513   :  { %vm18733_vm9 = vmmov %vm18726_vm5  ;;  %v3404_v44 = vsel %vm3212_vm0, %v3148_v9, 0.0  ;;  %vm18739_vm0 = vnez %v18738_v1 }
 0x514   :  { %9451 = vmatmul.msk.f32.gmra.mxu3 %vm18726_vm5, %v3403_v37  ;;  %vm18734_vm5 = vcmp.lt.s32.totalorder %v12151_v19, 15  ;;  %vm18736_vm3 = vmmov %vm18733_vm9 }
 0x515   :  { %9577 = vmatmul.msk.f32.gmra.mxu2 %vm18730_vm15, %v4653_v32  ;;  %v6162_v5 = vsel %vm18734_vm5, %v13735_v13, 0.0  ;;  %vm18735_vm15 = vmmov %vm18733_vm9  ;;  %v2965_v32 = vadd.f32 %v13006_v49, %v13004_v7 }
 0x516   :  { %v4402_v62 = vpop.f32.mrf.mxu1  ;;  %vm18737_vm10 = vmmov %vm18736_vm3 }
 0x517   :  { %v3689_v6 = vpop.f32.mrf.mxu3  ;;  %v4572_v52 = vadd.f32 %v4402_v62, %v3850_v23  ;;  %vm18741_vm5 = vmmov %vm18736_vm3 }
 0x518   :  { %v4935_v16 = vpop.f32.mrf.mxu2 }
 0x519   :  { %9512 = vmatmul.msk.f32.gmra.mxu1 %vm18733_vm9, %v13657_v17  ;;  %v13748_v40 = vadd.f32 %v4932_v25, %v4572_v52  ;;  %v13755_v17 = vld [vmem:[#allocation2 + $0x117] sm:$0xff]  ;;  %v4123_v25 = vsel %vm12972_vm11, %v13673_v60, 0.0  ;;  %vm18740_vm9 = vcmp.gt.s32.totalorder %v18466_v38, 0  ;;  %v3852_v60 = vadd.f32 %v3686_v54, %v2965_v32  ;;  %vm18743_vm11 = vmmov %vm18736_vm3  ;;  %v13773_v52 = vld [vmem:[#allocation2 + $0x11f] sm:$0xff] }
 0x51a   :  { %9706 = vmatmul.msk.f32.gmra.mxu0 %vm18735_vm15, %v6162_v5  ;;  %v6163_v23 = vsel %vm18739_vm0, %v13755_v17, 0.0  ;;  %v3405_v9 = vsel %vm18740_vm9, %v3149_v63, 0.0  ;;  %vm18742_vm15 = vmmov %vm18736_vm3  ;;  %v3150_v5 = vld [vmem:[#allocation2 + $0x111] sm:$0xff]  ;;  %v3151_v32 = vld [vmem:[#allocation2 + $0x119] sm:$0xff] }
 0x51b   :  { %vm18746_vm9 = vmmov %vm18741_vm5  ;;  %v4656_v63 = vld [vmem:[#allocation2 + $0x110] sm:$0xff] }
 0x51c   :  { %9452 = vmatmul.msk.f32.gmra.mxu3 %vm18736_vm3, %v3404_v44  ;;  %vm18750_vm4 = vmmov %vm18746_vm9 }
 0x51d   :  { %9578 = vmatmul.msk.f32.gmra.mxu2 %vm18737_vm10, %v4654_v28  ;;  %vm18744_vm10 = vnez %v18262_v46  ;;  %v2968_v28 = vadd.f32 %v13040_v56, %v13034_v18 }
 0x51e   :  { %v4405_v14 = vpop.f32.mrf.mxu1 }
 0x51f   :  { %v3692_v3 = vpop.f32.mrf.mxu3  ;;  %v4573_v37 = vadd.f32 %v4405_v14, %v3851_v22 }
 0x520   :  { %v4938_v0 = vpop.f32.mrf.mxu2 }
 0x521   :  { %9513 = vmatmul.msk.f32.gmra.mxu1 %vm18736_vm3, %v4123_v25  ;;  %v13766_v62 = vadd.f32 %v4935_v16, %v4573_v37  ;;  %vm18745_vm3 = vcmp.gt.s32.totalorder %v11549_v42, 0  ;;  %v13779_v16 = vpop.f32.mrf.mxu0  ;;  %v3853_v37 = vadd.f32 %v3689_v6, %v2968_v28  ;;  %v18751_v25 = vld [vmem:[#allocation19_spill] sm:$0xff]  ;;  %v2971_v6 = vadd.f32 %v13064_v8, %v13056_v2 }
 0x522   :  { %9707 = vmatmul.msk.f32.gmra.mxu0 %vm18741_vm5, %v6163_v23  ;;  %vm3214_vm0 = vmand %vm18745_vm3, %vm18744_vm10  ;;  %vm18747_vm5 = vcmp.lt.s32.totalorder %v11551_v31, 15  ;;  %vm17731_vm3 = vcmp.lt.s32.totalorder %v18466_v38, 15  ;;  %v4125_v23 = vsel %vm12199_vm2, %v13713_v15, 0.0 }
 0x523   :  { %v6164_v54 = vsel %vm18747_vm5, %v13773_v52, 0.0  ;;  %v3406_v14 = vsel %vm3214_vm0, %v3150_v5, 0.0  ;;  %v3854_v15 = vadd.f32 %v3692_v3, %v2971_v6  ;;  %vm18757_vm2 = vmmov %vm18750_vm4 }
 0x524   :  { %9453 = vmatmul.msk.f32.gmra.mxu3 %vm18742_vm15, %v3405_v9  ;;  %vm18748_vm15 = vmmov %vm18746_vm9 }
 0x525   :  { %9579 = vmatmul.msk.f32.gmra.mxu2 %vm18743_vm11, %v4655_v55  ;;  %vm18749_vm11 = vmmov %vm18746_vm9 }
 0x526   :  { %v4408_v49 = vpop.f32.mrf.mxu1 }
 0x527   :  { %v3695_v7 = vpop.f32.mrf.mxu3  ;;  %v4574_v44 = vadd.f32 %v4408_v49, %v3852_v60  ;;  %v18753_v49 = vld [vmem:[#allocation3_spill] sm:$0xff] }
 0x528   :  { %v4941_v20 = vpop.f32.mrf.mxu2  ;;  %vm18754_vm0 = vcmp.gt.s32.totalorder %v18753_v49, 0 }
 0x529   :  { %9514 = vmatmul.msk.f32.gmra.mxu1 %vm18746_vm9, %v13694_v12  ;;  %v13788_v22 = vadd.f32 %v4938_v0, %v4574_v44  ;;  %v13794_v12 = vld [vmem:[#allocation2 + $0x127] sm:$0xff]  ;;  %vm18752_vm9 = vnez %v18751_v25  ;;  %v13805_v9 = vpop.f32.mrf.mxu0  ;;  %v3407_v5 = vsel %vm18754_vm0, %v3151_v32, 0.0  ;;  %v13816_v44 = vld [vmem:[#allocation2 + $0x12f] sm:$0xff]  ;;  %vm18763_vm0 = vmmov %vm18757_vm2 }
 0x52a   :  { %9708 = vmatmul.msk.f32.gmra.mxu0 %vm18748_vm15, %v6164_v54  ;;  %vm5973_vm5 = vmand %vm17731_vm3, %vm18752_vm9  ;;  %v3152_v54 = vld [vmem:[#allocation2 + $0x121] sm:$0xff] }
 0x52b   :  { %v6165_v55 = vsel %vm5973_vm5, %v13794_v12, 0.0  ;;  %vm18755_vm15 = vmmov %vm18750_vm4 }
 0x52c   :  { %9454 = vmatmul.msk.f32.gmra.mxu3 %vm18749_vm11, %v3406_v14  ;;  %vm18756_vm11 = vmmov %vm18750_vm4  ;;  %v18758_v14 = vld [vmem:[#allocation125_spill] sm:$0xff] }
 0x52d   :  { %9580 = vmatmul.msk.f32.gmra.mxu2 %vm18750_vm4, %v4656_v63  ;;  %vm18759_vm5 = vnez %v18758_v14  ;;  %vm18767_vm7 = vmmov %vm18763_vm0 }
 0x52e   :  { %v4411_v56 = vpop.f32.mrf.mxu1 }
 0x52f   :  { %v3698_v18 = vpop.f32.mrf.mxu3  ;;  %v4575_v1 = vadd.f32 %v4411_v56, %v3853_v37  ;;  %v18762_v37 = vld [vmem:[#allocation172_spill] sm:$0xff] }
 0x530   :  { %v4944_v0 = vpop.f32.mrf.mxu2  ;;  %v2974_v56 = vadd.f32 %v18762_v37, %v13088_v59 }
 0x531   :  { %9515 = vmatmul.msk.f32.gmra.mxu1 %vm18750_vm4, %v4125_v23  ;;  %v13809_v60 = vadd.f32 %v4941_v20, %v4575_v1  ;;  %v18760_v20 = vld [vmem:[#allocation21_spill] sm:$0xff]  ;;  %v13833_v6 = vpop.f32.mrf.mxu0 }
 0x532   :  { %9709 = vmatmul.msk.f32.gmra.mxu0 %vm18755_vm15, %v6165_v55  ;;  %vm18761_vm4 = vcmp.gt.s32.totalorder %v18760_v20, 0  ;;  %vm18764_vm15 = vcmp.lt.s32.totalorder %v11549_v42, 15  ;;  %v4658_v23 = vld [vmem:[#allocation2 + $0x120] sm:$0xff]  ;;  %v3855_v59 = vadd.f32 %v3695_v7, %v2974_v56  ;;  %v18780_v42 = vld [vmem:[#allocation15_spill] sm:$0xff] }
 0x533   :  { %vm3216_vm3 = vmand %vm18761_vm4, %vm18759_vm5  ;;  %v6166_v3 = vsel %vm18764_vm15, %v13816_v44, 0.0  ;;  %vm17733_vm4 = vcmp.lt.s32.totalorder %v18753_v49, 15  ;;  %v18771_v7 = vld [vmem:[#allocation13_spill] sm:$0xff] }
 0x534   :  { %9455 = vmatmul.msk.f32.gmra.mxu3 %vm18756_vm11, %v3407_v5  ;;  %v3408_v1 = vsel %vm3216_vm3, %v3152_v54, 0.0  ;;  %vm18765_vm11 = vmmov %vm18763_vm0  ;;  %v13837_v5 = vld [vmem:[#allocation2 + $0x137] sm:$0xff]  ;;  %v4127_v54 = vsel %vm18752_vm9, %v13755_v17, 0.0 }
 0x535   :  { %9581 = vmatmul.msk.f32.gmra.mxu2 %vm18757_vm2, %v4657_v26  ;;  %vm18766_vm2 = vmmov %vm18763_vm0  ;;  %v18768_v26 = vld [vmem:[#allocation12_spill] sm:$0xff] }
 0x536   :  { %v4414_v8 = vpop.f32.mrf.mxu1 }
 0x537   :  { %v3701_v2 = vpop.f32.mrf.mxu3  ;;  %v4576_v63 = vadd.f32 %v4414_v8, %v3854_v15  ;;  %v3153_v15 = vld [vmem:[#allocation2 + $0x129] sm:$0xff] }
 0x538   :  { %v4947_v28 = vpop.f32.mrf.mxu2 }
 0x539   :  { %9516 = vmatmul.msk.f32.gmra.mxu1 %vm18763_vm0, %v13735_v13  ;;  %v13829_v32 = vadd.f32 %v4944_v0, %v4576_v63  ;;  %vm18769_vm0 = vnez %v18768_v26  ;;  %v18770_v63 = vld [vmem:[#allocation10_spill] sm:$0xff]  ;;  %v13857_v17 = vpop.f32.mrf.mxu0 }
 0x53a   :  { %9710 = vmatmul.msk.f32.gmra.mxu0 %vm18765_vm11, %v6166_v3  ;;  %vm5975_vm3 = vmand %vm17733_vm4, %vm18769_vm0  ;;  %v2977_v37 = vadd.f32 %v18771_v7, %v18770_v63  ;;  %18777 = vst [vmem:[#allocation92_spill] sm:$0xff] %v13857_v17 }
 0x53b   :  { %v6167_v56 = vsel %vm5975_vm3, %v13837_v5, 0.0  ;;  %vm18775_vm11 = vmmov %vm18766_vm2  ;;  %vm18781_vm3 = vcmp.gt.s32.totalorder %v18780_v42, 0 }
 0x53c   :  { %9456 = vmatmul.msk.f32.gmra.mxu3 %vm18766_vm2, %v3408_v1  ;;  %v18773_v1 = vld [vmem:[#allocation11_spill] sm:$0xff]  ;;  %vm18776_vm4 = vmmov %vm18766_vm2 }
 0x53d   :  { %9582 = vmatmul.msk.f32.gmra.mxu2 %vm18767_vm7, %v4658_v23  ;;  %vm18772_vm7 = vmmov %vm18766_vm2  ;;  %vm18774_vm15 = vcmp.gt.s32.totalorder %v18773_v1, 0 }
 0x53e   :  { %v4417_v55 = vpop.f32.mrf.mxu1  ;;  %v3409_v23 = vsel %vm18774_vm15, %v3153_v15, 0.0  ;;  %vm18784_vm15 = vmmov %vm18766_vm2 }
 0x53f   :  { %v3704_v13 = vpop.f32.mrf.mxu3  ;;  %v4577_v8 = vadd.f32 %v4417_v55, %v3855_v59  ;;  %v4659_v59 = vld [vmem:[#allocation2 + $0x128] sm:$0xff]  ;;  %v3856_v55 = vadd.f32 %v3698_v18, %v2977_v37 }
 0x540   :  { %v4950_v0 = vpop.f32.mrf.mxu2 }
 0x541   :  { %9517 = vmatmul.msk.f32.gmra.mxu1 %vm18772_vm7, %v4127_v54  ;;  %v13850_v3 = vadd.f32 %v4947_v28, %v4577_v8  ;;  %v13859_v54 = vld [vmem:[#allocation2 + $0x13f] sm:$0xff]  ;;  %v3154_v28 = vld [vmem:[#allocation2 + $0x131] sm:$0xff] }
 0x542   :  { %9711 = vmatmul.msk.f32.gmra.mxu0 %vm18775_vm11, %v6167_v56  ;;  %v18778_v8 = vld [vmem:[#allocation127_spill] sm:$0xff]  ;;  %vm18786_vm11 = vmmov %vm18766_vm2 }
 0x543   :  { %vm18779_vm9 = vnez %v18778_v8  ;;  %v18782_v56 = vld [vmem:[#allocation175_spill] sm:$0xff] }
 0x544   :  { %9457 = vmatmul.msk.f32.gmra.mxu3 %vm18766_vm2, %v3409_v23  ;;  %vm3218_vm7 = vmand %vm18781_vm3, %vm18779_vm9  ;;  %v18783_v23 = vld [vmem:[#allocation176_spill] sm:$0xff]  ;;  %v4660_v8 = vld [vmem:[#allocation2 + $0x130] sm:$0xff]  ;;  %vm17738_vm3 = vcmp.lt.s32.totalorder %v18773_v1, 15 }
 0x545   :  { %9583 = vmatmul.msk.f32.gmra.mxu2 %vm18776_vm4, %v4659_v59  ;;  %v2980_v49 = vadd.f32 %v18783_v23, %v18782_v56  ;;  %vm18785_vm4 = vcmp.lt.s32.totalorder %v18760_v20, 15  ;;  %v3410_v59 = vsel %vm3218_vm7, %v3154_v28, 0.0  ;;  %vm18787_vm9 = vmmov %vm18766_vm2  ;;  %v18788_v23 = vld [vmem:[#allocation25_spill] sm:$0xff]  ;;  %v18795_v1 = vld [vmem:[#allocation24_spill] sm:$0xff] }
 0x546   :  { %v4420_v63 = vpop.f32.mrf.mxu1  ;;  %v6168_v18 = vsel %vm18785_vm4, %v13859_v54, 0.0  ;;  %v3155_v28 = vld [vmem:[#allocation2 + $0x139] sm:$0xff]  ;;  %vm18796_vm7 = vcmp.gt.s32.totalorder %v18795_v1, 0 }
 0x547   :  { %v3707_v25 = vpop.f32.mrf.mxu3  ;;  %v4578_v15 = vadd.f32 %v4420_v63, %v3856_v55  ;;  %v3857_v55 = vadd.f32 %v3701_v2, %v2980_v49  ;;  %v4129_v49 = vsel %vm18769_vm0, %v13794_v12, 0.0  ;;  %v18791_v2 = vld [vmem:[#allocation178_spill] sm:$0xff]  ;;  %v3411_v14 = vsel %vm18796_vm7, %v3155_v28, 0.0  ;;  %vm18806_vm7 = vmmov %vm18766_vm2 }
 0x548   :  { %v4953_v7 = vpop.f32.mrf.mxu2 }
 0x549   :  { %9518 = vmatmul.msk.f32.gmra.mxu1 %vm18784_vm15, %v13773_v52  ;;  %v13872_v37 = vadd.f32 %v4950_v0, %v4578_v15  ;;  %v13878_v52 = vld [vmem:[#allocation2 + $0x147] sm:$0xff]  ;;  %vm18789_vm15 = vnez %v18788_v23  ;;  %v13884_v15 = vpop.f32.mrf.mxu0 }
 0x54a   :  { %9712 = vmatmul.msk.f32.gmra.mxu0 %vm18786_vm11, %v6168_v18  ;;  %vm5977_vm4 = vmand %vm17738_vm3, %vm18789_vm15  ;;  %18790 = vst [vmem:[#allocation103_spill] sm:$0xff] %v13884_v15  ;;  %v18799_v15 = vld [vmem:[#allocation130_spill] sm:$0xff] }
 0x54b   :  { %v6169_v20 = vsel %vm5977_vm4, %v13878_v52, 0.0  ;;  %vm18797_vm11 = vmmov %vm18766_vm2  ;;  %vm18800_vm0 = vnez %v18799_v15  ;;  %v18811_v15 = vld [vmem:[#allocation18_spill] sm:$0xff] }
 0x54c   :  { %9458 = vmatmul.msk.f32.gmra.mxu3 %vm18766_vm2, %v3410_v59  ;;  %vm18798_vm3 = vmmov %vm18766_vm2 }
 0x54d   :  { %9584 = vmatmul.msk.f32.gmra.mxu2 %vm18787_vm9, %v4660_v8  ;;  %v18792_v8 = vld [vmem:[#allocation4_spill] sm:$0xff]  ;;  %vm18793_vm9 = vmmov %vm18766_vm2 }
 0x54e   :  { %v4423_v56 = vpop.f32.mrf.mxu1  ;;  %v2983_v59 = vadd.f32 %v18792_v8, %v18791_v2  ;;  %v13900_v2 = vld [vmem:[#allocation2 + $0x14f] sm:$0xff]  ;;  %v3156_v8 = vld [vmem:[#allocation2 + $0x141] sm:$0xff] }
 0x54f   :  { %v3710_v63 = vpop.f32.mrf.mxu3  ;;  %v4579_v18 = vadd.f32 %v4423_v56, %v3857_v55  ;;  %v4661_v55 = vld [vmem:[#allocation2 + $0x138] sm:$0xff] }
 0x550   :  { %v4956_v0 = vpop.f32.mrf.mxu2  ;;  %v3858_v56 = vadd.f32 %v3704_v13, %v2983_v59 }
 0x551   :  { %9519 = vmatmul.msk.f32.gmra.mxu1 %vm18793_vm9, %v4129_v49  ;;  %v13893_v17 = vadd.f32 %v4953_v7, %v4579_v18  ;;  %v18801_v7 = vld [vmem:[#allocation17_spill] sm:$0xff]  ;;  %v18803_v18 = vld [vmem:[#allocation180_spill] sm:$0xff] }
 0x552   :  { %9713 = vmatmul.msk.f32.gmra.mxu0 %vm18797_vm11, %v6169_v20  ;;  %vm18802_vm4 = vcmp.gt.s32.totalorder %v18801_v7, 0  ;;  %v18804_v20 = vld [vmem:[#allocation181_spill] sm:$0xff]  ;;  %vm18809_vm11 = vmmov %vm18766_vm2 }
 0x553   :  { %18794 = vst [vmem:[#allocation97_spill] sm:$0xff] %v13893_v17  ;;  %vm3220_vm9 = vmand %vm18802_vm4, %vm18800_vm0  ;;  %v2986_v31 = vadd.f32 %v18804_v20, %v18803_v18  ;;  %vm17742_vm4 = vcmp.lt.s32.totalorder %v18795_v1, 15 }
 0x554   :  { %9459 = vmatmul.msk.f32.gmra.mxu3 %vm18766_vm2, %v3411_v14  ;;  %v13908_v14 = vpop.f32.mrf.mxu0  ;;  %vm18810_vm0 = vmmov %vm18766_vm2 }
 0x555   :  { %9585 = vmatmul.msk.f32.gmra.mxu2 %vm18798_vm3, %v4661_v55  ;;  %18805 = vst [vmem:[#allocation98_spill] sm:$0xff] %v13908_v14  ;;  %vm18807_vm3 = vcmp.lt.s32.totalorder %v18780_v42, 15  ;;  %v3412_v55 = vsel %vm3220_vm9, %v3156_v8, 0.0  ;;  %v3157_v8 = vld [vmem:[#allocation2 + $0x149] sm:$0xff] }
 0x556   :  { %v4426_v26 = vpop.f32.mrf.mxu1  ;;  %v6170_v13 = vsel %vm18807_vm3, %v13900_v2, 0.0  ;;  %v18816_v14 = vld [vmem:[#allocation6_spill] sm:$0xff] }
 0x557   :  { %v3713_v12 = vpop.f32.mrf.mxu3  ;;  %v4580_v28 = vadd.f32 %v4426_v26, %v3858_v56  ;;  %v4662_v56 = vld [vmem:[#allocation2 + $0x140] sm:$0xff]  ;;  %v3859_v26 = vadd.f32 %v3707_v25, %v2986_v31  ;;  %v18814_v31 = vld [vmem:[#allocation30_spill] sm:$0xff]  ;;  %vm18817_vm9 = vcmp.gt.s32.totalorder %v18816_v14, 0 }
 0x558   :  { %v4959_v49 = vpop.f32.mrf.mxu2  ;;  %v3413_v1 = vsel %vm18817_vm9, %v3157_v8, 0.0 }
 0x559   :  { %9520 = vmatmul.msk.f32.gmra.mxu1 %vm18806_vm7, %v13816_v44  ;;  %v13915_v59 = vadd.f32 %v4956_v0, %v4580_v28  ;;  %v13921_v44 = vld [vmem:[#allocation2 + $0x157] sm:$0xff]  ;;  %vm18812_vm7 = vnez %v18811_v15 }
 0x55a   :  { %9714 = vmatmul.msk.f32.gmra.mxu0 %vm18809_vm11, %v6170_v13  ;;  %vm5979_vm3 = vmand %vm17742_vm4, %vm18812_vm7  ;;  %v4131_v13 = vsel %vm18789_vm15, %v13837_v5, 0.0 }
 0x55b   :  { %18808 = vst [vmem:[#allocation104_spill] sm:$0xff] %v13915_v59  ;;  %vm18818_vm11 = vmmov %vm18810_vm0 }
 0x55c   :  { %9460 = vmatmul.msk.f32.gmra.mxu3 %vm18766_vm2, %v3412_v55  ;;  %v18813_v55 = vld [vmem:[#allocation183_spill] sm:$0xff]  ;;  %vm18819_vm2 = vmmov %vm18810_vm0 }
 0x55d   :  { %9586 = vmatmul.msk.f32.gmra.mxu2 %vm18810_vm0, %v4662_v56  ;;  %v2989_v25 = vadd.f32 %v18814_v31, %v18813_v55  ;;  %v6171_v56 = vsel %vm5979_vm3, %v13921_v44, 0.0  ;;  %vm18821_vm15 = vmmov %vm18810_vm0 }
 0x55e   :  { %v4429_v20 = vpop.f32.mrf.mxu1 }
 0x55f   :  { %v3716_v18 = vpop.f32.mrf.mxu3  ;;  %v4581_v28 = vadd.f32 %v4429_v20, %v3859_v26  ;;  %v4663_v26 = vld [vmem:[#allocation2 + $0x148] sm:$0xff]  ;;  %v13940_v20 = vpop.f32.mrf.mxu0  ;;  %v3860_v5 = vadd.f32 %v3710_v63, %v2989_v25 }
 0x560   :  { %v4962_v0 = vpop.f32.mrf.mxu2  ;;  %18820 = vst [vmem:[#allocation65_spill] sm:$0xff] %v13940_v20  ;;  %v18841_v20 = vld [vmem:[#allocation32_spill] sm:$0xff] }
 0x561   :  { %9521 = vmatmul.msk.f32.gmra.mxu1 %vm18810_vm0, %v4131_v13  ;;  %v13934_v42 = vadd.f32 %v4959_v49, %v4581_v28  ;;  %v13943_v13 = vld [vmem:[#allocation2 + $0x15f] sm:$0xff]  ;;  %v3158_v49 = vld [vmem:[#allocation2 + $0x151] sm:$0xff] }
 0x562   :  { %9715 = vmatmul.msk.f32.gmra.mxu0 %vm18818_vm11, %v6171_v56  ;;  %v18822_v28 = vld [vmem:[#allocation132_spill] sm:$0xff]  ;;  %v18826_v56 = vld [vmem:[#allocation185_spill] sm:$0xff]  ;;  %vm18828_vm11 = vmmov %vm18819_vm2 }
 0x563   :  { %18815 = vst [vmem:[#allocation105_spill] sm:$0xff] %v13934_v42  ;;  %vm18823_vm3 = vnez %v18822_v28  ;;  %v18824_v42 = vld [vmem:[#allocation29_spill] sm:$0xff]  ;;  %vm18832_vm4 = vmmov %vm18828_vm11  ;;  %v4664_v28 = vld [vmem:[#allocation2 + $0x150] sm:$0xff] }
 0x564   :  { %9461 = vmatmul.msk.f32.gmra.mxu3 %vm18819_vm2, %v3413_v1  ;;  %vm18825_vm0 = vcmp.gt.s32.totalorder %v18824_v42, 0  ;;  %v18827_v1 = vld [vmem:[#allocation186_spill] sm:$0xff]  ;;  %vm18829_vm2 = vcmp.lt.s32.totalorder %v18801_v7, 15  ;;  %v18835_v7 = vld [vmem:[#allocation33_spill] sm:$0xff] }
 0x565   :  { %9587 = vmatmul.msk.f32.gmra.mxu2 %vm18821_vm15, %v4663_v26  ;;  %vm3222_vm9 = vmand %vm18825_vm0, %vm18823_vm3  ;;  %v2992_v59 = vadd.f32 %v18827_v1, %v18826_v56  ;;  %v6172_v63 = vsel %vm18829_vm2, %v13943_v13, 0.0  ;;  %vm17745_vm0 = vcmp.lt.s32.totalorder %v18816_v14, 15  ;;  %v13964_v1 = vld [vmem:[#allocation2 + $0x167] sm:$0xff] }
 0x566   :  { %v4432_v55 = vpop.f32.mrf.mxu1  ;;  %v3414_v26 = vsel %vm3222_vm9, %v3158_v49, 0.0  ;;  %vm18831_vm15 = vmmov %vm18828_vm11  ;;  %v3159_v49 = vld [vmem:[#allocation2 + $0x159] sm:$0xff] }
 0x567   :  { %v3719_v23 = vpop.f32.mrf.mxu3  ;;  %v4582_v8 = vadd.f32 %v4432_v55, %v3860_v5  ;;  %v3861_v5 = vadd.f32 %v3713_v12, %v2992_v59  ;;  %vm18833_vm3 = vmmov %vm18832_vm4  ;;  %v13962_v55 = vpop.f32.mrf.mxu0  ;;  %v4133_v12 = vsel %vm18812_vm7, %v13878_v52, 0.0  ;;  %v18837_v59 = vld [vmem:[#allocation188_spill] sm:$0xff] }
 0x568   :  { %v4965_v31 = vpop.f32.mrf.mxu2  ;;  %18834 = vst [vmem:[#allocation110_spill] sm:$0xff] %v13962_v55 }
 0x569   :  { %9522 = vmatmul.msk.f32.gmra.mxu1 %vm18828_vm11, %v13859_v54  ;;  %v13956_v25 = vadd.f32 %v4962_v0, %v4582_v8  ;;  %vm18836_vm11 = vnez %v18835_v7  ;;  %v4667_v7 = vld [vmem:[#allocation2 + $0x168] sm:$0xff] }
 0x56a   :  { %9716 = vmatmul.msk.f32.gmra.mxu0 %vm18831_vm15, %v6172_v63  ;;  %vm5981_vm9 = vmand %vm17745_vm0, %vm18836_vm11 }
 0x56b   :  { %18830 = vst [vmem:[#allocation115_spill] sm:$0xff] %v13956_v25  ;;  %v18846_v25 = vld [vmem:[#allocation134_spill] sm:$0xff] }
 0x56c   :  { %9462 = vmatmul.msk.f32.gmra.mxu3 %vm18832_vm4, %v3414_v26  ;;  %vm18839_vm4 = vmmov %vm18833_vm3  ;;  %v6173_v26 = vsel %vm5981_vm9, %v13964_v1, 0.0  ;;  %vm18847_vm7 = vnez %v18846_v25  ;;  %v4666_v25 = vld [vmem:[#allocation2 + $0x160] sm:$0xff] }
 0x56d   :  { %9588 = vmatmul.msk.f32.gmra.mxu2 %vm18833_vm3, %v4664_v28  ;;  %v18838_v28 = vld [vmem:[#allocation37_spill] sm:$0xff]  ;;  %vm18842_vm3 = vcmp.gt.s32.totalorder %v18841_v20, 0  ;;  %vm18843_vm2 = vmmov %vm18839_vm4 }
 0x56e   :  { %v4435_v56 = vpop.f32.mrf.mxu1  ;;  %v2995_v63 = vadd.f32 %v18838_v28, %v18837_v59  ;;  %v3415_v14 = vsel %vm18842_vm3, %v3159_v49, 0.0  ;;  %vm18844_vm15 = vmmov %vm18843_vm2  ;;  %v13984_v59 = vld [vmem:[#allocation2 + $0x16f] sm:$0xff]  ;;  %v3160_v28 = vld [vmem:[#allocation2 + $0x161] sm:$0xff] }
 0x56f   :  { %v3722_v54 = vpop.f32.mrf.mxu3  ;;  %v4583_v8 = vadd.f32 %v4435_v56, %v3861_v5  ;;  %v4665_v5 = vld [vmem:[#allocation2 + $0x158] sm:$0xff]  ;;  %vm18845_vm0 = vmmov %vm18843_vm2  ;;  %v13990_v49 = vpop.f32.mrf.mxu0 }
 0x570   :  { %v4968_v0 = vpop.f32.mrf.mxu2  ;;  %v3862_v56 = vadd.f32 %v3716_v18, %v2995_v63  ;;  %18850 = vst [vmem:[#allocation116_spill] sm:$0xff] %v13990_v49  ;;  %vm18853_vm3 = vmmov %vm18845_vm0 }
 0x571   :  { %9523 = vmatmul.msk.f32.gmra.mxu1 %vm18839_vm4, %v4133_v12  ;;  %v13977_v55 = vadd.f32 %v4965_v31, %v4583_v8  ;;  %v18848_v31 = vld [vmem:[#allocation36_spill] sm:$0xff] }
 0x572   :  { %9717 = vmatmul.msk.f32.gmra.mxu0 %vm18843_vm2, %v6173_v26  ;;  %vm18849_vm9 = vcmp.gt.s32.totalorder %v18848_v31, 0  ;;  %v18851_v26 = vld [vmem:[#allocation190_spill] sm:$0xff] }
 0x573   :  { %18840 = vst [vmem:[#allocation111_spill] sm:$0xff] %v13977_v55  ;;  %vm3224_vm4 = vmand %vm18849_vm9, %vm18847_vm7  ;;  %vm17748_vm9 = vcmp.lt.s32.totalorder %v18841_v20, 15  ;;  %v18865_v20 = vld [vmem:[#allocation39_spill] sm:$0xff] }
 0x574   :  { %9463 = vmatmul.msk.f32.gmra.mxu3 %vm18844_vm15, %v3415_v14  ;;  %v18852_v14 = vld [vmem:[#allocation191_spill] sm:$0xff]  ;;  %vm18856_vm15 = vmmov %vm18843_vm2 }
 0x575   :  { %9589 = vmatmul.msk.f32.gmra.mxu2 %vm18845_vm0, %v4665_v5  ;;  %v2998_v55 = vadd.f32 %v18852_v14, %v18851_v26  ;;  %vm18854_vm0 = vcmp.lt.s32.totalorder %v18824_v42, 15  ;;  %v3416_v5 = vsel %vm3224_vm4, %v3160_v28, 0.0  ;;  %vm18857_vm7 = vmmov %vm18843_vm2  ;;  %v18858_v14 = vld [vmem:[#allocation40_spill] sm:$0xff]  ;;  %v3161_v28 = vld [vmem:[#allocation2 + $0x169] sm:$0xff]  ;;  %vm18866_vm4 = vcmp.gt.s32.totalorder %v18865_v20, 0 }
 0x576   :  { %v4438_v15 = vpop.f32.mrf.mxu1  ;;  %v6174_v18 = vsel %vm18854_vm0, %v13984_v59, 0.0 }
 0x577   :  { %v3725_v52 = vpop.f32.mrf.mxu3  ;;  %v4584_v8 = vadd.f32 %v4438_v15, %v3862_v56  ;;  %v3863_v56 = vadd.f32 %v3719_v23, %v2998_v55  ;;  %v18861_v23 = vld [vmem:[#allocation44_spill] sm:$0xff] }
 0x578   :  { %v4971_v12 = vpop.f32.mrf.mxu2 }
 0x579   :  { %9524 = vmatmul.msk.f32.gmra.mxu1 %vm18853_vm3, %v13900_v2  ;;  %v13999_v63 = vadd.f32 %v4968_v0, %v4584_v8  ;;  %v14005_v2 = vld [vmem:[#allocation2 + $0x177] sm:$0xff]  ;;  %vm18859_vm3 = vnez %v18858_v14 }
 0x57a   :  { %9718 = vmatmul.msk.f32.gmra.mxu0 %vm18843_vm2, %v6174_v18  ;;  %vm5983_vm0 = vmand %vm17748_vm9, %vm18859_vm3  ;;  %v4135_v18 = vsel %vm18836_vm11, %v13921_v44, 0.0 }
 0x57b   :  { %18855 = vst [vmem:[#allocation117_spill] sm:$0xff] %v13999_v63  ;;  %v6175_v42 = vsel %vm5983_vm0, %v14005_v2, 0.0  ;;  %v3417_v63 = vsel %vm18866_vm4, %v3161_v28, 0.0  ;;  %vm18868_vm11 = vmmov %vm18843_vm2 }
 0x57c   :  { %9464 = vmatmul.msk.f32.gmra.mxu3 %vm18856_vm15, %v3416_v5  ;;  %v18860_v5 = vld [vmem:[#allocation193_spill] sm:$0xff]  ;;  %vm18867_vm15 = vmmov %vm18843_vm2 }
 0x57d   :  { %9590 = vmatmul.msk.f32.gmra.mxu2 %vm18857_vm7, %v4666_v25  ;;  %v3001_v55 = vadd.f32 %v18861_v23, %v18860_v5  ;;  %v14016_v25 = vpop.f32.mrf.mxu0  ;;  %vm18863_vm7 = vmmov %vm18843_vm2  ;;  %v14027_v5 = vld [vmem:[#allocation2 + $0x17f] sm:$0xff]  ;;  %v3162_v23 = vld [vmem:[#allocation2 + $0x171] sm:$0xff] }
 0x57e   :  { %v4441_v26 = vpop.f32.mrf.mxu1  ;;  %18862 = vst [vmem:[#allocation70_spill] sm:$0xff] %v14016_v25  ;;  %v18869_v25 = vld [vmem:[#allocation139_spill] sm:$0xff]  ;;  %vm18875_vm4 = vmmov %vm18843_vm2 }
 0x57f   :  { %v3728_v15 = vpop.f32.mrf.mxu3  ;;  %v4585_v8 = vadd.f32 %v4441_v26, %v3863_v56  ;;  %v3864_v44 = vadd.f32 %v3722_v54, %v3001_v55  ;;  %vm18870_vm0 = vnez %v18869_v25 }
 0x580   :  { %v4974_v0 = vpop.f32.mrf.mxu2 }
 0x581   :  { %9525 = vmatmul.msk.f32.gmra.mxu1 %vm18863_vm7, %v4135_v18  ;;  %v14020_v49 = vadd.f32 %v4971_v12, %v4585_v8  ;;  %v18871_v12 = vld [vmem:[#allocation43_spill] sm:$0xff] }
 0x582   :  { %9719 = vmatmul.msk.f32.gmra.mxu0 %vm18843_vm2, %v6175_v42  ;;  %vm18872_vm7 = vcmp.gt.s32.totalorder %v18871_v12, 0  ;;  %v18873_v8 = vld [vmem:[#allocation195_spill] sm:$0xff]  ;;  %v18874_v42 = vld [vmem:[#allocation196_spill] sm:$0xff]  ;;  %vm18876_vm2 = vcmp.lt.s32.totalorder %v18848_v31, 15 }
 0x583   :  { %18864 = vst [vmem:[#allocation121_spill] sm:$0xff] %v14020_v49  ;;  %vm3226_vm9 = vmand %vm18872_vm7, %vm18870_vm0  ;;  %v3004_v49 = vadd.f32 %v18874_v42, %v18873_v8  ;;  %v6176_v54 = vsel %vm18876_vm2, %v14027_v5, 0.0  ;;  %vm17751_vm7 = vcmp.lt.s32.totalorder %v18865_v20, 15  ;;  %v14048_v8 = vld [vmem:[#allocation2 + $0x187] sm:$0xff]  ;;  %v18882_v42 = vld [vmem:[#allocation47_spill] sm:$0xff] }
 0x584   :  { %9465 = vmatmul.msk.f32.gmra.mxu3 %vm18867_vm15, %v3417_v63  ;;  %v3418_v55 = vsel %vm3226_vm9, %v3162_v23, 0.0  ;;  %vm18878_vm15 = vmmov %vm18875_vm4  ;;  %v3163_v23 = vld [vmem:[#allocation2 + $0x179] sm:$0xff] }
 0x585   :  { %9591 = vmatmul.msk.f32.gmra.mxu2 %vm18868_vm11, %v4667_v7  ;;  %vm18879_vm11 = vmmov %vm18875_vm4  ;;  %v4668_v7 = vld [vmem:[#allocation2 + $0x170] sm:$0xff]  ;;  %v14044_v25 = vpop.f32.mrf.mxu0 }
 0x586   :  { %v4444_v26 = vpop.f32.mrf.mxu1  ;;  %18880 = vst [vmem:[#allocation67_spill] sm:$0xff] %v14044_v25  ;;  %vm18881_vm0 = vmmov %vm18875_vm4  ;;  %v18887_v25 = vld [vmem:[#allocation46_spill] sm:$0xff] }
 0x587   :  { %v3731_v56 = vpop.f32.mrf.mxu3  ;;  %v4586_v28 = vadd.f32 %v4444_v26, %v3864_v44  ;;  %v3865_v44 = vadd.f32 %v3725_v52, %v3004_v49  ;;  %v18885_v52 = vld [vmem:[#allocation51_spill] sm:$0xff]  ;;  %vm18888_vm2 = vcmp.gt.s32.totalorder %v18887_v25, 0 }
 0x588   :  { %v4977_v18 = vpop.f32.mrf.mxu2  ;;  %v3419_v20 = vsel %vm18888_vm2, %v3163_v23, 0.0 }
 0x589   :  { %9526 = vmatmul.msk.f32.gmra.mxu1 %vm18875_vm4, %v13943_v13  ;;  %v14040_v63 = vadd.f32 %v4974_v0, %v4586_v28  ;;  %vm18883_vm4 = vnez %v18882_v42 }
 0x58a   :  { %9720 = vmatmul.msk.f32.gmra.mxu0 %vm18878_vm15, %v6176_v54  ;;  %vm5985_vm9 = vmand %vm17751_vm7, %vm18883_vm4  ;;  %v4137_v54 = vsel %vm18859_vm3, %v13964_v1, 0.0 }
 0x58b   :  { %18877 = vst [vmem:[#allocation73_spill] sm:$0xff] %v14040_v63  ;;  %vm18889_vm15 = vmmov %vm18881_vm0 }
 0x58c   :  { %9466 = vmatmul.msk.f32.gmra.mxu3 %vm18879_vm11, %v3418_v55  ;;  %v18884_v55 = vld [vmem:[#allocation198_spill] sm:$0xff]  ;;  %vm18890_vm11 = vmmov %vm18881_vm0 }
 0x58d   :  { %9592 = vmatmul.msk.f32.gmra.mxu2 %vm18881_vm0, %v4668_v7  ;;  %v3007_v49 = vadd.f32 %v18885_v52, %v18884_v55  ;;  %v6177_v7 = vsel %vm5985_vm9, %v14048_v8, 0.0  ;;  %vm18891_vm7 = vmmov %vm18881_vm0  ;;  %v14068_v1 = vpop.f32.mrf.mxu0 }
 0x58e   :  { %v4447_v26 = vpop.f32.mrf.mxu1  ;;  %18892 = vst [vmem:[#allocation75_spill] sm:$0xff] %v14068_v1  ;;  %vm18899_vm2 = vmmov %vm18891_vm7 }
 0x58f   :  { %v3734_v13 = vpop.f32.mrf.mxu3  ;;  %v4587_v28 = vadd.f32 %v4447_v26, %v3865_v44  ;;  %v4669_v44 = vld [vmem:[#allocation2 + $0x178] sm:$0xff]  ;;  %v3866_v26 = vadd.f32 %v3728_v15, %v3007_v49 }
 0x590   :  { %v4980_v0 = vpop.f32.mrf.mxu2 }
 0x591   :  { %9527 = vmatmul.msk.f32.gmra.mxu1 %vm18881_vm0, %v4137_v54  ;;  %v14061_v31 = vadd.f32 %v4977_v18, %v4587_v28  ;;  %v14070_v54 = vld [vmem:[#allocation2 + $0x18f] sm:$0xff]  ;;  %v3164_v18 = vld [vmem:[#allocation2 + $0x181] sm:$0xff]  ;;  %v18893_v28 = vld [vmem:[#allocation140_spill] sm:$0xff] }
 0x592   :  { %9721 = vmatmul.msk.f32.gmra.mxu0 %vm18889_vm15, %v6177_v7  ;;  %vm18894_vm3 = vnez %v18893_v28  ;;  %v18897_v7 = vld [vmem:[#allocation200_spill] sm:$0xff]  ;;  %vm18902_vm15 = vmmov %vm18899_vm2  ;;  %v4670_v28 = vld [vmem:[#allocation2 + $0x180] sm:$0xff] }
 0x593   :  { %18886 = vst [vmem:[#allocation77_spill] sm:$0xff] %v14061_v31  ;;  %v18895_v31 = vld [vmem:[#allocation50_spill] sm:$0xff] }
 0x594   :  { %9467 = vmatmul.msk.f32.gmra.mxu3 %vm18890_vm11, %v3419_v20  ;;  %vm18896_vm9 = vcmp.gt.s32.totalorder %v18895_v31, 0  ;;  %v18898_v20 = vld [vmem:[#allocation201_spill] sm:$0xff]  ;;  %vm18903_vm11 = vmmov %vm18899_vm2 }
 0x595   :  { %9593 = vmatmul.msk.f32.gmra.mxu2 %vm18891_vm7, %v4669_v44  ;;  %vm3228_vm0 = vmand %vm18896_vm9, %vm18894_vm3  ;;  %v3010_v63 = vadd.f32 %v18898_v20, %v18897_v7  ;;  %vm18900_vm7 = vcmp.lt.s32.totalorder %v18871_v12, 15  ;;  %vm17754_vm9 = vcmp.lt.s32.totalorder %v18887_v25, 15  ;;  %v18905_v20 = vld [vmem:[#allocation54_spill] sm:$0xff]  ;;  %v18911_v25 = vld [vmem:[#allocation53_spill] sm:$0xff] }
 0x596   :  { %v4450_v55 = vpop.f32.mrf.mxu1  ;;  %v6178_v15 = vsel %vm18900_vm7, %v14070_v54, 0.0  ;;  %v3420_v44 = vsel %vm3228_vm0, %v3164_v18, 0.0  ;;  %vm18904_vm3 = vmmov %vm18899_vm2  ;;  %v3165_v18 = vld [vmem:[#allocation2 + $0x189] sm:$0xff]  ;;  %vm18912_vm0 = vcmp.gt.s32.totalorder %v18911_v25, 0 }
 0x597   :  { %v3737_v14 = vpop.f32.mrf.mxu3  ;;  %v4588_v23 = vadd.f32 %v4450_v55, %v3866_v26  ;;  %v3867_v26 = vadd.f32 %v3731_v56, %v3010_v63  ;;  %v4139_v56 = vsel %vm18883_vm4, %v14005_v2, 0.0  ;;  %v18908_v63 = vld [vmem:[#allocation203_spill] sm:$0xff]  ;;  %v3421_v1 = vsel %vm18912_vm0, %v3165_v18, 0.0 }
 0x598   :  { %v4983_v52 = vpop.f32.mrf.mxu2 }
 0x599   :  { %9528 = vmatmul.msk.f32.gmra.mxu1 %vm18899_vm2, %v13984_v59  ;;  %v14083_v49 = vadd.f32 %v4980_v0, %v4588_v23  ;;  %v14089_v59 = vld [vmem:[#allocation2 + $0x197] sm:$0xff]  ;;  %vm18906_vm2 = vnez %v18905_v20  ;;  %v14095_v23 = vpop.f32.mrf.mxu0 }
 0x59a   :  { %9722 = vmatmul.msk.f32.gmra.mxu0 %vm18902_vm15, %v6178_v15  ;;  %vm5987_vm7 = vmand %vm17754_vm9, %vm18906_vm2  ;;  %18907 = vst [vmem:[#allocation172_spill] sm:$0xff] %v14095_v23  ;;  %v18916_v23 = vld [vmem:[#allocation142_spill] sm:$0xff] }
 0x59b   :  { %18901 = vst [vmem:[#allocation19_spill] sm:$0xff] %v14083_v49  ;;  %v6179_v12 = vsel %vm5987_vm7, %v14089_v59, 0.0  ;;  %vm18913_vm15 = vmmov %vm18904_vm3  ;;  %vm18917_vm4 = vnez %v18916_v23  ;;  %v18929_v23 = vld [vmem:[#allocation62_spill] sm:$0xff] }
 0x59c   :  { %9468 = vmatmul.msk.f32.gmra.mxu3 %vm18903_vm11, %v3420_v44  ;;  %vm18914_vm11 = vmmov %vm18904_vm3 }
 0x59d   :  { %9594 = vmatmul.msk.f32.gmra.mxu2 %vm18904_vm3, %v4670_v28  ;;  %v18909_v28 = vld [vmem:[#allocation57_spill] sm:$0xff]  ;;  %vm18915_vm9 = vmmov %vm18904_vm3 }
 0x59e   :  { %v4453_v7 = vpop.f32.mrf.mxu1  ;;  %v3013_v44 = vadd.f32 %v18909_v28, %v18908_v63  ;;  %v14111_v63 = vld [vmem:[#allocation2 + $0x19f] sm:$0xff]  ;;  %v3166_v28 = vld [vmem:[#allocation2 + $0x191] sm:$0xff]  ;;  %vm18923_vm0 = vmmov %vm18915_vm9 }
 0x59f   :  { %v3740_v55 = vpop.f32.mrf.mxu3  ;;  %v4589_v15 = vadd.f32 %v4453_v7, %v3867_v26  ;;  %v4671_v26 = vld [vmem:[#allocation2 + $0x188] sm:$0xff] }
 0x5a0   :  { %v4986_v0 = vpop.f32.mrf.mxu2  ;;  %v3868_v7 = vadd.f32 %v3734_v13, %v3013_v44 }
 0x5a1   :  { %9529 = vmatmul.msk.f32.gmra.mxu1 %vm18904_vm3, %v4139_v56  ;;  %v14104_v49 = vadd.f32 %v4983_v52, %v4589_v15  ;;  %v18918_v52 = vld [vmem:[#allocation58_spill] sm:$0xff]  ;;  %v18920_v15 = vld [vmem:[#allocation205_spill] sm:$0xff] }
 0x5a2   :  { %9723 = vmatmul.msk.f32.gmra.mxu0 %vm18913_vm15, %v6179_v12  ;;  %vm18919_vm7 = vcmp.gt.s32.totalorder %v18918_v52, 0  ;;  %v18921_v12 = vld [vmem:[#allocation206_spill] sm:$0xff]  ;;  %vm18926_vm15 = vmmov %vm18923_vm0 }
 0x5a3   :  { %18910 = vst [vmem:[#allocation12_spill] sm:$0xff] %v14104_v49  ;;  %vm3230_vm3 = vmand %vm18919_vm7, %vm18917_vm4  ;;  %v3016_v49 = vadd.f32 %v18921_v12, %v18920_v15  ;;  %vm17757_vm7 = vcmp.lt.s32.totalorder %v18911_v25, 15  ;;  %v18935_v25 = vld [vmem:[#allocation60_spill] sm:$0xff] }
 0x5a4   :  { %9469 = vmatmul.msk.f32.gmra.mxu3 %vm18914_vm11, %v3421_v1  ;;  %v14119_v1 = vpop.f32.mrf.mxu0  ;;  %vm18927_vm11 = vmmov %vm18923_vm0 }
 0x5a5   :  { %9595 = vmatmul.msk.f32.gmra.mxu2 %vm18915_vm9, %v4671_v26  ;;  %18922 = vst [vmem:[#allocation10_spill] sm:$0xff] %v14119_v1  ;;  %vm18924_vm9 = vcmp.lt.s32.totalorder %v18895_v31, 15  ;;  %v3422_v26 = vsel %vm3230_vm3, %v3166_v28, 0.0  ;;  %vm18928_vm4 = vmmov %vm18923_vm0  ;;  %vm18936_vm3 = vcmp.gt.s32.totalorder %v18935_v25, 0 }
 0x5a6   :  { %v4456_v42 = vpop.f32.mrf.mxu1  ;;  %v6180_v13 = vsel %vm18924_vm9, %v14111_v63, 0.0 }
 0x5a7   :  { %v3743_v2 = vpop.f32.mrf.mxu3  ;;  %v4590_v18 = vadd.f32 %v4456_v42, %v3868_v7  ;;  %v4672_v7 = vld [vmem:[#allocation2 + $0x190] sm:$0xff]  ;;  %v3869_v42 = vadd.f32 %v3737_v14, %v3016_v49  ;;  %v4141_v14 = vsel %vm18906_vm2, %v14048_v8, 0.0  ;;  %v18932_v49 = vld [vmem:[#allocation208_spill] sm:$0xff]  ;;  %vm18940_vm2 = vmmov %vm18928_vm4 }
 0x5a8   :  { %v4989_v56 = vpop.f32.mrf.mxu2 }
 0x5a9   :  { %9530 = vmatmul.msk.f32.gmra.mxu1 %vm18923_vm0, %v14027_v5  ;;  %v14126_v44 = vadd.f32 %v4986_v0, %v4590_v18  ;;  %v14132_v5 = vld [vmem:[#allocation2 + $0x1a7] sm:$0xff]  ;;  %vm18930_vm0 = vnez %v18929_v23  ;;  %v18931_v0 = vld [vmem:[#allocation87_spill] sm:$0xff]  ;;  %v14196_v23 = vld [vmem:[#allocation2 + $0x1bf] sm:$0xff] }
 0x5aa   :  { %9724 = vmatmul.msk.f32.gmra.mxu0 %vm18926_vm15, %v6180_v13  ;;  %vm5989_vm9 = vmand %vm17757_vm7, %vm18930_vm0  ;;  %v3167_v13 = vld [vmem:[#allocation2 + $0x199] sm:$0xff] }
 0x5ab   :  { %18925 = vst [vmem:[#allocation13_spill] sm:$0xff] %v14126_v44  ;;  %v6181_v44 = vsel %vm5989_vm9, %v14132_v5, 0.0  ;;  %v3423_v17 = vsel %vm18936_vm3, %v3167_v13, 0.0  ;;  %vm18937_vm15 = vmmov %vm18928_vm4  ;;  %v18944_v13 = vld [vmem:[#allocation72_spill] sm:$0xff] }
 0x5ac   :  { %9470 = vmatmul.msk.f32.gmra.mxu3 %vm18927_vm11, %v3422_v26  ;;  %vm18938_vm11 = vmmov %vm18928_vm4 }
 0x5ad   :  { %9596 = vmatmul.msk.f32.gmra.mxu2 %vm18928_vm4, %v4672_v7  ;;  %v18933_v7 = vld [vmem:[#allocation64_spill] sm:$0xff]  ;;  %vm18951_vm7 = vmmov %vm18940_vm2 }
 0x5ae   :  { %v4459_v12 = vpop.f32.mrf.mxu1  ;;  %v3019_v31 = vadd.f32 %v18933_v7, %v18932_v49  ;;  %v3168_v49 = vld [vmem:[#allocation2 + $0x1a1] sm:$0xff] }
 0x5af   :  { %v3746_v15 = vpop.f32.mrf.mxu3  ;;  %v4591_v26 = vadd.f32 %v4459_v12, %v3869_v42  ;;  %v4673_v42 = vld [vmem:[#allocation2 + $0x198] sm:$0xff]  ;;  %v18942_v7 = vld [vmem:[#allocation146_spill] sm:$0xff] }
 0x5b0   :  { %v3872_v28 = vadd.f32 %v3746_v15, %v18931_v0  ;;  %v4992_v18 = vpop.f32.mrf.mxu2  ;;  %v14152_v15 = vpop.f32.mrf.mxu0  ;;  %v3870_v8 = vadd.f32 %v3740_v55, %v3019_v31  ;;  %v14155_v0 = vld [vmem:[#allocation2 + $0x1af] sm:$0xff]  ;;  %vm18943_vm9 = vnez %v18942_v7 }
 0x5b1   :  { %9531 = vmatmul.msk.f32.gmra.mxu1 %vm18928_vm4, %v4141_v14  ;;  %v14146_v1 = vadd.f32 %v4989_v56, %v4591_v26  ;;  %18939 = vst [vmem:[#allocation176_spill] sm:$0xff] %v14152_v15  ;;  %v18941_v14 = vld [vmem:[#allocation93_spill] sm:$0xff]  ;;  %vm18945_vm4 = vcmp.gt.s32.totalorder %v18944_v13, 0 }
 0x5b2   :  { %9725 = vmatmul.msk.f32.gmra.mxu0 %vm18937_vm15, %v6181_v44  ;;  %vm3232_vm3 = vmand %vm18945_vm4, %vm18943_vm9  ;;  %v18946_v44 = vld [vmem:[#allocation210_spill] sm:$0xff]  ;;  %vm17759_vm4 = vcmp.lt.s32.totalorder %v18935_v25, 15  ;;  %v3170_v25 = vld [vmem:[#allocation2 + $0x1b1] sm:$0xff] }
 0x5b3   :  { %18934 = vst [vmem:[#allocation175_spill] sm:$0xff] %v14146_v1  ;;  %v18947_v1 = vld [vmem:[#allocation78_spill] sm:$0xff]  ;;  %vm18948_vm15 = vmmov %vm18940_vm2 }
 0x5b4   :  { %9471 = vmatmul.msk.f32.gmra.mxu3 %vm18938_vm11, %v3423_v17  ;;  %v3022_v15 = vadd.f32 %v18947_v1, %v18946_v44  ;;  %vm18949_vm11 = vcmp.lt.s32.totalorder %v18918_v52, 15  ;;  %vm18952_vm9 = vmmov %vm18940_vm2  ;;  %v18953_v44 = vld [vmem:[#allocation83_spill] sm:$0xff]  ;;  %v18958_v52 = vld [vmem:[#allocation82_spill] sm:$0xff] }
 0x5b5   :  { %9597 = vmatmul.msk.f32.gmra.mxu2 %vm18940_vm2, %v4673_v42  ;;  %v6182_v31 = vsel %vm18949_vm11, %v14155_v0, 0.0  ;;  %v3424_v42 = vsel %vm3232_vm3, %v3168_v49, 0.0  ;;  %vm18960_vm11 = vmmov %vm18940_vm2 }
 0x5b6   :  { %v4462_v12 = vpop.f32.mrf.mxu1 }
 0x5b7   :  { %v3749_v20 = vpop.f32.mrf.mxu3  ;;  %v4592_v17 = vadd.f32 %v4462_v12, %v3870_v8  ;;  %v3871_v8 = vadd.f32 %v3743_v2, %v3022_v15  ;;  %v4143_v2 = vsel %vm18930_vm0, %v14089_v59, 0.0  ;;  %v18962_v59 = vld [vmem:[#allocation106_spill] sm:$0xff] }
 0x5b8   :  { %v3873_v56 = vadd.f32 %v3749_v20, %v18941_v14  ;;  %v4995_v26 = vpop.f32.mrf.mxu2  ;;  %v4674_v20 = vld [vmem:[#allocation2 + $0x1a0] sm:$0xff]  ;;  %v14175_v1 = vpop.f32.mrf.mxu0  ;;  %v14177_v14 = vld [vmem:[#allocation2 + $0x1b7] sm:$0xff] }
 0x5b9   :  { %9532 = vmatmul.msk.f32.gmra.mxu1 %vm18948_vm15, %v14070_v54  ;;  %v14169_v55 = vadd.f32 %v4992_v18, %v4592_v17  ;;  %vm18954_vm15 = vnez %v18953_v44  ;;  %v18955_v18 = vld [vmem:[#allocation100_spill] sm:$0xff] }
 0x5ba   :  { %9726 = vmatmul.msk.f32.gmra.mxu0 %vm18940_vm2, %v6182_v31  ;;  %vm5991_vm3 = vmand %vm17759_vm4, %vm18954_vm15  ;;  %v3169_v31 = vld [vmem:[#allocation2 + $0x1a9] sm:$0xff] }
 0x5bb   :  { %18950 = vst [vmem:[#allocation25_spill] sm:$0xff] %v14169_v55  ;;  %v6183_v15 = vsel %vm5991_vm3, %v14177_v14, 0.0  ;;  %vm18961_vm4 = vmmov %vm18940_vm2  ;;  %v19061_v55 = vld [vmem:[#allocation160_spill] sm:$0xff] }
 0x5bc   :  { %9472 = vmatmul.msk.f32.gmra.mxu3 %vm18951_vm7, %v3424_v42  ;;  %vm18956_vm7 = vmmov %vm18940_vm2 }
 0x5bd   :  { %9598 = vmatmul.msk.f32.gmra.mxu2 %vm18952_vm9, %v4674_v20  ;;  %vm18959_vm9 = vcmp.gt.s32.totalorder %v18958_v52, 0 }
 0x5be   :  { %v4465_v12 = vpop.f32.mrf.mxu1  ;;  %v3425_v7 = vsel %vm18959_vm9, %v3169_v31, 0.0  ;;  %vm18968_vm9 = vmmov %vm18940_vm2 }
 0x5bf   :  { %v3752_v54 = vpop.f32.mrf.mxu3  ;;  %v4593_v42 = vadd.f32 %v4465_v12, %v3871_v8 }
 0x5c0   :  { %v3874_v49 = vadd.f32 %v3752_v54, %v18955_v18  ;;  %v4998_v17 = vpop.f32.mrf.mxu2  ;;  %v4675_v54 = vld [vmem:[#allocation2 + $0x1a8] sm:$0xff]  ;;  %v14203_v31 = vpop.f32.mrf.mxu0 }
 0x5c1   :  { %9533 = vmatmul.msk.f32.gmra.mxu1 %vm18956_vm7, %v4143_v2  ;;  %v14189_v20 = vadd.f32 %v4995_v26, %v4593_v42  ;;  %v18963_v26 = vld [vmem:[#allocation147_spill] sm:$0xff]  ;;  %v18965_v42 = vld [vmem:[#allocation89_spill] sm:$0xff]  ;;  %18967 = vst [vmem:[#allocation4_spill] sm:$0xff] %v14203_v31 }
 0x5c2   :  { %9727 = vmatmul.msk.f32.gmra.mxu0 %vm18960_vm11, %v6183_v15  ;;  %vm18964_vm0 = vnez %v18963_v26  ;;  %vm18966_vm3 = vcmp.gt.s32.totalorder %v18965_v42, 0  ;;  %vm18971_vm11 = vmmov %vm18940_vm2  ;;  %v14216_v26 = vld [vmem:[#allocation2 + $0x1c7] sm:$0xff]  ;;  %v18978_v31 = vld [vmem:[#allocation95_spill] sm:$0xff] }
 0x5c3   :  { %18957 = vst [vmem:[#allocation178_spill] sm:$0xff] %v14189_v20  ;;  %vm3234_vm7 = vmand %vm18966_vm3, %vm18964_vm0  ;;  %vm17763_vm3 = vcmp.lt.s32.totalorder %v18958_v52, 15 }
 0x5c4   :  { %9473 = vmatmul.msk.f32.gmra.mxu3 %vm18940_vm2, %v3425_v7  ;;  %vm18972_vm0 = vmmov %vm18940_vm2 }
 0x5c5   :  { %9599 = vmatmul.msk.f32.gmra.mxu2 %vm18961_vm4, %v4675_v54  ;;  %vm18969_vm4 = vcmp.lt.s32.totalorder %v18944_v13, 15 }
 0x5c6   :  { %v4468_v12 = vpop.f32.mrf.mxu1  ;;  %v6184_v7 = vsel %vm18969_vm4, %v14196_v23, 0.0 }
 0x5c7   :  { %v3755_v8 = vpop.f32.mrf.mxu3  ;;  %v4594_v15 = vadd.f32 %v4468_v12, %v3872_v28 }
 0x5c8   :  { %v3875_v18 = vadd.f32 %v3755_v8, %v18962_v59  ;;  %v5001_v2 = vpop.f32.mrf.mxu2  ;;  %v3426_v8 = vsel %vm3234_vm7, %v3170_v25, 0.0  ;;  %v4676_v59 = vld [vmem:[#allocation2 + $0x1b0] sm:$0xff]  ;;  %vm18979_vm7 = vcmp.gt.s32.totalorder %v18978_v31, 0 }
 0x5c9   :  { %9534 = vmatmul.msk.f32.gmra.mxu1 %vm18968_vm9, %v14111_v63  ;;  %v14210_v54 = vadd.f32 %v4998_v17, %v4594_v15  ;;  %v18973_v63 = vld [vmem:[#allocation96_spill] sm:$0xff]  ;;  %v18975_v17 = vld [vmem:[#allocation113_spill] sm:$0xff] }
 0x5ca   :  { %9728 = vmatmul.msk.f32.gmra.mxu0 %vm18971_vm11, %v6184_v7  ;;  %vm18974_vm9 = vnez %v18973_v63  ;;  %v3171_v7 = vld [vmem:[#allocation2 + $0x1b9] sm:$0xff]  ;;  %vm18980_vm11 = vmmov %vm18972_vm0 }
 0x5cb   :  { %18970 = vst [vmem:[#allocation180_spill] sm:$0xff] %v14210_v54  ;;  %vm5993_vm4 = vmand %vm17763_vm3, %vm18974_vm9  ;;  %v14226_v54 = vpop.f32.mrf.mxu0  ;;  %v3427_v52 = vsel %vm18979_vm7, %v3171_v7, 0.0 }
 0x5cc   :  { %9474 = vmatmul.msk.f32.gmra.mxu3 %vm18940_vm2, %v3426_v8  ;;  %v4145_v8 = vsel %vm18954_vm15, %v14132_v5, 0.0  ;;  %18976 = vst [vmem:[#allocation181_spill] sm:$0xff] %v14226_v54  ;;  %vm18981_vm2 = vmmov %vm18972_vm0  ;;  %v3172_v54 = vld [vmem:[#allocation2 + $0x1c1] sm:$0xff] }
 0x5cd   :  { %9600 = vmatmul.msk.f32.gmra.mxu2 %vm18972_vm0, %v4676_v59  ;;  %v6185_v59 = vsel %vm5993_vm4, %v14216_v26, 0.0  ;;  %vm18982_vm3 = vmmov %vm18972_vm0 }
 0x5ce   :  { %v4471_v12 = vpop.f32.mrf.mxu1  ;;  %vm18988_vm7 = vmmov %vm18981_vm2 }
 0x5cf   :  { %v3758_v28 = vpop.f32.mrf.mxu3  ;;  %v4595_v13 = vadd.f32 %v4471_v12, %v3873_v56  ;;  %v4677_v56 = vld [vmem:[#allocation2 + $0x1b8] sm:$0xff]  ;;  %v18983_v12 = vld [vmem:[#allocation118_spill] sm:$0xff]  ;;  %vm19013_vm10 = vmmov %vm18981_vm2 }
 0x5d0   :  { %v3876_v25 = vadd.f32 %v3758_v28, %v18975_v17  ;;  %v5004_v15 = vpop.f32.mrf.mxu2  ;;  %v14237_v28 = vld [vmem:[#allocation2 + $0x1cf] sm:$0xff] }
 0x5d1   :  { %9535 = vmatmul.msk.f32.gmra.mxu1 %vm18972_vm0, %v4145_v8  ;;  %v14230_v20 = vadd.f32 %v5001_v2, %v4595_v13  ;;  %v18984_v13 = vld [vmem:[#allocation150_spill] sm:$0xff] }
 0x5d2   :  { %9729 = vmatmul.msk.f32.gmra.mxu0 %vm18980_vm11, %v6185_v59  ;;  %vm18985_vm15 = vnez %v18984_v13  ;;  %v18986_v2 = vld [vmem:[#allocation102_spill] sm:$0xff]  ;;  %vm18991_vm11 = vmmov %vm18981_vm2  ;;  %v4147_v13 = vsel %vm18974_vm9, %v14177_v14, 0.0 }
 0x5d3   :  { %18977 = vst [vmem:[#allocation18_spill] sm:$0xff] %v14230_v20  ;;  %vm18987_vm4 = vcmp.gt.s32.totalorder %v18986_v2, 0  ;;  %v18999_v20 = vld [vmem:[#allocation108_spill] sm:$0xff] }
 0x5d4   :  { %9475 = vmatmul.msk.f32.gmra.mxu3 %vm18981_vm2, %v3427_v52  ;;  %vm3236_vm0 = vmand %vm18987_vm4, %vm18985_vm15  ;;  %vm17765_vm4 = vcmp.lt.s32.totalorder %v18978_v31, 15  ;;  %v19005_v31 = vld [vmem:[#allocation153_spill] sm:$0xff]  ;;  %vm17769_vm5 = vcmp.lt.s32.totalorder %v18999_v20, 15 }
 0x5d5   :  { %9601 = vmatmul.msk.f32.gmra.mxu2 %vm18982_vm3, %v4677_v56  ;;  %vm18989_vm3 = vcmp.lt.s32.totalorder %v18965_v42, 15  ;;  %v3428_v56 = vsel %vm3236_vm0, %v3172_v54, 0.0  ;;  %vm18993_vm15 = vmmov %vm18981_vm2  ;;  %v18994_v42 = vld [vmem:[#allocation109_spill] sm:$0xff]  ;;  %v18996_v54 = vld [vmem:[#allocation122_spill] sm:$0xff]  ;;  %vm19006_vm9 = vnez %v19005_v31 }
 0x5d6   :  { %v4474_v5 = vpop.f32.mrf.mxu1  ;;  %v6186_v52 = vsel %vm18989_vm3, %v14237_v28, 0.0  ;;  %vm18997_vm3 = vmmov %vm18981_vm2 }
 0x5d7   :  { %v3761_v44 = vpop.f32.mrf.mxu3  ;;  %v4596_v7 = vadd.f32 %v4474_v5, %v3874_v49  ;;  %v14257_v5 = vld [vmem:[#allocation2 + $0x1d7] sm:$0xff] }
 0x5d8   :  { %v3877_v17 = vadd.f32 %v3761_v44, %v18983_v12  ;;  %v5007_v8 = vpop.f32.mrf.mxu2  ;;  %v4678_v44 = vld [vmem:[#allocation2 + $0x1c0] sm:$0xff]  ;;  %v14253_v12 = vpop.f32.mrf.mxu0 }
 0x5d9   :  { %9536 = vmatmul.msk.f32.gmra.mxu1 %vm18988_vm7, %v14155_v0  ;;  %v14249_v59 = vadd.f32 %v5004_v15, %v4596_v7  ;;  %18992 = vst [vmem:[#allocation30_spill] sm:$0xff] %v14253_v12  ;;  %vm18995_vm7 = vnez %v18994_v42  ;;  %v14317_v42 = vld [vmem:[#allocation2 + $0x1ef] sm:$0xff] }
 0x5da   :  { %9730 = vmatmul.msk.f32.gmra.mxu0 %vm18991_vm11, %v6186_v52  ;;  %vm5995_vm0 = vmand %vm17765_vm4, %vm18995_vm7  ;;  %v3173_v52 = vld [vmem:[#allocation2 + $0x1c9] sm:$0xff] }
 0x5db   :  { %18990 = vst [vmem:[#allocation183_spill] sm:$0xff] %v14249_v59  ;;  %vm19001_vm11 = vmmov %vm18981_vm2 }
 0x5dc   :  { %9476 = vmatmul.msk.f32.gmra.mxu3 %vm18981_vm2, %v3428_v56  ;;  %vm19002_vm4 = vmmov %vm18981_vm2 }
 0x5dd   :  { %9602 = vmatmul.msk.f32.gmra.mxu2 %vm18993_vm15, %v4678_v44  ;;  %v6187_v44 = vsel %vm5995_vm0, %v14257_v5, 0.0  ;;  %vm19000_vm15 = vcmp.gt.s32.totalorder %v18999_v20, 0 }
 0x5de   :  { %v4477_v0 = vpop.f32.mrf.mxu1  ;;  %v3429_v12 = vsel %vm19000_vm15, %v3173_v52, 0.0  ;;  %v19007_v52 = vld [vmem:[#allocation114_spill] sm:$0xff]  ;;  %vm19009_vm15 = vmmov %vm18981_vm2 }
 0x5df   :  { %v3764_v49 = vpop.f32.mrf.mxu3  ;;  %v4597_v56 = vadd.f32 %v4477_v0, %v3875_v18  ;;  %v14278_v0 = vld [vmem:[#allocation2 + $0x1df] sm:$0xff]  ;;  %vm19008_vm0 = vcmp.gt.s32.totalorder %v19007_v52, 0 }
 0x5e0   :  { %v3878_v15 = vadd.f32 %v3764_v49, %v18996_v54  ;;  %v5010_v7 = vpop.f32.mrf.mxu2  ;;  %v4679_v49 = vld [vmem:[#allocation2 + $0x1c8] sm:$0xff]  ;;  %v14276_v18 = vpop.f32.mrf.mxu0 }
 0x5e1   :  { %9537 = vmatmul.msk.f32.gmra.mxu1 %vm18997_vm3, %v4147_v13  ;;  %v14269_v59 = vadd.f32 %v5007_v8, %v4597_v56  ;;  %19003 = vst [vmem:[#allocation186_spill] sm:$0xff] %v14276_v18  ;;  %v19004_v13 = vld [vmem:[#allocation131_spill] sm:$0xff]  ;;  %vm3238_vm3 = vmand %vm19008_vm0, %vm19006_vm9 }
 0x5e2   :  { %9731 = vmatmul.msk.f32.gmra.mxu0 %vm19001_vm11, %v6187_v44  ;;  %v3174_v56 = vld [vmem:[#allocation2 + $0x1d1] sm:$0xff]  ;;  %vm19012_vm11 = vmmov %vm18981_vm2 }
 0x5e3   :  { %18998 = vst [vmem:[#allocation185_spill] sm:$0xff] %v14269_v59  ;;  %v3430_v59 = vsel %vm3238_vm3, %v3174_v56, 0.0  ;;  %v19020_v18 = vld [vmem:[#allocation119_spill] sm:$0xff]  ;;  %vm19054_vm9 = vmmov %vm18981_vm2 }
 0x5e4   :  { %9477 = vmatmul.msk.f32.gmra.mxu3 %vm18981_vm2, %v3429_v12  ;;  %vm19021_vm3 = vcmp.gt.s32.totalorder %v19020_v18, 0 }
 0x5e5   :  { %9603 = vmatmul.msk.f32.gmra.mxu2 %vm19002_vm4, %v4679_v49  ;;  %vm19010_vm4 = vcmp.lt.s32.totalorder %v18986_v2, 15 }
 0x5e6   :  { %v4480_v14 = vpop.f32.mrf.mxu1  ;;  %v6188_v12 = vsel %vm19010_vm4, %v14278_v0, 0.0  ;;  %vm19022_vm4 = vmmov %vm18981_vm2 }
 0x5e7   :  { %v3767_v63 = vpop.f32.mrf.mxu3  ;;  %v4598_v44 = vadd.f32 %v4480_v14, %v3876_v25 }
 0x5e8   :  { %v3879_v54 = vadd.f32 %v3767_v63, %v19004_v13  ;;  %v5013_v8 = vpop.f32.mrf.mxu2  ;;  %v4680_v63 = vld [vmem:[#allocation2 + $0x1d0] sm:$0xff]  ;;  %v14296_v13 = vld [vmem:[#allocation2 + $0x1e7] sm:$0xff]  ;;  %v14303_v2 = vpop.f32.mrf.mxu0 }
 0x5e9   :  { %9538 = vmatmul.msk.f32.gmra.mxu1 %vm19009_vm15, %v14196_v23  ;;  %v14290_v49 = vadd.f32 %v5010_v7, %v4598_v44  ;;  %v19014_v23 = vld [vmem:[#allocation120_spill] sm:$0xff]  ;;  %19017 = vst [vmem:[#allocation188_spill] sm:$0xff] %v14303_v2  ;;  %v3176_v2 = vld [vmem:[#allocation2 + $0x1e1] sm:$0xff] }
 0x5ea   :  { %9732 = vmatmul.msk.f32.gmra.mxu0 %vm19012_vm11, %v6188_v12  ;;  %vm19015_vm0 = vnez %v19014_v23  ;;  %v19016_v7 = vld [vmem:[#allocation144_spill] sm:$0xff]  ;;  %vm19023_vm11 = vmmov %vm18981_vm2 }
 0x5eb   :  { %19011 = vst [vmem:[#allocation33_spill] sm:$0xff] %v14290_v49  ;;  %vm5997_vm15 = vmand %vm17769_vm5, %vm19015_vm0  ;;  %v3175_v12 = vld [vmem:[#allocation2 + $0x1d9] sm:$0xff] }
 0x5ec   :  { %9478 = vmatmul.msk.f32.gmra.mxu3 %vm18981_vm2, %v3430_v59  ;;  %v6189_v31 = vsel %vm5997_vm15, %v14296_v13, 0.0  ;;  %v3431_v20 = vsel %vm19021_vm3, %v3175_v12, 0.0  ;;  %vm19030_vm3 = vmmov %vm18981_vm2  ;;  %v14358_v23 = vld [vmem:[#allocation2 + $0x1ff] sm:$0xff] }
 0x5ed   :  { %9604 = vmatmul.msk.f32.gmra.mxu2 %vm19013_vm10, %v4680_v63  ;;  %v4149_v63 = vsel %vm18995_vm7, %v14216_v26, 0.0  ;;  %vm19018_vm10 = vmmov %vm18981_vm2  ;;  %v19024_v26 = vld [vmem:[#allocation156_spill] sm:$0xff] }
 0x5ee   :  { %v4483_v14 = vpop.f32.mrf.mxu1  ;;  %vm19034_vm5 = vmmov %vm18981_vm2 }
 0x5ef   :  { %v3770_v25 = vpop.f32.mrf.mxu3  ;;  %v4599_v59 = vadd.f32 %v4483_v14, %v3877_v17 }
 0x5f0   :  { %v3880_v56 = vadd.f32 %v3770_v25, %v19016_v7  ;;  %v5016_v44 = vpop.f32.mrf.mxu2  ;;  %v4681_v25 = vld [vmem:[#allocation2 + $0x1d8] sm:$0xff] }
 0x5f1   :  { %9539 = vmatmul.msk.f32.gmra.mxu1 %vm19018_vm10, %v4149_v63  ;;  %v14310_v49 = vadd.f32 %v5013_v8, %v4599_v59  ;;  %v19025_v8 = vld [vmem:[#allocation154_spill] sm:$0xff]  ;;  %v19027_v59 = vld [vmem:[#allocation124_spill] sm:$0xff] }
 0x5f2   :  { %9733 = vmatmul.msk.f32.gmra.mxu0 %vm19022_vm4, %v6189_v31  ;;  %vm19026_vm7 = vnez %v19025_v8  ;;  %vm19028_vm15 = vcmp.gt.s32.totalorder %v19027_v59, 0  ;;  %v14324_v31 = vpop.f32.mrf.mxu0  ;;  %vm19031_vm4 = vcmp.lt.s32.totalorder %v19007_v52, 15  ;;  %v14337_v8 = vld [vmem:[#allocation2 + $0x1f7] sm:$0xff] }
 0x5f3   :  { %19019 = vst [vmem:[#allocation37_spill] sm:$0xff] %v14310_v49  ;;  %vm3240_vm10 = vmand %vm19028_vm15, %vm19026_vm7  ;;  %vm17771_vm15 = vcmp.lt.s32.totalorder %v19020_v18, 15  ;;  %v19040_v49 = vld [vmem:[#allocation136_spill] sm:$0xff]  ;;  %v19046_v18 = vld [vmem:[#allocation157_spill] sm:$0xff] }
 0x5f4   :  { %9479 = vmatmul.msk.f32.gmra.mxu3 %vm19023_vm11, %v3431_v20  ;;  %19029 = vst [vmem:[#allocation190_spill] sm:$0xff] %v14324_v31  ;;  %v6190_v20 = vsel %vm19031_vm4, %v14317_v42, 0.0  ;;  %vm19033_vm11 = vmmov %vm18981_vm2  ;;  %vm17775_vm7 = vcmp.lt.s32.totalorder %v19040_v49, 15 }
 0x5f5   :  { %9605 = vmatmul.msk.f32.gmra.mxu2 %vm18981_vm2, %v4681_v25 }
 0x5f6   :  { %v4486_v14 = vpop.f32.mrf.mxu1 }
 0x5f7   :  { %v3773_v17 = vpop.f32.mrf.mxu3  ;;  %v4600_v12 = vadd.f32 %v4486_v14, %v3878_v15 }
 0x5f8   :  { %v3881_v7 = vadd.f32 %v3773_v17, %v19024_v26  ;;  %v5019_v63 = vpop.f32.mrf.mxu2  ;;  %v3432_v17 = vsel %vm3240_vm10, %v3176_v2, 0.0  ;;  %v4682_v26 = vld [vmem:[#allocation2 + $0x1e0] sm:$0xff]  ;;  %vm19038_vm10 = vmmov %vm18981_vm2 }
 0x5f9   :  { %9540 = vmatmul.msk.f32.gmra.mxu1 %vm19030_vm3, %v14237_v28  ;;  %v14331_v25 = vadd.f32 %v5016_v44, %v4600_v12  ;;  %v19035_v28 = vld [vmem:[#allocation137_spill] sm:$0xff]  ;;  %v19037_v44 = vld [vmem:[#allocation164_spill] sm:$0xff] }
 0x5fa   :  { %9734 = vmatmul.msk.f32.gmra.mxu0 %vm19033_vm11, %v6190_v20  ;;  %vm19036_vm3 = vnez %v19035_v28  ;;  %v3177_v20 = vld [vmem:[#allocation2 + $0x1e9] sm:$0xff]  ;;  %vm19042_vm11 = vmmov %vm18981_vm2 }
 0x5fb   :  { %19032 = vst [vmem:[#allocation191_spill] sm:$0xff] %v14331_v25  ;;  %vm5999_vm4 = vmand %vm17771_vm15, %vm19036_vm3 }
 0x5fc   :  { %9480 = vmatmul.msk.f32.gmra.mxu3 %vm18981_vm2, %v3432_v17  ;;  %v4151_v17 = vsel %vm19015_vm0, %v14257_v5, 0.0  ;;  %vm19044_vm15 = vmmov %vm18981_vm2  ;;  %vm19047_vm0 = vnez %v19046_v18  ;;  %v19059_v18 = vld [vmem:[#allocation161_spill] sm:$0xff] }
 0x5fd   :  { %9606 = vmatmul.msk.f32.gmra.mxu2 %vm19034_vm5, %v4682_v26  ;;  %v6191_v26 = vsel %vm5999_vm4, %v14337_v8, 0.0  ;;  %vm19041_vm5 = vcmp.gt.s32.totalorder %v19040_v49, 0 }
 0x5fe   :  { %v4489_v14 = vpop.f32.mrf.mxu1  ;;  %v3433_v31 = vsel %vm19041_vm5, %v3177_v20, 0.0  ;;  %v19048_v20 = vld [vmem:[#allocation149_spill] sm:$0xff]  ;;  %vm19050_vm5 = vmmov %vm18981_vm2 }
 0x5ff   :  { %v3776_v15 = vpop.f32.mrf.mxu3  ;;  %v4601_v52 = vadd.f32 %v4489_v14, %v3879_v54  ;;  %v19045_v14 = vld [vmem:[#allocation166_spill] sm:$0xff]  ;;  %vm19049_vm4 = vcmp.gt.s32.totalorder %v19048_v20, 0 }
 0x600   :  { %v3882_v2 = vadd.f32 %v3776_v15, %v19037_v44  ;;  %v5022_v12 = vpop.f32.mrf.mxu2  ;;  %v4683_v15 = vld [vmem:[#allocation2 + $0x1e8] sm:$0xff]  ;;  %v14355_v44 = vpop.f32.mrf.mxu0 }
 0x601   :  { %9541 = vmatmul.msk.f32.gmra.mxu1 %vm19038_vm10, %v4151_v17  ;;  %v14349_v25 = vadd.f32 %v5019_v63, %v4601_v52  ;;  %19043 = vst [vmem:[#allocation193_spill] sm:$0xff] %v14355_v44  ;;  %v3178_v63 = vld [vmem:[#allocation2 + $0x1f1] sm:$0xff]  ;;  %vm3242_vm10 = vmand %vm19049_vm4, %vm19047_vm0 }
 0x602   :  { %9735 = vmatmul.msk.f32.gmra.mxu0 %vm19042_vm11, %v6191_v26  ;;  %vm19053_vm11 = vmmov %vm18981_vm2 }
 0x603   :  { %19039 = vst [vmem:[#allocation40_spill] sm:$0xff] %v14349_v25  ;;  %v3434_v25 = vsel %vm3242_vm10, %v3178_v63, 0.0 }
 0x604   :  { %9481 = vmatmul.msk.f32.gmra.mxu3 %vm18981_vm2, %v3433_v31 }
 0x605   :  { %9607 = vmatmul.msk.f32.gmra.mxu2 %vm19044_vm15, %v4683_v15  ;;  %vm19051_vm15 = vcmp.lt.s32.totalorder %v19027_v59, 15  ;;  %v19056_v59 = vld [vmem:[#allocation163_spill] sm:$0xff] }
 0x606   :  { %v4492_v5 = vpop.f32.mrf.mxu1  ;;  %v6192_v31 = vsel %vm19051_vm15, %v14358_v23, 0.0  ;;  %vm19057_vm4 = vnez %v19056_v59  ;;  %vm19063_vm15 = vmmov %vm18981_vm2 }
 0x607   :  { %v3779_v54 = vpop.f32.mrf.mxu3  ;;  %v4602_v26 = vadd.f32 %v4492_v5, %v3880_v56  ;;  %vm6001_vm10 = vmand %vm17775_vm7, %vm19057_vm4 }
 0x608   :  { %v3883_v17 = vadd.f32 %v3779_v54, %v19045_v14  ;;  %v5025_v52 = vpop.f32.mrf.mxu2  ;;  %v4684_v54 = vld [vmem:[#allocation2 + $0x1f0] sm:$0xff]  ;;  %v14376_v56 = vpop.f32.mrf.mxu0  ;;  %v14378_v14 = vld [vmem:[#allocation2 + $0x207] sm:$0xff] }
 0x609   :  { %9542 = vmatmul.msk.f32.gmra.mxu1 %vm19050_vm5, %v14278_v0  ;;  %v14370_v15 = vadd.f32 %v5022_v12, %v4602_v26  ;;  %19055 = vst [vmem:[#allocation195_spill] sm:$0xff] %v14376_v56  ;;  %v19058_v12 = vld [vmem:[#allocation168_spill] sm:$0xff]  ;;  %v6193_v56 = vsel %vm6001_vm10, %v14378_v14, 0.0  ;;  %vm19062_vm5 = vcmp.gt.s32.totalorder %v19061_v55, 0 }
 0x60a   :  { %9736 = vmatmul.msk.f32.gmra.mxu0 %vm19053_vm11, %v6192_v31  ;;  %vm19064_vm11 = vmmov %vm18981_vm2 }
 0x60b   :  { %19052 = vst [vmem:[#allocation44_spill] sm:$0xff] %v14370_v15  ;;  %v1352_v15 = vand.u32 15, %v19059_v18  ;;  %v19065_v18 = vmov 0 }
 0x60c   :  { %9482 = vmatmul.msk.f32.gmra.mxu3 %vm18981_vm2, %v3434_v25  ;;  %v3179_v25 = vld [vmem:[#allocation2 + $0x1f9] sm:$0xff] }
 0x60d   :  { %9608 = vmatmul.msk.f32.gmra.mxu2 %vm19054_vm9, %v4684_v54  ;;  %v4153_v54 = vsel %vm19036_vm3, %v14296_v13, 0.0  ;;  %vm19060_vm9 = vmmov %vm18981_vm2  ;;  %v3435_v49 = vsel %vm19062_vm5, %v3179_v25, 0.0  ;;  %vm14398_vm7 = vcmp.lt.s32.totalorder %v1352_v15, 15  ;;  %vm19072_vm5 = vcmp.lt.s32.totalorder %v19048_v20, 15 }
 0x60e   :  { %v4495_v0 = vpop.f32.mrf.mxu1  ;;  %v19066_v18 = vsel %vm14398_vm7, 4294967295, %v19065_v18 }
 0x60f   :  { %v3782_v5 = vpop.f32.mrf.mxu3  ;;  %v4603_v31 = vadd.f32 %v4495_v0, %v3881_v7  ;;  %v4685_v7 = vld [vmem:[#allocation2 + $0x1f8] sm:$0xff]  ;;  %19067 = vst [vmem:[#allocation196_spill] sm:$0xff] %v19066_v18 }
 0x610   :  { %v3884_v63 = vadd.f32 %v3782_v5, %v19058_v12  ;;  %v5028_v26 = vpop.f32.mrf.mxu2  ;;  %v14402_v5 = vld [vmem:[#allocation2 + $0x20f] sm:$0xff]  ;;  %v14409_v25 = vpop.f32.mrf.mxu0 }
 0x611   :  { %9543 = vmatmul.msk.f32.gmra.mxu1 %vm19060_vm9, %v4153_v54  ;;  %v14391_v44 = vadd.f32 %v5025_v52, %v4603_v31  ;;  %v19068_v52 = vld [vmem:[#allocation170_spill] sm:$0xff]  ;;  %vm19071_vm9 = vmmov %vm18981_vm2  ;;  %v6194_v15 = vsel %vm19072_vm5, %v14402_v5, 0.0 }
 0x612   :  { %9737 = vmatmul.msk.f32.gmra.mxu0 %vm19063_vm15, %v6193_v56  ;;  %v3180_v31 = vld [vmem:[#allocation2 + $0x201] sm:$0xff]  ;;  %vm19074_vm15 = vmmov %vm18981_vm2 }
 0x613   :  { %v19069_v56 = vld [vmem:[#allocation165_spill] sm:$0xff] }
 0x614   :  { %9483 = vmatmul.msk.f32.gmra.mxu3 %vm19064_vm11, %v3435_v49  ;;  %vm19070_vm3 = vcmp.gt.s32.totalorder %v19069_v56, 0  ;;  %vm19075_vm11 = vmmov %vm18981_vm2  ;;  %v5155_v56 = vld [vmem:[#allocation2 + $0x19] sm:$0xff] }
 0x615   :  { %9609 = vmatmul.msk.f32.gmra.mxu2 %vm18981_vm2, %v4685_v7  ;;  %vm3244_vm10 = vmand %vm19070_vm3, %vm14398_vm7  ;;  %vm1607_vm2 = vcmp.lt.s32.totalorder %v19061_v55, 15  ;;  %v4687_v55 = vld [vmem:[#allocation2 + $0x208] sm:$0xff] }
 0x616   :  { %v4498_v28 = vpop.f32.mrf.mxu1  ;;  %v3436_v7 = vsel %vm3244_vm10, %v3180_v31, 0.0  ;;  %vm19076_vm3 = vmmov %vm19071_vm9 }
 0x617   :  { %v3785_v13 = vpop.f32.mrf.mxu3  ;;  %v4604_v49 = vadd.f32 %v4498_v28, %v3882_v2  ;;  %vm19080_vm10 = vmmov %vm19076_vm3 }
 0x618   :  { %v3885_v0 = vadd.f32 %v3785_v13, %v19068_v52  ;;  %v5031_v12 = vpop.f32.mrf.mxu2  ;;  %v4686_v13 = vld [vmem:[#allocation2 + $0x200] sm:$0xff]  ;;  %v5939_v52 = vld [vmem:[#allocation2 + $0x217] sm:$0xff]  ;;  %v14433_v18 = vpop.f32.mrf.mxu0 }
 0x619   :  { %9544 = vmatmul.msk.f32.gmra.mxu1 %vm19071_vm9, %v14317_v42  ;;  %v14416_v54 = vadd.f32 %v5028_v26, %v4604_v49  ;;  %v19077_v42 = vld [vmem:[#allocation167_spill] sm:$0xff] }
 0x61a   :  { %9738 = vmatmul.msk.f32.gmra.mxu0 %vm19074_vm15, %v6194_v15  ;;  %vm19078_vm9 = vnez %v19077_v42  ;;  %v19079_v26 = vld [vmem:[#allocation171_spill] sm:$0xff]  ;;  %v4155_v15 = vsel %vm19057_vm4, %v14337_v8, 0.0  ;;  %vm19082_vm15 = vmmov %vm19076_vm3 }
 0x61b   :  { %19073 = vst [vmem:[#allocation47_spill] sm:$0xff] %v14416_v54  ;;  %vm6003_vm5 = vmand %vm1607_vm2, %vm19078_vm9 }
 0x61c   :  { %9484 = vmatmul.msk.f32.gmra.mxu3 %vm19075_vm11, %v3436_v7  ;;  %v6195_v7 = vsel %vm6003_vm5, %v5939_v52, 0.0  ;;  %vm19083_vm11 = vmmov %vm19076_vm3 }
 0x61d   :  { %9610 = vmatmul.msk.f32.gmra.mxu2 %vm19076_vm3, %v4686_v13  ;;  %vm19085_vm4 = vmmov %vm19076_vm3 }
 0x61e   :  { %v4501_v28 = vpop.f32.mrf.mxu1  ;;  %vm19087_vm5 = vmmov %vm19076_vm3 }
 0x61f   :  { %v3788_v2 = vpop.f32.mrf.mxu3  ;;  %v4605_v20 = vadd.f32 %v4501_v28, %v3883_v17  ;;  %v19084_v28 = vld [vmem:[#allocation173_spill] sm:$0xff] }
 0x620   :  { %v3886_v49 = vadd.f32 %v3788_v2, %v19079_v26  ;;  %v5034_v31 = vpop.f32.mrf.mxu2  ;;  %v5156_v26 = vld [vmem:[#allocation2 + $0x21] sm:$0xff] }
 0x621   :  { %9545 = vmatmul.msk.f32.gmra.mxu1 %vm19080_vm10, %v4155_v15  ;;  %v14431_v13 = vadd.f32 %v5031_v12, %v4605_v20  ;;  %v5348_v52 = vsel %vm13026_vm8, %v5156_v26, 0.0  ;;  %vm19088_vm10 = vmmov %vm19076_vm3  ;;  %v19103_v12 = vld [vmem:[#allocation179_spill] sm:$0xff] }
 0x622   :  { %9739 = vmatmul.msk.f32.gmra.mxu0 %vm19082_vm15, %v6195_v7  ;;  %v4688_v7 = vld [vmem:[#allocation2 + $0x210] sm:$0xff]  ;;  %vm19090_vm15 = vmmov %vm19076_vm3 }
 0x623   :  { %19081 = vst [vmem:[#allocation198_spill] sm:$0xff] %v14431_v13  ;;  %v19089_v13 = vld [vmem:[#allocation174_spill] sm:$0xff] }
 0x624   :  { %9613 = vmatmul.msk.f32.vlgmr.msra.gmra.mxu3 %vm19083_vm11, %v5155_v56  ;;  %vm19092_vm11 = vmmov %vm19076_vm3 }
 0x625   :  { %9611 = vmatmul.msk.f32.gmra.mxu2 %vm19076_vm3, %v4687_v55 }
 0x626   :  { %v4504_v2 = vpop.f32.mrf.mxu1 }
 0x627   :  { %v3791_v17 = vpop.f32.mrf.mxu3  ;;  %v4606_v15 = vadd.f32 %v4504_v2, %v3884_v63  ;;  %v5157_v63 = vld [vmem:[#allocation2 + $0x29] sm:$0xff]  ;;  %v19093_v2 = vld [vmem:[#allocation20_spill] sm:$0xff] }
 0x628   :  { %v3887_v59 = vadd.f32 %v3791_v17, %v19084_v28  ;;  %v5037_v8 = vpop.f32.mrf.mxu2  ;;  %vm19094_vm3 = vcmp.lt.s32.totalorder %v19093_v2, 15 }
 0x629   :  { %9546 = vmatmul.msk.f32.gmra.mxu1 %vm19085_vm4, %v14358_v23  ;;  %v14441_v20 = vadd.f32 %v5034_v31, %v4606_v15  ;;  %v4157_v23 = vsel %vm19078_vm9, %v14378_v14, 0.0  ;;  %v7641_v26 = vsel %vm19094_vm3, %v5157_v63, 0.0  ;;  %v19096_v14 = vld [vmem:[#allocation22_spill] sm:$0xff] }
 0x62a   :  { %vm19097_vm9 = vcmp.lt.s32.totalorder %v19096_v14, 15 }
 0x62c   :  { %9614 = vmatmul.msk.f32.gmra.mxu3 %vm19087_vm5, %v5348_v52  ;;  %v19095_v52 = vld [vmem:[#allocation177_spill] sm:$0xff]  ;;  %vm7450_vm5 = vmand %vm19097_vm9, %vm13026_vm8 }
 0x62d   :  { %9612 = vmatmul.msk.f32.gmra.mxu2 %vm19088_vm10, %v4688_v7  ;;  %vm19098_vm10 = vmmov %vm19085_vm4 }
 0x62e   :  { %v4507_v56 = vpop.f32.mrf.mxu1  ;;  %vm19104_vm8 = vmmov %vm19094_vm3 }
 0x62f   :  { %v3794_v55 = vpop.f32.mrf.mxu3  ;;  %v4607_v54 = vadd.f32 %v4507_v56, %v3885_v0  ;;  %vm19105_vm3 = vmmov %vm19085_vm4 }
 0x630   :  { %v3888_v17 = vadd.f32 %v3794_v55, %v19089_v13  ;;  %v5040_v28 = vpop.f32.mrf.mxu2  ;;  %v5158_v55 = vld [vmem:[#allocation2 + $0x31] sm:$0xff] }
 0x631   :  { %9547 = vmatmul.msk.f32.gmra.mxu1 %vm19090_vm15, %v4157_v23  ;;  %v14452_v31 = vadd.f32 %v5037_v8, %v4607_v54  ;;  %v5350_v8 = vsel %vm13084_vm14, %v5158_v55, 0.0  ;;  %vm19101_vm15 = vmmov %vm19085_vm4  ;;  %v6663_v23 = vld [vmem:[#allocation2 + $0x28] sm:$0xff] }
 0x633   :  { %19091 = vst [vmem:[#allocation51_spill] sm:$0xff] %v14452_v31  ;;  %v5159_v31 = vld [vmem:[#allocation2 + $0x39] sm:$0xff] }
 0x634   :  { %9615 = vmatmul.msk.f32.gmra.mxu3 %vm19092_vm11, %v5157_v63  ;;  %v7642_v63 = vsel %vm7450_vm5, %v5158_v55, 0.0  ;;  %vm19102_vm11 = vmmov %vm19085_vm4  ;;  %v19108_v55 = vld [vmem:[#allocation23_spill] sm:$0xff] }
 0x635   :  { %9805 = vmatmul.msk.f32.vlgmr.msra.gmra.mxu2 %vm19085_vm4, %v7641_v26  ;;  %vm19107_vm4 = vmmov %vm19105_vm3  ;;  %vm19109_vm9 = vcmp.lt.s32.totalorder %v19108_v55, 15 }
 0x636   :  { %v4510_v13 = vpop.f32.mrf.mxu1  ;;  %vm19110_vm5 = vmmov %vm19105_vm3 }
 0x637   :  { %v3797_v15 = vpop.f32.mrf.mxu3  ;;  %v4608_v56 = vadd.f32 %v4510_v13, %v3886_v49 }
 0x638   :  { %v3889_v0 = vadd.f32 %v3797_v15, %v19095_v52  ;;  %v5043_v7 = vpop.f32.mrf.mxu2 }
 0x639   :  { %9548 = vmatmul.msk.f32.gmra.mxu1 %vm19098_vm10, %v14402_v5  ;;  %v14465_v54 = vadd.f32 %v5040_v28, %v4608_v56  ;;  %v6855_v5 = vsel %vm19104_vm8, %v6663_v23, 0.0  ;;  %v7643_v56 = vsel %vm19109_vm9, %v5159_v31, 0.0  ;;  %v19112_v23 = vld [vmem:[#allocation16_spill] sm:$0xff]  ;;  %vm19115_vm8 = vmmov %vm19105_vm3 }
 0x63a   :  { %vm19113_vm10 = vcmp.lt.s32.totalorder %v19112_v23, 15 }
 0x63b   :  { %19099 = vst [vmem:[#allocation200_spill] sm:$0xff] %v14465_v54  ;;  %v5160_v54 = vld [vmem:[#allocation2 + $0x41] sm:$0xff] }
 0x63c   :  { %9616 = vmatmul.msk.f32.gmra.mxu3 %vm19101_vm15, %v5350_v8  ;;  %v6664_v8 = vld [vmem:[#allocation2 + $0x30] sm:$0xff]  ;;  %vm7452_vm15 = vmand %vm19113_vm10, %vm13084_vm14 }
 0x63d   :  { %9806 = vmatmul.msk.f32.gmra.mxu2 %vm19102_vm11, %v7642_v63  ;;  %vm19114_vm11 = vcmp.lt.s32.totalorder %v19096_v14, 15  ;;  %vm19120_vm14 = vmmov %vm19109_vm9 }
 0x63e   :  { %v4513_v26 = vpop.f32.mrf.mxu1  ;;  %vm19121_vm9 = vmmov %vm19105_vm3 }
 0x63f   :  { %v3800_v49 = vpop.f32.mrf.mxu3  ;;  %v4609_v52 = vadd.f32 %v4513_v26, %v3887_v59 }
 0x640   :  { %v3890_v15 = vadd.f32 %v3800_v49, %v19103_v12  ;;  %v5046_v13 = vpop.f32.mrf.mxu2  ;;  %v19111_v12 = vld [vmem:[#allocation182_spill] sm:$0xff] }
 0x641   :  { %9741 = vmatmul.msk.f32.vlgmr.msra.gmra.mxu1 %vm19105_vm3, %v6855_v5  ;;  %v14475_v28 = vadd.f32 %v5043_v7, %v4609_v52  ;;  %v6856_v7 = vsel %vm19114_vm11, %v6664_v8, 0.0  ;;  %v5352_v5 = vsel %vm13133_vm1, %v5160_v54, 0.0  ;;  %v5161_v8 = vld [vmem:[#allocation2 + $0x49] sm:$0xff] }
 0x643   :  { %19106 = vst [vmem:[#allocation201_spill] sm:$0xff] %v14475_v28 }
 0x644   :  { %9617 = vmatmul.msk.f32.gmra.mxu3 %vm19107_vm4, %v5159_v31  ;;  %vm19118_vm4 = vmmov %vm19105_vm3 }
 0x645   :  { %9807 = vmatmul.msk.f32.gmra.mxu2 %vm19110_vm5, %v7643_v56  ;;  %v7644_v56 = vsel %vm7452_vm15, %v5160_v54, 0.0  ;;  %vm19123_vm5 = vmmov %vm19105_vm3  ;;  %v19124_v54 = vld [vmem:[#allocation26_spill] sm:$0xff] }
 0x646   :  { %v4516_v49 = vpop.f32.mrf.mxu1  ;;  %vm19125_vm10 = vcmp.lt.s32.totalorder %v19124_v54, 15  ;;  %vm19126_vm15 = vmmov %vm19105_vm3 }
 0x647   :  { %v3803_v63 = vpop.f32.mrf.mxu3  ;;  %v4610_v2 = vadd.f32 %v4516_v49, %v3888_v17  ;;  %v6665_v17 = vld [vmem:[#allocation2 + $0x38] sm:$0xff] }
 0x648   :  { %v3891_v59 = vadd.f32 %v3803_v63, %v19111_v12  ;;  %v5049_v26 = vpop.f32.mrf.mxu2  ;;  %v19119_v49 = vld [vmem:[#allocation184_spill] sm:$0xff] }
 0x649   :  { %9742 = vmatmul.msk.f32.gmra.mxu1 %vm19115_vm8, %v6856_v7  ;;  %v14489_v31 = vadd.f32 %v5046_v13, %v4610_v2  ;;  %v6857_v13 = vsel %vm19120_vm14, %v6665_v17, 0.0  ;;  %v7645_v7 = vsel %vm19125_vm10, %v5161_v8, 0.0  ;;  %v19128_v17 = vld [vmem:[#allocation5_spill] sm:$0xff]  ;;  %vm19133_vm14 = vmmov %vm19118_vm4 }
 0x64a   :  { %vm19129_vm11 = vcmp.lt.s32.totalorder %v19128_v17, 15 }
 0x64b   :  { %19116 = vst [vmem:[#allocation54_spill] sm:$0xff] %v14489_v31  ;;  %v5162_v31 = vld [vmem:[#allocation2 + $0x51] sm:$0xff]  ;;  %vm7454_vm8 = vmand %vm19129_vm11, %vm13133_vm1 }
 0x64c   :  { %9618 = vmatmul.msk.f32.gmra.mxu3 %vm19105_vm3, %v5352_v5  ;;  %v6666_v5 = vld [vmem:[#allocation2 + $0x40] sm:$0xff]  ;;  %vm19130_vm3 = vcmp.lt.s32.totalorder %v19112_v23, 15  ;;  %vm19136_vm1 = vmmov %vm19125_vm10 }
 0x64d   :  { %9808 = vmatmul.msk.f32.gmra.mxu2 %vm19118_vm4, %v7644_v56  ;;  %vm19139_vm10 = vmmov %vm19118_vm4 }
 0x64e   :  { %v4519_v63 = vpop.f32.mrf.mxu1  ;;  %vm19142_vm11 = vmmov %vm19118_vm4 }
 0x64f   :  { %v3806_v42 = vpop.f32.mrf.mxu3  ;;  %v4611_v14 = vadd.f32 %v4519_v63, %v3889_v0 }
 0x650   :  { %v3892_v12 = vadd.f32 %v3806_v42, %v19119_v49  ;;  %v5052_v28 = vpop.f32.mrf.mxu2  ;;  %v19127_v49 = vld [vmem:[#allocation187_spill] sm:$0xff] }
 0x651   :  { %9743 = vmatmul.msk.f32.gmra.mxu1 %vm19121_vm9, %v6857_v13  ;;  %v14499_v2 = vadd.f32 %v5049_v26, %v4611_v14  ;;  %v6858_v26 = vsel %vm19130_vm3, %v6666_v5, 0.0  ;;  %v5354_v13 = vsel %vm13181_vm12, %v5162_v31, 0.0  ;;  %vm19134_vm9 = vmmov %vm19118_vm4  ;;  %v5163_v5 = vld [vmem:[#allocation2 + $0x59] sm:$0xff] }
 0x653   :  { %19122 = vst [vmem:[#allocation203_spill] sm:$0xff] %v14499_v2 }
 0x654   :  { %9619 = vmatmul.msk.f32.gmra.mxu3 %vm19123_vm5, %v5161_v8  ;;  %vm19137_vm5 = vmmov %vm19118_vm4 }
 0x655   :  { %9809 = vmatmul.msk.f32.gmra.mxu2 %vm19126_vm15, %v7645_v7  ;;  %v7646_v7 = vsel %vm7454_vm8, %v5162_v31, 0.0  ;;  %v19140_v31 = vld [vmem:[#allocation7_spill] sm:$0xff] }
 0x656   :  { %v4522_v42 = vpop.f32.mrf.mxu1  ;;  %vm19141_vm15 = vcmp.lt.s32.totalorder %v19140_v31, 15 }
 0x657   :  { %v3809_v56 = vpop.f32.mrf.mxu3  ;;  %v4612_v55 = vadd.f32 %v4522_v42, %v3890_v15  ;;  %v6667_v15 = vld [vmem:[#allocation2 + $0x48] sm:$0xff]  ;;  %v19135_v42 = vld [vmem:[#allocation189_spill] sm:$0xff] }
 0x658   :  { %v3893_v0 = vadd.f32 %v3809_v56, %v19127_v49  ;;  %v5055_v63 = vpop.f32.mrf.mxu2 }
 0x659   :  { %9744 = vmatmul.msk.f32.gmra.mxu1 %vm19118_vm4, %v6858_v26  ;;  %v14513_v14 = vadd.f32 %v5052_v28, %v4612_v55  ;;  %v6859_v28 = vsel %vm19136_vm1, %v6667_v15, 0.0  ;;  %v7647_v26 = vsel %vm19141_vm15, %v5163_v5, 0.0  ;;  %v19144_v15 = vld [vmem:[#allocation31_spill] sm:$0xff]  ;;  %vm19146_vm4 = vcmp.lt.s32.totalorder %v19128_v17, 15  ;;  %vm19151_vm1 = vmmov %vm19137_vm5 }
 0x65a   :  { %vm19145_vm8 = vcmp.lt.s32.totalorder %v19144_v15, 15 }
 0x65b   :  { %19131 = vst [vmem:[#allocation57_spill] sm:$0xff] %v14513_v14  ;;  %v5164_v14 = vld [vmem:[#allocation2 + $0x61] sm:$0xff]  ;;  %vm7456_vm3 = vmand %vm19145_vm8, %vm13181_vm12 }
 0x65c   :  { %9620 = vmatmul.msk.f32.gmra.mxu3 %vm19133_vm14, %v5354_v13  ;;  %v6668_v13 = vld [vmem:[#allocation2 + $0x50] sm:$0xff]  ;;  %vm19147_vm14 = vmmov %vm19137_vm5 }
 0x65d   :  { %9810 = vmatmul.msk.f32.gmra.mxu2 %vm19134_vm9, %v7646_v7  ;;  %vm19154_vm12 = vmmov %vm19141_vm15 }
 0x65e   :  { %v4525_v56 = vpop.f32.mrf.mxu1  ;;  %vm19157_vm15 = vmmov %vm19151_vm1 }
 0x65f   :  { %v3812_v52 = vpop.f32.mrf.mxu3  ;;  %v4613_v23 = vadd.f32 %v4525_v56, %v3891_v59  ;;  %vm19160_vm8 = vmmov %vm19151_vm1 }
 0x660   :  { %v3894_v49 = vadd.f32 %v3812_v52, %v19135_v42  ;;  %v5058_v2 = vpop.f32.mrf.mxu2  ;;  %v19143_v42 = vld [vmem:[#allocation192_spill] sm:$0xff] }
 0x661   :  { %9745 = vmatmul.msk.f32.gmra.mxu1 %vm19137_vm5, %v6859_v28  ;;  %v14523_v55 = vadd.f32 %v5055_v63, %v4613_v23  ;;  %v6860_v63 = vsel %vm19146_vm4, %v6668_v13, 0.0  ;;  %vm19152_vm5 = vmmov %vm19151_vm1  ;;  %v5165_v13 = vld [vmem:[#allocation2 + $0x69] sm:$0xff] }
 0x663   :  { %19138 = vst [vmem:[#allocation205_spill] sm:$0xff] %v14523_v55 }
 0x664   :  { %9621 = vmatmul.msk.f32.gmra.mxu3 %vm19139_vm10, %v5163_v5  ;;  %v19149_v5 = vld [vmem:[#allocation35_spill] sm:$0xff]  ;;  %vm19155_vm10 = vmmov %vm19151_vm1 }
 0x665   :  { %9811 = vmatmul.msk.f32.gmra.mxu2 %vm19142_vm11, %v7647_v26  ;;  %vm19150_vm9 = vnez %v19149_v5  ;;  %v7648_v26 = vsel %vm7456_vm3, %v5164_v14, 0.0 }
 0x666   :  { %v4528_v52 = vpop.f32.mrf.mxu1  ;;  %v5356_v28 = vsel %vm19150_vm9, %v5164_v14, 0.0  ;;  %v19158_v14 = vld [vmem:[#allocation34_spill] sm:$0xff] }
 0x667   :  { %v3815_v7 = vpop.f32.mrf.mxu3  ;;  %v4614_v54 = vadd.f32 %v4528_v52, %v3892_v12  ;;  %v6669_v12 = vld [vmem:[#allocation2 + $0x58] sm:$0xff]  ;;  %v19153_v52 = vld [vmem:[#allocation194_spill] sm:$0xff]  ;;  %vm19159_vm11 = vcmp.lt.s32.totalorder %v19158_v14, 15 }
 0x668   :  { %v3895_v59 = vadd.f32 %v3815_v7, %v19143_v42  ;;  %v5061_v56 = vpop.f32.mrf.mxu2 }
 0x669   :  { %9746 = vmatmul.msk.f32.gmra.mxu1 %vm19147_vm14, %v6860_v63  ;;  %v14537_v23 = vadd.f32 %v5058_v2, %v4614_v54  ;;  %v6861_v2 = vsel %vm19154_vm12, %v6669_v12, 0.0  ;;  %v7649_v63 = vsel %vm19159_vm11, %v5165_v13, 0.0  ;;  %v19162_v12 = vld [vmem:[#allocation38_spill] sm:$0xff]  ;;  %vm19164_vm14 = vcmp.lt.s32.totalorder %v19144_v15, 15  ;;  %vm19168_vm12 = vmmov %vm19151_vm1 }
 0x66a   :  { %vm19163_vm3 = vcmp.lt.s32.totalorder %v19162_v12, 15 }
 0x66b   :  { %19148 = vst [vmem:[#allocation206_spill] sm:$0xff] %v14537_v23  ;;  %v5166_v23 = vld [vmem:[#allocation2 + $0x71] sm:$0xff]  ;;  %vm7458_vm4 = vmand %vm19163_vm3, %vm19150_vm9 }
 0x66c   :  { %9622 = vmatmul.msk.f32.gmra.mxu3 %vm19151_vm1, %v5356_v28  ;;  %v6670_v28 = vld [vmem:[#allocation2 + $0x60] sm:$0xff]  ;;  %vm19171_vm9 = vmmov %vm19159_vm11 }
 0x66d   :  { %9812 = vmatmul.msk.f32.gmra.mxu2 %vm19152_vm5, %v7648_v26  ;;  %vm19174_vm11 = vmmov %vm19151_vm1 }
 0x66e   :  { %v4531_v7 = vpop.f32.mrf.mxu1  ;;  %vm19177_vm3 = vmmov %vm19151_vm1 }
 0x66f   :  { %v3818_v8 = vpop.f32.mrf.mxu3  ;;  %v4615_v17 = vadd.f32 %v4531_v7, %v3893_v0 }
 0x670   :  { %v3896_v42 = vadd.f32 %v3818_v8, %v19153_v52  ;;  %v5064_v55 = vpop.f32.mrf.mxu2  ;;  %v19161_v52 = vld [vmem:[#allocation197_spill] sm:$0xff] }
 0x671   :  { %9747 = vmatmul.msk.f32.gmra.mxu1 %vm19155_vm10, %v6861_v2  ;;  %v14547_v54 = vadd.f32 %v5061_v56, %v4615_v17  ;;  %v6862_v56 = vsel %vm19164_vm14, %v6670_v28, 0.0  ;;  %vm19169_vm10 = vmmov %vm19151_vm1  ;;  %v5167_v28 = vld [vmem:[#allocation2 + $0x79] sm:$0xff] }
 0x673   :  { %19156 = vst [vmem:[#allocation62_spill] sm:$0xff] %v14547_v54 }
 0x674   :  { %9623 = vmatmul.msk.f32.gmra.mxu3 %vm19157_vm15, %v5165_v13  ;;  %v19166_v13 = vld [vmem:[#allocation42_spill] sm:$0xff]  ;;  %vm19172_vm15 = vmmov %vm19151_vm1 }
 0x675   :  { %9813 = vmatmul.msk.f32.gmra.mxu2 %vm19160_vm8, %v7649_v63  ;;  %vm19167_vm5 = vnez %v19166_v13  ;;  %v7650_v63 = vsel %vm7458_vm4, %v5166_v23, 0.0 }
 0x676   :  { %v4534_v8 = vpop.f32.mrf.mxu1  ;;  %v5358_v2 = vsel %vm19167_vm5, %v5166_v23, 0.0  ;;  %v19175_v23 = vld [vmem:[#allocation41_spill] sm:$0xff] }
 0x677   :  { %v3821_v26 = vpop.f32.mrf.mxu3  ;;  %v4616_v31 = vadd.f32 %v4534_v8, %v3894_v49  ;;  %v6671_v49 = vld [vmem:[#allocation2 + $0x68] sm:$0xff]  ;;  %v19170_v8 = vld [vmem:[#allocation199_spill] sm:$0xff]  ;;  %vm19176_vm8 = vcmp.lt.s32.totalorder %v19175_v23, 15 }
 0x678   :  { %v3897_v0 = vadd.f32 %v3821_v26, %v19161_v52  ;;  %v5067_v7 = vpop.f32.mrf.mxu2 }
 0x679   :  { %9748 = vmatmul.msk.f32.gmra.mxu1 %vm19151_vm1, %v6862_v56  ;;  %v14561_v17 = vadd.f32 %v5064_v55, %v4616_v31  ;;  %v6863_v55 = vsel %vm19171_vm9, %v6671_v49, 0.0  ;;  %v7651_v56 = vsel %vm19176_vm8, %v5167_v28, 0.0  ;;  %v19179_v49 = vld [vmem:[#allocation45_spill] sm:$0xff]  ;;  %vm19181_vm1 = vcmp.lt.s32.totalorder %v19162_v12, 15  ;;  %vm19186_vm9 = vmmov %vm19177_vm3 }
 0x67a   :  { %vm19180_vm4 = vcmp.lt.s32.totalorder %v19179_v49, 15 }
 0x67b   :  { %19165 = vst [vmem:[#allocation87_spill] sm:$0xff] %v14561_v17  ;;  %v5168_v17 = vld [vmem:[#allocation2 + $0x81] sm:$0xff]  ;;  %vm7460_vm14 = vmand %vm19180_vm4, %vm19167_vm5 }
 0x67c   :  { %9624 = vmatmul.msk.f32.gmra.mxu3 %vm19168_vm12, %v5358_v2  ;;  %v6672_v2 = vld [vmem:[#allocation2 + $0x70] sm:$0xff]  ;;  %vm19182_vm12 = vmmov %vm19177_vm3 }
 0x67d   :  { %9814 = vmatmul.msk.f32.gmra.mxu2 %vm19169_vm10, %v7650_v63  ;;  %vm19189_vm5 = vmmov %vm19176_vm8 }
 0x67e   :  { %v4537_v26 = vpop.f32.mrf.mxu1  ;;  %vm19192_vm8 = vmmov %vm19177_vm3 }
 0x67f   :  { %v3824_v5 = vpop.f32.mrf.mxu3  ;;  %v4617_v15 = vadd.f32 %v4537_v26, %v3895_v59  ;;  %vm19195_vm4 = vmmov %vm19192_vm8 }
 0x680   :  { %v3898_v52 = vadd.f32 %v3824_v5, %v19170_v8  ;;  %v5070_v54 = vpop.f32.mrf.mxu2  ;;  %v19178_v8 = vld [vmem:[#allocation202_spill] sm:$0xff] }
 0x681   :  { %9749 = vmatmul.msk.f32.gmra.mxu1 %vm19172_vm15, %v6863_v55  ;;  %v14571_v31 = vadd.f32 %v5067_v7, %v4617_v15  ;;  %v6864_v7 = vsel %vm19181_vm1, %v6672_v2, 0.0  ;;  %vm19187_vm15 = vmmov %vm19177_vm3  ;;  %v5169_v2 = vld [vmem:[#allocation2 + $0x89] sm:$0xff] }
 0x683   :  { %19173 = vst [vmem:[#allocation208_spill] sm:$0xff] %v14571_v31 }
 0x684   :  { %9625 = vmatmul.msk.f32.gmra.mxu3 %vm19174_vm11, %v5167_v28  ;;  %v19184_v28 = vld [vmem:[#allocation49_spill] sm:$0xff]  ;;  %vm19190_vm11 = vmmov %vm19177_vm3 }
 0x685   :  { %9815 = vmatmul.msk.f32.gmra.mxu2 %vm19177_vm3, %v7651_v56  ;;  %vm19185_vm10 = vnez %v19184_v28  ;;  %v7652_v56 = vsel %vm7460_vm14, %v5168_v17, 0.0 }
 0x686   :  { %v4540_v5 = vpop.f32.mrf.mxu1  ;;  %v5360_v55 = vsel %vm19185_vm10, %v5168_v17, 0.0  ;;  %v19193_v17 = vld [vmem:[#allocation48_spill] sm:$0xff] }
 0x687   :  { %v3827_v63 = vpop.f32.mrf.mxu3  ;;  %v4618_v14 = vadd.f32 %v4540_v5, %v3896_v42  ;;  %v6673_v42 = vld [vmem:[#allocation2 + $0x78] sm:$0xff]  ;;  %vm19194_vm3 = vcmp.lt.s32.totalorder %v19193_v17, 15 }
 0x688   :  { %v3899_v59 = vadd.f32 %v3827_v63, %v19178_v8  ;;  %v5073_v26 = vpop.f32.mrf.mxu2  ;;  %v19188_v5 = vld [vmem:[#allocation204_spill] sm:$0xff] }
 0x689   :  { %9750 = vmatmul.msk.f32.gmra.mxu1 %vm19182_vm12, %v6864_v7  ;;  %v14585_v15 = vadd.f32 %v5070_v54, %v4618_v14  ;;  %v6865_v54 = vsel %vm19189_vm5, %v6673_v42, 0.0  ;;  %v7653_v7 = vsel %vm19194_vm3, %v5169_v2, 0.0  ;;  %v19197_v42 = vld [vmem:[#allocation52_spill] sm:$0xff]  ;;  %vm19199_vm12 = vcmp.lt.s32.totalorder %v19179_v49, 15  ;;  %vm19204_vm5 = vmmov %vm19195_vm4 }
 0x68a   :  { %vm19198_vm14 = vcmp.lt.s32.totalorder %v19197_v42, 15 }
 0x68b   :  { %19183 = vst [vmem:[#allocation64_spill] sm:$0xff] %v14585_v15  ;;  %v5170_v15 = vld [vmem:[#allocation2 + $0x91] sm:$0xff]  ;;  %vm7462_vm1 = vmand %vm19198_vm14, %vm19185_vm10 }
 0x68c   :  { %9626 = vmatmul.msk.f32.gmra.mxu3 %vm19186_vm9, %v5360_v55  ;;  %v6674_v55 = vld [vmem:[#allocation2 + $0x80] sm:$0xff]  ;;  %vm19200_vm9 = vmmov %vm19195_vm4 }
 0x68d   :  { %9816 = vmatmul.msk.f32.gmra.mxu2 %vm19187_vm15, %v7652_v56  ;;  %vm19207_vm10 = vmmov %vm19194_vm3 }
 0x68e   :  { %v4543_v63 = vpop.f32.mrf.mxu1  ;;  %vm19210_vm3 = vmmov %vm19195_vm4 }
 0x68f   :  { %v3830_v13 = vpop.f32.mrf.mxu3  ;;  %v4619_v12 = vadd.f32 %v4543_v63, %v3897_v0  ;;  %vm19213_vm14 = vmmov %vm19210_vm3 }
 0x690   :  { %v3900_v8 = vadd.f32 %v3830_v13, %v19188_v5  ;;  %v5076_v31 = vpop.f32.mrf.mxu2  ;;  %v19196_v5 = vld [vmem:[#allocation207_spill] sm:$0xff] }
 0x691   :  { %9751 = vmatmul.msk.f32.gmra.mxu1 %vm19190_vm11, %v6865_v54  ;;  %v14595_v14 = vadd.f32 %v5073_v26, %v4619_v12  ;;  %v6866_v26 = vsel %vm19199_vm12, %v6674_v55, 0.0  ;;  %vm19205_vm11 = vmmov %vm19195_vm4  ;;  %v5171_v55 = vld [vmem:[#allocation2 + $0x99] sm:$0xff] }
 0x693   :  { %19191 = vst [vmem:[#allocation93_spill] sm:$0xff] %v14595_v14 }
 0x694   :  { %9627 = vmatmul.msk.f32.gmra.mxu3 %vm19192_vm8, %v5169_v2  ;;  %v19202_v2 = vld [vmem:[#allocation56_spill] sm:$0xff]  ;;  %vm19208_vm8 = vmmov %vm19195_vm4 }
 0x695   :  { %9817 = vmatmul.msk.f32.gmra.mxu2 %vm19195_vm4, %v7653_v7  ;;  %vm19203_vm15 = vnez %v19202_v2  ;;  %v7654_v7 = vsel %vm7462_vm1, %v5170_v15, 0.0 }
 0x696   :  { %v4546_v13 = vpop.f32.mrf.mxu1  ;;  %v5362_v54 = vsel %vm19203_vm15, %v5170_v15, 0.0  ;;  %v19211_v15 = vld [vmem:[#allocation55_spill] sm:$0xff] }
 0x697   :  { %v3833_v56 = vpop.f32.mrf.mxu3  ;;  %v4620_v23 = vadd.f32 %v4546_v13, %v3898_v52  ;;  %v6675_v52 = vld [vmem:[#allocation2 + $0x88] sm:$0xff]  ;;  %v19206_v13 = vld [vmem:[#allocation209_spill] sm:$0xff]  ;;  %vm19212_vm4 = vcmp.lt.s32.totalorder %v19211_v15, 15 }
 0x698   :  { %v3901_v0 = vadd.f32 %v3833_v56, %v19196_v5  ;;  %v5079_v63 = vpop.f32.mrf.mxu2 }
 0x699   :  { %9752 = vmatmul.msk.f32.gmra.mxu1 %vm19200_vm9, %v6866_v26  ;;  %v14609_v12 = vadd.f32 %v5076_v31, %v4620_v23  ;;  %v6867_v31 = vsel %vm19207_vm10, %v6675_v52, 0.0  ;;  %v7655_v26 = vsel %vm19212_vm4, %v5171_v55, 0.0  ;;  %v19214_v52 = vld [vmem:[#allocation59_spill] sm:$0xff]  ;;  %vm19216_vm9 = vcmp.lt.s32.totalorder %v19197_v42, 15  ;;  %vm19221_vm10 = vmmov %vm19210_vm3 }
 0x69a   :  { %vm19215_vm1 = vcmp.lt.s32.totalorder %v19214_v52, 15 }
 0x69b   :  { %19201 = vst [vmem:[#allocation210_spill] sm:$0xff] %v14609_v12  ;;  %vm7464_vm12 = vmand %vm19215_vm1, %vm19203_vm15  ;;  %v19575_v12 = vld [vmem:[#allocation155_spill] sm:$0xff] }
 0x69c   :  { %9628 = vmatmul.msk.f32.gmra.mxu3 %vm19204_vm5, %v5362_v54  ;;  %v6676_v54 = vld [vmem:[#allocation2 + $0x90] sm:$0xff]  ;;  %vm19217_vm5 = vmmov %vm19210_vm3 }
 0x69d   :  { %9818 = vmatmul.msk.f32.gmra.mxu2 %vm19205_vm11, %v7654_v7  ;;  %vm19223_vm15 = vmmov %vm19212_vm4 }
 0x69e   :  { %v4549_v56 = vpop.f32.mrf.mxu1  ;;  %vm19225_vm4 = vmmov %vm19210_vm3 }
 0x69f   :  { %v3836_v28 = vpop.f32.mrf.mxu3  ;;  %v4621_v49 = vadd.f32 %v4549_v56, %v3899_v59  ;;  %v5172_v56 = vld [vmem:[#allocation2 + $0xa1] sm:$0xff]  ;;  %vm19228_vm1 = vmmov %vm19210_vm3 }
 0x6a0   :  { %v3902_v5 = vadd.f32 %v3836_v28, %v19206_v13  ;;  %v5082_v14 = vpop.f32.mrf.mxu2 }
 0x6a1   :  { %9753 = vmatmul.msk.f32.gmra.mxu1 %vm19208_vm8, %v6867_v31  ;;  %v14619_v23 = vadd.f32 %v5079_v63, %v4621_v49  ;;  %v6868_v63 = vsel %vm19216_vm9, %v6676_v54, 0.0  ;;  %vm19222_vm8 = vmmov %vm19210_vm3  ;;  %v5173_v54 = vld [vmem:[#allocation2 + $0xa9] sm:$0xff] }
 0x6a3   :  { %19209 = vst [vmem:[#allocation78_spill] sm:$0xff] %v14619_v23  ;;  %v19572_v23 = vld [vmem:[#allocation153_spill] sm:$0xff] }
 0x6a4   :  { %9629 = vmatmul.msk.f32.gmra.mxu3 %vm19210_vm3, %v5171_v55  ;;  %v19219_v55 = vld [vmem:[#allocation66_spill] sm:$0xff] }
 0x6a5   :  { %9819 = vmatmul.msk.f32.gmra.mxu2 %vm19213_vm14, %v7655_v26  ;;  %vm19220_vm11 = vnez %v19219_v55 }
 0x6a6   :  { %v4552_v28 = vpop.f32.mrf.mxu1  ;;  %v5364_v31 = vsel %vm19220_vm11, %v5172_v56, 0.0 }
 0x6a7   :  { %v5621_v7 = vpop.f32.mrf.mxu3  ;;  %v4622_v17 = vadd.f32 %v4552_v28, %v3900_v8  ;;  %v6677_v8 = vld [vmem:[#allocation2 + $0x98] sm:$0xff] }
 0x6a8   :  { %v5085_v13 = vpop.f32.mrf.mxu2  ;;  %v5813_v59 = vadd.f32 %v5621_v7, %v13517_v11  ;;  %v7656_v11 = vsel %vm7464_vm12, %v5172_v56, 0.0  ;;  %v19226_v56 = vld [vmem:[#allocation68_spill] sm:$0xff] }
 0x6a9   :  { %9754 = vmatmul.msk.f32.gmra.mxu1 %vm19217_vm5, %v6868_v63  ;;  %v14633_v49 = vadd.f32 %v5082_v14, %v4622_v17  ;;  %v6869_v14 = vsel %vm19223_vm15, %v6677_v8, 0.0  ;;  %vm19227_vm14 = vcmp.lt.s32.totalorder %v19226_v56, 15  ;;  %v19229_v8 = vld [vmem:[#allocation81_spill] sm:$0xff]  ;;  %vm19231_vm5 = vcmp.lt.s32.totalorder %v19214_v52, 15  ;;  %vm19237_vm15 = vmmov %vm19228_vm1 }
 0x6aa   :  { %v7657_v63 = vsel %vm19227_vm14, %v5173_v54, 0.0  ;;  %vm19230_vm12 = vcmp.lt.s32.totalorder %v19229_v8, 15 }
 0x6ab   :  { %19218 = vst [vmem:[#allocation83_spill] sm:$0xff] %v14633_v49  ;;  %vm7466_vm9 = vmand %vm19230_vm12, %vm19220_vm11  ;;  %vm19245_vm12 = vcmp.lt.s32.totalorder %v18638_v30, 15 }
 0x6ac   :  { %9630 = vmatmul.msk.f32.gmra.mxu3 %vm19221_vm10, %v5364_v31  ;;  %v6678_v31 = vld [vmem:[#allocation2 + $0xa0] sm:$0xff]  ;;  %vm19232_vm10 = vmmov %vm19228_vm1 }
 0x6ad   :  { %9820 = vmatmul.msk.f32.gmra.mxu2 %vm19222_vm8, %v7656_v11  ;;  %vm19235_vm8 = vmmov %vm19228_vm1 }
 0x6ae   :  { %v4555_v26 = vpop.f32.mrf.mxu1  ;;  %vm19238_vm11 = vmmov %vm19227_vm14 }
 0x6af   :  { %v5624_v2 = vpop.f32.mrf.mxu3  ;;  %v4623_v42 = vadd.f32 %v4555_v26, %v3901_v0 }
 0x6b0   :  { %v5088_v7 = vpop.f32.mrf.mxu2  ;;  %v5814_v28 = vadd.f32 %v5624_v2, %v13544_v57  ;;  %v5174_v2 = vld [vmem:[#allocation2 + $0xb1] sm:$0xff] }
 0x6b1   :  { %9755 = vmatmul.msk.f32.gmra.mxu1 %vm19210_vm3, %v6869_v14  ;;  %v14643_v17 = vadd.f32 %v5085_v13, %v4623_v42  ;;  %v6870_v13 = vsel %vm19231_vm5, %v6678_v31, 0.0  ;;  %v19236_v14 = vld [vmem:[#allocation74_spill] sm:$0xff]  ;;  %vm19239_vm3 = vmmov %vm19228_vm1  ;;  %vm19246_vm5 = vcmp.lt.s32.totalorder %v19229_v8, 15  ;;  %v6681_v42 = vld [vmem:[#allocation2 + $0xb8] sm:$0xff] }
 0x6b3   :  { %19224 = vst [vmem:[#allocation100_spill] sm:$0xff] %v14643_v17 }
 0x6b4   :  { %9631 = vmatmul.msk.f32.gmra.mxu3 %vm19225_vm4, %v5173_v54  ;;  %v5366_v54 = vsel %vm13475_vm13, %v5174_v2, 0.0  ;;  %vm19241_vm4 = vmmov %vm19228_vm1 }
 0x6b5   :  { %9821 = vmatmul.msk.f32.gmra.mxu2 %vm19228_vm1, %v7657_v63 }
 0x6b6   :  { %v4558_v49 = vpop.f32.mrf.mxu1 }
 0x6b7   :  { %v5627_v11 = vpop.f32.mrf.mxu3  ;;  %v4624_v15 = vadd.f32 %v4558_v49, %v3902_v5  ;;  %v6599_v5 = vadd.f32 %v19236_v14, %v5813_v59  ;;  %v6679_v49 = vld [vmem:[#allocation2 + $0xa8] sm:$0xff] }
 0x6b8   :  { %v5815_v57 = vadd.f32 %v5627_v11, %v13565_v36  ;;  %v7915_v0 = vpop.f32.mrf.mxu2  ;;  %v7658_v36 = vsel %vm7466_vm9, %v5174_v2, 0.0  ;;  %v19242_v59 = vld [vmem:[#allocation86_spill] sm:$0xff]  ;;  %vm7468_vm9 = vmand %vm19245_vm12, %vm13475_vm13 }
 0x6b9   :  { %9756 = vmatmul.msk.f32.gmra.mxu1 %vm19232_vm10, %v6870_v13  ;;  %v14657_v26 = vadd.f32 %v5088_v7, %v4624_v15  ;;  %v5175_v13 = vld [vmem:[#allocation2 + $0xb9] sm:$0xff]  ;;  %v6871_v7 = vsel %vm19238_vm11, %v6679_v49, 0.0  ;;  %vm19243_vm14 = vcmp.lt.s32.totalorder %v19242_v59, 15  ;;  %v5176_v49 = vld [vmem:[#allocation2 + $0xc1] sm:$0xff]  ;;  %vm19247_vm10 = vmmov %vm19228_vm1 }
 0x6ba   :  { %v7659_v2 = vsel %vm19243_vm14, %v5175_v13, 0.0  ;;  %vm19253_vm11 = vmmov %vm19228_vm1 }
 0x6bb   :  { %19233 = vst [vmem:[#allocation106_spill] sm:$0xff] %v14657_v26  ;;  %vm19254_vm13 = vmmov %vm19243_vm14  ;;  %v19555_v26 = vld [vmem:[#allocation152_spill] sm:$0xff] }
 0x6bc   :  { %9632 = vmatmul.msk.f32.gmra.mxu3 %vm19235_vm8, %v5366_v54  ;;  %v19244_v54 = vld [vmem:[#allocation94_spill] sm:$0xff] }
 0x6bd   :  { %9822 = vmatmul.msk.f32.gmra.mxu2 %vm19237_vm15, %v7658_v36  ;;  %v6600_v36 = vadd.f32 %v19244_v54, %v5814_v28  ;;  %vm19251_vm15 = vmmov %vm19228_vm1 }
 0x6be   :  { %v7129_v63 = vpop.f32.mrf.mxu1 }
 0x6bf   :  { %v5630_v55 = vpop.f32.mrf.mxu3  ;;  %v7321_v11 = vadd.f32 %v7129_v63, %v6599_v5 }
 0x6c0   :  { %v5816_v52 = vadd.f32 %v5630_v55, %v13584_v41  ;;  %v7918_v31 = vpop.f32.mrf.mxu2  ;;  %v6680_v41 = vld [vmem:[#allocation2 + $0xb0] sm:$0xff] }
 0x6c1   :  { %9757 = vmatmul.msk.f32.gmra.mxu1 %vm19239_vm3, %v6871_v7  ;;  %v14668_v15 = vadd.f32 %v7915_v0, %v7321_v11  ;;  %v6872_v0 = vsel %vm19246_vm5, %v6680_v41, 0.0  ;;  %v19249_v11 = vld [vmem:[#allocation80_spill] sm:$0xff]  ;;  %v19252_v7 = vld [vmem:[#allocation79_spill] sm:$0xff]  ;;  %vm19255_vm3 = vmmov %vm19228_vm1  ;;  %vm19263_vm5 = vcmp.lt.s32.totalorder %v18638_v30, 15 }
 0x6c2   :  { %vm19250_vm8 = vnez %v19249_v11  ;;  %v6683_v11 = vld [vmem:[#allocation2 + $0xc8] sm:$0xff] }
 0x6c3   :  { %19240 = vst [vmem:[#allocation96_spill] sm:$0xff] %v14668_v15 }
 0x6c4   :  { %9633 = vmatmul.msk.f32.gmra.mxu3 %vm19241_vm4, %v5175_v13  ;;  %v5368_v13 = vsel %vm19250_vm8, %v5176_v49, 0.0  ;;  %vm19257_vm4 = vmmov %vm19228_vm1 }
 0x6c5   :  { %9823 = vmatmul.msk.f32.gmra.mxu2 %vm19228_vm1, %v7659_v2  ;;  %v6601_v2 = vadd.f32 %v19252_v7, %v5815_v57  ;;  %v19258_v57 = vld [vmem:[#allocation99_spill] sm:$0xff] }
 0x6c6   :  { %v7132_v5 = vpop.f32.mrf.mxu1  ;;  %vm19259_vm14 = vcmp.lt.s32.totalorder %v19258_v57, 15 }
 0x6c7   :  { %v5633_v14 = vpop.f32.mrf.mxu3  ;;  %v7322_v63 = vadd.f32 %v7132_v5, %v6600_v36  ;;  %v5177_v5 = vld [vmem:[#allocation2 + $0xc9] sm:$0xff] }
 0x6c8   :  { %v5817_v55 = vadd.f32 %v5633_v14, %v13607_v53  ;;  %v7921_v56 = vpop.f32.mrf.mxu2  ;;  %v7660_v53 = vsel %vm7468_vm9, %v5176_v49, 0.0  ;;  %v7661_v49 = vsel %vm19259_vm14, %v5177_v5, 0.0 }
 0x6c9   :  { %9758 = vmatmul.msk.f32.gmra.mxu1 %vm19247_vm10, %v6872_v0  ;;  %v14683_v28 = vadd.f32 %v7918_v31, %v7322_v63  ;;  %v6873_v31 = vsel %vm19254_vm13, %v6681_v42, 0.0  ;;  %v19260_v0 = vld [vmem:[#allocation90_spill] sm:$0xff]  ;;  %v5178_v42 = vld [vmem:[#allocation2 + $0xd1] sm:$0xff]  ;;  %vm19264_vm10 = vmmov %vm19228_vm1 }
 0x6ca   :  { %vm19270_vm13 = vmmov %vm19228_vm1 }
 0x6cb   :  { %19248 = vst [vmem:[#allocation113_spill] sm:$0xff] %v14683_v28 }
 0x6cc   :  { %9634 = vmatmul.msk.f32.gmra.mxu3 %vm19251_vm15, %v5368_v13  ;;  %v6602_v13 = vadd.f32 %v19260_v0, %v5816_v52 }
 0x6cd   :  { %9824 = vmatmul.msk.f32.gmra.mxu2 %vm19253_vm11, %v7660_v53  ;;  %vm19268_vm11 = vmmov %vm19228_vm1 }
 0x6ce   :  { %v7135_v36 = vpop.f32.mrf.mxu1 }
 0x6cf   :  { %v5636_v54 = vpop.f32.mrf.mxu3  ;;  %v7323_v14 = vadd.f32 %v7135_v36, %v6601_v2 }
 0x6d0   :  { %v5818_v8 = vadd.f32 %v5636_v54, %v13624_v51  ;;  %v7924_v41 = vpop.f32.mrf.mxu2  ;;  %v6682_v51 = vld [vmem:[#allocation2 + $0xc0] sm:$0xff] }
 0x6d1   :  { %9759 = vmatmul.msk.f32.gmra.mxu1 %vm19255_vm3, %v6873_v31  ;;  %v14694_v63 = vadd.f32 %v7921_v56, %v7323_v14  ;;  %v19261_v56 = vld [vmem:[#allocation107_spill] sm:$0xff]  ;;  %v6874_v36 = vsel %vm19263_vm5, %v6682_v51, 0.0  ;;  %v19269_v31 = vld [vmem:[#allocation101_spill] sm:$0xff]  ;;  %vm19272_vm3 = vmmov %vm19228_vm1 }
 0x6d2   :  { %vm19262_vm12 = vcmp.lt.s32.totalorder %v19261_v56, 15  ;;  %v19266_v14 = vld [vmem:[#allocation63_spill] sm:$0xff]  ;;  %vm19279_vm5 = vcmp.lt.s32.totalorder %v19261_v56, 15 }
 0x6d3   :  { %19256 = vst [vmem:[#allocation118_spill] sm:$0xff] %v14694_v63  ;;  %vm7470_vm9 = vmand %vm19262_vm12, %vm19250_vm8  ;;  %vm19267_vm15 = vnez %v19266_v14  ;;  %vm19278_vm12 = vcmp.lt.s32.totalorder %v12101_v58, 15  ;;  %v6685_v14 = vld [vmem:[#allocation2 + $0xd8] sm:$0xff] }
 0x6d4   :  { %9635 = vmatmul.msk.f32.gmra.mxu3 %vm19257_vm4, %v5177_v5  ;;  %v5370_v5 = vsel %vm19267_vm15, %v5178_v42, 0.0  ;;  %vm19271_vm8 = vmmov %vm19259_vm14 }
 0x6d5   :  { %9825 = vmatmul.msk.f32.gmra.mxu2 %vm19228_vm1, %v7661_v49  ;;  %v6603_v49 = vadd.f32 %v19269_v31, %v5817_v55  ;;  %vm19274_vm4 = vmmov %vm19228_vm1  ;;  %v19275_v55 = vld [vmem:[#allocation112_spill] sm:$0xff] }
 0x6d6   :  { %v7138_v7 = vpop.f32.mrf.mxu1  ;;  %vm19276_vm14 = vcmp.lt.s32.totalorder %v19275_v55, 15 }
 0x6d7   :  { %v5639_v53 = vpop.f32.mrf.mxu3  ;;  %v7324_v54 = vadd.f32 %v7138_v7, %v6602_v13  ;;  %v5179_v7 = vld [vmem:[#allocation2 + $0xd9] sm:$0xff] }
 0x6d8   :  { %v5819_v2 = vadd.f32 %v5639_v53, %v13647_v43  ;;  %v7927_v59 = vpop.f32.mrf.mxu2  ;;  %v7662_v43 = vsel %vm7470_vm9, %v5178_v42, 0.0  ;;  %v7663_v42 = vsel %vm19276_vm14, %v5179_v7, 0.0  ;;  %vm7472_vm9 = vmand %vm19278_vm12, %vm19267_vm15  ;;  %vm19292_vm12 = vcmp.lt.s32.totalorder %v12117_v34, 15 }
 0x6d9   :  { %9760 = vmatmul.msk.f32.gmra.mxu1 %vm19264_vm10, %v6874_v36  ;;  %v14709_v52 = vadd.f32 %v7924_v41, %v7324_v54  ;;  %v6875_v41 = vsel %vm19271_vm8, %v6683_v11, 0.0  ;;  %v19277_v36 = vld [vmem:[#allocation84_spill] sm:$0xff]  ;;  %v5180_v11 = vld [vmem:[#allocation2 + $0xe1] sm:$0xff]  ;;  %vm19280_vm10 = vmmov %vm19228_vm1 }
 0x6da   :  { %vm19286_vm8 = vmmov %vm19228_vm1 }
 0x6db   :  { %19265 = vst [vmem:[#allocation109_spill] sm:$0xff] %v14709_v52  ;;  %vm19287_vm15 = vmmov %vm19276_vm14  ;;  %vm19291_vm14 = vcmp.lt.s32.totalorder %v12547_v33, 15 }
 0x6dc   :  { %9636 = vmatmul.msk.f32.gmra.mxu3 %vm19268_vm11, %v5370_v5  ;;  %v6604_v5 = vadd.f32 %v19277_v36, %v5818_v8 }
 0x6dd   :  { %9826 = vmatmul.msk.f32.gmra.mxu2 %vm19270_vm13, %v7662_v43  ;;  %vm19284_vm13 = vmmov %vm19228_vm1 }
 0x6de   :  { %v7141_v13 = vpop.f32.mrf.mxu1 }
 0x6df   :  { %v5642_v0 = vpop.f32.mrf.mxu3  ;;  %v7325_v53 = vadd.f32 %v7141_v13, %v6603_v49  ;;  %v19282_v13 = vld [vmem:[#allocation69_spill] sm:$0xff] }
 0x6e0   :  { %v5820_v30 = vadd.f32 %v5642_v0, %v13666_v45  ;;  %v7930_v51 = vpop.f32.mrf.mxu2  ;;  %v6684_v45 = vld [vmem:[#allocation2 + $0xd0] sm:$0xff]  ;;  %vm19283_vm11 = vnez %v19282_v13  ;;  %v6687_v13 = vld [vmem:[#allocation2 + $0xe8] sm:$0xff] }
 0x6e1   :  { %9761 = vmatmul.msk.f32.gmra.mxu1 %vm19272_vm3, %v6875_v41  ;;  %v14720_v54 = vadd.f32 %v7927_v59, %v7325_v53  ;;  %v6876_v59 = vsel %vm19279_vm5, %v6684_v45, 0.0  ;;  %v5372_v53 = vsel %vm19283_vm11, %v5180_v11, 0.0  ;;  %vm19288_vm3 = vmmov %vm19228_vm1  ;;  %vm19293_vm5 = vcmp.lt.s32.totalorder %v12101_v58, 15 }
 0x6e3   :  { %19273 = vst [vmem:[#allocation122_spill] sm:$0xff] %v14720_v54 }
 0x6e4   :  { %9637 = vmatmul.msk.f32.gmra.mxu3 %vm19274_vm4, %v5179_v7  ;;  %v19285_v7 = vld [vmem:[#allocation85_spill] sm:$0xff]  ;;  %vm19290_vm4 = vmmov %vm19228_vm1 }
 0x6e5   :  { %9827 = vmatmul.msk.f32.gmra.mxu2 %vm19228_vm1, %v7663_v42  ;;  %v6605_v41 = vadd.f32 %v19285_v7, %v5819_v2 }
 0x6e6   :  { %v7144_v31 = vpop.f32.mrf.mxu1 }
 0x6e7   :  { %v5645_v43 = vpop.f32.mrf.mxu3  ;;  %v7326_v0 = vadd.f32 %v7144_v31, %v6604_v5 }
 0x6e8   :  { %v5821_v49 = vadd.f32 %v5645_v43, %v13686_v61  ;;  %v7933_v57 = vpop.f32.mrf.mxu2  ;;  %v7664_v61 = vsel %vm7472_vm9, %v5180_v11, 0.0  ;;  %v5181_v43 = vld [vmem:[#allocation2 + $0xe9] sm:$0xff]  ;;  %v6606_v11 = vadd.f32 %v13630_v39, %v5820_v30  ;;  %vm7474_vm9 = vmand %vm19292_vm12, %vm19283_vm11  ;;  %vm19307_vm12 = vcmp.lt.s32.totalorder %v12138_v27, 15 }
 0x6e9   :  { %9762 = vmatmul.msk.f32.gmra.mxu1 %vm19280_vm10, %v6876_v59  ;;  %v14735_v8 = vadd.f32 %v7930_v51, %v7326_v0  ;;  %v6877_v51 = vsel %vm19287_vm15, %v6685_v14, 0.0  ;;  %v7665_v2 = vsel %vm19291_vm14, %v5181_v43, 0.0  ;;  %vm19294_vm10 = vmmov %vm19228_vm1  ;;  %v19296_v30 = vld [vmem:[#allocation71_spill] sm:$0xff] }
 0x6ea   :  { %v19299_v14 = vld [vmem:[#allocation91_spill] sm:$0xff]  ;;  %vm19300_vm15 = vmmov %vm19228_vm1 }
 0x6eb   :  { %19281 = vst [vmem:[#allocation131_spill] sm:$0xff] %v14735_v8  ;;  %vm19301_vm11 = vmmov %vm19291_vm14 }
 0x6ec   :  { %9638 = vmatmul.msk.f32.gmra.mxu3 %vm19284_vm13, %v5372_v53  ;;  %vm19297_vm13 = vnez %v19296_v30  ;;  %v6689_v30 = vld [vmem:[#allocation2 + $0xf8] sm:$0xff] }
 0x6ed   :  { %9828 = vmatmul.msk.f32.gmra.mxu2 %vm19286_vm8, %v7664_v61  ;;  %v5182_v61 = vld [vmem:[#allocation2 + $0xf1] sm:$0xff]  ;;  %vm19298_vm8 = vmmov %vm19228_vm1 }
 0x6ee   :  { %v7147_v36 = vpop.f32.mrf.mxu1 }
 0x6ef   :  { %v5648_v42 = vpop.f32.mrf.mxu3  ;;  %v7327_v45 = vadd.f32 %v7147_v36, %v6605_v41  ;;  %v5374_v41 = vsel %vm19297_vm13, %v5182_v61, 0.0 }
 0x6f0   :  { %v5822_v56 = vadd.f32 %v5648_v42, %v13705_v48  ;;  %v7936_v5 = vpop.f32.mrf.mxu2  ;;  %v6686_v48 = vld [vmem:[#allocation2 + $0xe0] sm:$0xff]  ;;  %v6607_v42 = vadd.f32 %v19299_v14, %v5821_v49 }
 0x6f1   :  { %9763 = vmatmul.msk.f32.gmra.mxu1 %vm19288_vm3, %v6877_v51  ;;  %v14746_v31 = vadd.f32 %v7933_v57, %v7327_v45  ;;  %v6878_v57 = vsel %vm19293_vm5, %v6686_v48, 0.0  ;;  %vm19302_vm3 = vmmov %vm19228_vm1  ;;  %v19305_v49 = vld [vmem:[#allocation61_spill] sm:$0xff]  ;;  %vm19308_vm5 = vcmp.lt.s32.totalorder %v12117_v34, 15 }
 0x6f2   :  { %vm19306_vm14 = vcmp.lt.s32.totalorder %v19305_v49, 15 }
 0x6f3   :  { %19289 = vst [vmem:[#allocation120_spill] sm:$0xff] %v14746_v31 }
 0x6f4   :  { %9639 = vmatmul.msk.f32.gmra.mxu3 %vm19290_vm4, %v5181_v43  ;;  %vm19304_vm4 = vmmov %vm19228_vm1 }
 0x6f5   :  { %9829 = vmatmul.msk.f32.gmra.mxu2 %vm19228_vm1, %v7665_v2  ;;  %v5183_v2 = vld [vmem:[#allocation2 + $0xf9] sm:$0xff] }
 0x6f6   :  { %v7150_v59 = vpop.f32.mrf.mxu1  ;;  %v7667_v48 = vsel %vm19306_vm14, %v5183_v2, 0.0 }
 0x6f7   :  { %v5651_v0 = vpop.f32.mrf.mxu3  ;;  %v7328_v7 = vadd.f32 %v7150_v59, %v6606_v11 }
 0x6f8   :  { %v5823_v53 = vadd.f32 %v5651_v0, %v13726_v47  ;;  %v7939_v55 = vpop.f32.mrf.mxu2  ;;  %v7666_v47 = vsel %vm7474_vm9, %v5182_v61, 0.0  ;;  %v6608_v0 = vadd.f32 %v13675_v50, %v5822_v56  ;;  %vm7476_vm9 = vmand %vm19307_vm12, %vm19297_vm13  ;;  %v19311_v56 = vld [vmem:[#allocation76_spill] sm:$0xff] }
 0x6f9   :  { %9764 = vmatmul.msk.f32.gmra.mxu1 %vm19294_vm10, %v6878_v57  ;;  %v14761_v39 = vadd.f32 %v7936_v5, %v7328_v7  ;;  %v6879_v5 = vsel %vm19301_vm11, %v6687_v13, 0.0  ;;  %v5184_v57 = vld [vmem:[#allocation2 + $0x101] sm:$0xff]  ;;  %vm19309_vm10 = vmmov %vm19228_vm1 }
 0x6fa   :  { %v6609_v14 = vadd.f32 %v13698_v4, %v5823_v53  ;;  %vm19314_vm11 = vmmov %vm19228_vm1 }
 0x6fb   :  { %19295 = vst [vmem:[#allocation144_spill] sm:$0xff] %v14761_v39  ;;  %vm19315_vm13 = vmmov %vm19306_vm14  ;;  %vm19319_vm14 = vcmp.lt.s32.totalorder %v12948_v29, 15 }
 0x6fc   :  { %9640 = vmatmul.msk.f32.gmra.mxu3 %vm19298_vm8, %v5374_v41  ;;  %vm19312_vm8 = vnez %v19311_v56 }
 0x6fd   :  { %9830 = vmatmul.msk.f32.gmra.mxu2 %vm19300_vm15, %v7666_v47  ;;  %v5376_v47 = vsel %vm19312_vm8, %v5184_v57, 0.0  ;;  %vm19313_vm15 = vmmov %vm19228_vm1 }
 0x6fe   :  { %v7153_v45 = vpop.f32.mrf.mxu1  ;;  %vm19325_vm8 = vmmov %vm19228_vm1 }
 0x6ff   :  { %v5654_v36 = vpop.f32.mrf.mxu3  ;;  %v7329_v51 = vadd.f32 %v7153_v45, %v6607_v42 }
 0x700   :  { %v5824_v58 = vadd.f32 %v5654_v36, %v13748_v40  ;;  %v7942_v43 = vpop.f32.mrf.mxu2  ;;  %v6688_v40 = vld [vmem:[#allocation2 + $0xf0] sm:$0xff] }
 0x701   :  { %9765 = vmatmul.msk.f32.gmra.mxu1 %vm19302_vm3, %v6879_v5  ;;  %v14772_v11 = vadd.f32 %v7939_v55, %v7329_v51  ;;  %v6880_v55 = vsel %vm19308_vm5, %v6688_v40, 0.0  ;;  %v5185_v51 = vld [vmem:[#allocation2 + $0x109] sm:$0xff]  ;;  %vm19316_vm3 = vmmov %vm19228_vm1  ;;  %v5186_v40 = vld [vmem:[#allocation2 + $0x111] sm:$0xff] }
 0x702   :  { %v7669_v4 = vsel %vm19319_vm14, %v5185_v51, 0.0  ;;  %v6610_v53 = vadd.f32 %v13732_v35, %v5824_v58  ;;  %v5378_v35 = vsel %vm18731_vm6, %v5186_v40, 0.0  ;;  %vm19322_vm5 = vmmov %vm19228_vm1  ;;  %v19323_v58 = vld [vmem:[#allocation123_spill] sm:$0xff] }
 0x703   :  { %19303 = vst [vmem:[#allocation156_spill] sm:$0xff] %v14772_v11  ;;  %vm19327_vm6 = vmmov %vm19228_vm1 }
 0x704   :  { %9641 = vmatmul.msk.f32.gmra.mxu3 %vm19304_vm4, %v5183_v2  ;;  %vm19318_vm4 = vmmov %vm19228_vm1 }
 0x705   :  { %9831 = vmatmul.msk.f32.gmra.mxu2 %vm19228_vm1, %v7667_v48 }
 0x706   :  { %v7156_v61 = vpop.f32.mrf.mxu1 }
 0x707   :  { %v5657_v59 = vpop.f32.mrf.mxu3  ;;  %v7330_v41 = vadd.f32 %v7156_v61, %v6608_v0 }
 0x708   :  { %v5825_v7 = vadd.f32 %v5657_v59, %v13766_v62  ;;  %v7945_v33 = vpop.f32.mrf.mxu2  ;;  %v7668_v62 = vsel %vm7476_vm9, %v5184_v57, 0.0  ;;  %vm19320_vm9 = vmmov %vm19228_vm1 }
 0x709   :  { %9766 = vmatmul.msk.f32.gmra.mxu1 %vm19309_vm10, %v6880_v55  ;;  %v14787_v50 = vadd.f32 %v7942_v43, %v7330_v41  ;;  %v6881_v43 = vsel %vm19315_vm13, %v6689_v30, 0.0  ;;  %vm19324_vm10 = vnez %v19323_v58  ;;  %v6691_v41 = vld [vmem:[#allocation2 + $0x108] sm:$0xff]  ;;  %vm19330_vm13 = vcmp.lt.s32.totalorder %v12153_v21, 15 }
 0x70a   :  { %v7670_v57 = vsel %vm19324_vm10, %v5186_v40, 0.0  ;;  %vm19340_vm10 = vmmov %vm19330_vm13 }
 0x70b   :  { %19310 = vst [vmem:[#allocation137_spill] sm:$0xff] %v14787_v50 }
 0x70c   :  { %9642 = vmatmul.msk.f32.gmra.mxu3 %vm19313_vm15, %v5376_v47  ;;  %vm19326_vm15 = vmmov %vm19319_vm14 }
 0x70d   :  { %9832 = vmatmul.msk.f32.gmra.mxu2 %vm19314_vm11, %v7668_v62  ;;  %v6883_v24 = vsel %vm19326_vm15, %v6691_v41, 0.0  ;;  %vm19329_vm11 = vmmov %vm19228_vm1  ;;  %v5190_v41 = vld [vmem:[#allocation2 + $0x131] sm:$0xff] }
 0x70e   :  { %v7159_v13 = vpop.f32.mrf.mxu1  ;;  %vm19333_vm14 = vmmov %vm19228_vm1 }
 0x70f   :  { %v5660_v42 = vpop.f32.mrf.mxu3  ;;  %v7331_v45 = vadd.f32 %v7159_v13, %v6609_v14  ;;  %v5187_v14 = vld [vmem:[#allocation2 + $0x119] sm:$0xff] }
 0x710   :  { %v5826_v34 = vadd.f32 %v5660_v42, %v13788_v22  ;;  %v7948_v36 = vpop.f32.mrf.mxu2  ;;  %v6690_v22 = vld [vmem:[#allocation2 + $0x100] sm:$0xff] }
 0x711   :  { %9767 = vmatmul.msk.f32.gmra.mxu1 %vm19316_vm3, %v6881_v43  ;;  %v14798_v2 = vadd.f32 %v7945_v33, %v7331_v45  ;;  %v6882_v61 = vsel %vm19307_vm12, %v6690_v22, 0.0  ;;  %vm19331_vm3 = vmmov %vm19228_vm1  ;;  %v5188_v45 = vld [vmem:[#allocation2 + $0x121] sm:$0xff]  ;;  %v6693_v22 = vld [vmem:[#allocation2 + $0x118] sm:$0xff] }
 0x712   :  { %vm19336_vm12 = vmmov %vm19331_vm3 }
 0x713   :  { %19317 = vst [vmem:[#allocation164_spill] sm:$0xff] %v14798_v2  ;;  %vm19343_vm15 = vmmov %vm19331_vm3 }
 0x714   :  { %9643 = vmatmul.msk.f32.gmra.mxu3 %vm19318_vm4, %v5185_v51  ;;  %vm19332_vm4 = vcmp.lt.s32.totalorder %v12151_v19, 15 }
 0x715   :  { %9833 = vmatmul.msk.f32.gmra.mxu2 %vm19228_vm1, %v7669_v4  ;;  %vm19335_vm1 = vnez %v18262_v46  ;;  %v6885_v46 = vsel %vm19340_vm10, %v6693_v22, 0.0  ;;  %vm19361_vm10 = vmmov %vm19331_vm3  ;;  %v19364_v22 = vld [vmem:[#allocation103_spill] sm:$0xff] }
 0x716   :  { %v7162_v48 = vpop.f32.mrf.mxu1 }
 0x717   :  { %v5663_v5 = vpop.f32.mrf.mxu3  ;;  %v7332_v59 = vadd.f32 %v7162_v48, %v6610_v53 }
 0x718   :  { %v5827_v0 = vadd.f32 %v5663_v5, %v13809_v60  ;;  %v7951_v49 = vpop.f32.mrf.mxu2  ;;  %v6611_v60 = vadd.f32 %v13753_v10, %v5825_v7  ;;  %v7671_v10 = vsel %vm19330_vm13, %v5187_v14, 0.0  ;;  %v6612_v7 = vadd.f32 %v13779_v16, %v5826_v34  ;;  %v19337_v34 = vld [vmem:[#allocation126_spill] sm:$0xff] }
 0x719   :  { %9768 = vmatmul.msk.f32.gmra.mxu1 %vm19320_vm9, %v6882_v61  ;;  %v14809_v33 = vadd.f32 %v7948_v36, %v7332_v59  ;;  %v5380_v16 = vsel %vm19335_vm1, %v5188_v45, 0.0  ;;  %vm19338_vm9 = vnez %v19337_v34  ;;  %v5189_v59 = vld [vmem:[#allocation2 + $0x129] sm:$0xff] }
 0x71a   :  { %v7672_v53 = vsel %vm19338_vm9, %v5188_v45, 0.0 }
 0x71b   :  { %19321 = vst [vmem:[#allocation166_spill] sm:$0xff] %v14809_v33 }
 0x71c   :  { %9644 = vmatmul.msk.f32.gmra.mxu3 %vm19322_vm5, %v5378_v35  ;;  %vm19339_vm5 = vmmov %vm19331_vm3 }
 0x71d   :  { %9834 = vmatmul.msk.f32.gmra.mxu2 %vm19325_vm8, %v7670_v57  ;;  %vm19341_vm8 = vmmov %vm19331_vm3  ;;  %v19346_v57 = vld [vmem:[#allocation97_spill] sm:$0xff] }
 0x71e   :  { %v7165_v27 = vpop.f32.mrf.mxu1 }
 0x71f   :  { %v5666_v55 = vpop.f32.mrf.mxu3  ;;  %v7333_v62 = vadd.f32 %v7165_v27, %v6611_v60  ;;  %v19347_v27 = vld [vmem:[#allocation9_spill] sm:$0xff] }
 0x720   :  { %v5828_v56 = vadd.f32 %v5666_v55, %v13829_v32  ;;  %v7954_v47 = vpop.f32.mrf.mxu2  ;;  %v6692_v32 = vld [vmem:[#allocation2 + $0x110] sm:$0xff]  ;;  %vm19348_vm13 = vcmp.lt.s32.totalorder %v19347_v27, 15 }
 0x721   :  { %9769 = vmatmul.msk.f32.gmra.mxu1 %vm19327_vm6, %v6883_v24  ;;  %v14822_v30 = vadd.f32 %v7951_v49, %v7333_v62  ;;  %v6884_v43 = vsel %vm19332_vm4, %v6692_v32, 0.0  ;;  %vm19344_vm6 = vcmp.lt.s32.totalorder %v18466_v38, 15  ;;  %v6695_v32 = vld [vmem:[#allocation2 + $0x128] sm:$0xff] }
 0x722   :  { %vm19358_vm9 = vmmov %vm19344_vm6 }
 0x723   :  { %19328 = vst [vmem:[#allocation163_spill] sm:$0xff] %v14822_v30  ;;  %v6887_v34 = vsel %vm19358_vm9, %v6695_v32, 0.0  ;;  %v5193_v32 = vld [vmem:[#allocation2 + $0x149] sm:$0xff]  ;;  %vm19381_vm9 = vmmov %vm19331_vm3 }
 0x724   :  { %9645 = vmatmul.msk.f32.gmra.mxu3 %vm19329_vm11, %v5187_v14  ;;  %vm19345_vm11 = vmmov %vm19331_vm3  ;;  %v19350_v14 = vld [vmem:[#allocation125_spill] sm:$0xff] }
 0x725   :  { %9835 = vmatmul.msk.f32.gmra.mxu2 %vm19331_vm3, %v7671_v10  ;;  %vm19351_vm4 = vnez %v19350_v14  ;;  %v19355_v10 = vld [vmem:[#allocation92_spill] sm:$0xff] }
 0x726   :  { %v7168_v13 = vpop.f32.mrf.mxu1 }
 0x727   :  { %v5669_v42 = vpop.f32.mrf.mxu3  ;;  %v7334_v51 = vadd.f32 %v7168_v13, %v6612_v7 }
 0x728   :  { %v5829_v36 = vadd.f32 %v5669_v42, %v13850_v3  ;;  %v7957_v29 = vpop.f32.mrf.mxu2  ;;  %v6613_v3 = vadd.f32 %v13805_v9, %v5827_v0  ;;  %v7673_v9 = vsel %vm19344_vm6, %v5189_v59, 0.0  ;;  %v6614_v0 = vadd.f32 %v13833_v6, %v5828_v56  ;;  %v19353_v56 = vld [vmem:[#allocation128_spill] sm:$0xff] }
 0x729   :  { %9770 = vmatmul.msk.f32.gmra.mxu1 %vm19333_vm14, %v6884_v43  ;;  %v14833_v4 = vadd.f32 %v7954_v47, %v7334_v51  ;;  %v5382_v6 = vsel %vm19351_vm4, %v5190_v41, 0.0  ;;  %vm19352_vm14 = vmmov %vm19331_vm3  ;;  %vm19354_vm1 = vnez %v19353_v56  ;;  %v19377_v56 = vld [vmem:[#allocation115_spill] sm:$0xff] }
 0x72a   :  { %v7674_v24 = vsel %vm19354_vm1, %v5190_v41, 0.0  ;;  %v6615_v7 = vadd.f32 %v19355_v10, %v5829_v36  ;;  %v19362_v36 = vld [vmem:[#allocation3_spill] sm:$0xff] }
 0x72b   :  { %19334 = vst [vmem:[#allocation168_spill] sm:$0xff] %v14833_v4 }
 0x72c   :  { %9646 = vmatmul.msk.f32.gmra.mxu3 %vm19336_vm12, %v5380_v16  ;;  %vm19356_vm12 = vmmov %vm19331_vm3  ;;  %v5191_v16 = vld [vmem:[#allocation2 + $0x139] sm:$0xff] }
 0x72d   :  { %9836 = vmatmul.msk.f32.gmra.mxu2 %vm19339_vm5, %v7672_v53  ;;  %vm19359_vm5 = vmmov %vm19331_vm3 }
 0x72e   :  { %v7171_v19 = vpop.f32.mrf.mxu1 }
 0x72f   :  { %v5672_v5 = vpop.f32.mrf.mxu3  ;;  %v7335_v40 = vadd.f32 %v7171_v19, %v6613_v3  ;;  %v6696_v19 = vld [vmem:[#allocation2 + $0x130] sm:$0xff] }
 0x730   :  { %v5830_v48 = vadd.f32 %v5672_v5, %v13872_v37  ;;  %v7960_v49 = vpop.f32.mrf.mxu2  ;;  %v6694_v37 = vld [vmem:[#allocation2 + $0x120] sm:$0xff] }
 0x731   :  { %9771 = vmatmul.msk.f32.gmra.mxu1 %vm19341_vm8, %v6885_v46  ;;  %v14846_v61 = vadd.f32 %v7957_v29, %v7335_v40  ;;  %v6886_v47 = vsel %vm19348_vm13, %v6694_v37, 0.0  ;;  %v19357_v29 = vld [vmem:[#allocation104_spill] sm:$0xff]  ;;  %vm19363_vm8 = vcmp.lt.s32.totalorder %v19362_v36, 15 }
 0x732   :  { %v7675_v3 = vsel %vm19363_vm8, %v5191_v16, 0.0  ;;  %v6616_v5 = vadd.f32 %v19364_v22, %v5830_v48  ;;  %v19367_v37 = vld [vmem:[#allocation8_spill] sm:$0xff]  ;;  %vm19378_vm1 = vmmov %vm19363_vm8  ;;  %v19386_v22 = vld [vmem:[#allocation111_spill] sm:$0xff] }
 0x733   :  { %19342 = vst [vmem:[#allocation161_spill] sm:$0xff] %v14846_v61  ;;  %vm19368_vm6 = vcmp.lt.s32.totalorder %v19367_v37, 15 }
 0x734   :  { %9647 = vmatmul.msk.f32.gmra.mxu3 %vm19343_vm15, %v5189_v59  ;;  %vm19365_vm15 = vmmov %vm19331_vm3  ;;  %v19366_v59 = vld [vmem:[#allocation105_spill] sm:$0xff] }
 0x735   :  { %9837 = vmatmul.msk.f32.gmra.mxu2 %vm19345_vm11, %v7673_v9  ;;  %v5192_v9 = vld [vmem:[#allocation2 + $0x141] sm:$0xff]  ;;  %vm19369_vm11 = vmmov %vm19331_vm3 }
 0x736   :  { %v7174_v58 = vpop.f32.mrf.mxu1 }
 0x737   :  { %v5675_v35 = vpop.f32.mrf.mxu3  ;;  %v7336_v55 = vadd.f32 %v7174_v58, %v6614_v0 }
 0x738   :  { %v5831_v60 = vadd.f32 %v5675_v35, %v19346_v57  ;;  %v7963_v21 = vpop.f32.mrf.mxu2  ;;  %v6888_v35 = vsel %vm19368_vm6, %v6696_v19, 0.0  ;;  %v19371_v57 = vld [vmem:[#allocation127_spill] sm:$0xff] }
 0x739   :  { %9772 = vmatmul.msk.f32.gmra.mxu1 %vm19331_vm3, %v6886_v47  ;;  %v14857_v62 = vadd.f32 %v7960_v49, %v7336_v55  ;;  %vm19372_vm13 = vnez %v19371_v57  ;;  %v19375_v55 = vld [vmem:[#allocation98_spill] sm:$0xff]  ;;  %v6697_v47 = vld [vmem:[#allocation2 + $0x138] sm:$0xff] }
 0x73a   :  { %v5384_v48 = vsel %vm19372_vm13, %v5192_v9, 0.0  ;;  %v6617_v27 = vadd.f32 %v19375_v55, %v5831_v60  ;;  %v19382_v60 = vld [vmem:[#allocation11_spill] sm:$0xff]  ;;  %v19397_v55 = vld [vmem:[#allocation117_spill] sm:$0xff] }
 0x73b   :  { %19349 = vst [vmem:[#allocation170_spill] sm:$0xff] %v14857_v62  ;;  %v5194_v19 = vld [vmem:[#allocation2 + $0x151] sm:$0xff] }
 0x73c   :  { %9648 = vmatmul.msk.f32.gmra.mxu3 %vm19352_vm14, %v5382_v6  ;;  %vm19376_vm14 = vmmov %vm19331_vm3 }
 0x73d   :  { %9838 = vmatmul.msk.f32.gmra.mxu2 %vm19356_vm12, %v7674_v24  ;;  %vm19379_vm12 = vmmov %vm19331_vm3 }
 0x73e   :  { %v7177_v13 = vpop.f32.mrf.mxu1 }
 0x73f   :  { %v5678_v42 = vpop.f32.mrf.mxu3  ;;  %v7337_v43 = vadd.f32 %v7177_v13, %v6615_v7 }
 0x740   :  { %v5832_v45 = vadd.f32 %v5678_v42, %v19357_v29  ;;  %v7966_v51 = vpop.f32.mrf.mxu2  ;;  %v6889_v42 = vsel %vm19378_vm1, %v6697_v47, 0.0  ;;  %vm19401_vm1 = vmmov %vm19331_vm3 }
 0x741   :  { %9773 = vmatmul.msk.f32.gmra.mxu1 %vm19359_vm5, %v6887_v34  ;;  %v14870_v53 = vadd.f32 %v7963_v21, %v7337_v43  ;;  %v19373_v21 = vld [vmem:[#allocation129_spill] sm:$0xff]  ;;  %vm19383_vm5 = vcmp.lt.s32.totalorder %v19382_v60, 15  ;;  %v9882_v60 = vld [vmem:[%s17231_s0 + $0x10] sm:$0xff] }
 0x742   :  { %vm19374_vm4 = vnez %v19373_v21  ;;  %v7677_v29 = vsel %vm19383_vm5, %v5193_v32, 0.0  ;;  %8178 = vrot.lane.b32.xlu1 %v9882_v60, %s9946_s3  ;;  %v19423_v60 = vld [vmem:[#allocation6_spill] sm:$0xff] }
 0x743   :  { %19360 = vst [vmem:[#allocation167_spill] sm:$0xff] %v14870_v53  ;;  %v7676_v41 = vsel %vm19374_vm4, %v5192_v9, 0.0  ;;  %v19391_v9 = vld [vmem:[#allocation130_spill] sm:$0xff]  ;;  %vm19398_vm4 = vmmov %vm19383_vm5 }
 0x744   :  { %9649 = vmatmul.msk.f32.gmra.mxu3 %vm19361_vm10, %v5191_v16  ;;  %vm19385_vm10 = vmmov %vm19331_vm3  ;;  %v6698_v16 = vld [vmem:[#allocation2 + $0x140] sm:$0xff]  ;;  %vm19392_vm6 = vnez %v19391_v9  ;;  %v19411_v9 = vld [vmem:[#allocation132_spill] sm:$0xff] }
 0x745   :  { %9839 = vmatmul.msk.f32.gmra.mxu2 %vm19365_vm15, %v7675_v3  ;;  %vm19389_vm15 = vmmov %vm19331_vm3 }
 0x746   :  { %v7180_v40 = vpop.f32.mrf.mxu1 }
 0x747   :  { %v5681_v49 = vpop.f32.mrf.mxu3  ;;  %v7338_v0 = vadd.f32 %v7180_v40, %v6616_v5  ;;  %v19387_v40 = vld [vmem:[#allocation21_spill] sm:$0xff] }
 0x748   :  { %v5833_v46 = vadd.f32 %v5681_v49, %v19366_v59  ;;  %v7969_v38 = vpop.f32.mrf.mxu2  ;;  %vm19388_vm8 = vcmp.lt.s32.totalorder %v19387_v40, 15 }
 0x749   :  { %9774 = vmatmul.msk.f32.gmra.mxu1 %vm19369_vm11, %v6888_v35  ;;  %v14881_v58 = vadd.f32 %v7966_v51, %v7338_v0  ;;  %v19384_v51 = vld [vmem:[#allocation65_spill] sm:$0xff]  ;;  %v6890_v59 = vsel %vm19388_vm8, %v6698_v16, 0.0  ;;  %vm19393_vm11 = vmmov %vm19331_vm3  ;;  %v19396_v35 = vld [vmem:[#allocation110_spill] sm:$0xff]  ;;  %vm19412_vm8 = vnez %v19411_v9 }
 0x74a   :  { %v6618_v43 = vadd.f32 %v19384_v51, %v5832_v45  ;;  %v5386_v45 = vsel %vm19392_vm6, %v5194_v19, 0.0  ;;  %v19394_v0 = vld [vmem:[#allocation133_spill] sm:$0xff]  ;;  %v6619_v57 = vadd.f32 %v19396_v35, %v5833_v46  ;;  %v19402_v46 = vld [vmem:[#allocation24_spill] sm:$0xff]  ;;  %v9884_v35 = vld [vmem:[%s17231_s0 + $0x8] sm:$0xff] }
 0x74b   :  { %19370 = vst [vmem:[#allocation171_spill] sm:$0xff] %v14881_v58  ;;  %vm19395_vm13 = vnez %v19394_v0  ;;  %v9883_v51 = vld [vmem:[%s17231_s0 + $0x20] sm:$0xff]  ;;  %v19414_v0 = vld [vmem:[#allocation135_spill] sm:$0xff] }
 0x74c   :  { %9650 = vmatmul.msk.f32.gmra.mxu3 %vm19331_vm3, %v5384_v48  ;;  %v7678_v37 = vsel %vm19395_vm13, %v5194_v19, 0.0  ;;  %v6699_v48 = vld [vmem:[#allocation2 + $0x148] sm:$0xff]  ;;  %8182 = vrot.lane.b32.xlu2 %v9883_v51, %s9946_s3  ;;  %vm19415_vm6 = vnez %v19414_v0  ;;  %v5198_v9 = vld [vmem:[#allocation2 + $0x171] sm:$0xff]  ;;  %v19427_v0 = vld [vmem:[#allocation17_spill] sm:$0xff] }
 0x74d   :  { %9840 = vmatmul.msk.f32.gmra.mxu2 %vm19376_vm14, %v7676_v41  ;;  %vm19399_vm14 = vmmov %vm19331_vm3 }
 0x74e   :  { %v7183_v6 = vpop.f32.mrf.mxu1 }
 0x74f   :  { %v5684_v14 = vpop.f32.mrf.mxu3  ;;  %v7339_v7 = vadd.f32 %v7183_v6, %v6617_v27  ;;  %v5195_v6 = vld [vmem:[#allocation2 + $0x159] sm:$0xff] }
 0x750   :  { %v5834_v24 = vadd.f32 %v5684_v14, %v19377_v56  ;;  %v7972_v10 = vpop.f32.mrf.mxu2  ;;  %v6891_v56 = vsel %vm19398_vm4, %v6699_v48, 0.0  ;;  %vm19422_vm4 = vmmov %vm19401_vm1 }
 0x751   :  { %9775 = vmatmul.msk.f32.gmra.mxu1 %vm19379_vm12, %v6889_v42  ;;  %v14894_v13 = vadd.f32 %v7969_v38, %v7339_v7  ;;  %vm19403_vm12 = vcmp.lt.s32.totalorder %v19402_v46, 15  ;;  %v19404_v42 = vld [vmem:[#allocation116_spill] sm:$0xff] }
 0x752   :  { %v7679_v7 = vsel %vm19403_vm12, %v5195_v6, 0.0  ;;  %vm19419_vm13 = vmmov %vm19403_vm12  ;;  %v9888_v46 = vld [vmem:[%s17231_s0 + $0x38] sm:$0xff]  ;;  %vm19428_vm12 = vcmp.lt.s32.totalorder %v19427_v0, 15 }
 0x753   :  { %19380 = vst [vmem:[#allocation173_spill] sm:$0xff] %v14894_v13 }
 0x754   :  { %9651 = vmatmul.msk.f32.gmra.mxu3 %vm19381_vm9, %v5193_v32  ;;  %v9881_v32 = vld [vmem:[%s17231_s0] sm:$0xff]  ;;  %vm19405_vm9 = vmmov %vm19401_vm1 }
 0x755   :  { %9841 = vmatmul.msk.f32.gmra.mxu2 %vm19385_vm10, %v7677_v29  ;;  %8174 = vrot.lane.b32.xlu0 %v9881_v32, %s9946_s3  ;;  %v6620_v29 = vadd.f32 %v19404_v42, %v5834_v24  ;;  %vm19409_vm10 = vmmov %vm19401_vm1  ;;  %v5197_v32 = vld [vmem:[#allocation2 + $0x169] sm:$0xff] }
 0x756   :  { %v7186_v3 = vpop.f32.mrf.mxu1 }
 0x757   :  { %v5687_v34 = vpop.f32.mrf.mxu3  ;;  %v7340_v49 = vadd.f32 %v7186_v3, %v6618_v43  ;;  %v6700_v43 = vld [vmem:[#allocation2 + $0x150] sm:$0xff]  ;;  %v19406_v3 = vld [vmem:[#allocation121_spill] sm:$0xff] }
 0x758   :  { %v5835_v5 = vadd.f32 %v5687_v34, %v19386_v22  ;;  %v7975_v36 = vpop.f32.mrf.mxu2 }
 0x759   :  { %9776 = vmatmul.msk.f32.gmra.mxu1 %vm19389_vm15, %v6890_v59  ;;  %v14905_v38 = vadd.f32 %v7972_v10, %v7340_v49  ;;  %v19407_v49 = vld [vmem:[#allocation15_spill] sm:$0xff]  ;;  %vm19413_vm15 = vmmov %vm19401_vm1 }
 0x75a   :  { %vm19408_vm5 = vcmp.lt.s32.totalorder %v19407_v49, 15  ;;  %v19426_v49 = vld [vmem:[#allocation77_spill] sm:$0xff] }
 0x75b   :  { %19390 = vst [vmem:[#allocation169_spill] sm:$0xff] %v14905_v38  ;;  %v6892_v40 = vsel %vm19408_vm5, %v6700_v43, 0.0  ;;  %v9887_v43 = vld [vmem:[%s17231_s0 + $0x30] sm:$0xff] }
 0x75c   :  { %9652 = vmatmul.msk.f32.gmra.mxu3 %vm19393_vm11, %v5386_v45  ;;  %vm19417_vm11 = vmmov %vm19401_vm1 }
 0x75d   :  { %9842 = vmatmul.msk.f32.gmra.mxu2 %vm19331_vm3, %v7678_v37  ;;  %8176 = vrot.lane.b32.xlu0 %v9884_v35, %s9946_s3  ;;  %vm19420_vm3 = vmmov %vm19401_vm1 }
 0x75e   :  { %v7189_v41 = vpop.f32.mrf.mxu1 }
 0x75f   :  { %v5690_v21 = vpop.f32.mrf.mxu3  ;;  %v7341_v14 = vadd.f32 %v7189_v41, %v6619_v57  ;;  %v19416_v57 = vld [vmem:[#allocation70_spill] sm:$0xff] }
 0x760   :  { %v5836_v27 = vadd.f32 %v5690_v21, %v19397_v55  ;;  %v7978_v47 = vpop.f32.mrf.mxu2  ;;  %v6621_v48 = vadd.f32 %v19416_v57, %v5835_v5  ;;  %v9885_v21 = vld [vmem:[%s17231_s0 + $0x18] sm:$0xff]  ;;  %v9886_v41 = vld [vmem:[%s17231_s0 + $0x28] sm:$0xff] }
 0x761   :  { %9777 = vmatmul.msk.f32.gmra.mxu1 %vm19399_vm14, %v6891_v56  ;;  %v14918_v10 = vadd.f32 %v7975_v36, %v7341_v14  ;;  %v5196_v36 = vld [vmem:[#allocation2 + $0x161] sm:$0xff]  ;;  %8180 = vrot.lane.b32.xlu1 %v9885_v21, %s9946_s3  ;;  %v6701_v55 = vld [vmem:[#allocation2 + $0x158] sm:$0xff]  ;;  %vm19424_vm14 = vcmp.lt.s32.totalorder %v19423_v60, 15 }
 0x762   :  { %v5388_v45 = vsel %vm19412_vm8, %v5196_v36, 0.0  ;;  %v7680_v37 = vsel %vm19415_vm6, %v5196_v36, 0.0  ;;  %8184 = vrot.lane.b32.xlu2 %v9886_v41, %s9946_s3  ;;  %v6893_v42 = vsel %vm19419_vm13, %v6701_v55, 0.0  ;;  %v7681_v51 = vsel %vm19424_vm14, %v5197_v32, 0.0  ;;  %v19431_v57 = vld [vmem:[#allocation134_spill] sm:$0xff]  ;;  %vm19439_vm6 = vmmov %vm19424_vm14 }
 0x763   :  { %19400 = vst [vmem:[#allocation174_spill] sm:$0xff] %v14918_v10  ;;  %vm19432_vm5 = vnez %v19431_v57  ;;  %v19434_v21 = vld [vmem:[#allocation138_spill] sm:$0xff]  ;;  %vm19442_vm13 = vmmov %vm19401_vm1  ;;  %v19447_v57 = vld [vmem:[#allocation12_spill] sm:$0xff] }
 0x764   :  { %9653 = vmatmul.msk.f32.gmra.mxu3 %vm19401_vm1, %v5195_v6  ;;  %v19418_v6 = vld [vmem:[#allocation73_spill] sm:$0xff]  ;;  %vm19435_vm8 = vnez %v19434_v21  ;;  %v9890_v55 = vld [vmem:[%s17231_s0 + $0x48] sm:$0xff] }
 0x765   :  { %9843 = vmatmul.msk.f32.gmra.mxu2 %vm19405_vm9, %v7679_v7  ;;  %8186 = vrot.lane.b32.xlu0 %v9887_v43, %s9946_s3  ;;  %vm19429_vm9 = vmmov %vm19401_vm1  ;;  %v7682_v41 = vsel %vm19435_vm8, %v5198_v9, 0.0  ;;  %v9894_v60 = vld [vmem:[%s17231_s0 + $0x68] sm:$0xff] }
 0x766   :  { %v7192_v34 = vpop.f32.mrf.mxu1  ;;  %v5200_v21 = vld [vmem:[#allocation2 + $0x181] sm:$0xff] }
 0x767   :  { %v5693_v16 = vpop.f32.mrf.mxu3  ;;  %v7342_v19 = vadd.f32 %v7192_v34, %v6620_v29 }
 0x768   :  { %v5837_v22 = vadd.f32 %v5693_v16, %v19406_v3  ;;  %v7981_v24 = vpop.f32.mrf.mxu2  ;;  %v19425_v16 = vld [vmem:[#allocation67_spill] sm:$0xff]  ;;  %v9889_v3 = vld [vmem:[%s17231_s0 + $0x40] sm:$0xff] }
 0x769   :  { %9778 = vmatmul.msk.f32.gmra.mxu1 %vm19409_vm10, %v6892_v40  ;;  %v14941_v59 = vadd.f32 %v7978_v47, %v7342_v19  ;;  %v6622_v34 = vadd.f32 %v19425_v16, %v5836_v27  ;;  %8188 = vrot.lane.b32.xlu1 %v9888_v46, %s9946_s3  ;;  %vm19433_vm10 = vmmov %vm19401_vm1 }
 0x76a   :  { %8190 = vrot.lane.b32.xlu2 %v9889_v3, %s9946_s3 }
 0x76b   :  { %19410 = vst [vmem:[#allocation20_spill] sm:$0xff] %v14941_v59 }
 0x76c   :  { %9654 = vmatmul.msk.f32.gmra.mxu3 %vm19413_vm15, %v5388_v45  ;;  %vm19437_vm15 = vmmov %vm19401_vm1 }
 0x76d   :  { %9844 = vmatmul.msk.f32.gmra.mxu2 %vm19417_vm11, %v7680_v37  ;;  %8192 = vrot.lane.b32.xlu0 %v9890_v55, %s9946_s3  ;;  %vm19440_vm11 = vmmov %vm19401_vm1  ;;  %v19448_v55 = vld [vmem:[#allocation29_spill] sm:$0xff] }
 0x76e   :  { %v7195_v14 = vpop.f32.mrf.mxu1  ;;  %vm19449_vm14 = vcmp.lt.s32.totalorder %v19448_v55, 15 }
 0x76f   :  { %v5696_v47 = vpop.f32.mrf.mxu3  ;;  %v7343_v7 = vadd.f32 %v7195_v14, %v6621_v48  ;;  %v5390_v48 = vsel %vm19432_vm5, %v5198_v9, 0.0 }
 0x770   :  { %v5838_v56 = vadd.f32 %v5696_v47, %v19418_v6  ;;  %v7984_v5 = vpop.f32.mrf.mxu2  ;;  %v19436_v47 = vld [vmem:[#allocation75_spill] sm:$0xff] }
 0x771   :  { %9779 = vmatmul.msk.f32.gmra.mxu1 %vm19420_vm3, %v6893_v42  ;;  %v14966_v29 = vadd.f32 %v7981_v24, %v7343_v7  ;;  %v6702_v24 = vld [vmem:[#allocation2 + $0x160] sm:$0xff]  ;;  %v6623_v14 = vadd.f32 %v19436_v47, %v5837_v22  ;;  %v9891_v6 = vld [vmem:[%s17231_s0 + $0x50] sm:$0xff]  ;;  %v6703_v7 = vld [vmem:[#allocation2 + $0x168] sm:$0xff] }
 0x772   :  { %v6894_v37 = vsel %vm19428_vm12, %v6702_v24, 0.0  ;;  %8194 = vrot.lane.b32.xlu1 %v9891_v6, %s9946_s3  ;;  %v6895_v46 = vsel %vm19439_vm6, %v6703_v7, 0.0  ;;  %v19443_v24 = vld [vmem:[#allocation32_spill] sm:$0xff]  ;;  %v19451_v6 = vld [vmem:[#allocation139_spill] sm:$0xff]  ;;  %v19454_v7 = vld [vmem:[#allocation141_spill] sm:$0xff] }
 0x773   :  { %19421 = vst [vmem:[#allocation177_spill] sm:$0xff] %v14966_v29  ;;  %vm19444_vm3 = vcmp.lt.s32.totalorder %v19443_v24, 15  ;;  %vm19452_vm12 = vnez %v19451_v6  ;;  %vm19455_vm5 = vnez %v19454_v7  ;;  %vm19462_vm6 = vmmov %vm19401_vm1  ;;  %v9900_v24 = vld [vmem:[%s17231_s0 + $0x98] sm:$0xff]  ;;  %v19467_v7 = vld [vmem:[#allocation175_spill] sm:$0xff] }
 0x774   :  { %9655 = vmatmul.msk.f32.gmra.mxu3 %vm19422_vm4, %v5197_v32  ;;  %vm19446_vm4 = vmmov %vm19401_vm1 }
 0x775   :  { %9845 = vmatmul.msk.f32.gmra.mxu2 %vm19401_vm1, %v7681_v51  ;;  %v19438_v51 = vld [vmem:[#allocation19_spill] sm:$0xff]  ;;  %vm19459_vm8 = vmmov %vm19444_vm3 }
 0x776   :  { %v7198_v19 = vpop.f32.mrf.mxu1 }
 0x777   :  { %v5699_v36 = vpop.f32.mrf.mxu3  ;;  %v7344_v45 = vadd.f32 %v7198_v19, %v6622_v34  ;;  %v5199_v34 = vld [vmem:[#allocation2 + $0x179] sm:$0xff] }
 0x778   :  { %v5839_v40 = vadd.f32 %v5699_v36, %v19426_v49  ;;  %v7987_v27 = vpop.f32.mrf.mxu2  ;;  %v7683_v36 = vsel %vm19444_vm3, %v5199_v34, 0.0  ;;  %v9893_v19 = vld [vmem:[%s17231_s0 + $0x60] sm:$0xff]  ;;  %v19445_v49 = vld [vmem:[#allocation172_spill] sm:$0xff] }
 0x779   :  { %9780 = vmatmul.msk.f32.gmra.mxu1 %vm19429_vm9, %v6894_v37  ;;  %v14989_v35 = vadd.f32 %v7984_v5, %v7344_v45  ;;  %v9892_v5 = vld [vmem:[%s17231_s0 + $0x58] sm:$0xff]  ;;  %8198 = vrot.lane.b32.xlu0 %v9893_v19, %s9946_s3  ;;  %v6624_v9 = vadd.f32 %v19445_v49, %v5838_v56  ;;  %v6704_v45 = vld [vmem:[#allocation2 + $0x170] sm:$0xff]  ;;  %vm19453_vm9 = vmmov %vm19401_vm1 }
 0x77a   :  { %8196 = vrot.lane.b32.xlu2 %v9892_v5, %s9946_s3  ;;  %8200 = vrot.lane.b32.xlu1 %v9894_v60, %s9946_s3  ;;  %v6896_v47 = vsel %vm19449_vm14, %v6704_v45, 0.0  ;;  %v5392_v5 = vsel %vm19452_vm12, %v5200_v21, 0.0  ;;  %v19458_v49 = vld [vmem:[#allocation13_spill] sm:$0xff] }
 0x77b   :  { %19430 = vst [vmem:[#allocation22_spill] sm:$0xff] %v14989_v35 }
 0x77c   :  { %9656 = vmatmul.msk.f32.gmra.mxu3 %vm19433_vm10, %v5390_v48  ;;  %vm19457_vm10 = vmmov %vm19401_vm1 }
 0x77d   :  { %9846 = vmatmul.msk.f32.gmra.mxu2 %vm19437_vm15, %v7682_v41  ;;  %vm19460_vm15 = vmmov %vm19401_vm1 }
 0x77e   :  { %v7201_v42 = vpop.f32.mrf.mxu1 }
 0x77f   :  { %v5702_v32 = vpop.f32.mrf.mxu3  ;;  %v7345_v16 = vadd.f32 %v7201_v42, %v6623_v14  ;;  %v9896_v42 = vld [vmem:[%s17231_s0 + $0x78] sm:$0xff] }
 0x780   :  { %v5840_v43 = vadd.f32 %v5702_v32, %v19438_v51  ;;  %v7990_v22 = vpop.f32.mrf.mxu2  ;;  %v7684_v32 = vsel %vm19455_vm5, %v5200_v21, 0.0  ;;  %v19456_v51 = vld [vmem:[#allocation10_spill] sm:$0xff]  ;;  %v9899_v21 = vld [vmem:[%s17231_s0 + $0x90] sm:$0xff] }
 0x781   :  { %9781 = vmatmul.msk.f32.gmra.mxu1 %vm19440_vm11, %v6895_v46  ;;  %v15014_v3 = vadd.f32 %v7987_v27, %v7345_v16  ;;  %v9895_v27 = vld [vmem:[%s17231_s0 + $0x70] sm:$0xff]  ;;  %8204 = vrot.lane.b32.xlu0 %v9896_v42, %s9946_s3  ;;  %v6625_v16 = vadd.f32 %v19456_v51, %v5839_v40  ;;  %v6705_v46 = vld [vmem:[#allocation2 + $0x178] sm:$0xff] }
 0x782   :  { %8202 = vrot.lane.b32.xlu2 %v9895_v27, %s9946_s3  ;;  %v5201_v27 = vld [vmem:[#allocation2 + $0x189] sm:$0xff]  ;;  %v6897_v45 = vsel %vm19459_vm8, %v6705_v46, 0.0  ;;  %v5202_v42 = vld [vmem:[#allocation2 + $0x191] sm:$0xff]  ;;  %vm19481_vm8 = vmmov %vm19401_vm1 }
 0x783   :  { %19441 = vst [vmem:[#allocation14_spill] sm:$0xff] %v15014_v3  ;;  %v19472_v46 = vld [vmem:[#allocation140_spill] sm:$0xff] }
 0x784   :  { %9657 = vmatmul.msk.f32.gmra.mxu3 %vm19442_vm13, %v5199_v34  ;;  %v9898_v34 = vld [vmem:[%s17231_s0 + $0x88] sm:$0xff]  ;;  %vm19466_vm13 = vmmov %vm19401_vm1  ;;  %vm19473_vm14 = vnez %v19472_v46 }
 0x785   :  { %9847 = vmatmul.msk.f32.gmra.mxu2 %vm19446_vm4, %v7683_v36  ;;  %vm19470_vm4 = vmmov %vm19401_vm1 }
 0x786   :  { %v7204_v37 = vpop.f32.mrf.mxu1 }
 0x787   :  { %v5705_v0 = vpop.f32.mrf.mxu3  ;;  %v7346_v41 = vadd.f32 %v7204_v37, %v6624_v9  ;;  %v19463_v37 = vld [vmem:[#allocation39_spill] sm:$0xff] }
 0x788   :  { %v5841_v48 = vadd.f32 %v5705_v0, %v19447_v57  ;;  %v7993_v56 = vpop.f32.mrf.mxu2  ;;  %vm19464_vm11 = vcmp.lt.s32.totalorder %v19463_v37, 15  ;;  %v9906_v37 = vld [vmem:[%s17231_s0 + $0xc8] sm:$0xff] }
 0x789   :  { %9782 = vmatmul.msk.f32.gmra.mxu1 %vm19401_vm1, %v6896_v47  ;;  %v15037_v14 = vadd.f32 %v7990_v22, %v7346_v41  ;;  %v9897_v22 = vld [vmem:[%s17231_s0 + $0x80] sm:$0xff]  ;;  %v7685_v57 = vsel %vm19464_vm11, %v5201_v27, 0.0  ;;  %8210 = vrot.lane.b32.xlu0 %v9899_v21, %s9946_s3  ;;  %v19465_v41 = vld [vmem:[#allocation176_spill] sm:$0xff]  ;;  %vm19478_vm5 = vmmov %vm19464_vm11 }
 0x78a   :  { %8206 = vrot.lane.b32.xlu1 %v9897_v22, %s9946_s3  ;;  %8208 = vrot.lane.b32.xlu2 %v9898_v34, %s9946_s3  ;;  %v6626_v55 = vadd.f32 %v19465_v41, %v5840_v43  ;;  %v6706_v47 = vld [vmem:[#allocation2 + $0x180] sm:$0xff] }
 0x78b   :  { %19450 = vst [vmem:[#allocation179_spill] sm:$0xff] %v15037_v14 }
 0x78c   :  { %9658 = vmatmul.msk.f32.gmra.mxu3 %vm19453_vm9, %v5392_v5  ;;  %vm19476_vm9 = vmmov %vm19401_vm1 }
 0x78d   :  { %9848 = vmatmul.msk.f32.gmra.mxu2 %vm19457_vm10, %v7684_v32  ;;  %vm19479_vm10 = vmmov %vm19401_vm1 }
 0x78e   :  { %v7207_v19 = vpop.f32.mrf.mxu1 }
 0x78f   :  { %v5708_v36 = vpop.f32.mrf.mxu3  ;;  %v7347_v60 = vadd.f32 %v7207_v19, %v6625_v16  ;;  %v19468_v16 = vld [vmem:[#allocation36_spill] sm:$0xff]  ;;  %v19474_v19 = vld [vmem:[#allocation143_spill] sm:$0xff] }
 0x790   :  { %v5842_v9 = vadd.f32 %v5708_v36, %v19458_v49  ;;  %v7996_v40 = vpop.f32.mrf.mxu2  ;;  %vm19469_vm3 = vcmp.lt.s32.totalorder %v19468_v16, 15  ;;  %v5394_v36 = vsel %vm19473_vm14, %v5202_v42, 0.0  ;;  %vm19475_vm12 = vnez %v19474_v19  ;;  %v19486_v19 = vld [vmem:[#allocation178_spill] sm:$0xff] }
 0x791   :  { %9783 = vmatmul.msk.f32.gmra.mxu1 %vm19460_vm15, %v6897_v45  ;;  %v15062_v0 = vadd.f32 %v7993_v56, %v7347_v60  ;;  %v9901_v56 = vld [vmem:[%s17231_s0 + $0xa0] sm:$0xff]  ;;  %v6898_v22 = vsel %vm19469_vm3, %v6706_v47, 0.0  ;;  %v7686_v49 = vsel %vm19475_vm12, %v5202_v42, 0.0  ;;  %v9902_v60 = vld [vmem:[%s17231_s0 + $0xa8] sm:$0xff]  ;;  %v9904_v45 = vld [vmem:[%s17231_s0 + $0xb8] sm:$0xff] }
 0x792   :  { %8212 = vrot.lane.b32.xlu1 %v9900_v24, %s9946_s3  ;;  %8214 = vrot.lane.b32.xlu2 %v9901_v56, %s9946_s3  ;;  %v5203_v56 = vld [vmem:[#allocation2 + $0x199] sm:$0xff] }
 0x793   :  { %19461 = vst [vmem:[#allocation23_spill] sm:$0xff] %v15062_v0  ;;  %8216 = vrot.lane.b32.xlu0 %v9902_v60, %s9946_s3  ;;  %v9905_v42 = vld [vmem:[%s17231_s0 + $0xc0] sm:$0xff] }
 0x794   :  { %9659 = vmatmul.msk.f32.gmra.mxu3 %vm19462_vm6, %v5201_v27  ;;  %v6627_v27 = vadd.f32 %v14175_v1, %v5841_v48  ;;  %vm19485_vm6 = vmmov %vm19401_vm1  ;;  %v5204_v60 = vld [vmem:[#allocation2 + $0x1a1] sm:$0xff] }
 0x795   :  { %9849 = vmatmul.msk.f32.gmra.mxu2 %vm19466_vm13, %v7685_v57  ;;  %v6707_v57 = vld [vmem:[#allocation2 + $0x188] sm:$0xff]  ;;  %vm19489_vm13 = vmmov %vm19401_vm1 }
 0x796   :  { %v7210_v5 = vpop.f32.mrf.mxu1  ;;  %v6899_v47 = vsel %vm19478_vm5, %v6707_v57, 0.0  ;;  %vm19501_vm5 = vmmov %vm19401_vm1 }
 0x797   :  { %v5711_v6 = vpop.f32.mrf.mxu3  ;;  %v7348_v51 = vadd.f32 %v7210_v5, %v6626_v55  ;;  %v19477_v55 = vld [vmem:[#allocation25_spill] sm:$0xff]  ;;  %v19482_v5 = vld [vmem:[#allocation46_spill] sm:$0xff] }
 0x798   :  { %v5843_v32 = vadd.f32 %v5711_v6, %v19467_v7  ;;  %v7999_v43 = vpop.f32.mrf.mxu2  ;;  %vm19483_vm15 = vcmp.lt.s32.totalorder %v19482_v5, 15  ;;  %v9912_v5 = vld [vmem:[%s17231_s0 + $0xf8] sm:$0xff] }
 0x799   :  { %9784 = vmatmul.msk.f32.gmra.mxu1 %vm19470_vm4, %v6898_v22  ;;  %v15085_v34 = vadd.f32 %v7996_v40, %v7348_v51  ;;  %v9903_v40 = vld [vmem:[%s17231_s0 + $0xb0] sm:$0xff]  ;;  %v7687_v7 = vsel %vm19483_vm15, %v5203_v56, 0.0  ;;  %v19484_v51 = vld [vmem:[#allocation4_spill] sm:$0xff]  ;;  %vm19493_vm4 = vmmov %vm19401_vm1 }
 0x79a   :  { %8218 = vrot.lane.b32.xlu1 %v9903_v40, %s9946_s3  ;;  %8220 = vrot.lane.b32.xlu2 %v9904_v45, %s9946_s3  ;;  %v6628_v16 = vadd.f32 %v19484_v51, %v5842_v9  ;;  %v6708_v22 = vld [vmem:[#allocation2 + $0x190] sm:$0xff]  ;;  %v6709_v51 = vld [vmem:[#allocation2 + $0x198] sm:$0xff]  ;;  %vm19498_vm12 = vmmov %vm19483_vm15 }
 0x79b   :  { %19471 = vst [vmem:[#allocation182_spill] sm:$0xff] %v15085_v34  ;;  %8222 = vrot.lane.b32.xlu0 %v9905_v42, %s9946_s3  ;;  %v19487_v40 = vld [vmem:[#allocation43_spill] sm:$0xff]  ;;  %v9910_v42 = vld [vmem:[%s17231_s0 + $0xe8] sm:$0xff] }
 0x79c   :  { %9660 = vmatmul.msk.f32.gmra.mxu3 %vm19401_vm1, %v5394_v36  ;;  %vm19488_vm11 = vcmp.lt.s32.totalorder %v19487_v40, 15 }
 0x79d   :  { %9850 = vmatmul.msk.f32.gmra.mxu2 %vm19476_vm9, %v7686_v49  ;;  %v6900_v45 = vsel %vm19488_vm11, %v6708_v22, 0.0  ;;  %vm19499_vm9 = vmmov %vm19401_vm1 }
 0x79e   :  { %v7213_v41 = vpop.f32.mrf.mxu1 }
 0x79f   :  { %v5714_v21 = vpop.f32.mrf.mxu3  ;;  %v7349_v48 = vadd.f32 %v7213_v41, %v6627_v27 }
 0x7a0   :  { %v5844_v24 = vadd.f32 %v5714_v21, %v19477_v55  ;;  %v8002_v1 = vpop.f32.mrf.mxu2  ;;  %v19491_v21 = vld [vmem:[#allocation142_spill] sm:$0xff]  ;;  %v19494_v55 = vld [vmem:[#allocation145_spill] sm:$0xff] }
 0x7a1   :  { %9785 = vmatmul.msk.f32.gmra.mxu1 %vm19479_vm10, %v6899_v47  ;;  %v15110_v6 = vadd.f32 %v7999_v43, %v7349_v48  ;;  %v9907_v43 = vld [vmem:[%s17231_s0 + $0xd0] sm:$0xff]  ;;  %vm19492_vm3 = vnez %v19491_v21  ;;  %vm19495_vm14 = vnez %v19494_v55  ;;  %v19496_v47 = vld [vmem:[#allocation181_spill] sm:$0xff]  ;;  %v19504_v21 = vld [vmem:[#allocation30_spill] sm:$0xff] }
 0x7a2   :  { %8224 = vrot.lane.b32.xlu1 %v9906_v37, %s9946_s3  ;;  %8226 = vrot.lane.b32.xlu2 %v9907_v43, %s9946_s3  ;;  %v5396_v41 = vsel %vm19492_vm3, %v5204_v60, 0.0  ;;  %v7688_v48 = vsel %vm19495_vm14, %v5204_v60, 0.0  ;;  %v19497_v43 = vld [vmem:[#allocation180_spill] sm:$0xff]  ;;  %v6710_v55 = vld [vmem:[#allocation2 + $0x1a0] sm:$0xff] }
 0x7a3   :  { %19480 = vst [vmem:[#allocation16_spill] sm:$0xff] %v15110_v6 }
 0x7a4   :  { %9661 = vmatmul.msk.f32.gmra.mxu3 %vm19481_vm8, %v5203_v56  ;;  %v9908_v56 = vld [vmem:[%s17231_s0 + $0xd8] sm:$0xff]  ;;  %vm19505_vm8 = vmmov %vm19401_vm1 }
 0x7a5   :  { %9851 = vmatmul.msk.f32.gmra.mxu2 %vm19485_vm6, %v7687_v7  ;;  %8228 = vrot.lane.b32.xlu0 %v9908_v56, %s9946_s3  ;;  %v6629_v7 = vadd.f32 %v19496_v47, %v5843_v32  ;;  %v19506_v47 = vld [vmem:[#allocation18_spill] sm:$0xff]  ;;  %vm19509_vm6 = vmmov %vm19401_vm1 }
 0x7a6   :  { %v7216_v36 = vpop.f32.mrf.mxu1 }
 0x7a7   :  { %v5717_v46 = vpop.f32.mrf.mxu3  ;;  %v7350_v27 = vadd.f32 %v7216_v36, %v6628_v16  ;;  %v5205_v36 = vld [vmem:[#allocation2 + $0x1a9] sm:$0xff] }
 0x7a8   :  { %v5845_v49 = vadd.f32 %v5717_v46, %v19486_v19  ;;  %v8005_v9 = vpop.f32.mrf.mxu2  ;;  %v6901_v19 = vsel %vm19498_vm12, %v6709_v51, 0.0  ;;  %v19507_v51 = vld [vmem:[#allocation50_spill] sm:$0xff]  ;;  %vm19521_vm12 = vmmov %vm19401_vm1 }
 0x7a9   :  { %9786 = vmatmul.msk.f32.gmra.mxu1 %vm19489_vm13, %v6900_v45  ;;  %v15133_v57 = vadd.f32 %v8002_v1, %v7350_v27  ;;  %v9909_v1 = vld [vmem:[%s17231_s0 + $0xe0] sm:$0xff]  ;;  %v9911_v45 = vld [vmem:[%s17231_s0 + $0xf0] sm:$0xff]  ;;  %vm19508_vm15 = vcmp.lt.s32.totalorder %v19507_v51, 15  ;;  %vm19513_vm13 = vmmov %vm19401_vm1  ;;  %v15205_v51 = vpop.f32.mrf.mxu0 }
 0x7aa   :  { %8230 = vrot.lane.b32.xlu1 %v9909_v1, %s9946_s3  ;;  %8232 = vrot.lane.b32.xlu2 %v9910_v42, %s9946_s3  ;;  %v19502_v27 = vld [vmem:[#allocation53_spill] sm:$0xff]  ;;  %v5206_v1 = vld [vmem:[#allocation2 + $0x1b1] sm:$0xff] }
 0x7ab   :  { %19490 = vst [vmem:[#allocation27_spill] sm:$0xff] %v15133_v57  ;;  %vm19503_vm10 = vcmp.lt.s32.totalorder %v19502_v27, 15 }
 0x7ac   :  { %9662 = vmatmul.msk.f32.gmra.mxu3 %vm19493_vm4, %v5396_v41  ;;  %v7689_v40 = vsel %vm19503_vm10, %v5205_v36, 0.0  ;;  %v6630_v41 = vadd.f32 %v19504_v21, %v5844_v24  ;;  %vm19517_vm4 = vmmov %vm19401_vm1 }
 0x7ad   :  { %9852 = vmatmul.msk.f32.gmra.mxu2 %vm19401_vm1, %v7688_v48  ;;  %8234 = vrot.lane.b32.xlu0 %v9911_v45, %s9946_s3  ;;  %v19516_v45 = vld [vmem:[#allocation186_spill] sm:$0xff]  ;;  %vm19519_vm14 = vmmov %vm19503_vm10 }
 0x7ae   :  { %v7219_v37 = vpop.f32.mrf.mxu1  ;;  %v6631_v21 = vadd.f32 %v19516_v45, %v5845_v49  ;;  %v6712_v45 = vld [vmem:[#allocation2 + $0x1b0] sm:$0xff] }
 0x7af   :  { %v5720_v16 = vpop.f32.mrf.mxu3  ;;  %v7351_v46 = vadd.f32 %v7219_v37, %v6629_v7 }
 0x7b0   :  { %v5846_v22 = vadd.f32 %v5720_v16, %v19497_v43  ;;  %v8008_v32 = vpop.f32.mrf.mxu2  ;;  %v6902_v16 = vsel %vm19508_vm15, %v6710_v55, 0.0  ;;  %v19511_v43 = vld [vmem:[#allocation146_spill] sm:$0xff] }
 0x7b1   :  { %9787 = vmatmul.msk.f32.gmra.mxu1 %vm19499_vm9, %v6901_v19  ;;  %v15158_v60 = vadd.f32 %v8005_v9, %v7351_v46  ;;  %v9913_v9 = vld [vmem:[%s17231_s0 + $0x100] sm:$0xff]  ;;  %vm19512_vm11 = vnez %v19511_v43  ;;  %v19522_v43 = vld [vmem:[#allocation60_spill] sm:$0xff] }
 0x7b2   :  { %8236 = vrot.lane.b32.xlu1 %v9912_v5, %s9946_s3  ;;  %8238 = vrot.lane.b32.xlu2 %v9913_v9, %s9946_s3  ;;  %v5398_v46 = vsel %vm19512_vm11, %v5206_v1, 0.0  ;;  %v6711_v5 = vld [vmem:[#allocation2 + $0x1a8] sm:$0xff]  ;;  %vm19523_vm9 = vcmp.lt.s32.totalorder %v19522_v43, 15  ;;  %v9924_v43 = vld [vmem:[%s17231_s0 + $0x158] sm:$0xff] }
 0x7b3   :  { %19500 = vst [vmem:[#allocation184_spill] sm:$0xff] %v15158_v60 }
 0x7b4   :  { %9663 = vmatmul.msk.f32.gmra.mxu3 %vm19501_vm5, %v5205_v36  ;;  %v19514_v36 = vld [vmem:[#allocation148_spill] sm:$0xff]  ;;  %vm19525_vm5 = vmmov %vm19401_vm1 }
 0x7b5   :  { %9853 = vmatmul.msk.f32.gmra.mxu2 %vm19505_vm8, %v7689_v40  ;;  %vm19515_vm3 = vnez %v19514_v36  ;;  %v9914_v40 = vld [vmem:[%s17231_s0 + $0x108] sm:$0xff]  ;;  %v9917_v36 = vld [vmem:[%s17231_s0 + $0x120] sm:$0xff]  ;;  %vm19529_vm8 = vmmov %vm19401_vm1 }
 0x7b6   :  { %v7222_v56 = vpop.f32.mrf.mxu1  ;;  %v7690_v19 = vsel %vm19515_vm3, %v5206_v1, 0.0  ;;  %8240 = vrot.lane.b32.xlu0 %v9914_v40, %s9946_s3  ;;  %v5207_v1 = vld [vmem:[#allocation2 + $0x1b9] sm:$0xff]  ;;  %v9919_v40 = vld [vmem:[%s17231_s0 + $0x130] sm:$0xff]  ;;  %vm19539_vm3 = vmmov %vm19523_vm9 }
 0x7b7   :  { %v5723_v48 = vpop.f32.mrf.mxu3  ;;  %v7352_v42 = vadd.f32 %v7222_v56, %v6630_v41  ;;  %v9916_v41 = vld [vmem:[%s17231_s0 + $0x118] sm:$0xff] }
 0x7b8   :  { %v5847_v7 = vadd.f32 %v5723_v48, %v19506_v47  ;;  %v8011_v24 = vpop.f32.mrf.mxu2  ;;  %v19518_v48 = vld [vmem:[#allocation183_spill] sm:$0xff] }
 0x7b9   :  { %9788 = vmatmul.msk.f32.gmra.mxu1 %vm19509_vm6, %v6902_v16  ;;  %v15181_v37 = vadd.f32 %v8008_v32, %v7352_v42  ;;  %v9915_v32 = vld [vmem:[%s17231_s0 + $0x110] sm:$0xff]  ;;  %v6903_v42 = vsel %vm19519_vm14, %v6711_v5, 0.0  ;;  %vm19533_vm6 = vmmov %vm19401_vm1 }
 0x7ba   :  { %8242 = vrot.lane.b32.xlu1 %v9915_v32, %s9946_s3  ;;  %8244 = vrot.lane.b32.xlu2 %v9916_v41, %s9946_s3  ;;  %v19526_v41 = vld [vmem:[#allocation185_spill] sm:$0xff]  ;;  %vm19542_vm14 = vmmov %vm19401_vm1 }
 0x7bb   :  { %19510 = vst [vmem:[#allocation26_spill] sm:$0xff] %v15181_v37 }
 0x7bc   :  { %9664 = vmatmul.msk.f32.gmra.mxu3 %vm19513_vm13, %v5398_v46  ;;  %v7691_v46 = vsel %vm19523_vm9, %v5207_v1, 0.0  ;;  %vm19537_vm13 = vmmov %vm19401_vm1 }
 0x7bd   :  { %9854 = vmatmul.msk.f32.gmra.mxu2 %vm19517_vm4, %v7690_v19  ;;  %v19524_v19 = vld [vmem:[#allocation188_spill] sm:$0xff]  ;;  %vm19540_vm4 = vmmov %vm19401_vm1 }
 0x7be   :  { %v7225_v55 = vpop.f32.mrf.mxu1  ;;  %8246 = vrot.lane.b32.xlu0 %v9917_v36, %s9946_s3  ;;  %v6632_v27 = vadd.f32 %v19524_v19, %v5846_v22  ;;  %v19534_v36 = vld [vmem:[#allocation151_spill] sm:$0xff] }
 0x7bf   :  { %v5726_v9 = vpop.f32.mrf.mxu3  ;;  %v7353_v47 = vadd.f32 %v7225_v55, %v6631_v21  ;;  %vm19535_vm11 = vnez %v19534_v36 }
 0x7c0   :  { %v5848_v56 = vadd.f32 %v5726_v9, %v19518_v48  ;;  %v8014_v49 = vpop.f32.mrf.mxu2  ;;  %v5208_v9 = vld [vmem:[#allocation2 + $0x1c1] sm:$0xff] }
 0x7c1   :  { %9789 = vmatmul.msk.f32.gmra.mxu1 %vm19401_vm1, %v6903_v42  ;;  %v15208_v16 = vadd.f32 %v8011_v24, %v7353_v47  ;;  %v9918_v24 = vld [vmem:[%s17231_s0 + $0x128] sm:$0xff]  ;;  %v19531_v42 = vld [vmem:[#allocation147_spill] sm:$0xff]  ;;  %v7692_v19 = vsel %vm19535_vm11, %v5208_v9, 0.0 }
 0x7c2   :  { %8248 = vrot.lane.b32.xlu1 %v9918_v24, %s9946_s3  ;;  %8250 = vrot.lane.b32.xlu2 %v9919_v40, %s9946_s3  ;;  %v19527_v48 = vld [vmem:[#allocation58_spill] sm:$0xff]  ;;  %vm19532_vm15 = vnez %v19531_v42  ;;  %v9920_v24 = vld [vmem:[%s17231_s0 + $0x138] sm:$0xff] }
 0x7c3   :  { %19520 = vst [vmem:[#allocation187_spill] sm:$0xff] %v15208_v16  ;;  %vm19528_vm10 = vcmp.lt.s32.totalorder %v19527_v48, 15  ;;  %v19536_v40 = vld [vmem:[#allocation190_spill] sm:$0xff] }
 0x7c4   :  { %9665 = vmatmul.msk.f32.gmra.mxu3 %vm19521_vm12, %v5207_v1  ;;  %v6904_v47 = vsel %vm19528_vm10, %v6712_v45, 0.0  ;;  %v6633_v45 = vadd.f32 %v19536_v40, %v5847_v7  ;;  %v5209_v42 = vld [vmem:[#allocation2 + $0x1c9] sm:$0xff]  ;;  %vm19546_vm12 = vmmov %vm19540_vm4 }
 0x7c5   :  { %9855 = vmatmul.msk.f32.gmra.mxu2 %vm19525_vm5, %v7691_v46  ;;  %v5400_v46 = vsel %vm19532_vm15, %v5208_v9, 0.0  ;;  %v9923_v40 = vld [vmem:[%s17231_s0 + $0x150] sm:$0xff]  ;;  %vm19550_vm5 = vmmov %vm19540_vm4  ;;  %vm19556_vm15 = vnez %v19555_v26  ;;  %v9928_v26 = vld [vmem:[%s17231_s0 + $0x178] sm:$0xff] }
 0x7c6   :  { %v7228_v32 = vpop.f32.mrf.mxu1  ;;  %8252 = vrot.lane.b32.xlu0 %v9920_v24, %s9946_s3 }
 0x7c7   :  { %v5729_v21 = vpop.f32.mrf.mxu3  ;;  %v7354_v55 = vadd.f32 %v7228_v32, %v6632_v27  ;;  %v15242_v27 = vpop.f32.mrf.mxu0  ;;  %v6713_v32 = vld [vmem:[#allocation2 + $0x1b8] sm:$0xff] }
 0x7c8   :  { %v5849_v5 = vadd.f32 %v5729_v21, %v19526_v41  ;;  %v8017_v22 = vpop.f32.mrf.mxu2  ;;  %v9922_v21 = vld [vmem:[%s17231_s0 + $0x148] sm:$0xff] }
 0x7c9   :  { %9790 = vmatmul.msk.f32.gmra.mxu1 %vm19529_vm8, %v6904_v47  ;;  %v15231_v1 = vadd.f32 %v8014_v49, %v7354_v55  ;;  %v9921_v49 = vld [vmem:[%s17231_s0 + $0x140] sm:$0xff]  ;;  %vm19554_vm8 = vmmov %vm19540_vm4 }
 0x7ca   :  { %8254 = vrot.lane.b32.xlu1 %v9921_v49, %s9946_s3  ;;  %8256 = vrot.lane.b32.xlu2 %v9922_v21, %s9946_s3  ;;  %v19538_v55 = vld [vmem:[#allocation33_spill] sm:$0xff] }
 0x7cb   :  { %19530 = vst [vmem:[#allocation5_spill] sm:$0xff] %v15231_v1 }
 0x7cc   :  { %9666 = vmatmul.msk.f32.gmra.mxu3 %vm19533_vm6, %v5400_v46  ;;  %v6905_v46 = vsel %vm19539_vm3, %v6713_v32, 0.0  ;;  %v6714_v32 = vld [vmem:[#allocation2 + $0x1c0] sm:$0xff]  ;;  %vm19558_vm6 = vmmov %vm19540_vm4 }
 0x7cd   :  { %9856 = vmatmul.msk.f32.gmra.mxu2 %vm19537_vm13, %v7692_v19  ;;  %v19543_v19 = vld [vmem:[#allocation82_spill] sm:$0xff]  ;;  %vm19561_vm13 = vmmov %vm19540_vm4 }
 0x7ce   :  { %v7231_v9 = vpop.f32.mrf.mxu1  ;;  %vm19544_vm1 = vcmp.lt.s32.totalorder %v19543_v19, 15  ;;  %8258 = vrot.lane.b32.xlu0 %v9923_v40, %s9946_s3  ;;  %vm19563_vm3 = vmmov %vm19540_vm4  ;;  %v9930_v19 = vld [vmem:[%s17231_s0 + $0x188] sm:$0xff] }
 0x7cf   :  { %v5732_v41 = vpop.f32.mrf.mxu3  ;;  %v7355_v47 = vadd.f32 %v7231_v9, %v6633_v45  ;;  %v7693_v24 = vsel %vm19544_vm1, %v5209_v42, 0.0  ;;  %v19545_v45 = vld [vmem:[#allocation193_spill] sm:$0xff]  ;;  %v15277_v21 = vpop.f32.mrf.mxu0  ;;  %vm19560_vm11 = vmmov %vm19544_vm1 }
 0x7d0   :  { %v5850_v48 = vadd.f32 %v5732_v41, %v19538_v55  ;;  %v8020_v7 = vpop.f32.mrf.mxu2  ;;  %v6634_v49 = vadd.f32 %v19545_v45, %v5848_v56  ;;  %v19547_v56 = vld [vmem:[#allocation37_spill] sm:$0xff] }
 0x7d1   :  { %9791 = vmatmul.msk.f32.gmra.mxu1 %vm19540_vm4, %v6905_v46  ;;  %v15258_v36 = vadd.f32 %v8017_v22, %v7355_v47  ;;  %v9925_v22 = vld [vmem:[%s17231_s0 + $0x160] sm:$0xff] }
 0x7d2   :  { %8260 = vrot.lane.b32.xlu1 %v9924_v43, %s9946_s3  ;;  %8262 = vrot.lane.b32.xlu2 %v9925_v22, %s9946_s3  ;;  %v19552_v43 = vld [vmem:[#allocation150_spill] sm:$0xff] }
 0x7d3   :  { %19541 = vst [vmem:[#allocation28_spill] sm:$0xff] %v15258_v36  ;;  %vm19553_vm10 = vnez %v19552_v43  ;;  %v5211_v43 = vld [vmem:[#allocation2 + $0x1d9] sm:$0xff] }
 0x7d4   :  { %9667 = vmatmul.msk.f32.gmra.mxu3 %vm19542_vm14, %v5209_v42  ;;  %v5210_v42 = vld [vmem:[#allocation2 + $0x1d1] sm:$0xff]  ;;  %vm19566_vm14 = vmmov %vm19563_vm3 }
 0x7d5   :  { %9857 = vmatmul.msk.f32.gmra.mxu2 %vm19546_vm12, %v7693_v24  ;;  %v19548_v24 = vld [vmem:[#allocation72_spill] sm:$0xff]  ;;  %v5402_v22 = vsel %vm19553_vm10, %v5210_v42, 0.0  ;;  %v7694_v17 = vsel %vm19556_vm15, %v5210_v42, 0.0  ;;  %vm19570_vm12 = vmmov %vm19563_vm3  ;;  %vm19576_vm10 = vnez %v19575_v12  ;;  %v9934_v12 = vld [vmem:[%s17231_s0 + $0x1a8] sm:$0xff] }
 0x7d6   :  { %v7234_v9 = vpop.f32.mrf.mxu1  ;;  %vm19549_vm9 = vcmp.lt.s32.totalorder %v19548_v24, 15 }
 0x7d7   :  { %v5735_v41 = vpop.f32.mrf.mxu3  ;;  %v7356_v46 = vadd.f32 %v7234_v9, %v6634_v49  ;;  %v6906_v40 = vsel %vm19549_vm9, %v6714_v32, 0.0  ;;  %v19557_v49 = vld [vmem:[#allocation195_spill] sm:$0xff]  ;;  %v6715_v9 = vld [vmem:[#allocation2 + $0x1c8] sm:$0xff]  ;;  %vm19573_vm9 = vnez %v19572_v23  ;;  %v9933_v23 = vld [vmem:[%s17231_s0 + $0x1a0] sm:$0xff] }
 0x7d8   :  { %v5851_v55 = vadd.f32 %v5735_v41, %v19547_v56  ;;  %v8023_v47 = vpop.f32.mrf.mxu2  ;;  %v9926_v41 = vld [vmem:[%s17231_s0 + $0x168] sm:$0xff]  ;;  %v6635_v32 = vadd.f32 %v19557_v49, %v5849_v5  ;;  %v19564_v49 = vld [vmem:[#allocation95_spill] sm:$0xff] }
 0x7d9   :  { %9792 = vmatmul.msk.f32.gmra.mxu1 %vm19550_vm5, %v6906_v40  ;;  %v15283_v45 = vadd.f32 %v8020_v7, %v7356_v46  ;;  %8264 = vrot.lane.b32.xlu0 %v9926_v41, %s9946_s3  ;;  %v9927_v7 = vld [vmem:[%s17231_s0 + $0x170] sm:$0xff]  ;;  %v15305_v40 = vpop.f32.mrf.mxu0  ;;  %vm19565_vm4 = vcmp.lt.s32.totalorder %v19564_v49, 15  ;;  %vm19574_vm5 = vmmov %vm19563_vm3 }
 0x7da   :  { %8266 = vrot.lane.b32.xlu1 %v9927_v7, %s9946_s3  ;;  %8268 = vrot.lane.b32.xlu2 %v9928_v26, %s9946_s3  ;;  %v19559_v46 = vld [vmem:[#allocation191_spill] sm:$0xff]  ;;  %v7695_v7 = vsel %vm19565_vm4, %v5211_v43, 0.0  ;;  %v9929_v26 = vld [vmem:[%s17231_s0 + $0x180] sm:$0xff]  ;;  %vm19579_vm15 = vmmov %vm19565_vm4 }
 0x7db   :  { %19551 = vst [vmem:[#allocation189_spill] sm:$0xff] %v15283_v45 }
 0x7dc   :  { %9668 = vmatmul.msk.f32.gmra.mxu3 %vm19554_vm8, %v5402_v22  ;;  %v6907_v22 = vsel %vm19560_vm11, %v6715_v9, 0.0  ;;  %v6716_v9 = vld [vmem:[#allocation2 + $0x1d0] sm:$0xff]  ;;  %vm19577_vm8 = vmmov %vm19563_vm3 }
 0x7dd   :  { %9858 = vmatmul.msk.f32.gmra.mxu2 %vm19558_vm6, %v7694_v17  ;;  %vm19580_vm6 = vmmov %vm19563_vm3 }
 0x7de   :  { %v7237_v42 = vpop.f32.mrf.mxu1  ;;  %vm19582_vm11 = vmmov %vm19563_vm3 }
 0x7df   :  { %v5738_v56 = vpop.f32.mrf.mxu3  ;;  %v7357_v17 = vadd.f32 %v7237_v42, %v6635_v32  ;;  %v6636_v32 = vadd.f32 %v14409_v25, %v5850_v48  ;;  %v5212_v48 = vld [vmem:[#allocation2 + $0x1e1] sm:$0xff] }
 0x7e0   :  { %v5852_v24 = vadd.f32 %v5738_v56, %v19559_v46  ;;  %v8026_v5 = vpop.f32.mrf.mxu2  ;;  %v19567_v46 = vld [vmem:[#allocation40_spill] sm:$0xff] }
 0x7e1   :  { %9793 = vmatmul.msk.f32.gmra.mxu1 %vm19561_vm13, %v6907_v22  ;;  %v15310_v41 = vadd.f32 %v8023_v47, %v7357_v17  ;;  %8270 = vrot.lane.b32.xlu0 %v9929_v26, %s9946_s3  ;;  %v9931_v47 = vld [vmem:[%s17231_s0 + $0x190] sm:$0xff]  ;;  %v19568_v22 = vld [vmem:[#allocation89_spill] sm:$0xff]  ;;  %v15332_v26 = vpop.f32.mrf.mxu0 }
 0x7e2   :  { %8272 = vrot.lane.b32.xlu1 %v9930_v19, %s9946_s3  ;;  %8274 = vrot.lane.b32.xlu2 %v9931_v47, %s9946_s3  ;;  %vm19569_vm1 = vcmp.lt.s32.totalorder %v19568_v22, 15  ;;  %v5404_v47 = vsel %vm19573_vm9, %v5212_v48, 0.0  ;;  %v5213_v22 = vld [vmem:[#allocation2 + $0x1e9] sm:$0xff]  ;;  %v6638_v49 = vadd.f32 %v15205_v51, %v5852_v24  ;;  %v5214_v24 = vld [vmem:[#allocation2 + $0x1f1] sm:$0xff] }
 0x7e3   :  { %19562 = vst [vmem:[#allocation7_spill] sm:$0xff] %v15310_v41 }
 0x7e4   :  { %9669 = vmatmul.msk.f32.gmra.mxu3 %vm19563_vm3, %v5211_v43 }
 0x7e5   :  { %9859 = vmatmul.msk.f32.gmra.mxu2 %vm19566_vm14, %v7695_v7  ;;  %v6908_v7 = vsel %vm19569_vm1, %v6716_v9, 0.0  ;;  %v6637_v9 = vadd.f32 %v14433_v18, %v5851_v55  ;;  %vm19587_vm14 = vmmov %vm19563_vm3 }
 0x7e6   :  { %v7240_v42 = vpop.f32.mrf.mxu1 }
 0x7e7   :  { %v5741_v56 = vpop.f32.mrf.mxu3  ;;  %v7358_v43 = vadd.f32 %v7240_v42, %v6636_v32  ;;  %v9932_v32 = vld [vmem:[%s17231_s0 + $0x198] sm:$0xff] }
 0x7e8   :  { %v5853_v17 = vadd.f32 %v5741_v56, %v19567_v46  ;;  %v8029_v25 = vpop.f32.mrf.mxu2  ;;  %v7696_v56 = vsel %vm19576_vm10, %v5212_v48, 0.0  ;;  %v19578_v48 = vld [vmem:[#allocation44_spill] sm:$0xff] }
 0x7e9   :  { %9794 = vmatmul.msk.f32.gmra.mxu1 %vm19570_vm12, %v6908_v7  ;;  %v15335_v19 = vadd.f32 %v8026_v5, %v7358_v43  ;;  %8276 = vrot.lane.b32.xlu0 %v9932_v32, %s9946_s3  ;;  %v6717_v5 = vld [vmem:[#allocation2 + $0x1d8] sm:$0xff]  ;;  %vm19591_vm12 = vmmov %vm19563_vm3 }
 0x7ea   :  { %8278 = vrot.lane.b32.xlu1 %v9933_v23, %s9946_s3  ;;  %8280 = vrot.lane.b32.xlu2 %v9934_v12, %s9946_s3  ;;  %v6909_v7 = vsel %vm19579_vm15, %v6717_v5, 0.0  ;;  %v9935_v23 = vld [vmem:[%s17231_s0 + $0x1b0] sm:$0xff]  ;;  %v9937_v12 = vld [vmem:[%s17231_s0 + $0x1c0] sm:$0xff]  ;;  %vm19599_vm15 = vmmov %vm19563_vm3 }
 0x7eb   :  { %19571 = vst [vmem:[#allocation192_spill] sm:$0xff] %v15335_v19  ;;  %v6718_v5 = vld [vmem:[#allocation2 + $0x1e0] sm:$0xff] }
 0x7ec   :  { %9670 = vmatmul.msk.f32.gmra.mxu3 %vm19574_vm5, %v5404_v47  ;;  %vm19594_vm5 = vmmov %vm19563_vm3 }
 0x7ed   :  { %9860 = vmatmul.msk.f32.gmra.mxu2 %vm19577_vm8, %v7696_v56  ;;  %v19583_v56 = vld [vmem:[#allocation108_spill] sm:$0xff]  ;;  %vm19597_vm8 = vmmov %vm19563_vm3 }
 0x7ee   :  { %v7243_v46 = vpop.f32.mrf.mxu1  ;;  %vm19584_vm13 = vcmp.lt.s32.totalorder %v19583_v56, 15  ;;  %v9942_v56 = vld [vmem:[%s17231_s0 + $0x1e8] sm:$0xff] }
 0x7ef   :  { %v5744_v42 = vpop.f32.mrf.mxu3  ;;  %v7359_v55 = vadd.f32 %v7243_v46, %v6637_v9  ;;  %v7697_v32 = vsel %vm19584_vm13, %v5213_v22, 0.0  ;;  %v15369_v9 = vpop.f32.mrf.mxu0  ;;  %vm19596_vm10 = vmmov %vm19584_vm13 }
 0x7f0   :  { %v5854_v43 = vadd.f32 %v5744_v42, %v19578_v48  ;;  %v8032_v18 = vpop.f32.mrf.mxu2 }
 0x7f1   :  { %9795 = vmatmul.msk.f32.gmra.mxu1 %vm19580_vm6, %v6909_v7  ;;  %v15360_v47 = vadd.f32 %v8029_v25, %v7359_v55  ;;  %8282 = vrot.lane.b32.xlu0 %v9935_v23, %s9946_s3  ;;  %v9936_v25 = vld [vmem:[%s17231_s0 + $0x1b8] sm:$0xff]  ;;  %v19589_v23 = vld [vmem:[#allocation154_spill] sm:$0xff] }
 0x7f2   :  { %8284 = vrot.lane.b32.xlu1 %v9936_v25, %s9946_s3  ;;  %8286 = vrot.lane.b32.xlu2 %v9937_v12, %s9946_s3  ;;  %vm19590_vm1 = vnez %v19589_v23  ;;  %v19592_v12 = vld [vmem:[#allocation158_spill] sm:$0xff] }
 0x7f3   :  { %19581 = vst [vmem:[#allocation31_spill] sm:$0xff] %v15360_v47  ;;  %v5406_v25 = vsel %vm19590_vm1, %v5214_v24, 0.0  ;;  %vm19593_vm9 = vnez %v19592_v12  ;;  %v19600_v12 = vld [vmem:[#allocation119_spill] sm:$0xff]  ;;  %vm19611_vm1 = vmmov %vm19563_vm3 }
 0x7f4   :  { %9671 = vmatmul.msk.f32.gmra.mxu3 %vm19582_vm11, %v5213_v22  ;;  %v19585_v22 = vld [vmem:[#allocation102_spill] sm:$0xff]  ;;  %v7698_v47 = vsel %vm19593_vm9, %v5214_v24, 0.0  ;;  %vm19601_vm6 = vcmp.lt.s32.totalorder %v19600_v12, 15  ;;  %vm19602_vm11 = vmmov %vm19563_vm3  ;;  %v19619_v12 = vld [vmem:[#allocation51_spill] sm:$0xff] }
 0x7f5   :  { %9861 = vmatmul.msk.f32.gmra.mxu2 %vm19563_vm3, %v7697_v32  ;;  %vm19586_vm4 = vcmp.lt.s32.totalorder %v19585_v22, 15  ;;  %vm19615_vm9 = vmmov %vm19611_vm1 }
 0x7f6   :  { %v7246_v46 = vpop.f32.mrf.mxu1  ;;  %v6910_v7 = vsel %vm19586_vm4, %v6718_v5, 0.0  ;;  %v9940_v5 = vld [vmem:[%s17231_s0 + $0x1d8] sm:$0xff]  ;;  %vm19608_vm4 = vmmov %vm19563_vm3 }
 0x7f7   :  { %v5747_v42 = vpop.f32.mrf.mxu3  ;;  %v7360_v55 = vadd.f32 %v7246_v46, %v6638_v49  ;;  %v6639_v49 = vadd.f32 %v15242_v27, %v5853_v17  ;;  %v6719_v46 = vld [vmem:[#allocation2 + $0x1e8] sm:$0xff]  ;;  %v19595_v27 = vld [vmem:[#allocation47_spill] sm:$0xff] }
 0x7f8   :  { %v5855_v48 = vadd.f32 %v5747_v42, %v14391_v44  ;;  %v8035_v51 = vpop.f32.mrf.mxu2  ;;  %v9938_v44 = vld [vmem:[%s17231_s0 + $0x1c8] sm:$0xff]  ;;  %v15406_v42 = vpop.f32.mrf.mxu0  ;;  %v6911_v23 = vsel %vm19596_vm10, %v6719_v46, 0.0  ;;  %vm19618_vm10 = vmmov %vm19611_vm1 }
 0x7f9   :  { %9796 = vmatmul.msk.f32.gmra.mxu1 %vm19587_vm14, %v6910_v7  ;;  %v15385_v32 = vadd.f32 %v8032_v18, %v7360_v55  ;;  %8288 = vrot.lane.b32.xlu0 %v9938_v44, %s9946_s3  ;;  %v9939_v18 = vld [vmem:[%s17231_s0 + $0x1d0] sm:$0xff]  ;;  %v5215_v7 = vld [vmem:[#allocation2 + $0x1f9] sm:$0xff] }
 0x7fa   :  { %8290 = vrot.lane.b32.xlu1 %v9939_v18, %s9946_s3  ;;  %8292 = vrot.lane.b32.xlu2 %v9940_v5, %s9946_s3  ;;  %v7699_v44 = vsel %vm19601_vm6, %v5215_v7, 0.0  ;;  %v9941_v18 = vld [vmem:[%s17231_s0 + $0x1e0] sm:$0xff]  ;;  %v6720_v5 = vld [vmem:[#allocation2 + $0x1f0] sm:$0xff] }
 0x7fb   :  { %19588 = vst [vmem:[#allocation35_spill] sm:$0xff] %v15385_v32 }
 0x7fc   :  { %9672 = vmatmul.msk.f32.gmra.mxu3 %vm19591_vm12, %v5406_v25  ;;  %vm19613_vm12 = vmmov %vm19611_vm1 }
 0x7fd   :  { %9862 = vmatmul.msk.f32.gmra.mxu2 %vm19594_vm5, %v7698_v47 }
 0x7fe   :  { %v7249_v55 = vpop.f32.mrf.mxu1 }
 0x7ff   :  { %v5750_v24 = vpop.f32.mrf.mxu3  ;;  %v7361_v22 = vadd.f32 %v7249_v55, %v6639_v49  ;;  %v6640_v49 = vadd.f32 %v15277_v21, %v5854_v43  ;;  %v19603_v55 = vld [vmem:[#allocation198_spill] sm:$0xff] }
 0x800   :  { %v5856_v17 = vadd.f32 %v5750_v24, %v19595_v27  ;;  %v8038_v47 = vpop.f32.mrf.mxu2  ;;  %v5216_v43 = vld [vmem:[#allocation2 + $0x201] sm:$0xff] }
 0x801   :  { %9797 = vmatmul.msk.f32.gmra.mxu1 %vm19597_vm8, %v6911_v23  ;;  %v15412_v25 = vadd.f32 %v8035_v51, %v7361_v22  ;;  %8294 = vrot.lane.b32.xlu0 %v9941_v18, %s9946_s3  ;;  %v9943_v51 = vld [vmem:[%s17231_s0 + $0x1f0] sm:$0xff]  ;;  %v15432_v22 = vpop.f32.mrf.mxu0  ;;  %v19604_v23 = vld [vmem:[#allocation114_spill] sm:$0xff] }
 0x802   :  { %8296 = vrot.lane.b32.xlu1 %v9942_v56, %s9946_s3  ;;  %8298 = vrot.lane.b32.xlu2 %v9943_v51, %s9946_s3  ;;  %vm19605_vm13 = vcmp.lt.s32.totalorder %v19604_v23, 15  ;;  %v5408_v51 = vsel %vm19047_vm0, %v5216_v43, 0.0  ;;  %v5217_v56 = vld [vmem:[#allocation2 + $0x209] sm:$0xff]  ;;  %vm19612_vm0 = vmmov %vm19601_vm6 }
 0x803   :  { %19598 = vst [vmem:[#allocation194_spill] sm:$0xff] %v15412_v25  ;;  %v19609_v25 = vld [vmem:[#allocation159_spill] sm:$0xff]  ;;  %vm19625_vm6 = vmmov %vm19611_vm1 }
 0x804   :  { %9673 = vmatmul.msk.f32.gmra.mxu3 %vm19599_vm15, %v5215_v7  ;;  %vm19610_vm14 = vnez %v19609_v25  ;;  %vm19622_vm15 = vmmov %vm19611_vm1 }
 0x805   :  { %9863 = vmatmul.msk.f32.gmra.mxu2 %vm19602_vm11, %v7699_v44  ;;  %v6912_v44 = vsel %vm19605_vm13, %v6720_v5, 0.0  ;;  %vm19628_vm13 = vmmov %vm19611_vm1 }
 0x806   :  { %v7252_v24 = vpop.f32.mrf.mxu1 }
 0x807   :  { %v5753_v46 = vpop.f32.mrf.mxu3  ;;  %v7362_v7 = vadd.f32 %v7252_v24, %v6640_v49  ;;  %v6641_v49 = vadd.f32 %v15305_v40, %v5855_v48  ;;  %v19616_v40 = vld [vmem:[#allocation136_spill] sm:$0xff] }
 0x808   :  { %v5857_v27 = vadd.f32 %v5753_v46, %v19603_v55  ;;  %v8041_v21 = vpop.f32.mrf.mxu2  ;;  %v7700_v46 = vsel %vm19610_vm14, %v5216_v43, 0.0  ;;  %v9944_v55 = vld [vmem:[%s17231_s0 + $0x1f8] sm:$0xff]  ;;  %vm19617_vm5 = vcmp.lt.s32.totalorder %v19616_v40, 15  ;;  %vm19632_vm14 = vmmov %vm19611_vm1  ;;  %v19636_v40 = vld [vmem:[#allocation201_spill] sm:$0xff] }
 0x809   :  { %9798 = vmatmul.msk.f32.gmra.mxu1 %vm19563_vm3, %v6912_v44  ;;  %v15437_v18 = vadd.f32 %v8038_v47, %v7362_v7  ;;  %8300 = vrot.lane.b32.xlu0 %v9944_v55, %s9946_s3  ;;  %v6721_v47 = vld [vmem:[#allocation2 + $0x1f8] sm:$0xff]  ;;  %v15453_v43 = vpop.f32.mrf.mxu0  ;;  %v7701_v48 = vsel %vm19617_vm5, %v5217_v56, 0.0 }
 0x80a   :  { %v6913_v25 = vsel %vm19612_vm0, %v6721_v47, 0.0  ;;  %vm19635_vm0 = vmmov %vm19611_vm1 }
 0x80b   :  { %19606 = vst [vmem:[#allocation34_spill] sm:$0xff] %v15437_v18 }
 0x80c   :  { %9674 = vmatmul.msk.f32.gmra.mxu3 %vm19608_vm4, %v5408_v51  ;;  %vm19631_vm4 = vmmov %vm19617_vm5 }
 0x80d   :  { %9864 = vmatmul.msk.f32.gmra.mxu2 %vm19611_vm1, %v7700_v46  ;;  %v6642_v46 = vadd.f32 %v15332_v26, %v5856_v17  ;;  %v19626_v17 = vld [vmem:[#allocation162_spill] sm:$0xff]  ;;  %vm19639_vm5 = vmmov %vm19635_vm0 }
 0x80e   :  { %v7255_v24 = vpop.f32.mrf.mxu1  ;;  %vm19627_vm11 = vnez %v19626_v17 }
 0x80f   :  { %v5756_v5 = vpop.f32.mrf.mxu3  ;;  %v7363_v44 = vadd.f32 %v7255_v24, %v6641_v49  ;;  %v5218_v24 = vld [vmem:[#allocation2 + $0x211] sm:$0xff] }
 0x810   :  { %v5858_v7 = vadd.f32 %v5756_v5, %v14441_v20  ;;  %v8044_v23 = vpop.f32.mrf.mxu2  ;;  %v6722_v20 = vld [vmem:[#allocation2 + $0x200] sm:$0xff]  ;;  %v5410_v26 = vsel %vm14398_vm7, %v5218_v24, 0.0 }
 0x811   :  { %9799 = vmatmul.msk.f32.gmra.mxu1 %vm19613_vm12, %v6913_v25  ;;  %v15456_v51 = vadd.f32 %v8041_v21, %v7363_v44  ;;  %v19620_v25 = vld [vmem:[#allocation124_spill] sm:$0xff] }
 0x812   :  { %vm19621_vm8 = vcmp.lt.s32.totalorder %v19620_v25, 15 }
 0x813   :  { %19614 = vst [vmem:[#allocation197_spill] sm:$0xff] %v15456_v51  ;;  %v6914_v21 = vsel %vm19621_vm8, %v6722_v20, 0.0  ;;  %v6551_v51 = vpop.f32.mrf.mxu0  ;;  %vm19648_vm8 = vmmov %vm19635_vm0 }
 0x814   :  { %9675 = vmatmul.msk.f32.gmra.mxu3 %vm19615_vm9, %v5217_v56 }
 0x815   :  { %9865 = vmatmul.msk.f32.gmra.mxu2 %vm19618_vm10, %v7701_v48  ;;  %v7702_v48 = vsel %vm19627_vm11, %v5218_v24, 0.0  ;;  %vm19641_vm10 = vmmov %vm19635_vm0 }
 0x816   :  { %v7258_v49 = vpop.f32.mrf.mxu1  ;;  %vm19651_vm11 = vmmov %vm19635_vm0 }
 0x817   :  { %v5759_v55 = vpop.f32.mrf.mxu3  ;;  %v7364_v18 = vadd.f32 %v7258_v49, %v6642_v46  ;;  %v6723_v46 = vld [vmem:[#allocation2 + $0x208] sm:$0xff] }
 0x818   :  { %v5859_v47 = vadd.f32 %v5759_v55, %v19619_v12  ;;  %v8047_v5 = vpop.f32.mrf.mxu2  ;;  %v6643_v55 = vadd.f32 %v15369_v9, %v5857_v27  ;;  %v19629_v12 = vld [vmem:[#allocation200_spill] sm:$0xff]  ;;  %v6915_v24 = vsel %vm19631_vm4, %v6723_v46, 0.0  ;;  %v19645_v9 = vld [vmem:[#allocation203_spill] sm:$0xff]  ;;  %vm19655_vm4 = vmmov %vm19635_vm0 }
 0x819   :  { %9800 = vmatmul.msk.f32.gmra.mxu1 %vm19622_vm15, %v6914_v21  ;;  %v15467_v44 = vadd.f32 %v8044_v23, %v7364_v18  ;;  %v19630_v23 = vld [vmem:[#allocation165_spill] sm:$0xff]  ;;  %vm19649_vm15 = vmmov %vm19635_vm0 }
 0x81a   :  { %vm1608_vm3 = vcmp.lt.s32.totalorder %v19630_v23, 15  ;;  %v5940_v21 = vld [vmem:[#allocation2 + $0x21f] sm:$0xff] }
 0x81b   :  { %19623 = vst [vmem:[#allocation38_spill] sm:$0xff] %v15467_v44  ;;  %v7447_v44 = vld [vmem:[#allocation2 + $0x219] sm:$0xff]  ;;  %vm7512_vm12 = vmand %vm1608_vm3, %vm14398_vm7 }
 0x81c   :  { %9676 = vmatmul.msk.f32.gmra.mxu3 %vm19625_vm6, %v5410_v26  ;;  %v6196_v26 = vsel %vm1608_vm3, %v5940_v21, 0.0  ;;  %v7703_v27 = vsel %vm1607_vm2, %v7447_v44, 0.0  ;;  %vm19643_vm7 = vmmov %vm19635_vm0 }
 0x81d   :  { %9866 = vmatmul.msk.f32.gmra.mxu2 %vm19628_vm13, %v7702_v48  ;;  %9740 = vmatmul.msk.f32.gmra.mxu0 %vm19632_vm14, %v6196_v26  ;;  %v6644_v48 = vadd.f32 %v15406_v42, %v5858_v7  ;;  %v7448_v26 = vld [vmem:[#allocation2 + $0x221] sm:$0xff]  ;;  %vm19650_vm6 = vmmov %vm19635_vm0 }
 0x81e   :  { %v7261_v20 = vpop.f32.mrf.mxu1  ;;  %v7704_v7 = vsel %vm7512_vm12, %v7448_v26, 0.0  ;;  %vm19652_vm13 = vmmov %vm19635_vm0 }
 0x81f   :  { %v5762_v49 = vpop.f32.mrf.mxu3  ;;  %v7365_v32 = vadd.f32 %v7261_v20, %v6643_v55  ;;  %v15490_v55 = vpop.f32.mrf.mxu0  ;;  %vm19656_vm14 = vmmov %vm19635_vm0 }
 0x820   :  { %v5860_v25 = vadd.f32 %v5762_v49, %v19629_v12  ;;  %v8050_v18 = vpop.f32.mrf.mxu2  ;;  %v6724_v49 = vld [vmem:[#allocation2 + $0x210] sm:$0xff]  ;;  %vm19659_vm12 = vmmov %vm19635_vm0 }
 0x821   :  { %9801 = vmatmul.msk.f32.gmra.mxu1 %vm19611_vm1, %v6915_v24  ;;  %v15486_v17 = vadd.f32 %v8047_v5, %v7365_v32  ;;  %v19637_v5 = vld [vmem:[#allocation149_spill] sm:$0xff]  ;;  %v6645_v24 = vadd.f32 %v15432_v22, %v5859_v47  ;;  %vm19658_vm1 = vmmov %vm19635_vm0 }
 0x822   :  { %vm19638_vm9 = vcmp.lt.s32.totalorder %v19637_v5, 15  ;;  %v6646_v22 = vadd.f32 %v15453_v43, %v5860_v25  ;;  %v6726_v47 = vld [vmem:[#allocation2 + $0x220] sm:$0xff]  ;;  %v8566_v25 = vmul.f32 %v14694_v63, %v14694_v63 }
 0x823   :  { %19634 = vst [vmem:[#allocation42_spill] sm:$0xff] %v15486_v17  ;;  %v6916_v42 = vsel %vm19638_vm9, %v6724_v49, 0.0  ;;  %v19642_v17 = vld [vmem:[#allocation54_spill] sm:$0xff]  ;;  %vm19660_vm9 = vmmov %vm19635_vm0 }
 0x825   :  { %9867 = vmatmul.msk.f32.gmra.mxu2 %vm19635_vm0, %v7703_v27  ;;  %v6725_v27 = vld [vmem:[#allocation2 + $0x218] sm:$0xff] }
 0x826   :  { %v7264_v12 = vpop.f32.mrf.mxu1  ;;  %v6917_v56 = vsel %vm1607_vm2, %v6725_v27, 0.0  ;;  %vm19646_vm2 = vmmov %vm19635_vm0 }
 0x827   :  { %v5765_v20 = vpop.f32.mrf.mxu3  ;;  %v7366_v32 = vadd.f32 %v7264_v12, %v6644_v48  ;;  %v15507_v5 = vpop.f32.mrf.mxu0 }
 0x828   :  { %v5861_v46 = vadd.f32 %v5765_v20, %v19636_v40  ;;  %v8053_v21 = vpop.f32.mrf.mxu2 }
 0x829   :  { %9802 = vmatmul.msk.f32.gmra.mxu1 %vm19639_vm5, %v6916_v42  ;;  %v15500_v44 = vadd.f32 %v8050_v18, %v7366_v32  ;;  %v6918_v42 = vsel %vm1608_vm3, %v6726_v47, 0.0  ;;  %vm19653_vm3 = vmmov %vm19635_vm0 }
 0x82a   :  { %v6647_v23 = vadd.f32 %v6551_v51, %v5861_v46  ;;  %v8568_v51 = vmul.f32 %v14720_v54, %v14720_v54  ;;  %vm19661_vm5 = vmmov %vm19635_vm0 }
 0x82b   :  { %19640 = vst [vmem:[#allocation199_spill] sm:$0xff] %v15500_v44 }
 0x82d   :  { %9868 = vmatmul.msk.f32.gmra.mxu2 %vm19641_vm10, %v7704_v7  ;;  %vm19662_vm10 = vmmov %vm19635_vm0 }
 0x82e   :  { %v7267_v40 = vpop.f32.mrf.mxu1 }
 0x82f   :  { %v5768_v20 = vpop.f32.mrf.mxu3  ;;  %v7367_v49 = vadd.f32 %v7267_v40, %v6645_v24  ;;  %v8565_v24 = vmul.f32 %v14683_v28, %v14683_v28  ;;  %v8431_v40 = vsel %vm19648_vm8, %v14683_v28, 0.0  ;;  %vm19667_vm8 = vmmov %vm19635_vm0 }
 0x830   :  { %v5862_v48 = vadd.f32 %v5768_v20, %v19642_v17  ;;  %v8056_v12 = vpop.f32.mrf.mxu2  ;;  %v15520_v20 = vpop.f32.mrf.mxu0 }
 0x831   :  { %9803 = vmatmul.msk.f32.gmra.mxu1 %vm19643_vm7, %v6917_v56  ;;  %v15510_v18 = vadd.f32 %v8053_v21, %v7367_v49  ;;  %v8564_v21 = vmul.f32 %v14668_v15, %v14668_v15  ;;  %v8629_v56 = vsel %vm19649_vm15, %v8565_v24, 0.0  ;;  %v8567_v49 = vmul.f32 %v14709_v52, %v14709_v52  ;;  %vm19664_vm7 = vmmov %vm19635_vm0 }
 0x832   :  { %vm19668_vm15 = vmmov %vm19635_vm0 }
 0x833   :  { %19644 = vst [vmem:[#allocation41_spill] sm:$0xff] %v15510_v18  ;;  %v8628_v47 = vsel %vm19651_vm11, %v8564_v21, 0.0  ;;  %v8435_v21 = vsel %vm19655_vm4, %v14709_v52, 0.0  ;;  %vm19670_vm11 = vmmov %vm19635_vm0 }
 0x834   :  { %v8630_v28 = vadd.f32 %v8629_v56, %v8628_v47  ;;  %v8439_v47 = vsel %vm19659_vm12, %v14735_v8, 0.0  ;;  %vm19673_vm4 = vmmov %vm19635_vm0 }
 0x835   :  { %vm19677_vm12 = vmmov %vm19635_vm0 }
 0x836   :  { %v7270_v32 = vpop.f32.mrf.mxu1 }
 0x837   :  { %v5771_v26 = vpop.f32.mrf.mxu3  ;;  %v7368_v27 = vadd.f32 %v7270_v32, %v6646_v22  ;;  %v8430_v22 = vsel %vm19650_vm6, %v14668_v15, 0.0  ;;  %v8631_v32 = vsel %vm19653_vm3, %v8566_v25, 0.0  ;;  %v8633_v15 = vsel %vm19656_vm14, %v8567_v49, 0.0  ;;  %vm19669_vm6 = vmmov %vm19635_vm0 }
 0x838   :  { %v15516_v7 = vadd.f32 %v5771_v26, %v19645_v9  ;;  %v8059_v17 = vpop.f32.mrf.mxu2  ;;  %v8432_v24 = vadd.f32 %v8431_v40, %v8430_v22  ;;  %v8632_v18 = vadd.f32 %v8631_v32, %v8630_v28  ;;  %v6563_v40 = vpop.f32.mrf.mxu0  ;;  %v6648_v49 = vadd.f32 %v15490_v55, %v5862_v48  ;;  %v19663_v48 = vld [vmem:[#allocation205_spill] sm:$0xff]  ;;  %vm19672_vm3 = vmmov %vm19635_vm0 }
 0x839   :  { %9804 = vmatmul.msk.f32.gmra.mxu1 %vm19646_vm2, %v6918_v42  ;;  %v15525_v43 = vadd.f32 %v8056_v12, %v7368_v27  ;;  %v8433_v12 = vsel %vm19652_vm13, %v14694_v63, 0.0  ;;  %v19654_v42 = vld [vmem:[#allocation57_spill] sm:$0xff]  ;;  %v8569_v63 = vmul.f32 %v14735_v8, %v14735_v8  ;;  %vm19665_vm2 = vmmov %vm19635_vm0 }
 0x83a   :  { %v8434_v25 = vadd.f32 %v8433_v12, %v8432_v24  ;;  %v8634_v22 = vadd.f32 %v8633_v15, %v8632_v18  ;;  %v8572_v15 = vmul.f32 %v14772_v11, %v14772_v11  ;;  %vm19671_vm13 = vmmov %vm19635_vm0 }
 0x83b   :  { %19647 = vst [vmem:[#allocation202_spill] sm:$0xff] %v15525_v43  ;;  %v8637_v28 = vsel %vm19660_vm9, %v8569_v63, 0.0  ;;  %vm19674_vm14 = vmmov %vm19635_vm0 }
 0x83c   :  { %v8436_v56 = vadd.f32 %v8435_v21, %v8434_v25  ;;  %vm19678_vm9 = vmmov %vm19635_vm0 }
 0x83e   :  { %v7273_v46 = vpop.f32.mrf.mxu1 }
 0x83f   :  { %v5774_v26 = vpop.f32.mrf.mxu3  ;;  %v7369_v43 = vadd.f32 %v7273_v46, %v6647_v23  ;;  %v8570_v23 = vmul.f32 %v14746_v31, %v14746_v31 }
 0x840   :  { %v15543_v9 = vadd.f32 %v5774_v26, %v19654_v42  ;;  %v8062_v27 = vpop.f32.mrf.mxu2  ;;  %v8437_v26 = vsel %vm19658_vm1, %v14720_v54, 0.0  ;;  %v8635_v42 = vsel %vm19635_vm0, %v8568_v51, 0.0  ;;  %v8441_v51 = vsel %vm19661_vm5, %v14746_v31, 0.0  ;;  %vm19676_vm1 = vmmov %vm19635_vm0 }
 0x841   :  { %v15550_v44 = vadd.f32 %v8059_v17, %v7369_v43  ;;  %v8571_v17 = vmul.f32 %v14761_v39, %v14761_v39  ;;  %v8438_v43 = vadd.f32 %v8437_v26, %v8436_v56  ;;  %v8636_v12 = vadd.f32 %v8635_v42, %v8634_v22  ;;  %vm19679_vm5 = vmmov %vm19635_vm0 }
 0x842   :  { %v8639_v46 = vsel %vm19662_vm10, %v8570_v23, 0.0  ;;  %v8443_v26 = vsel %vm19664_vm7, %v14761_v39, 0.0  ;;  %v8573_v56 = vmul.f32 %v14787_v50, %v14787_v50  ;;  %vm19680_vm10 = vmmov %vm19635_vm0 }
 0x843   :  { %19657 = vst [vmem:[#allocation45_spill] sm:$0xff] %v15550_v44  ;;  %v8440_v21 = vadd.f32 %v8439_v47, %v8438_v43  ;;  %v8638_v63 = vadd.f32 %v8637_v28, %v8636_v12  ;;  %v8641_v42 = vsel %vm19665_vm2, %v8571_v17, 0.0  ;;  %v8643_v47 = vsel %vm19668_vm15, %v8572_v15, 0.0  ;;  %vm19681_vm7 = vmmov %vm19635_vm0 }
 0x844   :  { %v6649_v17 = vadd.f32 %v15507_v5, %v15516_v7  ;;  %v8645_v12 = vsel %vm19670_vm11, %v8573_v56, 0.0  ;;  %v8576_v5 = vmul.f32 %v14822_v30, %v14822_v30  ;;  %v8577_v56 = vmul.f32 %v14833_v4, %v14833_v4  ;;  %vm19682_vm2 = vmmov %vm19635_vm0 }
 0x845   :  { %v8442_v23 = vadd.f32 %v8441_v51, %v8440_v21  ;;  %v8640_v31 = vadd.f32 %v8639_v46, %v8638_v63  ;;  %v15590_v51 = vpop.f32.mrf.mxu0  ;;  %vm19685_vm15 = vmmov %vm19635_vm0 }
 0x846   :  { %v7276_v55 = vpop.f32.mrf.mxu1  ;;  %vm19687_vm11 = vmmov %vm19635_vm0 }
 0x847   :  { %v5777_v32 = vpop.f32.mrf.mxu3  ;;  %v7370_v25 = vadd.f32 %v7276_v55, %v6648_v49  ;;  %v8574_v49 = vmul.f32 %v14798_v2, %v14798_v2  ;;  %v8444_v28 = vadd.f32 %v8443_v26, %v8442_v23  ;;  %v8642_v43 = vadd.f32 %v8641_v42, %v8640_v31 }
 0x848   :  { %v5865_v18 = vadd.f32 %v5777_v32, %v19663_v48  ;;  %v8065_v24 = vpop.f32.mrf.mxu2  ;;  %v8445_v32 = vsel %vm19667_vm8, %v14772_v11, 0.0  ;;  %v8449_v31 = vsel %vm19671_vm13, %v14798_v2, 0.0  ;;  %v8451_v26 = vsel %vm19673_vm4, %v14809_v33, 0.0  ;;  %vm19684_vm8 = vmmov %vm19635_vm0  ;;  %v19732_v11 = vld [vmem:[#allocation35_spill] sm:$0xff] }
 0x849   :  { %v15576_v8 = vadd.f32 %v8062_v27, %v7370_v25  ;;  %v8575_v27 = vmul.f32 %v14809_v33, %v14809_v33  ;;  %v8446_v46 = vadd.f32 %v8445_v32, %v8444_v28  ;;  %v8644_v15 = vadd.f32 %v8643_v47, %v8642_v43  ;;  %vm19688_vm13 = vmmov %vm19635_vm0 }
 0x84a   :  { %v15574_v22 = vadd.f32 %v6563_v40, %v5865_v18  ;;  %v8447_v40 = vsel %vm19669_vm6, %v14787_v50, 0.0  ;;  %v8647_v48 = vsel %vm19672_vm3, %v8574_v49, 0.0  ;;  %v8453_v49 = vsel %vm19676_vm1, %v14822_v30, 0.0  ;;  %vm19686_vm6 = vmmov %vm19635_vm0  ;;  %v19729_v50 = vld [vmem:[#allocation31_spill] sm:$0xff] }
 0x84b   :  { %19666 = vst [vmem:[#allocation49_spill] sm:$0xff] %v15576_v8  ;;  %v8448_v21 = vadd.f32 %v8447_v40, %v8446_v46  ;;  %v8646_v63 = vadd.f32 %v8645_v12, %v8644_v15  ;;  %v8649_v42 = vsel %vm19674_vm14, %v8575_v27, 0.0  ;;  %v8651_v28 = vsel %vm19635_vm0, %v8576_v5, 0.0  ;;  %v15611_v12 = vpop.permute.xlu0 %8174  ;;  %vm19689_vm3 = vmmov %vm19635_vm0 }
 0x84c   :  { %v8578_v43 = vmul.f32 %v14846_v61, %v14846_v61  ;;  %v6650_v27 = vadd.f32 %v15520_v20, %v15543_v9  ;;  %v8455_v46 = vsel %vm19677_vm12, %v14833_v4, 0.0  ;;  %v8579_v15 = vmul.f32 %v14857_v62, %v14857_v62  ;;  %vm19690_vm4 = vmmov %vm19635_vm0 }
 0x84d   :  { %v8450_v23 = vadd.f32 %v8449_v31, %v8448_v21  ;;  %v8648_v32 = vadd.f32 %v8647_v48, %v8646_v63  ;;  %v8580_v20 = vmul.f32 %v14870_v53, %v14870_v53  ;;  %vm19691_vm14 = vmmov %vm19635_vm0 }
 0x84e   :  { %v7279_v7 = vpop.f32.mrf.mxu1  ;;  %v8655_v21 = vsel %vm19680_vm10, %v8578_v43, 0.0  ;;  %vm19693_vm1 = vmmov %vm19635_vm0 }
 0x84f   :  { %v15592_v55 = vpop.f32.mrf.mxu3  ;;  %v7371_v25 = vadd.f32 %v7279_v7, %v6649_v17  ;;  %v8452_v17 = vadd.f32 %v8451_v26, %v8450_v23  ;;  %v8650_v40 = vadd.f32 %v8649_v42, %v8648_v32  ;;  %v8457_v7 = vsel %vm19679_vm5, %v14846_v61, 0.0  ;;  %vm19694_vm12 = vmmov %vm19635_vm0 }
 0x850   :  { %v8068_v18 = vpop.f32.mrf.mxu2  ;;  %v8459_v23 = vsel %vm19681_vm7, %v14857_v62, 0.0  ;;  %v8657_v32 = vsel %vm19682_vm2, %v8579_v15, 0.0  ;;  %v8659_v61 = vsel %vm19685_vm15, %v8580_v20, 0.0  ;;  %v8463_v15 = vsel %vm19686_vm6, %v14881_v58, 0.0  ;;  %vm19696_vm5 = vmmov %vm19635_vm0 }
 0x851   :  { %v15604_v47 = vadd.f32 %v8065_v24, %v7371_v25  ;;  %v8653_v24 = vsel %vm19678_vm9, %v8577_v56, 0.0  ;;  %v8454_v31 = vadd.f32 %v8453_v49, %v8452_v17  ;;  %v8652_v48 = vadd.f32 %v8651_v28, %v8650_v40  ;;  %v15627_v25 = vpop.f32.mrf.mxu0  ;;  %vm19695_vm9 = vmmov %vm19635_vm0 }
 0x852   :  { %v8581_v49 = vmul.f32 %v14881_v58, %v14881_v58  ;;  %v8461_v40 = vsel %vm19684_vm8, %v14870_v53, 0.0  ;;  %vm19697_vm10 = vmmov %vm19635_vm0 }
 0x853   :  { %19675 = vst [vmem:[#allocation204_spill] sm:$0xff] %v15604_v47  ;;  %v8456_v26 = vadd.f32 %v8455_v46, %v8454_v31  ;;  %v8654_v42 = vadd.f32 %v8653_v24, %v8652_v48  ;;  %v15641_v31 = vpop.permute.xlu2 %8182  ;;  %v15650_v20 = vpop.permute.xlu0 %8176  ;;  %vm19698_vm7 = vmmov %vm19635_vm0 }
 0x854   :  { %v8661_v48 = vsel %vm19687_vm11, %v8581_v49, 0.0  ;;  %vm19699_vm2 = vmmov %vm19635_vm0 }
 0x855   :  { %v8458_v28 = vadd.f32 %v8457_v7, %v8456_v26  ;;  %v8656_v43 = vadd.f32 %v8655_v21, %v8654_v42  ;;  %v15648_v7 = vpop.permute.xlu1 %8178  ;;  %v8465_v42 = vsel %vm19688_vm13, %v14894_v13, 0.0  ;;  %vm19700_vm8 = vmmov %vm19635_vm0 }
 0x856   :  { %v7282_v9 = vpop.f32.mrf.mxu1  ;;  %vm19701_vm15 = vmmov %vm19635_vm0 }
 0x857   :  { %v15620_v5 = vpop.f32.mrf.mxu3  ;;  %v7372_v56 = vadd.f32 %v7282_v9, %v6650_v27  ;;  %v8582_v27 = vmul.f32 %v14894_v13, %v14894_v13  ;;  %v8460_v46 = vadd.f32 %v8459_v23, %v8458_v28  ;;  %v8658_v24 = vadd.f32 %v8657_v32, %v8656_v43  ;;  %vm19702_vm6 = vmmov %vm19635_vm0 }
 0x858   :  { %v8071_v63 = vpop.f32.mrf.mxu2  ;;  %v8584_v23 = vmul.f32 %v14918_v10, %v14918_v10  ;;  %vm19703_vm11 = vmmov %vm19635_vm0 }
 0x859   :  { %v15634_v17 = vadd.f32 %v8068_v18, %v7372_v56  ;;  %v8583_v18 = vmul.f32 %v14905_v38, %v14905_v38  ;;  %v8462_v21 = vadd.f32 %v8461_v40, %v8460_v46  ;;  %v8660_v9 = vadd.f32 %v8659_v61, %v8658_v24  ;;  %v15667_v13 = vpop.f32.mrf.mxu0  ;;  %vm19704_vm13 = vmmov %vm19635_vm0 }
 0x85a   :  { %v8663_v56 = vsel %vm19689_vm3, %v8582_v27, 0.0  ;;  %v8467_v61 = vsel %vm19690_vm4, %v14905_v38, 0.0  ;;  %v8585_v24 = vmul.f32 %v14941_v59, %v14941_v59  ;;  %vm19705_vm3 = vmmov %vm19635_vm0 }
 0x85b   :  { %19683 = vst [vmem:[#allocation48_spill] sm:$0xff] %v15634_v17  ;;  %v8464_v28 = vadd.f32 %v8463_v15, %v8462_v21  ;;  %v8662_v43 = vadd.f32 %v8661_v48, %v8660_v9  ;;  %v8665_v46 = vsel %vm19691_vm14, %v8583_v18, 0.0  ;;  %v8469_v15 = vsel %vm19693_vm1, %v14918_v10, 0.0  ;;  %vm19706_vm4 = vmmov %vm19635_vm0 }
 0x85c   :  { %v8667_v48 = vsel %vm19635_vm0, %v8584_v23, 0.0  ;;  %v8471_v18 = vsel %vm19694_vm12, %v14941_v59, 0.0  ;;  %v8473_v23 = vsel %vm19696_vm5, %v14966_v29, 0.0  ;;  %v8477_v10 = vsel %vm19700_vm8, %v15014_v3, 0.0  ;;  %vm19707_vm14 = vmmov %vm19635_vm0 }
 0x85d   :  { %v8466_v27 = vadd.f32 %v8465_v42, %v8464_v28  ;;  %v8664_v58 = vadd.f32 %v8663_v56, %v8662_v43  ;;  %v8587_v42 = vmul.f32 %v14989_v35, %v14989_v35  ;;  %v15681_v28 = vpop.permute.xlu2 %8184  ;;  %vm19710_vm1 = vmmov %vm19635_vm0 }
 0x85e   :  { %v7285_v32 = vpop.f32.mrf.mxu1  ;;  %vm19711_vm12 = vmmov %vm19635_vm0 }
 0x85f   :  { %v15652_v26 = vpop.f32.mrf.mxu3  ;;  %v7373_v40 = vadd.f32 %v7285_v32, %v15574_v22  ;;  %v8586_v22 = vmul.f32 %v14966_v29, %v14966_v29  ;;  %v8468_v21 = vadd.f32 %v8467_v61, %v8466_v27  ;;  %v8666_v9 = vadd.f32 %v8665_v46, %v8664_v58  ;;  %vm19713_vm5 = vmmov %vm19635_vm0 }
 0x860   :  { %v15659_v49 = vpop.f32.mrf.mxu2  ;;  %v8669_v32 = vsel %vm19695_vm9, %v8585_v24, 0.0  ;;  %v8588_v58 = vmul.f32 %v15014_v3, %v15014_v3  ;;  %v8592_v3 = vmul.f32 %v15110_v6, %v15110_v6  ;;  %vm19712_vm9 = vmmov %vm19635_vm0 }
 0x861   :  { %v15669_v53 = vadd.f32 %v8071_v63, %v7373_v40  ;;  %v8470_v63 = vadd.f32 %v8469_v15, %v8468_v21  ;;  %v8668_v56 = vadd.f32 %v8667_v48, %v8666_v9  ;;  %v8671_v40 = vsel %vm19697_vm10, %v8586_v22, 0.0  ;;  %v15694_v15 = vpop.permute.xlu1 %8180  ;;  %v15696_v48 = vpop.permute.xlu0 %8186  ;;  %vm19714_vm10 = vmmov %vm19635_vm0 }
 0x862   :  { %v8475_v21 = vsel %vm19698_vm7, %v14989_v35, 0.0  ;;  %v8673_v9 = vsel %vm19699_vm2, %v8587_v42, 0.0  ;;  %v8589_v22 = vmul.f32 %v15037_v14, %v15037_v14  ;;  %v8479_v42 = vsel %vm19702_vm6, %v15037_v14, 0.0  ;;  %vm19715_vm7 = vmmov %vm19635_vm0 }
 0x863   :  { %19692 = vst [vmem:[#allocation207_spill] sm:$0xff] %v15669_v53  ;;  %v8472_v24 = vadd.f32 %v8471_v18, %v8470_v63  ;;  %v8670_v27 = vadd.f32 %v8669_v32, %v8668_v56  ;;  %v8675_v18 = vsel %vm19701_vm15, %v8588_v58, 0.0  ;;  %v8590_v32 = vmul.f32 %v15062_v0, %v15062_v0  ;;  %v15708_v63 = vpop.f32.mrf.mxu0  ;;  %vm19716_vm2 = vmmov %vm19635_vm0 }
 0x864   :  { %v8677_v35 = vsel %vm19703_vm11, %v8589_v22, 0.0  ;;  %v8481_v58 = vsel %vm19704_vm13, %v15062_v0, 0.0  ;;  %vm19717_vm8 = vmmov %vm19635_vm0 }
 0x865   :  { %v8474_v29 = vadd.f32 %v8473_v23, %v8472_v24  ;;  %v8672_v59 = vadd.f32 %v8671_v40, %v8670_v27  ;;  %v8591_v23 = vmul.f32 %v15085_v34, %v15085_v34  ;;  %v8679_v27 = vsel %vm19705_vm3, %v8590_v32, 0.0  ;;  %v15731_v32 = vpop.permute.xlu2 %8190  ;;  %vm19718_vm15 = vmmov %vm19635_vm0 }
 0x866   :  { %v15690_v61 = vpop.f32.mrf.mxu1  ;;  %vm19722_vm6 = vmmov %vm19635_vm0 }
 0x867   :  { %v15683_v43 = vpop.f32.mrf.mxu3  ;;  %v8476_v56 = vadd.f32 %v8475_v21, %v8474_v29  ;;  %v8674_v38 = vadd.f32 %v8673_v9, %v8672_v59  ;;  %vm19723_vm11 = vmmov %vm19635_vm0 }
 0x868   :  { %v15692_v46 = vpop.f32.mrf.mxu2  ;;  %vm19724_vm13 = vmmov %vm19635_vm0 }
 0x869   :  { %v8478_v40 = vadd.f32 %v8477_v10, %v8476_v56  ;;  %v8676_v24 = vadd.f32 %v8675_v18, %v8674_v38  ;;  %v8483_v10 = vsel %vm19706_vm4, %v15085_v34, 0.0  ;;  %v8681_v38 = vsel %vm19707_vm14, %v8591_v23, 0.0  ;;  %v15733_v14 = vpop.permute.xlu1 %8188  ;;  %v15735_v62 = vpop.permute.xlu0 %8192  ;;  %vm19725_vm3 = vmmov %vm19635_vm0 }
 0x86a   :  { %v8593_v18 = vmul.f32 %v15133_v57, %v15133_v57  ;;  %19708 = vst [vmem:[#allocation52_spill] sm:$0xff] %v15733_v14  ;;  %v8487_v34 = vsel %vm19711_vm12, %v15133_v57, 0.0  ;;  %v8491_v57 = vsel %vm19715_vm7, %v15181_v37, 0.0  ;;  %vm19726_vm4 = vmmov %vm19635_vm0 }
 0x86b   :  { %v8480_v21 = vadd.f32 %v8479_v42, %v8478_v40  ;;  %v8678_v9 = vadd.f32 %v8677_v35, %v8676_v24  ;;  %19709 = vst [vmem:[#allocation56_spill] sm:$0xff] %v15735_v62  ;;  %v8485_v35 = vsel %vm19710_vm1, %v15110_v6, 0.0  ;;  %v8683_v42 = vsel %vm19635_vm0, %v8592_v3, 0.0  ;;  %vm19727_vm14 = vmmov %vm19635_vm0 }
 0x86c   :  { %v8594_v40 = vmul.f32 %v15158_v60, %v15158_v60  ;;  %v8489_v3 = vsel %vm19713_vm5, %v15158_v60, 0.0  ;;  %v8493_v60 = vsel %vm19717_vm8, %v15208_v16, 0.0  ;;  %vm19728_vm1 = vmmov %vm19635_vm0 }
 0x86d   :  { %v8482_v56 = vadd.f32 %v8481_v58, %v8480_v21  ;;  %v8680_v0 = vadd.f32 %v8679_v27, %v8678_v9  ;;  %v8685_v58 = vsel %vm19712_vm9, %v8593_v18, 0.0  ;;  %v8595_v27 = vmul.f32 %v15181_v37, %v15181_v37  ;;  %v15747_v21 = vpop.f32.mrf.mxu0  ;;  %vm19730_vm12 = vmmov %vm19635_vm0 }
 0x86e   :  { %v15720_v29 = vpop.f32.mrf.mxu1  ;;  %v8687_v6 = vsel %vm19714_vm10, %v8594_v40, 0.0  ;;  %vm19731_vm9 = vmmov %vm19635_vm0 }
 0x86f   :  { %v15724_v22 = vpop.f32.mrf.mxu3  ;;  %v8484_v23 = vadd.f32 %v8483_v10, %v8482_v56  ;;  %v8682_v24 = vadd.f32 %v8681_v38, %v8680_v0  ;;  %v8596_v0 = vmul.f32 %v15208_v16, %v15208_v16  ;;  %v8497_v16 = vsel %vm19724_vm13, %v15258_v36, 0.0  ;;  %vm19736_vm5 = vmmov %vm19635_vm0 }
 0x870   :  { %v15722_v59 = vpop.f32.mrf.mxu2  ;;  %vm19737_vm10 = vmmov %vm19635_vm0 }
 0x871   :  { %v8486_v9 = vadd.f32 %v8485_v35, %v8484_v23  ;;  %v8684_v4 = vadd.f32 %v8683_v42, %v8682_v24  ;;  %v8689_v35 = vsel %vm19716_vm2, %v8595_v27, 0.0  ;;  %v8597_v42 = vmul.f32 %v15231_v1, %v15231_v1  ;;  %v15772_v27 = vpop.permute.xlu1 %8194  ;;  %v15774_v37 = vpop.permute.xlu0 %8198  ;;  %vm19739_vm7 = vmmov %vm19635_vm0 }
 0x872   :  { %v8691_v30 = vsel %vm19718_vm15, %v8596_v0, 0.0  ;;  %19720 = vst [vmem:[#allocation55_spill] sm:$0xff] %v15772_v27  ;;  %vm19740_vm2 = vmmov %vm19635_vm0 }
 0x873   :  { %v8488_v18 = vadd.f32 %v8487_v34, %v8486_v9  ;;  %v8686_v56 = vadd.f32 %v8685_v58, %v8684_v4  ;;  %v8598_v4 = vmul.f32 %v15258_v36, %v15258_v36  ;;  %v15770_v34 = vpop.permute.xlu2 %8196  ;;  %19721 = vst [vmem:[#allocation59_spill] sm:$0xff] %v15774_v37  ;;  %v8501_v36 = vsel %vm19728_vm1, %v15310_v41, 0.0  ;;  %vm19742_vm8 = vmmov %vm19635_vm0  ;;  %v19750_v37 = vld [vmem:[#allocation42_spill] sm:$0xff] }
 0x874   :  { %19719 = vst [vmem:[#allocation209_spill] sm:$0xff] %v15770_v34  ;;  %vm19743_vm15 = vmmov %vm19635_vm0 }
 0x875   :  { %v8490_v23 = vadd.f32 %v8489_v3, %v8488_v18  ;;  %v8688_v24 = vadd.f32 %v8687_v6, %v8686_v56  ;;  %v8495_v6 = vsel %vm19722_vm6, %v15231_v1, 0.0  ;;  %v8693_v3 = vsel %vm19723_vm11, %v8597_v42, 0.0  ;;  %v15790_v42 = vpop.f32.mrf.mxu0  ;;  %vm19745_vm6 = vmmov %vm19635_vm0 }
 0x876   :  { %v15754_v10 = vpop.f32.mrf.mxu1  ;;  %v8599_v18 = vmul.f32 %v15283_v45, %v15283_v45  ;;  %vm19746_vm11 = vmmov %vm19635_vm0 }
 0x877   :  { %v15763_v40 = vpop.f32.mrf.mxu3  ;;  %v8492_v58 = vadd.f32 %v8491_v57, %v8490_v23  ;;  %v8690_v9 = vadd.f32 %v8689_v35, %v8688_v24  ;;  %v8695_v57 = vsel %vm19725_vm3, %v8598_v4, 0.0  ;;  %v8600_v35 = vmul.f32 %v15310_v41, %v15310_v41  ;;  %vm19748_vm13 = vmmov %vm19635_vm0 }
 0x878   :  { %v15756_v38 = vpop.f32.mrf.mxu2  ;;  %vm19749_vm3 = vmmov %vm19635_vm0 }
 0x879   :  { %v8494_v0 = vadd.f32 %v8493_v60, %v8492_v58  ;;  %v8692_v56 = vadd.f32 %v8691_v30, %v8690_v9  ;;  %v8499_v60 = vsel %vm19726_vm4, %v15283_v45, 0.0  ;;  %v8697_v30 = vsel %vm19727_vm14, %v8599_v18, 0.0  ;;  %v15813_v41 = vpop.permute.xlu0 %8204  ;;  %vm19753_vm4 = vmmov %vm19635_vm0 }
 0x87a   :  { %v8601_v58 = vmul.f32 %v15335_v19, %v15335_v19  ;;  %v8699_v2 = vsel %vm19635_vm0, %v8600_v35, 0.0  ;;  %v8503_v18 = vsel %vm19730_vm12, %v15335_v19, 0.0  ;;  %v15811_v35 = vpop.permute.xlu1 %8200  ;;  %19735 = vst [vmem:[#allocation81_spill] sm:$0xff] %v15813_v41  ;;  %vm19754_vm14 = vmmov %vm19635_vm0 }
 0x87b   :  { %v8496_v1 = vadd.f32 %v8495_v6, %v8494_v0  ;;  %v8694_v33 = vadd.f32 %v8693_v3, %v8692_v56  ;;  %v8602_v6 = vmul.f32 %v19729_v50, %v19729_v50  ;;  %19734 = vst [vmem:[#allocation68_spill] sm:$0xff] %v15811_v35  ;;  %vm19757_vm1 = vmmov %vm19635_vm0 }
 0x87c   :  { %v8701_v45 = vsel %vm19731_vm9, %v8601_v58, 0.0  ;;  %vm19759_vm12 = vmmov %vm19635_vm0 }
 0x87d   :  { %v8498_v4 = vadd.f32 %v8497_v16, %v8496_v1  ;;  %v8696_v9 = vadd.f32 %v8695_v57, %v8694_v33  ;;  %v8603_v33 = vmul.f32 %v19732_v11, %v19732_v11  ;;  %v15809_v16 = vpop.permute.xlu2 %8202  ;;  %vm19760_vm9 = vmmov %vm19635_vm0 }
 0x87e   :  { %v15786_v23 = vpop.f32.mrf.mxu1  ;;  %19733 = vst [vmem:[#allocation66_spill] sm:$0xff] %v15809_v16  ;;  %v19744_v16 = vld [vmem:[#allocation197_spill] sm:$0xff] }
 0x87f   :  { %v8500_v3 = vadd.f32 %v8499_v60, %v8498_v4  ;;  %v8698_v0 = vadd.f32 %v8697_v30, %v8696_v9  ;;  %v15802_v56 = vpop.f32.mrf.mxu3  ;;  %v8505_v60 = vsel %vm19736_vm5, %v19729_v50, 0.0  ;;  %v8703_v30 = vsel %vm19737_vm10, %v8602_v6, 0.0  ;;  %v19738_v4 = vld [vmem:[#allocation194_spill] sm:$0xff]  ;;  %v15829_v6 = vpop.f32.mrf.mxu0  ;;  %vm19763_vm5 = vmmov %vm19635_vm0 }
 0x880   :  { %v15788_v24 = vpop.f32.mrf.mxu2  ;;  %v8604_v9 = vmul.f32 %v19738_v4, %v19738_v4  ;;  %v8509_v41 = vsel %vm19742_vm8, %v19738_v4, 0.0  ;;  %vm19764_vm10 = vmmov %vm19635_vm0 }
 0x881   :  { %v8502_v1 = vadd.f32 %v8501_v36, %v8500_v3  ;;  %v8700_v57 = vadd.f32 %v8699_v2, %v8698_v0  ;;  %v8507_v2 = vsel %vm19739_vm7, %v19732_v11, 0.0  ;;  %v8705_v36 = vsel %vm19740_vm2, %v8603_v33, 0.0  ;;  %v19741_v3 = vld [vmem:[#allocation34_spill] sm:$0xff]  ;;  %vm19766_vm7 = vmmov %vm19635_vm0 }
 0x882   :  { %v8605_v0 = vmul.f32 %v19741_v3, %v19741_v3  ;;  %v8707_v35 = vsel %vm19743_vm15, %v8604_v9, 0.0  ;;  %v8511_v33 = vsel %vm19745_vm6, %v19741_v3, 0.0  ;;  %v19747_v11 = vld [vmem:[#allocation38_spill] sm:$0xff]  ;;  %v8513_v9 = vsel %vm19748_vm13, %v19744_v16, 0.0  ;;  %vm19767_vm2 = vmmov %vm19635_vm0 }
 0x883   :  { %v8504_v39 = vadd.f32 %v8503_v18, %v8502_v1  ;;  %v8702_v54 = vadd.f32 %v8701_v45, %v8700_v57  ;;  %v8606_v45 = vmul.f32 %v19744_v16, %v19744_v16  ;;  %v15861_v16 = vpop.permute.xlu0 %8210  ;;  %vm19769_vm8 = vmmov %vm19635_vm0 }
 0x884   :  { %v8709_v57 = vsel %vm19746_vm11, %v8605_v0, 0.0  ;;  %19756 = vst [vmem:[#allocation86_spill] sm:$0xff] %v15861_v16  ;;  %v19761_v16 = vld [vmem:[#allocation202_spill] sm:$0xff]  ;;  %vm19770_vm15 = vmmov %vm19635_vm0 }
 0x885   :  { %v8506_v50 = vadd.f32 %v8505_v60, %v8504_v39  ;;  %v8704_v52 = vadd.f32 %v8703_v30, %v8702_v54  ;;  %v8607_v54 = vmul.f32 %v19747_v11, %v19747_v11  ;;  %v8711_v4 = vsel %vm19749_vm3, %v8606_v45, 0.0  ;;  %v15852_v3 = vpop.permute.xlu2 %8208  ;;  %vm19772_vm6 = vmmov %vm19635_vm0 }
 0x886   :  { %v15820_v58 = vpop.f32.mrf.mxu1  ;;  %19751 = vst [vmem:[#allocation88_spill] sm:$0xff] %v15852_v3  ;;  %vm19773_vm11 = vmmov %vm19635_vm0 }
 0x887   :  { %v8508_v18 = vadd.f32 %v8507_v2, %v8506_v50  ;;  %v8706_v1 = vadd.f32 %v8705_v36, %v8704_v52  ;;  %v15841_v30 = vpop.f32.mrf.mxu3  ;;  %v8608_v52 = vmul.f32 %v19750_v37, %v19750_v37  ;;  %vm19775_vm13 = vmmov %vm19635_vm0 }
 0x888   :  { %v15822_v19 = vpop.f32.mrf.mxu2  ;;  %vm19777_vm3 = vmmov %vm19635_vm0 }
 0x889   :  { %v8510_v39 = vadd.f32 %v8509_v41, %v8508_v18  ;;  %v8708_v60 = vadd.f32 %v8707_v35, %v8706_v1  ;;  %v15854_v41 = vpop.permute.xlu1 %8206  ;;  %v8515_v35 = vsel %vm19753_vm4, %v19747_v11, 0.0  ;;  %v8713_v18 = vsel %vm19754_vm14, %v8607_v54, 0.0  ;;  %v19755_v1 = vld [vmem:[#allocation199_spill] sm:$0xff]  ;;  %v15868_v11 = vpop.f32.mrf.mxu0  ;;  %vm19779_vm4 = vmmov %vm19635_vm0 }
 0x88a   :  { %19752 = vst [vmem:[#allocation74_spill] sm:$0xff] %v15854_v41  ;;  %v8609_v45 = vmul.f32 %v19755_v1, %v19755_v1  ;;  %v8519_v54 = vsel %vm19759_vm12, %v19755_v1, 0.0  ;;  %vm19781_vm14 = vmmov %vm19635_vm0 }
 0x88b   :  { %v8512_v36 = vadd.f32 %v8511_v33, %v8510_v39  ;;  %v8710_v0 = vadd.f32 %v8709_v57, %v8708_v60  ;;  %v8517_v33 = vsel %vm19757_vm1, %v19750_v37, 0.0  ;;  %v8715_v57 = vsel %vm19635_vm0, %v8608_v52, 0.0  ;;  %v19758_v39 = vld [vmem:[#allocation41_spill] sm:$0xff]  ;;  %vm19784_vm1 = vmmov %vm19635_vm0 }
 0x88c   :  { %v8610_v60 = vmul.f32 %v19758_v39, %v19758_v39  ;;  %v8717_v62 = vsel %vm19760_vm9, %v8609_v45, 0.0  ;;  %v8521_v37 = vsel %vm19763_vm5, %v19758_v39, 0.0  ;;  %vm19787_vm12 = vmmov %vm19635_vm0 }
 0x88d   :  { %v8514_v27 = vadd.f32 %v8513_v9, %v8512_v36  ;;  %v8712_v34 = vadd.f32 %v8711_v4, %v8710_v0  ;;  %v8611_v4 = vmul.f32 %v19761_v16, %v19761_v16  ;;  %v19762_v9 = vld [vmem:[#allocation206_spill] sm:$0xff]  ;;  %vm19789_vm9 = vmmov %vm19635_vm0 }
 0x88e   :  { %v15848_v50 = vpop.f32.mrf.mxu1  ;;  %v5866_v36 = vadd.f32 %v15592_v55, %v19762_v9  ;;  %v8523_v55 = vsel %vm19766_vm7, %v19761_v16, 0.0  ;;  %vm19791_vm5 = vmmov %vm19635_vm0 }
 0x88f   :  { %v8516_v41 = vadd.f32 %v8515_v35, %v8514_v27  ;;  %v8714_v3 = vadd.f32 %v8713_v18, %v8712_v34  ;;  %v8719_v34 = vsel %vm19764_vm10, %v8610_v60, 0.0  ;;  %v8612_v27 = vmul.f32 %v15550_v44, %v15550_v44  ;;  %v19765_v35 = vld [vmem:[#allocation62_spill] sm:$0xff]  ;;  %v5804_v9 = vpop.f32.mrf.mxu3  ;;  %vm19793_vm10 = vmmov %vm19635_vm0 }
 0x890   :  { %v15850_v2 = vpop.f32.mrf.mxu2  ;;  %v5867_v18 = vadd.f32 %v15620_v5, %v19765_v35  ;;  %vm19794_vm7 = vmmov %vm19635_vm0 }
 0x891   :  { %v8518_v0 = vadd.f32 %v8517_v33, %v8516_v41  ;;  %v8716_v52 = vadd.f32 %v8715_v57, %v8714_v3  ;;  %v8721_v3 = vsel %vm19767_vm2, %v8611_v4, 0.0  ;;  %v8613_v41 = vmul.f32 %v15576_v8, %v15576_v8  ;;  %v19768_v57 = vld [vmem:[#allocation87_spill] sm:$0xff]  ;;  %vm19796_vm2 = vmmov %vm19635_vm0 }
 0x892   :  { %v6652_v33 = vadd.f32 %v15590_v51, %v5866_v36  ;;  %v5868_v60 = vadd.f32 %v15652_v26, %v19768_v57  ;;  %v8525_v4 = vsel %vm19769_vm8, %v15550_v44, 0.0  ;;  %v19771_v51 = vld [vmem:[#allocation208_spill] sm:$0xff]  ;;  %v15906_v26 = vpop.permute.xlu0 %8216  ;;  %vm19797_vm8 = vmmov %vm19635_vm0 }
 0x893   :  { %v8520_v1 = vadd.f32 %v8519_v54, %v8518_v0  ;;  %v8718_v14 = vadd.f32 %v8717_v62, %v8716_v52  ;;  %v15896_v54 = vpop.permute.xlu2 %8214  ;;  %v15898_v62 = vpop.permute.xlu1 %8212  ;;  %v8723_v0 = vsel %vm19770_vm15, %v8612_v27, 0.0  ;;  %v6653_v52 = vadd.f32 %v15627_v25, %v5867_v18  ;;  %v19774_v25 = vld [vmem:[#allocation64_spill] sm:$0xff]  ;;  %vm19799_vm15 = vmmov %vm19635_vm0 }
 0x894   :  { %v5869_v36 = vadd.f32 %v15683_v43, %v19771_v51  ;;  %v7374_v27 = vadd.f32 %v15690_v61, %v6652_v33  ;;  %v5870_v18 = vadd.f32 %v15724_v22, %v19774_v25  ;;  %v8533_v25 = vsel %vm19784_vm1, %v15669_v53, 0.0  ;;  %vm19810_vm1 = vmmov %vm19635_vm0 }
 0x895   :  { %v8522_v5 = vadd.f32 %v8521_v37, %v8520_v1  ;;  %v8720_v35 = vadd.f32 %v8719_v34, %v8718_v14  ;;  %v8527_v14 = vsel %vm19772_vm6, %v15576_v8, 0.0  ;;  %v8614_v37 = vmul.f32 %v15604_v47, %v15604_v47  ;;  %vm19800_vm6 = vmmov %vm19635_vm0 }
 0x896   :  { %v15884_v45 = vpop.f32.mrf.mxu1  ;;  %v8725_v1 = vsel %vm19773_vm11, %v8613_v41, 0.0  ;;  %v6654_v34 = vadd.f32 %v15667_v13, %v5868_v60  ;;  %v6655_v41 = vadd.f32 %v15708_v63, %v5869_v36  ;;  %v7375_v13 = vadd.f32 %v15720_v29, %v6653_v52  ;;  %vm19802_vm11 = vmmov %vm19635_vm0 }
 0x897   :  { %v8524_v57 = vadd.f32 %v8523_v55, %v8522_v5  ;;  %v8722_v16 = vadd.f32 %v8721_v3, %v8720_v35  ;;  %v8615_v55 = vmul.f32 %v15634_v17, %v15634_v17  ;;  %v6590_v3 = vpop.f32.mrf.mxu0  ;;  %v8529_v5 = vsel %vm19775_vm13, %v15604_v47, 0.0  ;;  %vm19803_vm13 = vmmov %vm19635_vm0  ;;  %v19861_v47 = vld [vmem:[#allocation122_spill] sm:$0xff] }
 0x898   :  { %v15894_v39 = vpop.f32.mrf.mxu2  ;;  %v15922_v35 = vadd.f32 %v15659_v49, %v7374_v27  ;;  %v8727_v22 = vsel %vm19777_vm3, %v8614_v37, 0.0  ;;  %v6656_v49 = vadd.f32 %v15747_v21, %v5870_v18  ;;  %v7376_v63 = vadd.f32 %v15754_v10, %v6654_v34  ;;  %v5807_v27 = vpop.f32.mrf.mxu3  ;;  %vm19806_vm3 = vmmov %vm19635_vm0 }
 0x899   :  { %v8526_v43 = vadd.f32 %v8525_v4, %v8524_v57  ;;  %v8724_v51 = vadd.f32 %v8723_v0, %v8722_v16  ;;  %v19778_v16 = vld [vmem:[#allocation93_spill] sm:$0xff]  ;;  %v8531_v0 = vsel %vm19779_vm4, %v15634_v17, 0.0  ;;  %v15932_v57 = vadd.f32 %v15692_v46, %v7375_v13  ;;  %vm19807_vm4 = vmmov %vm19635_vm0 }
 0x89a   :  { %19776 = vst [vmem:[#allocation94_spill] sm:$0xff] %v15922_v35  ;;  %v5871_v4 = vadd.f32 %v15763_v40, %v19778_v16  ;;  %v8729_v29 = vsel %vm19781_vm14, %v8615_v55, 0.0  ;;  %v8616_v52 = vmul.f32 %v15669_v53, %v15669_v53  ;;  %v15944_v46 = vadd.f32 %v15722_v59, %v7376_v63  ;;  %vm19809_vm14 = vmmov %vm19635_vm0 }
 0x89b   :  { %v8528_v33 = vadd.f32 %v8527_v14, %v8526_v43  ;;  %v8726_v60 = vadd.f32 %v8725_v1, %v8724_v51  ;;  %19780 = vst [vmem:[#allocation80_spill] sm:$0xff] %v15932_v57  ;;  %v19782_v14 = vld [vmem:[#allocation210_spill] sm:$0xff]  ;;  %v8617_v1 = vmul.f32 %v15922_v35, %v15922_v35  ;;  %v7377_v21 = vadd.f32 %v15786_v23, %v6655_v41  ;;  %v15949_v18 = vpop.permute.xlu2 %8220  ;;  %v15951_v43 = vpop.permute.xlu1 %8218 }
 0x89c   :  { %v5872_v37 = vadd.f32 %v15802_v56, %v19782_v14  ;;  %19783 = vst [vmem:[#allocation79_spill] sm:$0xff] %v15944_v46  ;;  %v6657_v56 = vadd.f32 %v15790_v42, %v5871_v4  ;;  %v19785_v51 = vld [vmem:[#allocation78_spill] sm:$0xff]  ;;  %v8618_v59 = vmul.f32 %v15932_v57, %v15932_v57  ;;  %v15958_v23 = vpop.permute.xlu0 %8222  ;;  %v7378_v13 = vadd.f32 %v15820_v58, %v6656_v49 }
 0x89d   :  { %v8530_v36 = vadd.f32 %v8529_v5, %v8528_v33  ;;  %v8728_v40 = vadd.f32 %v8727_v22, %v8726_v60  ;;  %v5873_v55 = vadd.f32 %v15841_v30, %v19785_v51  ;;  %v15961_v41 = vadd.f32 %v15756_v38, %v7377_v21  ;;  %v19788_v22 = vld [vmem:[#allocation83_spill] sm:$0xff] }
 0x89e   :  { %v7309_v61 = vpop.f32.mrf.mxu1  ;;  %v8731_v33 = vsel %vm19635_vm0, %v8616_v52, 0.0  ;;  %v8535_v60 = vsel %vm19787_vm12, %v15922_v35, 0.0  ;;  %v6658_v42 = vadd.f32 %v15829_v6, %v5872_v37  ;;  %v5874_v30 = vadd.f32 %v5804_v9, %v19788_v22  ;;  %v19792_v6 = vld [vmem:[#allocation100_spill] sm:$0xff]  ;;  %vm19811_vm12 = vmmov %vm19635_vm0 }
 0x89f   :  { %v8532_v34 = vadd.f32 %v8531_v0, %v8530_v36  ;;  %v8730_v5 = vadd.f32 %v8729_v29, %v8728_v40  ;;  %19786 = vst [vmem:[#allocation99_spill] sm:$0xff] %v15961_v41  ;;  %v8733_v4 = vsel %vm19789_vm9, %v8617_v1, 0.0  ;;  %v8619_v0 = vmul.f32 %v15944_v46, %v15944_v46  ;;  %v6593_v9 = vpop.f32.mrf.mxu0  ;;  %vm19812_vm9 = vmmov %vm19635_vm0 }
 0x8a0   :  { %v8098_v10 = vpop.f32.mrf.mxu2  ;;  %v15973_v38 = vadd.f32 %v15788_v24, %v7378_v13  ;;  %v8537_v58 = vsel %vm19791_vm5, %v15932_v57, 0.0  ;;  %v6659_v49 = vadd.f32 %v15868_v11, %v5873_v55  ;;  %v7379_v36 = vadd.f32 %v15848_v50, %v6657_v56  ;;  %vm19813_vm5 = vmmov %vm19635_vm0 }
 0x8a1   :  { %v8534_v16 = vadd.f32 %v8533_v25, %v8532_v34  ;;  %v5875_v29 = vadd.f32 %v5807_v27, %v19792_v6  ;;  %v8732_v52 = vadd.f32 %v8731_v33, %v8730_v5  ;;  %v8735_v37 = vsel %vm19793_vm10, %v8618_v59, 0.0  ;;  %vm19814_vm10 = vmmov %vm19635_vm0 }
 0x8a2   :  { %19790 = vst [vmem:[#allocation90_spill] sm:$0xff] %v15973_v38  ;;  %v8620_v40 = vmul.f32 %v15961_v41, %v15961_v41  ;;  %v8539_v24 = vsel %vm19794_vm7, %v15944_v46, 0.0  ;;  %v15986_v1 = vadd.f32 %v15822_v19, %v7379_v36  ;;  %v6660_v21 = vadd.f32 %v6590_v3, %v5874_v30  ;;  %vm19815_vm7 = vmmov %vm19635_vm0 }
 0x8a3   :  { %v8536_v14 = vadd.f32 %v8535_v60, %v8534_v16  ;;  %v7380_v11 = vadd.f32 %v15884_v45, %v6658_v42  ;;  %v8734_v50 = vadd.f32 %v8733_v4, %v8732_v52  ;;  %v8737_v27 = vsel %vm19796_vm2, %v8619_v0, 0.0  ;;  %v5810_v45 = vpop.f32.mrf.mxu3  ;;  %v15998_v33 = vpop.permute.xlu2 %8226  ;;  %vm19816_vm2 = vmmov %vm19635_vm0 }
 0x8a4   :  { %19795 = vst [vmem:[#allocation107_spill] sm:$0xff] %v15986_v1  ;;  %v8621_v25 = vmul.f32 %v15973_v38, %v15973_v38  ;;  %v8541_v56 = vsel %vm19797_vm8, %v15961_v41, 0.0  ;;  %v7381_v55 = vadd.f32 %v7309_v61, %v6659_v49  ;;  %v6661_v5 = vadd.f32 %v6593_v9, %v5875_v29  ;;  %v16000_v60 = vpop.permute.xlu1 %8224  ;;  %v16009_v4 = vpop.permute.xlu0 %8228  ;;  %v19804_v29 = vld [vmem:[#allocation106_spill] sm:$0xff] }
 0x8a5   :  { %v8538_v34 = vadd.f32 %v8537_v58, %v8536_v14  ;;  %v15995_v51 = vadd.f32 %v15850_v2, %v7380_v11  ;;  %v8736_v19 = vadd.f32 %v8735_v37, %v8734_v50  ;;  %v8739_v3 = vsel %vm19799_vm15, %v8620_v40, 0.0 }
 0x8a6   :  { %v7312_v63 = vpop.f32.mrf.mxu1  ;;  %v8543_v42 = vsel %vm19800_vm6, %v15973_v38, 0.0  ;;  %v8622_v22 = vmul.f32 %v15986_v1, %v15986_v1  ;;  %v16007_v2 = vadd.f32 %v15894_v39, %v7381_v55  ;;  %v8741_v0 = vsel %vm19802_vm11, %v8621_v25, 0.0 }
 0x8a7   :  { %19798 = vst [vmem:[#allocation63_spill] sm:$0xff] %v15995_v51  ;;  %v8540_v59 = vadd.f32 %v8539_v24, %v8538_v34  ;;  %v7382_v61 = vadd.f32 %v7312_v63, %v6660_v21  ;;  %v8738_v30 = vadd.f32 %v8737_v27, %v8736_v19  ;;  %v8545_v58 = vsel %vm19803_vm13, %v15986_v1, 0.0  ;;  %v6596_v14 = vpop.f32.mrf.mxu0  ;;  %v19829_v1 = vld [vmem:[#allocation86_spill] sm:$0xff]  ;;  %vm19943_vm13 = vmmov %vm19635_vm0 }
 0x8a8   :  { %v8101_v13 = vpop.f32.mrf.mxu2  ;;  %19801 = vst [vmem:[#allocation101_spill] sm:$0xff] %v16007_v2  ;;  %v8623_v36 = vmul.f32 %v15995_v51, %v15995_v51  ;;  %v5876_v9 = vadd.f32 %v5810_v45, %v19804_v29  ;;  %v8743_v37 = vsel %vm19806_vm3, %v8622_v22, 0.0  ;;  %v8547_v40 = vsel %vm19807_vm4, %v15995_v51, 0.0  ;;  %vm19944_vm3 = vmmov %vm19635_vm0 }
 0x8a9   :  { %v8542_v16 = vadd.f32 %v8541_v56, %v8540_v59  ;;  %v16017_v52 = vadd.f32 %v8098_v10, %v7382_v61  ;;  %v8740_v39 = vadd.f32 %v8739_v3, %v8738_v30  ;;  %v8624_v24 = vmul.f32 %v16007_v2, %v16007_v2  ;;  %vm19945_vm4 = vmmov %vm19635_vm0 }
 0x8aa   :  { %v8745_v34 = vsel %vm19809_vm14, %v8623_v36, 0.0  ;;  %v8549_v10 = vsel %vm19810_vm1, %v16007_v2, 0.0  ;;  %v6662_v25 = vadd.f32 %v6596_v14, %v5876_v9  ;;  %v19828_v2 = vld [vmem:[#allocation74_spill] sm:$0xff]  ;;  %vm19946_vm14 = vmmov %vm19635_vm0 }
 0x8ab   :  { %19805 = vst [vmem:[#allocation112_spill] sm:$0xff] %v16017_v52  ;;  %v8544_v63 = vadd.f32 %v8543_v42, %v8542_v16  ;;  %v8742_v11 = vadd.f32 %v8741_v0, %v8740_v39  ;;  %v8625_v27 = vmul.f32 %v16017_v52, %v16017_v52  ;;  %v8551_v19 = vsel %vm19811_vm12, %v16017_v52, 0.0  ;;  %v16036_v22 = vpop.permute.xlu2 %8232  ;;  %v19825_v52 = vld [vmem:[#allocation68_spill] sm:$0xff]  ;;  %vm19947_vm1 = vmmov %vm19635_vm0 }
 0x8ac   :  { %v16041_v0 = vpop.permute.xlu1 %8230  ;;  %vm19948_vm12 = vmmov %vm19635_vm0 }
 0x8ad   :  { %v8546_v50 = vadd.f32 %v8545_v58, %v8544_v63  ;;  %v8744_v56 = vadd.f32 %v8743_v37, %v8742_v11  ;;  %v8749_v61 = vsel %vm19812_vm9, %v8625_v27, 0.0  ;;  %v16043_v58 = vpop.permute.xlu0 %8234  ;;  %vm19949_vm9 = vmmov %vm19635_vm0 }
 0x8ae   :  { %v7315_v49 = vpop.f32.mrf.mxu1 }
 0x8af   :  { %v7383_v6 = vadd.f32 %v7315_v49, %v6661_v5  ;;  %v8548_v55 = vadd.f32 %v8547_v40, %v8546_v50  ;;  %v8747_v5 = vsel %vm19635_vm0, %v8624_v24, 0.0  ;;  %v8746_v3 = vadd.f32 %v8745_v34, %v8744_v56 }
 0x8b0   :  { %v8104_v42 = vpop.f32.mrf.mxu2 }
 0x8b1   :  { %v16024_v21 = vadd.f32 %v8101_v13, %v7383_v6  ;;  %v8550_v45 = vadd.f32 %v8549_v10, %v8548_v55  ;;  %v8748_v49 = vadd.f32 %v8747_v5, %v8746_v3 }
 0x8b3   :  { %19808 = vst [vmem:[#allocation84_spill] sm:$0xff] %v16024_v21  ;;  %v8626_v59 = vmul.f32 %v16024_v21, %v16024_v21  ;;  %v8553_v16 = vsel %vm19813_vm5, %v16024_v21, 0.0  ;;  %v8552_v36 = vadd.f32 %v8551_v19, %v8550_v45  ;;  %v8750_v9 = vadd.f32 %v8749_v61, %v8748_v49  ;;  %v16053_v27 = vpop.permute.xlu2 %8238  ;;  %v19826_v21 = vld [vmem:[#allocation81_spill] sm:$0xff]  ;;  %vm19950_vm5 = vmmov %vm19635_vm0 }
 0x8b5   :  { %v8751_v6 = vsel %vm19814_vm10, %v8626_v59, 0.0  ;;  %v8554_v39 = vadd.f32 %v8553_v16, %v8552_v36  ;;  %v16057_v56 = vpop.permute.xlu0 %8240  ;;  %vm19951_vm10 = vmmov %vm19635_vm0 }
 0x8b6   :  { %v7318_v13 = vpop.f32.mrf.mxu1  ;;  %v8752_v37 = vadd.f32 %v8751_v6, %v8750_v9 }
 0x8b7   :  { %v7384_v30 = vadd.f32 %v7318_v13, %v6662_v25  ;;  %v16055_v25 = vpop.permute.xlu1 %8236 }
 0x8b9   :  { %v16046_v29 = vadd.f32 %v8104_v42, %v7384_v30 }
 0x8bb   :  { %v8555_v63 = vsel %vm19815_vm7, %v16046_v29, 0.0  ;;  %v8627_v14 = vmul.f32 %v16046_v29, %v16046_v29  ;;  %v8245_v61 = vpop.permute.xlu2 %8244  ;;  %vm19952_vm7 = vmmov %vm19635_vm0 }
 0x8bc   :  { %v8556_v40 = vadd.f32 %v8555_v63, %v8554_v39 }
 0x8bd   :  { %v8753_v24 = vsel %vm19816_vm2, %v8627_v14, 0.0  ;;  %v8247_v16 = vpop.permute.xlu0 %8246  ;;  %vm19954_vm2 = vmmov %vm19635_vm0 }
 0x8be   :  { %v8557_v11 = vrot.slane %v8556_v40, 4  ;;  %v8754_v50 = vadd.f32 %v8753_v24, %v8752_v37  ;;  %v19817_v24 = vlaneseq }
 0x8bf   :  { %v8243_v30 = vpop.permute.xlu1 %8242 }
 0x8c0   :  { %v8558_v34 = vadd.f32 %v8557_v11, %v8556_v40  ;;  %v8755_v10 = vrot.slane %v8754_v50, 4  ;;  %v16066_v11 = vand.u32 127, %v19817_v24 }
 0x8c2   :  { %v8559_v55 = vrot.slane %v8558_v34, 2  ;;  %v8756_v5 = vadd.f32 %v8755_v10, %v8754_v50  ;;  %19818 = vst [vmem:[#allocation69_spill] sm:$0xff] %v16066_v11  ;;  %vm8173_vm8 = vcmp.lt.s32.totalorder %v16066_v11, 4 }
 0x8c3   :  { %v8251_v63 = vpop.permute.xlu2 %8250  ;;  %v16255_v41 = vsel %vm8173_vm8, %v8247_v16, 0.0 }
 0x8c4   :  { %v8560_v19 = vadd.f32 %v8559_v55, %v8558_v34  ;;  %v8757_v59 = vrot.slane %v8756_v5, 2  ;;  %19847 = vst [vmem:[#allocation127_spill] sm:$0xff] %v16255_v41  ;;  %v19873_v41 = vld [vmem:[#allocation167_spill] sm:$0xff] }
 0x8c5   :  { %v8253_v37 = vpop.permute.xlu0 %8252 }
 0x8c6   :  { %v8561_v3 = vrot.slane %v8560_v19, 1  ;;  %v8758_v45 = vadd.f32 %v8757_v59, %v8756_v5  ;;  %v16075_v5 = vsel %vm8173_vm8, %v15611_v12, 0.0  ;;  %v16082_v59 = vsel %vm8173_vm8, %v15641_v31, 0.0 }
 0x8c7   :  { %v8249_v14 = vpop.permute.xlu1 %8248  ;;  %v16097_v12 = vsel %vm8173_vm8, %v15681_v28, 0.0  ;;  %v16102_v31 = vsel %vm8173_vm8, %v15694_v15, 0.0 }
 0x8c8   :  { %v8562_v13 = vadd.f32 %v8561_v3, %v8560_v19  ;;  %v8759_v42 = vrot.slane %v8758_v45, 1  ;;  %v16087_v3 = vsel %vm8173_vm8, %v15648_v7, 0.0  ;;  %v16107_v7 = vsel %vm8173_vm8, %v15696_v48, 0.0 }
 0x8ca   :  { %v16059_v49 = vmul.f32 0.001953125, %v8562_v13  ;;  %v8760_v36 = vadd.f32 %v8759_v42, %v8758_v45  ;;  %v16092_v45 = vsel %vm8173_vm8, %v15650_v20, 0.0  ;;  %v16112_v20 = vsel %vm8173_vm8, %v15731_v32, 0.0  ;;  %v19819_v13 = vld [vmem:[#allocation52_spill] sm:$0xff] }
 0x8cb   :  { %v8257_v50 = vpop.permute.xlu2 %8256  ;;  %v16117_v28 = vsel %vm8173_vm8, %v19819_v13, 0.0  ;;  %v19820_v42 = vld [vmem:[#allocation56_spill] sm:$0xff]  ;;  %v19824_v13 = vld [vmem:[#allocation66_spill] sm:$0xff] }
 0x8cc   :  { %v8761_v6 = vmul.f32 0.001953125, %v8760_v36  ;;  %v8762_v9 = vmul.f32 %v16059_v49, %v16059_v49  ;;  %v16122_v15 = vsel %vm8173_vm8, %v19820_v42, 0.0  ;;  %v19821_v36 = vld [vmem:[#allocation209_spill] sm:$0xff]  ;;  %v16143_v42 = vsel %vm8173_vm8, %v19824_v13, 0.0 }
 0x8cd   :  { %v8259_v55 = vpop.permute.xlu0 %8258  ;;  %v16127_v48 = vsel %vm8173_vm8, %v19821_v36, 0.0  ;;  %v16148_v36 = vsel %vm8173_vm8, %v19825_v52, 0.0  ;;  %v16163_v13 = vsel %vm8173_vm8, %v19828_v2, 0.0  ;;  %v16168_v52 = vsel %vm8173_vm8, %v19829_v1, 0.0 }
 0x8ce   :  { %v8763_v39 = vsub.f32 %v8761_v6, %v8762_v9  ;;  %v19822_v6 = vld [vmem:[#allocation55_spill] sm:$0xff]  ;;  %v16183_v2 = vsel %vm8173_vm8, %v15906_v26, 0.0  ;;  %v16188_v1 = vsel %vm8173_vm8, %v15949_v18, 0.0  ;;  %v16203_v26 = vsel %vm8173_vm8, %v15998_v33, 0.0 }
 0x8cf   :  { %v8255_v10 = vpop.permute.xlu1 %8254  ;;  %v16132_v32 = vsel %vm8173_vm8, %v19822_v6, 0.0  ;;  %v16153_v6 = vsel %vm8173_vm8, %v19826_v21, 0.0  ;;  %v16173_v21 = vsel %vm8173_vm8, %v15896_v54, 0.0  ;;  %19832 = vst [vmem:[#allocation91_spill] sm:$0xff] %v16183_v2  ;;  %v16193_v54 = vsel %vm8173_vm8, %v15951_v43, 0.0 }
 0x8d0   :  { %v16063_v40 = vadd.f32 1e-05, %v8763_v39  ;;  %v19823_v39 = vld [vmem:[#allocation59_spill] sm:$0xff]  ;;  %19830 = vst [vmem:[#allocation85_spill] sm:$0xff] %v16173_v21  ;;  %v16208_v18 = vsel %vm8173_vm8, %v16000_v60, 0.0  ;;  %v16213_v43 = vsel %vm8173_vm8, %v16009_v4, 0.0 }
 0x8d1   :  { %v16138_v24 = vsel %vm8173_vm8, %v19823_v39, 0.0  ;;  %19833 = vst [vmem:[#allocation61_spill] sm:$0xff] %v16188_v1  ;;  %v16223_v33 = vsel %vm8173_vm8, %v16041_v0, 0.0  ;;  %v16228_v60 = vsel %vm8173_vm8, %v16043_v58, 0.0  ;;  %v16233_v4 = vsel %vm8173_vm8, %v16053_v27, 0.0 }
 0x8d2   :  { %9879 = vrsqrt.f32 %v16063_v40  ;;  %19834 = vst [vmem:[#allocation76_spill] sm:$0xff] %v16193_v54  ;;  %v16243_v0 = vsel %vm8173_vm8, %v16057_v56, 0.0  ;;  %v16247_v58 = vsel %vm8173_vm8, %v8245_v61, 0.0  ;;  %v16251_v27 = vsel %vm8173_vm8, %v8243_v30, 0.0 }
 0x8d3   :  { %19836 = vst [vmem:[#allocation126_spill] sm:$0xff] %v16203_v26  ;;  %v16263_v56 = vsel %vm8173_vm8, %v8249_v14, 0.0  ;;  %v16267_v61 = vsel %vm8173_vm8, %v8253_v37, 0.0  ;;  %v16271_v30 = vsel %vm8173_vm8, %v8257_v50, 0.0  ;;  %v16275_v16 = vsel %vm8173_vm8, %v8255_v10, 0.0  ;;  %v19857_v10 = vld [vmem:[#allocation96_spill] sm:$0xff] }
 0x8d4   :  { %19837 = vst [vmem:[#allocation97_spill] sm:$0xff] %v16208_v18  ;;  %v8764_v53 = vsub.f32 %v19857_v10, %v16059_v49  ;;  %v19864_v10 = vld [vmem:[#allocation144_spill] sm:$0xff]  ;;  %vm8835_vm6 = vweird.f32 %v16063_v40 }
 0x8d5   :  { %19838 = vst [vmem:[#allocation9_spill] sm:$0xff] %v16213_v43  ;;  %v8265_v46 = vpop.permute.xlu0 %8264 }
 0x8d6   :  { %19840 = vst [vmem:[#allocation128_spill] sm:$0xff] %v16223_v33  ;;  %v16291_v50 = vsel %vm8173_vm8, %v8265_v46, 0.0  ;;  %v19863_v46 = vld [vmem:[#allocation120_spill] sm:$0xff] }
 0x8d7   :  { %19841 = vst [vmem:[#allocation92_spill] sm:$0xff] %v16228_v60  ;;  %v8261_v38 = vpop.permute.xlu1 %8260 }
 0x8d8   :  { %v16070_v34 = vpop.eup %9879  ;;  %19842 = vst [vmem:[#allocation104_spill] sm:$0xff] %v16233_v4  ;;  %v16287_v37 = vsel %vm8173_vm8, %v8261_v38, 0.0  ;;  %v8768_v38 = vsub.f32 %v19861_v47, %v16059_v49  ;;  %v19867_v47 = vld [vmem:[#allocation164_spill] sm:$0xff]  ;;  %v19877_v4 = vld [vmem:[#allocation174_spill] sm:$0xff] }
 0x8d9   :  { %v8830_v19 = vmul.f32 %v16070_v34, %v16063_v40  ;;  %19844 = vst [vmem:[#allocation103_spill] sm:$0xff] %v16243_v0  ;;  %vm8836_vm15 = vweird.f32 %v16070_v34  ;;  %v19876_v0 = vld [vmem:[#allocation169_spill] sm:$0xff]  ;;  %v19880_v40 = vld [vmem:[#allocation22_spill] sm:$0xff] }
 0x8da   :  { %19845 = vst [vmem:[#allocation105_spill] sm:$0xff] %v16247_v58  ;;  %v8780_v58 = vsub.f32 %v19873_v41, %v16059_v49  ;;  %vm8837_vm11 = vmor %vm8835_vm6, %vm8836_vm15  ;;  %v19879_v41 = vld [vmem:[#allocation177_spill] sm:$0xff] }
 0x8db   :  { %v8831_v9 = vmul.f32 %v16070_v34, %v8830_v19  ;;  %v19827_v19 = vld [vmem:[#allocation88_spill] sm:$0xff]  ;;  %19846 = vst [vmem:[#allocation8_spill] sm:$0xff] %v16251_v27  ;;  %v19875_v27 = vld [vmem:[#allocation173_spill] sm:$0xff]  ;;  %v8786_v60 = vsub.f32 %v19879_v41, %v16059_v49  ;;  %v19884_v41 = vld [vmem:[#allocation182_spill] sm:$0xff] }
 0x8dc   :  { %v16158_v39 = vsel %vm8173_vm8, %v19827_v19, 0.0  ;;  %v16178_v19 = vsel %vm8173_vm8, %v15898_v62, 0.0  ;;  %v16198_v62 = vsel %vm8173_vm8, %v15958_v23, 0.0  ;;  %v16218_v23 = vsel %vm8173_vm8, %v16036_v22, 0.0  ;;  %19849 = vst [vmem:[#allocation98_spill] sm:$0xff] %v16263_v56  ;;  %vm19958_vm15 = vmmov %vm19635_vm0 }
 0x8dd   :  { %19831 = vst [vmem:[#allocation71_spill] sm:$0xff] %v16178_v19  ;;  %v8832_v51 = vmul.f32 0.5, %v8831_v9  ;;  %v8263_v9 = vpop.permute.xlu2 %8262  ;;  %v16238_v22 = vsel %vm8173_vm8, %v16055_v25, 0.0  ;;  %v16259_v25 = vsel %vm8173_vm8, %v8251_v63, 0.0  ;;  %v16279_v63 = vsel %vm8173_vm8, %v8259_v55, 0.0  ;;  %v19859_v55 = vld [vmem:[#allocation118_spill] sm:$0xff]  ;;  %vm19962_vm6 = vmmov %vm19635_vm0 }
 0x8de   :  { %19835 = vst [vmem:[#allocation123_spill] sm:$0xff] %v16198_v62  ;;  %v16283_v14 = vsel %vm8173_vm8, %v8263_v9, 0.0  ;;  %v8766_v17 = vsub.f32 %v19859_v55, %v16059_v49  ;;  %v19860_v9 = vld [vmem:[#allocation109_spill] sm:$0xff]  ;;  %v8791_v18 = vsub.f32 %v19884_v41, %v16059_v49 }
 0x8df   :  { %19839 = vst [vmem:[#allocation125_spill] sm:$0xff] %v16218_v23  ;;  %v8833_v57 = vsub.f32 1.5, %v8832_v51  ;;  %v19858_v51 = vld [vmem:[#allocation113_spill] sm:$0xff]  ;;  %v8767_v8 = vsub.f32 %v19860_v9, %v16059_v49  ;;  %v8787_v23 = vsub.f32 %v19880_v40, %v16059_v49  ;;  %v19885_v40 = vld [vmem:[#allocation16_spill] sm:$0xff] }
 0x8e0   :  { %19843 = vst [vmem:[#allocation3_spill] sm:$0xff] %v16238_v22  ;;  %v8765_v35 = vsub.f32 %v19858_v51, %v16059_v49  ;;  %v19865_v51 = vld [vmem:[#allocation156_spill] sm:$0xff]  ;;  %v19866_v55 = vld [vmem:[#allocation137_spill] sm:$0xff]  ;;  %v8792_v62 = vsub.f32 %v19885_v40, %v16059_v49 }
 0x8e1   :  { %19848 = vst [vmem:[#allocation129_spill] sm:$0xff] %v16259_v25  ;;  %v8773_v44 = vsub.f32 %v19866_v55, %v16059_v49  ;;  %v8834_v9 = vmul.f32 %v16070_v34, %v8833_v57  ;;  %v19872_v55 = vld [vmem:[#allocation170_spill] sm:$0xff] }
 0x8e2   :  { %19850 = vst [vmem:[#allocation115_spill] sm:$0xff] %v16267_v61  ;;  %v8779_v57 = vsub.f32 %v19872_v55, %v16059_v49  ;;  %v19878_v55 = vld [vmem:[#allocation20_spill] sm:$0xff] }
 0x8e3   :  { %19851 = vst [vmem:[#allocation11_spill] sm:$0xff] %v16271_v30  ;;  %v8774_v30 = vsub.f32 %v19867_v47, %v16059_v49  ;;  %v19874_v47 = vld [vmem:[#allocation171_spill] sm:$0xff]  ;;  %v8785_v22 = vsub.f32 %v19878_v55, %v16059_v49  ;;  %v8827_v55 = vsub.f32 %v16046_v29, %v16059_v49 }
 0x8e4   :  { %19852 = vst [vmem:[#allocation65_spill] sm:$0xff] %v16275_v16 }
 0x8e5   :  { %19853 = vst [vmem:[#allocation111_spill] sm:$0xff] %v16279_v63  ;;  %v8772_v63 = vsub.f32 %v19865_v51, %v16059_v49  ;;  %v19871_v51 = vld [vmem:[#allocation161_spill] sm:$0xff] }
 0x8e6   :  { %19854 = vst [vmem:[#allocation21_spill] sm:$0xff] %v16283_v14  ;;  %v19862_v14 = vld [vmem:[#allocation131_spill] sm:$0xff]  ;;  %v8778_v56 = vsub.f32 %v19871_v51, %v16059_v49  ;;  %v8784_v51 = vsub.f32 %v19877_v4, %v16059_v49 }
 0x8e7   :  { %19855 = vst [vmem:[#allocation130_spill] sm:$0xff] %v16287_v37  ;;  %v8769_v11 = vsub.f32 %v19862_v14, %v16059_v49  ;;  %v8771_v37 = vsub.f32 %v19864_v10, %v16059_v49  ;;  %v19868_v14 = vld [vmem:[#allocation166_spill] sm:$0xff]  ;;  %v19870_v10 = vld [vmem:[#allocation168_spill] sm:$0xff]  ;;  %v19883_v4 = vld [vmem:[#allocation23_spill] sm:$0xff] }
 0x8e8   :  { %19856 = vst [vmem:[#allocation133_spill] sm:$0xff] %v16291_v50  ;;  %v8770_v50 = vsub.f32 %v19863_v46, %v16059_v49  ;;  %v8775_v16 = vsub.f32 %v19868_v14, %v16059_v49  ;;  %v19869_v46 = vld [vmem:[#allocation163_spill] sm:$0xff]  ;;  %v8777_v25 = vsub.f32 %v19870_v10, %v16059_v49  ;;  %v8781_v14 = vsub.f32 %v19874_v47, %v16059_v49 }
 0x8e9   :  { %v8776_v61 = vsub.f32 %v19869_v46, %v16059_v49  ;;  %v8782_v46 = vsub.f32 %v19875_v27, %v16059_v49  ;;  %v8783_v10 = vsub.f32 %v19876_v0, %v16059_v49  ;;  %v16345_v47 = vsel %vm8837_vm11, %v16070_v34, %v8834_v9  ;;  %v19881_v27 = vld [vmem:[#allocation14_spill] sm:$0xff]  ;;  %v19882_v0 = vld [vmem:[#allocation179_spill] sm:$0xff]  ;;  %v19900_v34 = vld [vmem:[#allocation197_spill] sm:$0xff] }
 0x8ea   :  { %v8788_v33 = vsub.f32 %v19881_v27, %v16059_v49  ;;  %v8789_v43 = vsub.f32 %v19882_v0, %v16059_v49  ;;  %v8790_v26 = vsub.f32 %v19883_v4, %v16059_v49  ;;  %v16370_v41 = vmul.f32 %v16345_v47, %v8827_v55  ;;  %v19898_v55 = vld [vmem:[#allocation194_spill] sm:$0xff]  ;;  %vm19966_vm11 = vmmov %vm19635_vm0 }
 0x8eb   :  { %v19902_v0 = vld [vmem:[#allocation42_spill] sm:$0xff]  ;;  %v8839_v29 = vmul.f32 %v16345_v47, %v8764_v53  ;;  %v8840_v21 = vmul.f32 %v16345_v47, %v8765_v35  ;;  %v8842_v40 = vmul.f32 %v16345_v47, %v8767_v8  ;;  %v8843_v19 = vmul.f32 %v16345_v47, %v8768_v38 }
 0x8ec   :  { %19891 = vst [vmem:[#allocation110_spill] sm:$0xff] %v16370_v41  ;;  %v8841_v41 = vmul.f32 %v16345_v47, %v8766_v17  ;;  %v8844_v9 = vmul.f32 %v16345_v47, %v8769_v11  ;;  %v8845_v1 = vmul.f32 %v16345_v47, %v8770_v50  ;;  %v8846_v27 = vmul.f32 %v16345_v47, %v8771_v37  ;;  %v16415_v37 = vld [vmem:[%s17230_s1 + $0x72] ss:$0 sm:$0xff] }
 0x8ed   :  { %v8847_v54 = vmul.f32 %v16345_v47, %v8772_v63  ;;  %v8848_v2 = vmul.f32 %v16345_v47, %v8773_v44  ;;  %v8849_v53 = vmul.f32 %v16345_v47, %v8774_v30  ;;  %v8850_v35 = vmul.f32 %v16345_v47, %v8775_v16 }
 0x8ee   :  { %v8851_v17 = vmul.f32 %v16345_v47, %v8776_v61  ;;  %v8852_v8 = vmul.f32 %v16345_v47, %v8777_v25  ;;  %v8853_v38 = vmul.f32 %v16345_v47, %v8778_v56  ;;  %v8854_v11 = vmul.f32 %v16345_v47, %v8779_v57 }
 0x8ef   :  { %v8855_v63 = vmul.f32 %v16345_v47, %v8780_v58  ;;  %v8856_v44 = vmul.f32 %v16345_v47, %v8781_v14  ;;  %v8857_v30 = vmul.f32 %v16345_v47, %v8782_v46  ;;  %v8858_v16 = vmul.f32 %v16345_v47, %v8783_v10 }
 0x8f0   :  { %v8859_v61 = vmul.f32 %v16345_v47, %v8784_v51  ;;  %v8860_v25 = vmul.f32 %v16345_v47, %v8785_v22  ;;  %v8861_v56 = vmul.f32 %v16345_v47, %v8786_v60  ;;  %v8862_v50 = vmul.f32 %v16345_v47, %v8787_v23 }
 0x8f1   :  { %v8863_v57 = vmul.f32 %v16345_v47, %v8788_v33  ;;  %v16427_v4 = vmul.f32 %v16345_v47, %v8789_v43  ;;  %v16430_v58 = vmul.f32 %v16345_v47, %v8790_v26  ;;  %v16433_v14 = vmul.f32 %v16345_v47, %v8791_v18 }
 0x8f2   :  { %v16436_v46 = vmul.f32 %v16345_v47, %v8792_v62  ;;  %v8904_v22 = vmul.f32 %v16415_v37, %v8839_v29  ;;  %v8905_v60 = vmul.f32 %v16415_v37, %v8840_v21  ;;  %v8906_v23 = vmul.f32 %v16415_v37, %v8841_v41  ;;  %v16452_v21 = vld [vmem:[%s17230_s1 + $0x73] ss:$0 sm:$0xff] }
 0x8f3   :  { %v8907_v33 = vmul.f32 %v16415_v37, %v8842_v40  ;;  %v8908_v43 = vmul.f32 %v16415_v37, %v8843_v19  ;;  %v8909_v10 = vmul.f32 %v16415_v37, %v8844_v9  ;;  %v8910_v26 = vmul.f32 %v16415_v37, %v8845_v1 }
 0x8f4   :  { %19904 = vst [vmem:[#allocation117_spill] sm:$0xff] %v16436_v46  ;;  %v8911_v18 = vmul.f32 %v16415_v37, %v8846_v27  ;;  %v8912_v51 = vmul.f32 %v16415_v37, %v8847_v54  ;;  %v8913_v62 = vmul.f32 %v16415_v37, %v8848_v2  ;;  %v8914_v29 = vmul.f32 %v16415_v37, %v8849_v53 }
 0x8f5   :  { %v8915_v41 = vmul.f32 %v16415_v37, %v8850_v35  ;;  %v8916_v19 = vmul.f32 %v16415_v37, %v8851_v17  ;;  %v8917_v9 = vmul.f32 %v16415_v37, %v8852_v8  ;;  %v8918_v1 = vmul.f32 %v16415_v37, %v8853_v38 }
 0x8f6   :  { %v8919_v27 = vmul.f32 %v16415_v37, %v8854_v11  ;;  %v8920_v54 = vmul.f32 %v16415_v37, %v8855_v63  ;;  %v8921_v2 = vmul.f32 %v16415_v37, %v8856_v44  ;;  %v8922_v40 = vmul.f32 %v16415_v37, %v8857_v30 }
 0x8f7   :  { %v8923_v53 = vmul.f32 %v16415_v37, %v8858_v16  ;;  %v8924_v46 = vmul.f32 %v16415_v37, %v8859_v61  ;;  %v8925_v35 = vmul.f32 %v16415_v37, %v8860_v25  ;;  %v8926_v17 = vmul.f32 %v16415_v37, %v8861_v56 }
 0x8f8   :  { %v8927_v8 = vmul.f32 %v16415_v37, %v8862_v50  ;;  %v8928_v38 = vmul.f32 %v16415_v37, %v8863_v57  ;;  %v8969_v11 = vadd.f32 %v16452_v21, %v8904_v22  ;;  %v8970_v63 = vadd.f32 %v16452_v21, %v8905_v60 }
 0x8f9   :  { %v8971_v44 = vadd.f32 %v16452_v21, %v8906_v23  ;;  %v8972_v30 = vadd.f32 %v16452_v21, %v8907_v33  ;;  %v8973_v16 = vadd.f32 %v16452_v21, %v8908_v43  ;;  %v8974_v61 = vadd.f32 %v16452_v21, %v8909_v10 }
 0x8fa   :  { %v8975_v25 = vadd.f32 %v16452_v21, %v8910_v26  ;;  %v8976_v56 = vadd.f32 %v16452_v21, %v8911_v18  ;;  %v8977_v50 = vadd.f32 %v16452_v21, %v8912_v51  ;;  %v8978_v57 = vadd.f32 %v16452_v21, %v8913_v62 }
 0x8fb   :  { %v8979_v22 = vadd.f32 %v16452_v21, %v8914_v29  ;;  %v8980_v60 = vadd.f32 %v16452_v21, %v8915_v41  ;;  %v8981_v23 = vadd.f32 %v16452_v21, %v8916_v19  ;;  %v8982_v33 = vadd.f32 %v16452_v21, %v8917_v9 }
 0x8fc   :  { %v8983_v43 = vadd.f32 %v16452_v21, %v8918_v1  ;;  %v8984_v10 = vadd.f32 %v16452_v21, %v8919_v27  ;;  %v8985_v26 = vadd.f32 %v16452_v21, %v8920_v54  ;;  %v8986_v18 = vadd.f32 %v16452_v21, %v8921_v2 }
 0x8fd   :  { %v8987_v51 = vadd.f32 %v16452_v21, %v8922_v40  ;;  %v8988_v62 = vadd.f32 %v16452_v21, %v8923_v53  ;;  %v8989_v29 = vadd.f32 %v16452_v21, %v8924_v46  ;;  %v8990_v41 = vadd.f32 %v16452_v21, %v8925_v35 }
 0x8fe   :  { %v8991_v19 = vadd.f32 %v16452_v21, %v8926_v17  ;;  %v8992_v9 = vadd.f32 %v16452_v21, %v8927_v8  ;;  %v8993_v1 = vadd.f32 %v16452_v21, %v8928_v38  ;;  %v9033_v27 = vadd.f32 %v8969_v11, %v16075_v5 }
 0x8ff   :  { %v16495_v54 = vadd.f32 %v8970_v63, %v16092_v45  ;;  %v16498_v2 = vadd.f32 %v8971_v44, %v16087_v3  ;;  %v16501_v40 = vadd.f32 %v8972_v30, %v16102_v31  ;;  %v16504_v46 = vadd.f32 %v8973_v16, %v16082_v59 }
 0x900   :  { %v16507_v53 = vadd.f32 %v8974_v61, %v16097_v12  ;;  %v16510_v35 = vadd.f32 %v8975_v25, %v16107_v7  ;;  %v16513_v5 = vadd.f32 %v8976_v56, %v16117_v28  ;;  %v16516_v45 = vadd.f32 %v8977_v50, %v16112_v20  ;;  %v19913_v61 = vld [vmem:[#allocation184_spill] sm:$0xff]  ;;  %v19915_v50 = vld [vmem:[#allocation26_spill] sm:$0xff] }
 0x901   :  { %v16519_v3 = vadd.f32 %v8978_v57, %v16122_v15  ;;  %v16522_v31 = vadd.f32 %v8979_v22, %v16132_v32  ;;  %v16525_v59 = vadd.f32 %v8980_v60, %v16127_v48  ;;  %v16528_v12 = vadd.f32 %v8981_v23, %v16138_v24  ;;  %v19905_v24 = vld [vmem:[#allocation71_spill] sm:$0xff] }
 0x902   :  { %v16531_v7 = vadd.f32 %v8982_v33, %v16148_v36  ;;  %v16534_v28 = vadd.f32 %v8983_v43, %v16143_v42  ;;  %v16537_v20 = vadd.f32 %v8984_v10, %v16153_v6  ;;  %v16540_v15 = vadd.f32 %v8985_v26, %v16163_v13  ;;  %v19906_v36 = vld [vmem:[#allocation85_spill] sm:$0xff]  ;;  %v19907_v42 = vld [vmem:[#allocation91_spill] sm:$0xff]  ;;  %v19908_v6 = vld [vmem:[#allocation76_spill] sm:$0xff] }
 0x903   :  { %v16543_v32 = vadd.f32 %v8986_v18, %v16158_v39  ;;  %v16546_v48 = vadd.f32 %v8987_v51, %v16168_v52  ;;  %v16549_v17 = vadd.f32 %v8988_v62, %v19905_v24  ;;  %v16552_v8 = vadd.f32 %v8989_v29, %v19906_v36  ;;  %v19909_v13 = vld [vmem:[#allocation61_spill] sm:$0xff]  ;;  %v19910_v39 = vld [vmem:[#allocation123_spill] sm:$0xff]  ;;  %v19921_v18 = vld [vmem:[#allocation28_spill] sm:$0xff] }
 0x904   :  { %v16555_v38 = vadd.f32 %v8990_v41, %v19907_v42  ;;  %v16558_v11 = vadd.f32 %v8991_v19, %v19908_v6  ;;  %v16561_v63 = vadd.f32 %v8992_v9, %v19909_v13  ;;  %v16564_v44 = vadd.f32 %v8993_v1, %v19910_v39  ;;  %v19911_v52 = vld [vmem:[#allocation27_spill] sm:$0xff]  ;;  %v19919_v43 = vld [vmem:[#allocation5_spill] sm:$0xff]  ;;  %v19927_v36 = vld [vmem:[#allocation192_spill] sm:$0xff] }
 0x905   :  { %v19912_v30 = vsub.f32 %v19911_v52, %v16059_v49  ;;  %v19914_v25 = vsub.f32 %v19913_v61, %v16059_v49  ;;  %v19916_v57 = vsub.f32 %v19915_v50, %v16059_v49  ;;  %v19917_v60 = vld [vmem:[#allocation187_spill] sm:$0xff]  ;;  %v19920_v10 = vsub.f32 %v19919_v43, %v16059_v49  ;;  %v19923_v29 = vld [vmem:[#allocation189_spill] sm:$0xff] }
 0x906   :  { %v19918_v23 = vsub.f32 %v19917_v60, %v16059_v49  ;;  %v19922_v51 = vsub.f32 %v19921_v18, %v16059_v49  ;;  %v19924_v41 = vsub.f32 %v19923_v29, %v16059_v49  ;;  %v19925_v9 = vld [vmem:[#allocation7_spill] sm:$0xff]  ;;  %v19928_v42 = vsub.f32 %v19927_v36, %v16059_v49  ;;  %v19934_v60 = vld [vmem:[#allocation34_spill] sm:$0xff] }
 0x907   :  { %v8868_v16 = vmul.f32 %v16345_v47, %v19912_v30  ;;  %v8869_v56 = vmul.f32 %v16345_v47, %v19914_v25  ;;  %v8870_v22 = vmul.f32 %v16345_v47, %v19916_v57  ;;  %v8872_v26 = vmul.f32 %v16345_v47, %v19920_v10  ;;  %v19929_v13 = vld [vmem:[#allocation31_spill] sm:$0xff] }
 0x908   :  { %v8871_v33 = vmul.f32 %v16345_v47, %v19918_v23  ;;  %v8873_v62 = vmul.f32 %v16345_v47, %v19922_v51  ;;  %v8874_v19 = vmul.f32 %v16345_v47, %v19924_v41  ;;  %v19926_v1 = vsub.f32 %v19925_v9, %v16059_v49  ;;  %v19931_v30 = vld [vmem:[#allocation35_spill] sm:$0xff]  ;;  %v19937_v51 = vld [vmem:[#allocation38_spill] sm:$0xff] }
 0x909   :  { %v8876_v6 = vmul.f32 %v16345_v47, %v19928_v42  ;;  %v19930_v39 = vsub.f32 %v19929_v13, %v16059_v49  ;;  %v19932_v61 = vsub.f32 %v19931_v30, %v16059_v49  ;;  %v19933_v50 = vsub.f32 %v19898_v55, %v16059_v49  ;;  %v19942_v30 = vld [vmem:[#allocation117_spill] sm:$0xff] }
 0x90a   :  { %v8875_v24 = vmul.f32 %v16345_v47, %v19926_v1  ;;  %v19935_v23 = vsub.f32 %v19934_v60, %v16059_v49  ;;  %v19936_v10 = vsub.f32 %v19900_v34, %v16059_v49  ;;  %v19938_v29 = vsub.f32 %v19937_v51, %v16059_v49  ;;  %v19940_v1 = vld [vmem:[#allocation199_spill] sm:$0xff] }
 0x90b   :  { %v8877_v52 = vmul.f32 %v16345_v47, %v19930_v39  ;;  %v8878_v25 = vmul.f32 %v16345_v47, %v19932_v61  ;;  %v8879_v57 = vmul.f32 %v16345_v47, %v19933_v50  ;;  %v19939_v55 = vsub.f32 %v19902_v0, %v16059_v49 }
 0x90c   :  { %v8880_v43 = vmul.f32 %v16345_v47, %v19935_v23  ;;  %v8881_v18 = vmul.f32 %v16345_v47, %v19936_v10  ;;  %v8882_v41 = vmul.f32 %v16345_v47, %v19938_v29  ;;  %v19941_v36 = vsub.f32 %v19940_v1, %v16059_v49 }
 0x90d   :  { %v8883_v9 = vmul.f32 %v16345_v47, %v19939_v55  ;;  %v8929_v34 = vmul.f32 %v16415_v37, %v16427_v4  ;;  %v8930_v13 = vmul.f32 %v16415_v37, %v16430_v58  ;;  %v8931_v39 = vmul.f32 %v16415_v37, %v16433_v14 }
 0x90e   :  { %v8884_v42 = vmul.f32 %v16345_v47, %v19941_v36  ;;  %v8932_v61 = vmul.f32 %v16415_v37, %v19942_v30  ;;  %v9097_v0 = vmax.f32 %v9033_v27, 0.0  ;;  %v9098_v50 = vmax.f32 %v16495_v54, 0.0 }
 0x90f   :  { %v9099_v60 = vmax.f32 %v16498_v2, 0.0  ;;  %v8933_v23 = vmul.f32 %v16415_v37, %v8868_v16  ;;  %v8934_v10 = vmul.f32 %v16415_v37, %v8869_v56  ;;  %v8935_v4 = vmul.f32 %v16415_v37, %v8870_v22 }
 0x910   :  { %v9100_v51 = vmax.f32 %v16501_v40, 0.0  ;;  %v8936_v58 = vmul.f32 %v16415_v37, %v8871_v33  ;;  %v8937_v14 = vmul.f32 %v16415_v37, %v8872_v26  ;;  %v8938_v29 = vmul.f32 %v16415_v37, %v8873_v62  ;;  %9161 = vst.msk [vmem:[%s17232_s2] sm:$0xff] %vm19943_vm13, %v9097_v0  ;;  %vm19970_vm13 = vmmov %vm19635_vm0 }
 0x911   :  { %v9101_v27 = vmax.f32 %v16504_v46, 0.0  ;;  %v8939_v54 = vmul.f32 %v16415_v37, %v8874_v19  ;;  %v8940_v2 = vmul.f32 %v16415_v37, %v8875_v24  ;;  %v8941_v16 = vmul.f32 %v16415_v37, %v8876_v6  ;;  %9162 = vst.msk [vmem:[%s17232_s2 + $0x8] sm:$0xff] %vm19944_vm3, %v9098_v50  ;;  %vm19972_vm3 = vmmov %vm19635_vm0 }
 0x912   :  { %v9102_v40 = vmax.f32 %v16507_v53, 0.0  ;;  %v8942_v46 = vmul.f32 %v16415_v37, %v8877_v52  ;;  %v8943_v56 = vmul.f32 %v16415_v37, %v8878_v25  ;;  %v8944_v22 = vmul.f32 %v16415_v37, %v8879_v57  ;;  %9163 = vst.msk [vmem:[%s17232_s2 + $0x10] sm:$0xff] %vm19945_vm4, %v9099_v60  ;;  %vm19977_vm4 = vmmov %vm19635_vm0 }
 0x913   :  { %v9103_v33 = vmax.f32 %v16510_v35, 0.0  ;;  %v8945_v53 = vmul.f32 %v16415_v37, %v8880_v43  ;;  %v8946_v26 = vmul.f32 %v16415_v37, %v8881_v18  ;;  %v8947_v62 = vmul.f32 %v16415_v37, %v8882_v41  ;;  %9164 = vst.msk [vmem:[%s17232_s2 + $0x18] sm:$0xff] %vm19946_vm14, %v9100_v51  ;;  %vm19979_vm14 = vmmov %vm19635_vm0 }
 0x914   :  { %v9104_v19 = vmax.f32 %v16513_v5, 0.0  ;;  %v8948_v35 = vmul.f32 %v16415_v37, %v8883_v9  ;;  %v8949_v24 = vmul.f32 %v16415_v37, %v8884_v42  ;;  %v8994_v6 = vadd.f32 %v16452_v21, %v8929_v34  ;;  %9165 = vst.msk [vmem:[%s17232_s2 + $0x20] sm:$0xff] %vm19947_vm1, %v9101_v27  ;;  %v16700_v9 = vpop.permute.xlu2 %8268  ;;  %vm19984_vm1 = vmmov %vm19635_vm0 }
 0x915   :  { %v9105_v52 = vmax.f32 %v16516_v45, 0.0  ;;  %v8995_v5 = vadd.f32 %v16452_v21, %v8930_v13  ;;  %v8996_v25 = vadd.f32 %v16452_v21, %v8931_v39  ;;  %v8997_v57 = vadd.f32 %v16452_v21, %v8932_v61  ;;  %9166 = vst.msk [vmem:[%s17232_s2 + $0x28] sm:$0xff] %vm19635_vm0, %v9102_v40 }
 0x916   :  { %v9106_v43 = vmax.f32 %v16519_v3, 0.0  ;;  %v8998_v45 = vadd.f32 %v16452_v21, %v8933_v23  ;;  %v8999_v18 = vadd.f32 %v16452_v21, %v8934_v10  ;;  %v9000_v41 = vadd.f32 %v16452_v21, %v8935_v4  ;;  %9167 = vst.msk [vmem:[%s17232_s2 + $0x30] sm:$0xff] %vm19948_vm12, %v9103_v33  ;;  %v19953_v4 = vld [vmem:[#allocation97_spill] sm:$0xff]  ;;  %vm19986_vm12 = vmmov %vm19635_vm0 }
 0x917   :  { %v9107_v55 = vmax.f32 %v16522_v31, 0.0  ;;  %v9001_v3 = vadd.f32 %v16452_v21, %v8936_v58  ;;  %v9002_v1 = vadd.f32 %v16452_v21, %v8937_v14  ;;  %v9003_v36 = vadd.f32 %v16452_v21, %v8938_v29  ;;  %9168 = vst.msk [vmem:[%s17232_s2 + $0x38] sm:$0xff] %vm19949_vm9, %v9104_v19  ;;  %v19956_v29 = vld [vmem:[#allocation9_spill] sm:$0xff]  ;;  %vm19988_vm9 = vmmov %vm19635_vm0 }
 0x918   :  { %v9108_v42 = vmax.f32 %v16525_v59, 0.0  ;;  %v9004_v31 = vadd.f32 %v16452_v21, %v8939_v54  ;;  %v9005_v34 = vadd.f32 %v16452_v21, %v8940_v2  ;;  %v9006_v13 = vadd.f32 %v16452_v21, %v8941_v16  ;;  %9169 = vst.msk [vmem:[%s17232_s2 + $0x40] sm:$0xff] %vm19950_vm5, %v9105_v52  ;;  %v19957_v54 = vld [vmem:[#allocation128_spill] sm:$0xff]  ;;  %vm19989_vm5 = vmmov %vm19635_vm0 }
 0x919   :  { %v9109_v39 = vmax.f32 %v16528_v12, 0.0  ;;  %v9007_v59 = vadd.f32 %v16452_v21, %v8942_v46  ;;  %v9008_v30 = vadd.f32 %v16452_v21, %v8943_v56  ;;  %v9009_v61 = vadd.f32 %v16452_v21, %v8944_v22  ;;  %9170 = vst.msk [vmem:[%s17232_s2 + $0x48] sm:$0xff] %vm19951_vm10, %v9106_v43  ;;  %v19960_v46 = vld [vmem:[#allocation92_spill] sm:$0xff]  ;;  %v19961_v22 = vld [vmem:[#allocation3_spill] sm:$0xff]  ;;  %vm19991_vm10 = vmmov %vm19635_vm0 }
 0x91a   :  { %v9110_v0 = vmax.f32 %v16531_v7, 0.0  ;;  %v9010_v12 = vadd.f32 %v16452_v21, %v8945_v53  ;;  %v9011_v50 = vadd.f32 %v16452_v21, %v8946_v26  ;;  %v9012_v60 = vadd.f32 %v16452_v21, %v8947_v62  ;;  %9171 = vst.msk [vmem:[%s17232_s2 + $0x50] sm:$0xff] %vm19952_vm7, %v9107_v55  ;;  %v19964_v62 = vld [vmem:[#allocation103_spill] sm:$0xff]  ;;  %v19967_v52 = vld [vmem:[#allocation8_spill] sm:$0xff]  ;;  %vm19992_vm7 = vmmov %vm19635_vm0 }
 0x91b   :  { %v9111_v23 = vmax.f32 %v16534_v28, 0.0  ;;  %v9013_v7 = vadd.f32 %v16452_v21, %v8948_v35  ;;  %v9014_v10 = vadd.f32 %v16452_v21, %v8949_v24  ;;  %v16741_v51 = vadd.f32 %v8994_v6, %v19953_v4  ;;  %9172 = vst.msk [vmem:[%s17232_s2 + $0x58] sm:$0xff] %vm19954_vm2, %v9108_v42  ;;  %v19955_v28 = vld [vmem:[#allocation126_spill] sm:$0xff]  ;;  %v19969_v43 = vld [vmem:[#allocation127_spill] sm:$0xff]  ;;  %vm19993_vm2 = vmmov %vm19635_vm0 }
 0x91c   :  { %v9112_v58 = vmax.f32 %v16537_v20, 0.0  ;;  %v16749_v14 = vadd.f32 %v8995_v5, %v19955_v28  ;;  %v16752_v27 = vadd.f32 %v8996_v25, %v19956_v29  ;;  %v16755_v2 = vadd.f32 %v8997_v57, %v19957_v54  ;;  %9173 = vst.msk [vmem:[%s17232_s2 + $0x60] sm:$0xff] %vm19958_vm15, %v9109_v39  ;;  %v19959_v20 = vld [vmem:[#allocation125_spill] sm:$0xff]  ;;  %v19965_v24 = vld [vmem:[#allocation202_spill] sm:$0xff]  ;;  %v16818_v42 = vpop.permute.xlu2 %8274  ;;  %v19975_v39 = vld [vmem:[#allocation115_spill] sm:$0xff] }
 0x91d   :  { %v9113_v16 = vmax.f32 %v16540_v15, 0.0  ;;  %v16763_v40 = vadd.f32 %v8998_v45, %v19959_v20  ;;  %v16766_v56 = vadd.f32 %v8999_v18, %v19960_v46  ;;  %v16769_v33 = vadd.f32 %v9000_v41, %v19961_v22  ;;  %9174 = vst.msk [vmem:[%s17232_s2 + $0x68] sm:$0xff] %vm19962_vm6, %v9110_v0  ;;  %v19963_v15 = vld [vmem:[#allocation104_spill] sm:$0xff]  ;;  %v19968_v25 = vld [vmem:[#allocation105_spill] sm:$0xff]  ;;  %v16805_v18 = vpop.permute.xlu0 %8270  ;;  %v19971_v41 = vld [vmem:[#allocation98_spill] sm:$0xff] }
 0x91e   :  { %v9114_v53 = vmax.f32 %v16543_v32, 0.0  ;;  %v16777_v26 = vadd.f32 %v9001_v3, %v19963_v15  ;;  %v16780_v19 = vadd.f32 %v9002_v1, %v19964_v62  ;;  %v9115_v35 = vmax.f32 %v16546_v48, 0.0  ;;  %9175 = vst.msk [vmem:[%s17232_s2 + $0x70] sm:$0xff] %vm19966_vm11, %v9111_v23  ;;  %v16789_v32 = vpop.permute.xlu1 %8266  ;;  %v19976_v0 = vld [vmem:[#allocation65_spill] sm:$0xff]  ;;  %v19978_v4 = vld [vmem:[#allocation11_spill] sm:$0xff]  ;;  %v19982_v54 = vld [vmem:[#allocation130_spill] sm:$0xff] }
 0x91f   :  { %v8811_v6 = vsub.f32 %v19965_v24, %v16059_v49  ;;  %v16792_v5 = vadd.f32 %v9003_v36, %v19967_v52  ;;  %v16795_v57 = vadd.f32 %v9004_v31, %v19968_v25  ;;  %v16798_v45 = vadd.f32 %v9005_v34, %v19969_v43  ;;  %9176 = vst.msk [vmem:[%s17232_s2 + $0x78] sm:$0xff] %vm19970_vm13, %v9112_v58  ;;  %v19974_v31 = vld [vmem:[#allocation129_spill] sm:$0xff]  ;;  %vm19996_vm15 = vmmov %vm19635_vm0 }
 0x920   :  { %v9116_v48 = vmax.f32 %v16549_v17, 0.0  ;;  %v16808_v55 = vadd.f32 %v9006_v13, %v19971_v41  ;;  %v9117_v3 = vmax.f32 %v16552_v8, 0.0  ;;  %9177 = vst.msk [vmem:[%s17232_s2 + $0x80] sm:$0xff] %vm19972_vm3, %v9113_v16  ;;  %v19973_v17 = vld [vmem:[#allocation41_spill] sm:$0xff]  ;;  %v16821_v34 = vadd.f32 %v9007_v59, %v19974_v31  ;;  %vm19997_vm6 = vmmov %vm19635_vm0 }
 0x921   :  { %v8886_v1 = vmul.f32 %v16345_v47, %v8811_v6  ;;  %v8810_v36 = vsub.f32 %v19973_v17, %v16059_v49  ;;  %v16824_v13 = vadd.f32 %v9008_v30, %v19975_v39  ;;  %v16827_v8 = vadd.f32 %v9009_v61, %v19976_v0  ;;  %9178 = vst.msk [vmem:[%s17232_s2 + $0x88] sm:$0xff] %vm19977_vm4, %v9114_v53  ;;  %v19980_v30 = vld [vmem:[#allocation45_spill] sm:$0xff]  ;;  %v19981_v61 = vld [vmem:[#allocation111_spill] sm:$0xff]  ;;  %vm19999_vm11 = vmmov %vm19635_vm0 }
 0x922   :  { %v9118_v23 = vmax.f32 %v16555_v38, 0.0  ;;  %v16835_v58 = vadd.f32 %v9010_v12, %v19978_v4  ;;  %v9119_v28 = vmax.f32 %v16558_v11, 0.0  ;;  %9179 = vst.msk [vmem:[%s17232_s2 + $0x90] sm:$0xff] %vm19979_vm14, %v9115_v35  ;;  %v8812_v38 = vsub.f32 %v19980_v30, %v16059_v49  ;;  %v19983_v12 = vld [vmem:[#allocation21_spill] sm:$0xff]  ;;  %vm20000_vm13 = vmmov %vm19635_vm0 }
 0x923   :  { %v8885_v59 = vmul.f32 %v16345_v47, %v8810_v36  ;;  %v16846_v29 = vadd.f32 %v9011_v50, %v19981_v61  ;;  %v16849_v16 = vadd.f32 %v9012_v60, %v19982_v54  ;;  %v16852_v20 = vadd.f32 %v9013_v7, %v19983_v12  ;;  %9180 = vst.msk [vmem:[%s17232_s2 + $0x98] sm:$0xff] %vm19984_vm1, %v9116_v48  ;;  %v19985_v46 = vld [vmem:[#allocation133_spill] sm:$0xff]  ;;  %vm20001_vm3 = vmmov %vm19635_vm0 }
 0x924   :  { %v9120_v11 = vmax.f32 %v16561_v63, 0.0  ;;  %v16860_v22 = vadd.f32 %v9014_v10, %v19985_v46  ;;  %v9121_v53 = vmax.f32 %v16564_v44, 0.0  ;;  %v8951_v50 = vmul.f32 %v16415_v37, %v8886_v1  ;;  %9181 = vst.msk [vmem:[%s17232_s2 + $0xa0] sm:$0xff] %vm19635_vm0, %v9117_v3  ;;  %v19987_v44 = vld [vmem:[#allocation204_spill] sm:$0xff]  ;;  %vm20003_vm4 = vmmov %vm19635_vm0 }
 0x925   :  { %v8887_v60 = vmul.f32 %v16345_v47, %v8812_v38  ;;  %v9122_v63 = vmax.f32 %v16741_v51, 0.0  ;;  %v9123_v7 = vmax.f32 %v16749_v14, 0.0  ;;  %v9124_v15 = vmax.f32 %v16752_v27, 0.0  ;;  %9182 = vst.msk [vmem:[%s17232_s2 + $0xa8] sm:$0xff] %vm19986_vm12, %v9118_v23  ;;  %v8277_v52 = vpop.permute.xlu0 %8276  ;;  %vm20005_vm14 = vmmov %vm19635_vm0 }
 0x926   :  { %v8814_v10 = vsub.f32 %v19987_v44, %v16059_v49  ;;  %v9125_v62 = vmax.f32 %v16755_v2, 0.0  ;;  %v9126_v35 = vmax.f32 %v16763_v40, 0.0  ;;  %v9127_v24 = vmax.f32 %v16766_v56, 0.0  ;;  %9183 = vst.msk [vmem:[%s17232_s2 + $0xb0] sm:$0xff] %vm19988_vm9, %v9119_v28  ;;  %v8273_v14 = vpop.permute.xlu1 %8272  ;;  %v19990_v40 = vld [vmem:[#allocation49_spill] sm:$0xff]  ;;  %vm20007_vm1 = vmmov %vm19635_vm0 }
 0x927   :  { %v8950_v51 = vmul.f32 %v16415_v37, %v8885_v59  ;;  %v9128_v27 = vmax.f32 %v16769_v33, 0.0  ;;  %v9129_v6 = vmax.f32 %v16777_v26, 0.0  ;;  %9184 = vst.msk [vmem:[%s17232_s2 + $0xb8] sm:$0xff] %vm19989_vm5, %v9120_v11  ;;  %v8813_v56 = vsub.f32 %v19990_v40, %v16059_v49  ;;  %v16903_v26 = vpop.permute.xlu2 %8280  ;;  %v20006_v40 = vld [vmem:[#allocation99_spill] sm:$0xff]  ;;  %vm20010_vm12 = vmmov %vm19635_vm0 }
 0x928   :  { %v8889_v2 = vmul.f32 %v16345_v47, %v8814_v10  ;;  %v9130_v25 = vmax.f32 %v16780_v19, 0.0  ;;  %v9131_v43 = vmax.f32 %v16792_v5, 0.0  ;;  %v9016_v48 = vadd.f32 %v16452_v21, %v8951_v50  ;;  %9185 = vst.msk [vmem:[%s17232_s2 + $0xc0] sm:$0xff] %vm19991_vm10, %v9121_v53  ;;  %vm20013_vm9 = vmmov %vm19635_vm0 }
 0x929   :  { %v8952_v33 = vmul.f32 %v16415_v37, %v8887_v60  ;;  %v9132_v41 = vmax.f32 %v16795_v57, 0.0  ;;  %v9133_v3 = vmax.f32 %v16798_v45, 0.0  ;;  %v9134_v1 = vmax.f32 %v16808_v55, 0.0  ;;  %9186 = vst.msk [vmem:[%s17232_s2 + $0xc8] sm:$0xff] %vm19992_vm7, %v9122_v63  ;;  %v19994_v45 = vld [vmem:[#allocation48_spill] sm:$0xff]  ;;  %vm20015_vm5 = vmmov %vm19635_vm0 }
 0x92a   :  { %v8888_v19 = vmul.f32 %v16345_v47, %v8813_v56  ;;  %v9135_v5 = vmax.f32 %v16821_v34, 0.0  ;;  %v9136_v17 = vmax.f32 %v16824_v13, 0.0  ;;  %9187 = vst.msk [vmem:[%s17232_s2 + $0xd0] sm:$0xff] %vm19993_vm2, %v9123_v7  ;;  %v9015_v57 = vadd.f32 %v16452_v21, %v8950_v51  ;;  %vm20017_vm10 = vmmov %vm19635_vm0 }
 0x92b   :  { %v8815_v55 = vsub.f32 %v19994_v45, %v16059_v49  ;;  %v9137_v36 = vmax.f32 %v16827_v8, 0.0  ;;  %v9138_v31 = vmax.f32 %v16835_v58, 0.0  ;;  %v8413_v0 = vsel %vm8173_vm8, %v16700_v9, 0.0  ;;  %9188 = vst.msk [vmem:[%s17232_s2 + $0xd8] sm:$0xff] %vm19996_vm15, %v9124_v15  ;;  %v19998_v9 = vld [vmem:[#allocation94_spill] sm:$0xff]  ;;  %v20002_v15 = vld [vmem:[#allocation207_spill] sm:$0xff]  ;;  %vm20019_vm7 = vmmov %vm19635_vm0 }
 0x92c   :  { %v8954_v23 = vmul.f32 %v16415_v37, %v8889_v2  ;;  %v16932_v4 = vadd.f32 %v9016_v48, %v8413_v0  ;;  %9189 = vst.msk [vmem:[%s17232_s2 + $0xe0] sm:$0xff] %vm19997_vm6, %v9125_v62  ;;  %v9017_v28 = vadd.f32 %v16452_v21, %v8952_v33  ;;  %v8817_v30 = vsub.f32 %v19998_v9, %v16059_v49  ;;  %v20012_v9 = vld [vmem:[#allocation110_spill] sm:$0xff]  ;;  %vm20020_vm2 = vmmov %vm19635_vm0 }
 0x92d   :  { %v8890_v59 = vmul.f32 %v16345_v47, %v8815_v55  ;;  %v9139_v38 = vmax.f32 %v16846_v29, 0.0  ;;  %v9140_v61 = vmax.f32 %v16849_v16, 0.0  ;;  %9190 = vst.msk [vmem:[%s17232_s2 + $0xe8] sm:$0xff] %vm19999_vm11, %v9126_v35  ;;  %v8412_v54 = vsel %vm8173_vm8, %v16789_v32, 0.0  ;;  %v16976_v10 = vpop.permute.xlu0 %8282  ;;  %v20009_v55 = vld [vmem:[#allocation90_spill] sm:$0xff]  ;;  %vm20021_vm15 = vmmov %vm19635_vm0 }
 0x92e   :  { %v8953_v12 = vmul.f32 %v16415_v37, %v8888_v19  ;;  %v9141_v11 = vmax.f32 %v16852_v20, 0.0  ;;  %v9142_v46 = vmax.f32 %v16860_v22, 0.0  ;;  %9191 = vst.msk [vmem:[%s17232_s2 + $0xf0] sm:$0xff] %vm20000_vm13, %v9127_v24  ;;  %v16958_v53 = vadd.f32 %v9015_v57, %v8412_v54  ;;  %v16961_v60 = vpop.permute.xlu1 %8278  ;;  %vm20023_vm6 = vmmov %vm19635_vm0 }
 0x92f   :  { %v8892_v50 = vmul.f32 %v16345_v47, %v8817_v30  ;;  %9192 = vst.msk [vmem:[%s17232_s2 + $0xf8] sm:$0xff] %vm20001_vm3, %v9128_v27  ;;  %v8414_v32 = vsel %vm8173_vm8, %v16805_v18, 0.0  ;;  %v8416_v63 = vsel %vm8173_vm8, %v16818_v42, 0.0  ;;  %v9019_v7 = vadd.f32 %v16452_v21, %v8954_v23  ;;  %v20004_v42 = vld [vmem:[#allocation80_spill] sm:$0xff]  ;;  %v16988_v51 = vpop.permute.xlu2 %8286  ;;  %vm20024_vm11 = vmmov %vm19635_vm0 }
 0x930   :  { %v8816_v44 = vsub.f32 %v20002_v15, %v16059_v49  ;;  %v9144_v62 = vmax.f32 %v16932_v4, 0.0  ;;  %9193 = vst.msk [vmem:[%s17232_s2 + $0x100] sm:$0xff] %vm20003_vm4, %v9129_v6  ;;  %v16983_v35 = vadd.f32 %v9017_v28, %v8414_v32  ;;  %v8955_v18 = vmul.f32 %v16415_v37, %v8890_v59  ;;  %vm20025_vm13 = vmmov %vm19635_vm0 }
 0x931   :  { %v8818_v24 = vsub.f32 %v20004_v42, %v16059_v49  ;;  %9194 = vst.msk [vmem:[%s17232_s2 + $0x108] sm:$0xff] %vm20005_vm14, %v9130_v25  ;;  %v8415_v27 = vsel %vm8173_vm8, %v8273_v14, 0.0  ;;  %v9018_v2 = vadd.f32 %v16452_v21, %v8953_v12  ;;  %v8820_v56 = vsub.f32 %v20006_v40, %v16059_v49  ;;  %v20008_v14 = vld [vmem:[#allocation79_spill] sm:$0xff]  ;;  %vm20026_vm3 = vmmov %vm19635_vm0 }
 0x932   :  { %v8891_v6 = vmul.f32 %v16345_v47, %v8816_v44  ;;  %9195 = vst.msk [vmem:[%s17232_s2 + $0x110] sm:$0xff] %vm20007_vm1, %v9131_v43  ;;  %v9143_v48 = vmax.f32 %v16958_v53, 0.0  ;;  %v8957_v33 = vmul.f32 %v16415_v37, %v8892_v50  ;;  %v8819_v19 = vsub.f32 %v20008_v14, %v16059_v49  ;;  %v20014_v12 = vld [vmem:[#allocation107_spill] sm:$0xff]  ;;  %vm20027_vm4 = vmmov %vm19635_vm0 }
 0x933   :  { %v8893_v25 = vmul.f32 %v16345_v47, %v8818_v24  ;;  %9196 = vst.msk [vmem:[%s17232_s2 + $0x118] sm:$0xff] %vm19635_vm0, %v9132_v41  ;;  %v17013_v57 = vadd.f32 %v9019_v7, %v8416_v63  ;;  %v8417_v45 = vsel %vm8173_vm8, %v8277_v52, 0.0  ;;  %v8895_v43 = vmul.f32 %v16345_v47, %v8820_v56  ;;  %v20011_v41 = vld [vmem:[#allocation63_spill] sm:$0xff]  ;;  %v20016_v7 = vld [vmem:[#allocation101_spill] sm:$0xff]  ;;  %v20018_v24 = vld [vmem:[#allocation84_spill] sm:$0xff] }
 0x934   :  { %v8821_v0 = vsub.f32 %v20009_v55, %v16059_v49  ;;  %9197 = vst.msk [vmem:[%s17232_s2 + $0x120] sm:$0xff] %vm20010_vm12, %v9133_v3  ;;  %v9020_v23 = vadd.f32 %v16452_v21, %v8955_v18  ;;  %v8894_v28 = vmul.f32 %v16345_v47, %v8819_v19  ;;  %v8823_v59 = vsub.f32 %v20011_v41, %v16059_v49  ;;  %vm20028_vm14 = vmmov %vm19635_vm0 }
 0x935   :  { %v8967_v52 = vmul.f32 %v16415_v37, %v20012_v9  ;;  %9198 = vst.msk [vmem:[%s17232_s2 + $0x128] sm:$0xff] %vm20013_vm9, %v9134_v1  ;;  %v17034_v30 = vadd.f32 %v9018_v2, %v8415_v27  ;;  %v8956_v54 = vmul.f32 %v16415_v37, %v8891_v6  ;;  %v8822_v50 = vsub.f32 %v20014_v12, %v16059_v49  ;;  %v8289_v18 = vpop.permute.xlu0 %8288  ;;  %vm20029_vm1 = vmmov %vm19635_vm0 }
 0x936   :  { %v8896_v3 = vmul.f32 %v16345_v47, %v8821_v0  ;;  %9199 = vst.msk [vmem:[%s17232_s2 + $0x130] sm:$0xff] %vm20015_vm5, %v9135_v5  ;;  %v8958_v32 = vmul.f32 %v16415_v37, %v8893_v25  ;;  %v8285_v63 = vpop.permute.xlu1 %8284  ;;  %v8898_v1 = vmul.f32 %v16345_v47, %v8823_v59  ;;  %v8824_v15 = vsub.f32 %v20016_v7, %v16059_v49  ;;  %vm20030_vm12 = vmmov %vm19635_vm0 }
 0x937   :  { %v17051_v44 = vadd.f32 %v16452_v21, %v8967_v52  ;;  %9200 = vst.msk [vmem:[%s17232_s2 + $0x138] sm:$0xff] %vm20017_vm10, %v9136_v17  ;;  %v9022_v34 = vadd.f32 %v16452_v21, %v8957_v33  ;;  %v8960_v5 = vmul.f32 %v16415_v37, %v8895_v43  ;;  %v8897_v42 = vmul.f32 %v16345_v47, %v8822_v50  ;;  %v8293_v6 = vpop.permute.xlu2 %8292  ;;  %v20022_v33 = vld [vmem:[#allocation112_spill] sm:$0xff]  ;;  %vm20031_vm9 = vmmov %vm19635_vm0 }
 0x938   :  { %v8826_v27 = vsub.f32 %v20018_v24, %v16059_v49  ;;  %9201 = vst.msk [vmem:[%s17232_s2 + $0x140] sm:$0xff] %vm20019_vm7, %v9137_v36  ;;  %v9145_v13 = vmax.f32 %v16983_v35, 0.0  ;;  %v8419_v17 = vsel %vm8173_vm8, %v16903_v26, 0.0  ;;  %v8959_v2 = vmul.f32 %v16415_v37, %v8894_v28  ;;  %vm20032_vm5 = vmmov %vm19635_vm0 }
 0x939   :  { %v8899_v40 = vmul.f32 %v16345_v47, %v8824_v15  ;;  %9202 = vst.msk [vmem:[%s17232_s2 + $0x148] sm:$0xff] %vm20020_vm2, %v9138_v31  ;;  %v9147_v8 = vmax.f32 %v17013_v57, 0.0  ;;  %v9021_v36 = vadd.f32 %v16452_v21, %v8956_v54  ;;  %v8961_v35 = vmul.f32 %v16415_v37, %v8896_v3  ;;  %vm20033_vm10 = vmmov %vm19635_vm0 }
 0x93a   :  { %v8901_v26 = vmul.f32 %v16345_v47, %v8826_v27  ;;  %9203 = vst.msk [vmem:[%s17232_s2 + $0x150] sm:$0xff] %vm20021_vm15, %v9139_v38  ;;  %v9084_v58 = vadd.f32 %v9020_v23, %v8417_v45  ;;  %v9023_v56 = vadd.f32 %v16452_v21, %v8958_v32  ;;  %v8963_v31 = vmul.f32 %v16415_v37, %v8898_v1  ;;  %vm20034_vm7 = vmmov %vm19635_vm0 }
 0x93b   :  { %v8825_v25 = vsub.f32 %v20022_v33, %v16059_v49  ;;  %9204 = vst.msk [vmem:[%s17232_s2 + $0x158] sm:$0xff] %vm20023_vm6, %v9140_v61  ;;  %v9146_v29 = vmax.f32 %v17034_v30, 0.0  ;;  %v9086_v14 = vadd.f32 %v9022_v34, %v8419_v17  ;;  %v9025_v38 = vadd.f32 %v16452_v21, %v8960_v5  ;;  %vm20035_vm2 = vmmov %vm19635_vm0 }
 0x93c   :  { %v8962_v19 = vmul.f32 %v16415_v37, %v8897_v42  ;;  %9205 = vst.msk [vmem:[%s17232_s2 + $0x160] sm:$0xff] %vm20024_vm11, %v9141_v11  ;;  %v8418_v49 = vsel %vm8173_vm8, %v16961_v60, 0.0  ;;  %v9024_v16 = vadd.f32 %v16452_v21, %v8959_v2  ;;  %v8964_v61 = vmul.f32 %v16415_v37, %v8899_v40  ;;  %vm20036_vm15 = vmmov %vm19635_vm0 }
 0x93d   :  { %v8900_v57 = vmul.f32 %v16345_v47, %v8825_v25  ;;  %9206 = vst.msk [vmem:[%s17232_s2 + $0x168] sm:$0xff] %vm20025_vm13, %v9142_v46  ;;  %v9085_v20 = vadd.f32 %v9021_v36, %v8418_v49  ;;  %v8420_v11 = vsel %vm8173_vm8, %v16976_v10, 0.0  ;;  %v9026_v60 = vadd.f32 %v16452_v21, %v8961_v35  ;;  %v8295_v23 = vpop.permute.xlu0 %8294  ;;  %vm20037_vm6 = vmmov %vm19635_vm0 }
 0x93e   :  { %v8966_v45 = vmul.f32 %v16415_v37, %v8901_v26  ;;  %9208 = vst.msk [vmem:[%s17232_s2 + $0x178] sm:$0xff] %vm20026_vm3, %v9144_v62  ;;  %v9148_v47 = vmax.f32 %v9084_v58, 0.0  ;;  %v9087_v22 = vadd.f32 %v9023_v56, %v8420_v11  ;;  %v8422_v46 = vsel %vm8173_vm8, %v16988_v51, 0.0  ;;  %v8291_v10 = vpop.permute.xlu1 %8290  ;;  %vm20038_vm11 = vmmov %vm19635_vm0 }
 0x93f   :  { %v9028_v43 = vadd.f32 %v16452_v21, %v8963_v31  ;;  %9207 = vst.msk [vmem:[%s17232_s2 + $0x170] sm:$0xff] %vm20027_vm4, %v9143_v48  ;;  %v9150_v4 = vmax.f32 %v9086_v14, 0.0  ;;  %v9089_v55 = vadd.f32 %v9025_v38, %v8422_v46  ;;  %v8421_v62 = vsel %vm8173_vm8, %v8285_v63, 0.0  ;;  %v8299_v48 = vpop.permute.xlu2 %8298  ;;  %vm20040_vm13 = vmmov %vm19635_vm0 }
 0x940   :  { %v9027_v0 = vadd.f32 %v16452_v21, %v8962_v19  ;;  %9209 = vst.msk [vmem:[%s17232_s2 + $0x180] sm:$0xff] %vm20028_vm14, %v9145_v13  ;;  %v9088_v51 = vadd.f32 %v9024_v16, %v8421_v62  ;;  %v8423_v53 = vsel %vm8173_vm8, %v8289_v18, 0.0  ;;  %v9029_v28 = vadd.f32 %v16452_v21, %v8964_v61  ;;  %vm20041_vm3 = vmmov %vm19635_vm0 }
 0x941   :  { %v8965_v41 = vmul.f32 %v16415_v37, %v8900_v57  ;;  %9211 = vst.msk [vmem:[%s17232_s2 + $0x190] sm:$0xff] %vm20029_vm1, %v9147_v8  ;;  %v9149_v59 = vmax.f32 %v9085_v20, 0.0  ;;  %v9090_v9 = vadd.f32 %v9026_v60, %v8423_v53  ;;  %v8425_v52 = vsel %vm8173_vm8, %v8293_v6, 0.0  ;;  %vm20042_vm4 = vmmov %vm19635_vm0 }
 0x942   :  { %v9031_v30 = vadd.f32 %v16452_v21, %v8966_v45  ;;  %9210 = vst.msk [vmem:[%s17232_s2 + $0x188] sm:$0xff] %vm19635_vm0, %v9146_v29  ;;  %v9151_v54 = vmax.f32 %v9087_v22, 0.0  ;;  %v9092_v3 = vadd.f32 %v9028_v43, %v8425_v52  ;;  %v8424_v37 = vsel %vm8173_vm8, %v8291_v10, 0.0 }
 0x943   :  { %v8428_v12 = vsel %vm8173_vm8, %v8299_v48, 0.0  ;;  %9212 = vst.msk [vmem:[%s17232_s2 + $0x198] sm:$0xff] %vm20030_vm12, %v9148_v47  ;;  %v9153_v50 = vmax.f32 %v9089_v55, 0.0  ;;  %v9091_v32 = vadd.f32 %v9027_v0, %v8424_v37  ;;  %v8426_v63 = vsel %vm8173_vm8, %v8295_v23, 0.0 }
 0x944   :  { %9214 = vst.msk [vmem:[%s17232_s2 + $0x1a8] sm:$0xff] %vm20031_vm9, %v9150_v4  ;;  %v9152_v1 = vmax.f32 %v9088_v51, 0.0  ;;  %v9093_v7 = vadd.f32 %v9029_v28, %v8426_v63  ;;  %v9030_v15 = vadd.f32 %v16452_v21, %v8965_v41  ;;  %v9154_v34 = vmax.f32 %v9090_v9, 0.0 }
 0x945   :  { %9213 = vst.msk [vmem:[%s17232_s2 + $0x1a0] sm:$0xff] %vm20032_vm5, %v9149_v59  ;;  %v9095_v5 = vadd.f32 %v9031_v30, %v8428_v12  ;;  %v9156_v18 = vmax.f32 %v9092_v3, 0.0  ;;  %v9155_v21 = vmax.f32 %v9091_v32, 0.0  ;;  %v8301_v27 = vpop.permute.xlu0 %8300 }
 0x946   :  { %9215 = vst.msk [vmem:[%s17232_s2 + $0x1b0] sm:$0xff] %vm20033_vm10, %v9151_v54  ;;  %v8297_v42 = vpop.permute.xlu1 %8296  ;;  %v9157_v13 = vmax.f32 %v9093_v7, 0.0  ;;  %v8429_v2 = vsel %vm8173_vm8, %v8301_v27, 0.0 }
 0x947   :  { %9217 = vst.msk [vmem:[%s17232_s2 + $0x1c0] sm:$0xff] %vm20034_vm7, %v9153_v50  ;;  %v8427_v24 = vsel %vm8173_vm8, %v8297_v42, 0.0  ;;  %v9159_v6 = vmax.f32 %v9095_v5, 0.0  ;;  %v9096_v40 = vadd.f32 %v17051_v44, %v8429_v2  ;;  %vm20039_vm8 = vmmov %vm19635_vm0 }
 0x948   :  { %9216 = vst.msk [vmem:[%s17232_s2 + $0x1b8] sm:$0xff] %vm20035_vm2, %v9152_v1  ;;  %v9094_v17 = vadd.f32 %v9030_v15, %v8427_v24 }
 0x949   :  { %9218 = vst.msk [vmem:[%s17232_s2 + $0x1c8] sm:$0xff] %vm20036_vm15, %v9154_v34  ;;  %v9160_v39 = vmax.f32 %v9096_v40, 0.0 }
 0x94a   :  { %9220 = vst.msk [vmem:[%s17232_s2 + $0x1d8] sm:$0xff] %vm20037_vm6, %v9156_v18  ;;  %v9158_v8 = vmax.f32 %v9094_v17, 0.0 }
 0x94b   :  { %9219 = vst.msk [vmem:[%s17232_s2 + $0x1d0] sm:$0xff] %vm20038_vm11, %v9155_v21 }
 0x94c   :  { %9221 = vst.msk [vmem:[%s17232_s2 + $0x1e0] sm:$0xff] %vm20039_vm8, %v9157_v13 }
 0x94d   :  { %9223 = vst.msk [vmem:[%s17232_s2 + $0x1f0] sm:$0xff] %vm20040_vm13, %v9159_v6 }
 0x94e   :  { %9222 = vst.msk [vmem:[%s17232_s2 + $0x1e8] sm:$0xff] %vm20041_vm3, %v9158_v8 }
 0x94f   :  { %9224 = vst.msk [vmem:[%s17232_s2 + $0x1f8] sm:$0xff] %vm20042_vm4, %v9160_v39 }

</bundles_post_ra>
